<compile_context>
chip_gen: v5e
topology: v5e:2x2
jax: 0.10.0
libtpu: 0.0.40
codegen_flags: <defaults>
</compile_context>

<pallas_src>
import functools

import jax
import jax.numpy as jnp
from jax import lax
from jax.experimental import pallas as pl
from jax.experimental.pallas import tpu as pltpu

NEG_BIG = -1e30  # maxpool pad sentinel; every 3x3/s1/p1 window has >= 1 real element


# ----------------------------- Pallas kernel --------------------------------

def make_inception_kernel(H, W, C1, C2r, C3r, mxu_dtype):
    """Builds the fused inception kernel for a (B, H*W, C) flattened layout."""

    def kernel(x_ref, wx_ref, wm_ref, bred_ref, w2b_ref, b2b_ref,
               w3b_ref, b3b_ref, o_ref, xp_sc, z2p_sc, z3p_sc):
        B, HW, Cin = x_ref.shape
        BHW = B * HW

        def write_halo(ref, p, value):
            # Thin constant halo strips, rewritten every step (megacore-safe).
            _, Hp, Wp, C = ref.shape
            dt = ref.dtype
            ref[:, 0:p, :, :] = jnp.full((B, p, Wp, C), value, dt)
            ref[:, Hp - p:Hp, :, :] = jnp.full((B, p, Wp, C), value, dt)
            ref[:, :, 0:p, :] = jnp.full((B, Hp, p, C), value, dt)
            ref[:, :, Wp - p:Wp, :] = jnp.full((B, Hp, p, C), value, dt)

        def conv_kxk(zp_ref, K, w_ref, b_ref, Cr):
            # Shift-and-accumulate "same" conv: K*K small matmuls on the idle MXU.
            acc = None
            for dy in range(K):
                for dx in range(K):
                    tap = dy * K + dx
                    win = zp_ref[:, dy:dy + H, dx:dx + W, :]      # (B,H,W,Cr) mxu dtype
                    win2 = win.reshape(BHW, Cr)
                    w_tap = w_ref[tap * Cr:(tap + 1) * Cr, :]     # (Cr, Cout)
                    part = jnp.dot(win2, w_tap,
                                   preferred_element_type=jnp.float32)
                    acc = part if acc is None else acc + part
            return jnp.maximum(acc + b_ref[...], 0.0)             # (BHW, Cout) f32

        x = x_ref[...]                                            # (B, HW, Cin) f32

        # ---- 3x3/s1/p1 maxpool: padded VMEM scratch, separable, f32 compares ----
        write_halo(xp_sc, 1, NEG_BIG)
        xp_sc[:, 1:H + 1, 1:W + 1, :] = x.reshape(B, H, W, Cin)
        rowmax = jnp.maximum(
            jnp.maximum(xp_sc[:, :, 0:W, :], xp_sc[:, :, 1:W + 1, :]),
            xp_sc[:, :, 2:W + 2, :])                              # (B, H+2, W, Cin)
        m = jnp.maximum(jnp.maximum(rowmax[:, 0:H], rowmax[:, 1:H + 1]),
                        rowmax[:, 2:H + 2])                       # (B, H, W, Cin)

        # ---- all four 1x1 convs fused: [b1 | b2r | b3r | b4], one epilogue ----
        x2 = x.reshape(BHW, Cin).astype(mxu_dtype)
        m2 = m.reshape(BHW, Cin).astype(mxu_dtype)
        red = jnp.dot(x2, wx_ref[...], preferred_element_type=jnp.float32)
        red = red + jnp.dot(m2, wm_ref[...], preferred_element_type=jnp.float32)
        red = jnp.maximum(red + bred_ref[...], 0.0)               # (BHW, Cred) f32

        b1 = red[:, :C1]
        z2 = red[:, C1:C1 + C2r]
        z3 = red[:, C1 + C2r:C1 + C2r + C3r]
        b4 = red[:, C1 + C2r + C3r:]

        # ---- 3x3 branch: cast to MXU dtype BEFORE padding (persistent scratch) ----
        write_halo(z2p_sc, 1, 0.0)
        z2p_sc[:, 1:H + 1, 1:W + 1, :] = z2.reshape(B, H, W, C2r).astype(z2p_sc.dtype)
        b2 = conv_kxk(z2p_sc, 3, w2b_ref, b2b_ref, C2r)

        # ---- 5x5 branch ----
        write_halo(z3p_sc, 2, 0.0)
        z3p_sc[:, 2:H + 2, 2:W + 2, :] = z3.reshape(B, H, W, C3r).astype(z3p_sc.dtype)
        b3 = conv_kxk(z3p_sc, 5, w3b_ref, b3b_ref, C3r)

        # ---- channel concat inside the kernel; single (B, HW, Ctot) store ----
        # TODO(synk): Ctot=40 < 128 lanes -> masked vst; padding to 128 + wrapper
        # slice only pays off if stores dominate (not at these sizes).
        out = jnp.concatenate([b1, b2, b3, b4], axis=-1)          # (BHW, Ctot) f32
        o_ref[...] = out.reshape(B, HW, out.shape[-1]).astype(o_ref.dtype)

    return kernel


def _pick_images_per_step(N, H, W, Cin, C2r, C3r, Ctot):
    """Largest divisor of N that keeps >=2 grid steps (v7x dual-TC) and fits VMEM."""
    per_image = 4 * (2 * H * W * (Cin + Ctot)            # in/out blocks, double-buffered
                     + (H + 2) * (W + 2) * (Cin + C2r)    # padded scratches (f32 bound)
                     + (H + 4) * (W + 4) * C3r)
    budget = 24 * 1024 * 1024        # conservative vs v7x's 64 MiB physical VMEM
    cap = max(1, budget // max(per_image, 1))
    best = 1
    for b in range(1, N + 1):
        if N % b == 0 and b <= cap and (N // b) >= min(2, N):
            best = b
    return best


# ------------------------------ wrapper --------------------------------------

@functools.partial(jax.jit, static_argnames=("mxu_dtype",))
def inception_block(x_nchw, params, mxu_dtype=jnp.bfloat16):
    x = jnp.transpose(x_nchw, (0, 2, 3, 1))                 # NCHW -> NHWC
    N, H, W, Cin = x.shape
    x_flat = x.reshape(N, H * W, Cin)                        # free contiguous reshape

    C1 = params["b1_w"].shape[1]
    C2r, C2 = params["b2b_w"].shape[2], params["b2b_w"].shape[3]
    C3r, C3 = params["b3b_w"].shape[2], params["b3b_w"].shape[3]
    C4 = params["b4_w"].shape[1]
    Ctot = C1 + C2 + C3 + C4
    f32 = jnp.float32

    # Fused 1x1 weights: x path [w1 | w2a | w3a | 0], maxpool path [0 | 0 | 0 | w4].
    wx = jnp.concatenate([params["b1_w"], params["b2a_w"], params["b3a_w"],
                          jnp.zeros((Cin, C4), f32)], axis=1).astype(mxu_dtype)
    wm = jnp.concatenate([jnp.zeros((Cin, C1 + C2r + C3r), f32),
                          params["b4_w"]], axis=1).astype(mxu_dtype)
    bred = jnp.concatenate([params["b1_b"], params["b2a_b"], params["b3a_b"],
                            params["b4_b"]])[None, :]
    # KxK weights laid out (K*K*Cr, Cout); tap slice k*Cr:(k+1)*Cr == w[dy, dx].
    w2b = params["b2b_w"].reshape(9 * C2r, C2).astype(mxu_dtype)
    w3b = params["b3b_w"].reshape(25 * C3r, C3).astype(mxu_dtype)
    b2b = params["b2b_b"][None, :]
    b3b = params["b3b_b"][None, :]

    B = _pick_images_per_step(N, H, W, Cin, C2r, C3r, Ctot)
    grid = (N // B,)

    kernel = make_inception_kernel(H, W, C1, C2r, C3r, mxu_dtype)
    const2d = lambda n: (0, 0)   # resident weight/bias blocks

    out_flat = pl.pallas_call(
        kernel,
        out_shape=jax.ShapeDtypeStruct((N, H * W, Ctot), x.dtype),
        grid=grid,
        in_specs=[
            pl.BlockSpec((B, H * W, Cin), lambda n: (n, 0, 0)),
            pl.BlockSpec(wx.shape, const2d),
            pl.BlockSpec(wm.shape, const2d),
            pl.BlockSpec(bred.shape, const2d),
            pl.BlockSpec(w2b.shape, const2d),
            pl.BlockSpec(b2b.shape, const2d),
            pl.BlockSpec(w3b.shape, const2d),
            pl.BlockSpec(b3b.shape, const2d),
        ],
        out_specs=pl.BlockSpec((B, H * W, Ctot), lambda n: (n, 0, 0)),
        scratch_shapes=[
            pltpu.VMEM((B, H + 2, W + 2, Cin), jnp.float32),   # maxpool pad (f32)
            pltpu.VMEM((B, H + 2, W + 2, C2r), mxu_dtype),     # 3x3 pad (MXU dtype)
            pltpu.VMEM((B, H + 4, W + 4, C3r), mxu_dtype),     # 5x5 pad (MXU dtype)
        ],
        compiler_params=pltpu.CompilerParams(
            dimension_semantics=("parallel",),        # shards grid across v7x's 2 TCs
            vmem_limit_bytes=48 * 1024 * 1024,        # < v7x 64 MiB; v5e/v6e have 128
        ),
    )(x_flat, wx, wm, bred, w2b, b2b, w3b, b3b)

    out_nhwc = out_flat.reshape(N, H, W, Ctot)
    # TODO(synk): NCHW<->NHWC transposes stay in XLA to preserve the module's
    # NCHW interface; keep the surrounding graph NHWC to drop them entirely.
    return jnp.transpose(out_nhwc, (0, 3, 1, 2))


# -------------------------- params / reference --------------------------------

def init_params(key, arch, in_channels):
    ks = jax.random.split(key, 12)
    def conv_w(k, kh, cin, cout):
        return jax.random.normal(k, (kh, kh, cin, cout), jnp.float32) * 0.1
    def conv_b(k, cout):
        return jax.random.normal(k, (cout,), jnp.float32) * 0.1
    return {
        "b1_w": conv_w(ks[0], 1, in_channels, arch[0])[0, 0],  "b1_b": conv_b(ks[1], arch[0]),
        "b2a_w": conv_w(ks[2], 1, in_channels, arch[1])[0, 0], "b2a_b": conv_b(ks[3], arch[1]),
        "b2b_w": conv_w(ks[4], 3, arch[1], arch[2]),           "b2b_b": conv_b(ks[5], arch[2]),
        "b3a_w": conv_w(ks[6], 1, in_channels, arch[3])[0, 0], "b3a_b": conv_b(ks[7], arch[3]),
        "b3b_w": conv_w(ks[8], 5, arch[3], arch[4]),           "b3b_b": conv_b(ks[9], arch[4]),
        "b4_w": conv_w(ks[10], 1, in_channels, arch[5])[0, 0], "b4_b": conv_b(ks[11], arch[5]),
    }


def _conv_ref(x, w, b, pad):
    dn = lax.conv_dimension_numbers(x.shape, w.shape, ("NHWC", "HWIO", "NHWC"))
    y = lax.conv_general_dilated(x, w, (1, 1), [(pad, pad), (pad, pad)],
                                 dimension_numbers=dn,
                                 precision=lax.Precision.HIGHEST)
    return jnp.maximum(y + b, 0.0)


def inception_block_ref(x_nchw, params):
    x = jnp.transpose(x_nchw, (0, 2, 3, 1))
    w1 = params["b1_w"][None, None]
    w2a = params["b2a_w"][None, None]
    w3a = params["b3a_w"][None, None]
    w4 = params["b4_w"][None, None]

    b1 = _conv_ref(x, w1, params["b1_b"], 0)
    b2 = _conv_ref(_conv_ref(x, w2a, params["b2a_b"], 0), params["b2b_w"], params["b2b_b"], 1)
    b3 = _conv_ref(_conv_ref(x, w3a, params["b3a_b"], 0), params["b3b_w"], params["b3b_b"], 2)
    mp = lax.reduce_window(x, -jnp.inf, lax.max, (1, 3, 3, 1), (1, 1, 1, 1),
                           [(0, 0), (1, 1), (1, 1), (0, 0)])
    b4 = _conv_ref(mp, w4, params["b4_b"], 0)
    out = jnp.concatenate([b1, b2, b3, b4], axis=-1)
    return jnp.transpose(out, (0, 3, 1, 2))


# --------------------------------- main ---------------------------------------

if __name__ == "__main__":
    key = jax.random.PRNGKey(0)
    k_x, k_p = jax.random.split(key)

    in_channels = 4
    arch = [8, 8, 16, 4, 8, 8]          # [b1, b2_reduce, b2, b3_reduce, b3, b4]
    x = jax.random.normal(k_x, (2, in_channels, 16, 16), jnp.float32)   # NCHW

    params = init_params(k_p, arch, in_channels)
    ref = inception_block_ref(x, params)
    c_out = arch[0] + arch[2] + arch[4] + arch[5]

    # Verification path: f32 MXU operands -> tight tolerance vs. f32 reference.
    out_f32 = jax.block_until_ready(inception_block(x, params, mxu_dtype=jnp.float32))
    assert out_f32.shape == (2, c_out, 16, 16), out_f32.shape
    assert jnp.allclose(out_f32, ref, atol=5e-4, rtol=5e-4), \
        float(jnp.max(jnp.abs(out_f32 - ref)))

    # Performance path (default): bf16 MXU operands, f32 accumulation/epilogue.
    # 5e-2 tolerance is the expected bf16-operand error, not a bug.
    out = jax.block_until_ready(inception_block(x, params))
    assert out.shape == (2, c_out, 16, 16), out.shape
    assert jnp.allclose(out, ref, atol=5e-2, rtol=5e-2), \
        float(jnp.max(jnp.abs(out - ref)))

    print("KERNEL_OK")
</pallas_src>

<mosaic_0001>
module attributes {stable_mosaic.version = 11 : i64} {
  func.func @kernel(%arg0: i32, %arg1: memref<1x256x4xf32, #tpu.memory_space<vmem>>, %arg2: memref<4x28xf32, #tpu.memory_space<vmem>>, %arg3: memref<4x28xf32, #tpu.memory_space<vmem>>, %arg4: memref<1x28xf32, #tpu.memory_space<vmem>>, %arg5: memref<72x16xf32, #tpu.memory_space<vmem>>, %arg6: memref<1x16xf32, #tpu.memory_space<vmem>>, %arg7: memref<100x8xf32, #tpu.memory_space<vmem>>, %arg8: memref<1x8xf32, #tpu.memory_space<vmem>>, %arg9: memref<1x256x40xf32, #tpu.memory_space<vmem>>, %arg10: memref<1x18x18x4xf32, #tpu.memory_space<vmem>>, %arg11: memref<1x18x18x8xf32, #tpu.memory_space<vmem>>, %arg12: memref<1x20x20x4xf32, #tpu.memory_space<vmem>>) attributes {dimension_semantics = [#tpu.dimension_semantics<parallel>], iteration_bounds = array<i64: 2>, scalar_prefetch = 0 : i64, scratch_operands = 3 : i64, tpu.core_type = #tpu.core_type<tc>, window_params = [{transform_indices = @transform_0, window_bounds = array<i64: 1, 256, 4>}, {pipeline_mode = #tpu.pipeline_mode<synchronous>, transform_indices = @transform_1, window_bounds = array<i64: 4, 28>}, {pipeline_mode = #tpu.pipeline_mode<synchronous>, transform_indices = @transform_2, window_bounds = array<i64: 4, 28>}, {pipeline_mode = #tpu.pipeline_mode<synchronous>, transform_indices = @transform_3, window_bounds = array<i64: 1, 28>}, {pipeline_mode = #tpu.pipeline_mode<synchronous>, transform_indices = @transform_4, window_bounds = array<i64: 72, 16>}, {pipeline_mode = #tpu.pipeline_mode<synchronous>, transform_indices = @transform_5, window_bounds = array<i64: 1, 16>}, {pipeline_mode = #tpu.pipeline_mode<synchronous>, transform_indices = @transform_6, window_bounds = array<i64: 100, 8>}, {pipeline_mode = #tpu.pipeline_mode<synchronous>, transform_indices = @transform_7, window_bounds = array<i64: 1, 8>}, {transform_indices = @transform_8, window_bounds = array<i64: 1, 256, 40>}]} {
    %c0 = arith.constant 0 : index
    %c0_0 = arith.constant 0 : index
    %c0_1 = arith.constant 0 : index
    %0 = vector.load %arg1[%c0, %c0_0, %c0_1] : memref<1x256x4xf32, #tpu.memory_space<vmem>>, vector<1x256x4xf32>
    %cst = arith.constant -1.000000e+30 : f32
    %1 = vector.broadcast %cst : f32 to vector<1x1x18x4xf32>
    %c0_2 = arith.constant 0 : index
    %c0_3 = arith.constant 0 : index
    %c0_4 = arith.constant 0 : index
    %c0_5 = arith.constant 0 : index
    %2 = vector.load %arg10[%c0_2, %c0_3, %c0_4, %c0_5] : memref<1x18x18x4xf32, #tpu.memory_space<vmem>>, vector<1x1x18x4xf32>
    tpu.vector_store %arg10[%c0_2, %c0_3, %c0_4, %c0_5], %1 {strides = array<i32>} : memref<1x18x18x4xf32, #tpu.memory_space<vmem>>, vector<1x1x18x4xf32>,
    %cst_6 = arith.constant -1.000000e+30 : f32
    %3 = vector.broadcast %cst_6 : f32 to vector<1x1x18x4xf32>
    %c0_7 = arith.constant 0 : index
    %c17 = arith.constant 17 : index
    %c0_8 = arith.constant 0 : index
    %c0_9 = arith.constant 0 : index
    %4 = vector.load %arg10[%c0_7, %c17, %c0_8, %c0_9] : memref<1x18x18x4xf32, #tpu.memory_space<vmem>>, vector<1x1x18x4xf32>
    tpu.vector_store %arg10[%c0_7, %c17, %c0_8, %c0_9], %3 {strides = array<i32>} : memref<1x18x18x4xf32, #tpu.memory_space<vmem>>, vector<1x1x18x4xf32>,
    %cst_10 = arith.constant -1.000000e+30 : f32
    %5 = vector.broadcast %cst_10 : f32 to vector<1x18x1x4xf32>
    %c0_11 = arith.constant 0 : index
    %c0_12 = arith.constant 0 : index
    %c0_13 = arith.constant 0 : index
    %c0_14 = arith.constant 0 : index
    %6 = vector.load %arg10[%c0_11, %c0_12, %c0_13, %c0_14] : memref<1x18x18x4xf32, #tpu.memory_space<vmem>>, vector<1x18x1x4xf32>
    tpu.vector_store %arg10[%c0_11, %c0_12, %c0_13, %c0_14], %5 {strides = array<i32>} : memref<1x18x18x4xf32, #tpu.memory_space<vmem>>, vector<1x18x1x4xf32>,
    %cst_15 = arith.constant -1.000000e+30 : f32
    %7 = vector.broadcast %cst_15 : f32 to vector<1x18x1x4xf32>
    %c0_16 = arith.constant 0 : index
    %c0_17 = arith.constant 0 : index
    %c17_18 = arith.constant 17 : index
    %c0_19 = arith.constant 0 : index
    %8 = vector.load %arg10[%c0_16, %c0_17, %c17_18, %c0_19] : memref<1x18x18x4xf32, #tpu.memory_space<vmem>>, vector<1x18x1x4xf32>
    tpu.vector_store %arg10[%c0_16, %c0_17, %c17_18, %c0_19], %7 {strides = array<i32>} : memref<1x18x18x4xf32, #tpu.memory_space<vmem>>, vector<1x18x1x4xf32>,
    %9 = vector.shape_cast %0 : vector<1x256x4xf32> to vector<1x16x16x4xf32>
    %c0_20 = arith.constant 0 : index
    %c1 = arith.constant 1 : index
    %c1_21 = arith.constant 1 : index
    %c0_22 = arith.constant 0 : index
    %10 = vector.load %arg10[%c0_20, %c1, %c1_21, %c0_22] : memref<1x18x18x4xf32, #tpu.memory_space<vmem>>, vector<1x16x16x4xf32>
    tpu.vector_store %arg10[%c0_20, %c1, %c1_21, %c0_22], %9 {strides = array<i32>} : memref<1x18x18x4xf32, #tpu.memory_space<vmem>>, vector<1x16x16x4xf32>,
    %c0_23 = arith.constant 0 : index
    %c0_24 = arith.constant 0 : index
    %c0_25 = arith.constant 0 : index
    %c0_26 = arith.constant 0 : index
    %11 = vector.load %arg10[%c0_23, %c0_24, %c0_25, %c0_26] : memref<1x18x18x4xf32, #tpu.memory_space<vmem>>, vector<1x18x16x4xf32>
    %c0_27 = arith.constant 0 : index
    %c0_28 = arith.constant 0 : index
    %c1_29 = arith.constant 1 : index
    %c0_30 = arith.constant 0 : index
    %12 = vector.load %arg10[%c0_27, %c0_28, %c1_29, %c0_30] : memref<1x18x18x4xf32, #tpu.memory_space<vmem>>, vector<1x18x16x4xf32>
    %13 = arith.maximumf %11, %12 : vector<1x18x16x4xf32>
    %c0_31 = arith.constant 0 : index
    %c0_32 = arith.constant 0 : index
    %c2 = arith.constant 2 : index
    %c0_33 = arith.constant 0 : index
    %14 = vector.load %arg10[%c0_31, %c0_32, %c2, %c0_33] : memref<1x18x18x4xf32, #tpu.memory_space<vmem>>, vector<1x18x16x4xf32>
    %15 = arith.maximumf %13, %14 : vector<1x18x16x4xf32>
    %16 = vector.extract_strided_slice %15 {offsets = [0, 0, 0, 0], sizes = [1, 16, 16, 4], strides = [1, 1, 1, 1]} : vector<1x18x16x4xf32> to vector<1x16x16x4xf32>
    %17 = vector.extract_strided_slice %15 {offsets = [0, 1, 0, 0], sizes = [1, 16, 16, 4], strides = [1, 1, 1, 1]} : vector<1x18x16x4xf32> to vector<1x16x16x4xf32>
    %18 = arith.maximumf %16, %17 : vector<1x16x16x4xf32>
    %19 = vector.extract_strided_slice %15 {offsets = [0, 2, 0, 0], sizes = [1, 16, 16, 4], strides = [1, 1, 1, 1]} : vector<1x18x16x4xf32> to vector<1x16x16x4xf32>
    %20 = arith.maximumf %18, %19 : vector<1x16x16x4xf32>
    %21 = vector.shape_cast %0 : vector<1x256x4xf32> to vector<256x4xf32>
    %22 = vector.shape_cast %20 : vector<1x16x16x4xf32> to vector<256x4xf32>
    %c0_34 = arith.constant 0 : index
    %c0_35 = arith.constant 0 : index
    %23 = vector.load %arg2[%c0_34, %c0_35] : memref<4x28xf32, #tpu.memory_space<vmem>>, vector<4x28xf32>
    %cst_36 = arith.constant dense<0.000000e+00> : vector<256x28xf32>
    %24 = tpu.matmul %21, %23, %cst_36 {dimension_numbers = #tpu.dot_dimension_numbers<[1], [0], [0], [1], [0, 0, 1, 1], [], []>} : vector<256x4xf32>, vector<4x28xf32>, vector<256x28xf32> -> vector<256x28xf32>
    %c0_37 = arith.constant 0 : index
    %c0_38 = arith.constant 0 : index
    %25 = vector.load %arg3[%c0_37, %c0_38] : memref<4x28xf32, #tpu.memory_space<vmem>>, vector<4x28xf32>
    %cst_39 = arith.constant dense<0.000000e+00> : vector<256x28xf32>
    %26 = tpu.matmul %22, %25, %cst_39 {dimension_numbers = #tpu.dot_dimension_numbers<[1], [0], [0], [1], [0, 0, 1, 1], [], []>} : vector<256x4xf32>, vector<4x28xf32>, vector<256x28xf32> -> vector<256x28xf32>
    %27 = arith.addf %24, %26 : vector<256x28xf32>
    %c0_40 = arith.constant 0 : index
    %c0_41 = arith.constant 0 : index
    %28 = vector.load %arg4[%c0_40, %c0_41] : memref<1x28xf32, #tpu.memory_space<vmem>>, vector<1x28xf32>
    %29 = vector.broadcast %28 : vector<1x28xf32> to vector<256x28xf32>
    %30 = arith.addf %27, %29 : vector<256x28xf32>
    %cst_42 = arith.constant 0.000000e+00 : f32
    %31 = vector.broadcast %cst_42 : f32 to vector<256x28xf32>
    %32 = arith.maximumf %30, %31 : vector<256x28xf32>
    %33 = vector.extract_strided_slice %32 {offsets = [0, 0], sizes = [256, 8], strides = [1, 1]} : vector<256x28xf32> to vector<256x8xf32>
    %34 = vector.extract_strided_slice %32 {offsets = [0, 8], sizes = [256, 8], strides = [1, 1]} : vector<256x28xf32> to vector<256x8xf32>
    %35 = vector.extract_strided_slice %32 {offsets = [0, 16], sizes = [256, 4], strides = [1, 1]} : vector<256x28xf32> to vector<256x4xf32>
    %36 = vector.extract_strided_slice %32 {offsets = [0, 20], sizes = [256, 8], strides = [1, 1]} : vector<256x28xf32> to vector<256x8xf32>
    %cst_43 = arith.constant 0.000000e+00 : f32
    %37 = vector.broadcast %cst_43 : f32 to vector<1x1x18x8xf32>
    %c0_44 = arith.constant 0 : index
    %c0_45 = arith.constant 0 : index
    %c0_46 = arith.constant 0 : index
    %c0_47 = arith.constant 0 : index
    %38 = vector.load %arg11[%c0_44, %c0_45, %c0_46, %c0_47] : memref<1x18x18x8xf32, #tpu.memory_space<vmem>>, vector<1x1x18x8xf32>
    tpu.vector_store %arg11[%c0_44, %c0_45, %c0_46, %c0_47], %37 {strides = array<i32>} : memref<1x18x18x8xf32, #tpu.memory_space<vmem>>, vector<1x1x18x8xf32>,
    %cst_48 = arith.constant 0.000000e+00 : f32
    %39 = vector.broadcast %cst_48 : f32 to vector<1x1x18x8xf32>
    %c0_49 = arith.constant 0 : index
    %c17_50 = arith.constant 17 : index
    %c0_51 = arith.constant 0 : index
    %c0_52 = arith.constant 0 : index
    %40 = vector.load %arg11[%c0_49, %c17_50, %c0_51, %c0_52] : memref<1x18x18x8xf32, #tpu.memory_space<vmem>>, vector<1x1x18x8xf32>
    tpu.vector_store %arg11[%c0_49, %c17_50, %c0_51, %c0_52], %39 {strides = array<i32>} : memref<1x18x18x8xf32, #tpu.memory_space<vmem>>, vector<1x1x18x8xf32>,
    %cst_53 = arith.constant 0.000000e+00 : f32
    %41 = vector.broadcast %cst_53 : f32 to vector<1x18x1x8xf32>
    %c0_54 = arith.constant 0 : index
    %c0_55 = arith.constant 0 : index
    %c0_56 = arith.constant 0 : index
    %c0_57 = arith.constant 0 : index
    %42 = vector.load %arg11[%c0_54, %c0_55, %c0_56, %c0_57] : memref<1x18x18x8xf32, #tpu.memory_space<vmem>>, vector<1x18x1x8xf32>
    tpu.vector_store %arg11[%c0_54, %c0_55, %c0_56, %c0_57], %41 {strides = array<i32>} : memref<1x18x18x8xf32, #tpu.memory_space<vmem>>, vector<1x18x1x8xf32>,
    %cst_58 = arith.constant 0.000000e+00 : f32
    %43 = vector.broadcast %cst_58 : f32 to vector<1x18x1x8xf32>
    %c0_59 = arith.constant 0 : index
    %c0_60 = arith.constant 0 : index
    %c17_61 = arith.constant 17 : index
    %c0_62 = arith.constant 0 : index
    %44 = vector.load %arg11[%c0_59, %c0_60, %c17_61, %c0_62] : memref<1x18x18x8xf32, #tpu.memory_space<vmem>>, vector<1x18x1x8xf32>
    tpu.vector_store %arg11[%c0_59, %c0_60, %c17_61, %c0_62], %43 {strides = array<i32>} : memref<1x18x18x8xf32, #tpu.memory_space<vmem>>, vector<1x18x1x8xf32>,
    %45 = vector.shape_cast %34 : vector<256x8xf32> to vector<1x16x16x8xf32>
    %c0_63 = arith.constant 0 : index
    %c1_64 = arith.constant 1 : index
    %c1_65 = arith.constant 1 : index
    %c0_66 = arith.constant 0 : index
    %46 = vector.load %arg11[%c0_63, %c1_64, %c1_65, %c0_66] : memref<1x18x18x8xf32, #tpu.memory_space<vmem>>, vector<1x16x16x8xf32>
    tpu.vector_store %arg11[%c0_63, %c1_64, %c1_65, %c0_66], %45 {strides = array<i32>} : memref<1x18x18x8xf32, #tpu.memory_space<vmem>>, vector<1x16x16x8xf32>,
    %c0_67 = arith.constant 0 : index
    %c0_68 = arith.constant 0 : index
    %c0_69 = arith.constant 0 : index
    %c0_70 = arith.constant 0 : index
    %47 = vector.load %arg11[%c0_67, %c0_68, %c0_69, %c0_70] : memref<1x18x18x8xf32, #tpu.memory_space<vmem>>, vector<1x16x16x8xf32>
    %48 = vector.shape_cast %47 : vector<1x16x16x8xf32> to vector<256x8xf32>
    %c0_71 = arith.constant 0 : index
    %c0_72 = arith.constant 0 : index
    %49 = vector.load %arg5[%c0_71, %c0_72] : memref<72x16xf32, #tpu.memory_space<vmem>>, vector<8x16xf32>
    %cst_73 = arith.constant dense<0.000000e+00> : vector<256x16xf32>
    %50 = tpu.matmul %48, %49, %cst_73 {dimension_numbers = #tpu.dot_dimension_numbers<[1], [0], [0], [1], [0, 0, 1, 1], [], []>} : vector<256x8xf32>, vector<8x16xf32>, vector<256x16xf32> -> vector<256x16xf32>
    %c0_74 = arith.constant 0 : index
    %c0_75 = arith.constant 0 : index
    %c1_76 = arith.constant 1 : index
    %c0_77 = arith.constant 0 : index
    %51 = vector.load %arg11[%c0_74, %c0_75, %c1_76, %c0_77] : memref<1x18x18x8xf32, #tpu.memory_space<vmem>>, vector<1x16x16x8xf32>
    %52 = vector.shape_cast %51 : vector<1x16x16x8xf32> to vector<256x8xf32>
    %c8 = arith.constant 8 : index
    %c0_78 = arith.constant 0 : index
    %53 = vector.load %arg5[%c8, %c0_78] : memref<72x16xf32, #tpu.memory_space<vmem>>, vector<8x16xf32>
    %cst_79 = arith.constant dense<0.000000e+00> : vector<256x16xf32>
    %54 = tpu.matmul %52, %53, %cst_79 {dimension_numbers = #tpu.dot_dimension_numbers<[1], [0], [0], [1], [0, 0, 1, 1], [], []>} : vector<256x8xf32>, vector<8x16xf32>, vector<256x16xf32> -> vector<256x16xf32>
    %55 = arith.addf %50, %54 : vector<256x16xf32>
    %c0_80 = arith.constant 0 : index
    %c0_81 = arith.constant 0 : index
    %c2_82 = arith.constant 2 : index
    %c0_83 = arith.constant 0 : index
    %56 = vector.load %arg11[%c0_80, %c0_81, %c2_82, %c0_83] : memref<1x18x18x8xf32, #tpu.memory_space<vmem>>, vector<1x16x16x8xf32>
    %57 = vector.shape_cast %56 : vector<1x16x16x8xf32> to vector<256x8xf32>
    %c16 = arith.constant 16 : index
    %c0_84 = arith.constant 0 : index
    %58 = vector.load %arg5[%c16, %c0_84] : memref<72x16xf32, #tpu.memory_space<vmem>>, vector<8x16xf32>
    %cst_85 = arith.constant dense<0.000000e+00> : vector<256x16xf32>
    %59 = tpu.matmul %57, %58, %cst_85 {dimension_numbers = #tpu.dot_dimension_numbers<[1], [0], [0], [1], [0, 0, 1, 1], [], []>} : vector<256x8xf32>, vector<8x16xf32>, vector<256x16xf32> -> vector<256x16xf32>
    %60 = arith.addf %55, %59 : vector<256x16xf32>
    %c0_86 = arith.constant 0 : index
    %c1_87 = arith.constant 1 : index
    %c0_88 = arith.constant 0 : index
    %c0_89 = arith.constant 0 : index
    %61 = vector.load %arg11[%c0_86, %c1_87, %c0_88, %c0_89] : memref<1x18x18x8xf32, #tpu.memory_space<vmem>>, vector<1x16x16x8xf32>
    %62 = vector.shape_cast %61 : vector<1x16x16x8xf32> to vector<256x8xf32>
    %c24 = arith.constant 24 : index
    %c0_90 = arith.constant 0 : index
    %63 = vector.load %arg5[%c24, %c0_90] : memref<72x16xf32, #tpu.memory_space<vmem>>, vector<8x16xf32>
    %cst_91 = arith.constant dense<0.000000e+00> : vector<256x16xf32>
    %64 = tpu.matmul %62, %63, %cst_91 {dimension_numbers = #tpu.dot_dimension_numbers<[1], [0], [0], [1], [0, 0, 1, 1], [], []>} : vector<256x8xf32>, vector<8x16xf32>, vector<256x16xf32> -> vector<256x16xf32>
    %65 = arith.addf %60, %64 : vector<256x16xf32>
    %c0_92 = arith.constant 0 : index
    %c1_93 = arith.constant 1 : index
    %c1_94 = arith.constant 1 : index
    %c0_95 = arith.constant 0 : index
    %66 = vector.load %arg11[%c0_92, %c1_93, %c1_94, %c0_95] : memref<1x18x18x8xf32, #tpu.memory_space<vmem>>, vector<1x16x16x8xf32>
    %67 = vector.shape_cast %66 : vector<1x16x16x8xf32> to vector<256x8xf32>
    %c32 = arith.constant 32 : index
    %c0_96 = arith.constant 0 : index
    %68 = vector.load %arg5[%c32, %c0_96] : memref<72x16xf32, #tpu.memory_space<vmem>>, vector<8x16xf32>
    %cst_97 = arith.constant dense<0.000000e+00> : vector<256x16xf32>
    %69 = tpu.matmul %67, %68, %cst_97 {dimension_numbers = #tpu.dot_dimension_numbers<[1], [0], [0], [1], [0, 0, 1, 1], [], []>} : vector<256x8xf32>, vector<8x16xf32>, vector<256x16xf32> -> vector<256x16xf32>
    %70 = arith.addf %65, %69 : vector<256x16xf32>
    %c0_98 = arith.constant 0 : index
    %c1_99 = arith.constant 1 : index
    %c2_100 = arith.constant 2 : index
    %c0_101 = arith.constant 0 : index
    %71 = vector.load %arg11[%c0_98, %c1_99, %c2_100, %c0_101] : memref<1x18x18x8xf32, #tpu.memory_space<vmem>>, vector<1x16x16x8xf32>
    %72 = vector.shape_cast %71 : vector<1x16x16x8xf32> to vector<256x8xf32>
    %c40 = arith.constant 40 : index
    %c0_102 = arith.constant 0 : index
    %73 = vector.load %arg5[%c40, %c0_102] : memref<72x16xf32, #tpu.memory_space<vmem>>, vector<8x16xf32>
    %cst_103 = arith.constant dense<0.000000e+00> : vector<256x16xf32>
    %74 = tpu.matmul %72, %73, %cst_103 {dimension_numbers = #tpu.dot_dimension_numbers<[1], [0], [0], [1], [0, 0, 1, 1], [], []>} : vector<256x8xf32>, vector<8x16xf32>, vector<256x16xf32> -> vector<256x16xf32>
    %75 = arith.addf %70, %74 : vector<256x16xf32>
    %c0_104 = arith.constant 0 : index
    %c2_105 = arith.constant 2 : index
    %c0_106 = arith.constant 0 : index
    %c0_107 = arith.constant 0 : index
    %76 = vector.load %arg11[%c0_104, %c2_105, %c0_106, %c0_107] : memref<1x18x18x8xf32, #tpu.memory_space<vmem>>, vector<1x16x16x8xf32>
    %77 = vector.shape_cast %76 : vector<1x16x16x8xf32> to vector<256x8xf32>
    %c48 = arith.constant 48 : index
    %c0_108 = arith.constant 0 : index
    %78 = vector.load %arg5[%c48, %c0_108] : memref<72x16xf32, #tpu.memory_space<vmem>>, vector<8x16xf32>
    %cst_109 = arith.constant dense<0.000000e+00> : vector<256x16xf32>
    %79 = tpu.matmul %77, %78, %cst_109 {dimension_numbers = #tpu.dot_dimension_numbers<[1], [0], [0], [1], [0, 0, 1, 1], [], []>} : vector<256x8xf32>, vector<8x16xf32>, vector<256x16xf32> -> vector<256x16xf32>
    %80 = arith.addf %75, %79 : vector<256x16xf32>
    %c0_110 = arith.constant 0 : index
    %c2_111 = arith.constant 2 : index
    %c1_112 = arith.constant 1 : index
    %c0_113 = arith.constant 0 : index
    %81 = vector.load %arg11[%c0_110, %c2_111, %c1_112, %c0_113] : memref<1x18x18x8xf32, #tpu.memory_space<vmem>>, vector<1x16x16x8xf32>
    %82 = vector.shape_cast %81 : vector<1x16x16x8xf32> to vector<256x8xf32>
    %c56 = arith.constant 56 : index
    %c0_114 = arith.constant 0 : index
    %83 = vector.load %arg5[%c56, %c0_114] : memref<72x16xf32, #tpu.memory_space<vmem>>, vector<8x16xf32>
    %cst_115 = arith.constant dense<0.000000e+00> : vector<256x16xf32>
    %84 = tpu.matmul %82, %83, %cst_115 {dimension_numbers = #tpu.dot_dimension_numbers<[1], [0], [0], [1], [0, 0, 1, 1], [], []>} : vector<256x8xf32>, vector<8x16xf32>, vector<256x16xf32> -> vector<256x16xf32>
    %85 = arith.addf %80, %84 : vector<256x16xf32>
    %c0_116 = arith.constant 0 : index
    %c2_117 = arith.constant 2 : index
    %c2_118 = arith.constant 2 : index
    %c0_119 = arith.constant 0 : index
    %86 = vector.load %arg11[%c0_116, %c2_117, %c2_118, %c0_119] : memref<1x18x18x8xf32, #tpu.memory_space<vmem>>, vector<1x16x16x8xf32>
    %87 = vector.shape_cast %86 : vector<1x16x16x8xf32> to vector<256x8xf32>
    %c64 = arith.constant 64 : index
    %c0_120 = arith.constant 0 : index
    %88 = vector.load %arg5[%c64, %c0_120] : memref<72x16xf32, #tpu.memory_space<vmem>>, vector<8x16xf32>
    %cst_121 = arith.constant dense<0.000000e+00> : vector<256x16xf32>
    %89 = tpu.matmul %87, %88, %cst_121 {dimension_numbers = #tpu.dot_dimension_numbers<[1], [0], [0], [1], [0, 0, 1, 1], [], []>} : vector<256x8xf32>, vector<8x16xf32>, vector<256x16xf32> -> vector<256x16xf32>
    %90 = arith.addf %85, %89 : vector<256x16xf32>
    %c0_122 = arith.constant 0 : index
    %c0_123 = arith.constant 0 : index
    %91 = vector.load %arg6[%c0_122, %c0_123] : memref<1x16xf32, #tpu.memory_space<vmem>>, vector<1x16xf32>
    %92 = vector.broadcast %91 : vector<1x16xf32> to vector<256x16xf32>
    %93 = arith.addf %90, %92 : vector<256x16xf32>
    %cst_124 = arith.constant 0.000000e+00 : f32
    %94 = vector.broadcast %cst_124 : f32 to vector<256x16xf32>
    %95 = arith.maximumf %93, %94 : vector<256x16xf32>
    %cst_125 = arith.constant 0.000000e+00 : f32
    %96 = vector.broadcast %cst_125 : f32 to vector<1x2x20x4xf32>
    %c0_126 = arith.constant 0 : index
    %c0_127 = arith.constant 0 : index
    %c0_128 = arith.constant 0 : index
    %c0_129 = arith.constant 0 : index
    %97 = vector.load %arg12[%c0_126, %c0_127, %c0_128, %c0_129] : memref<1x20x20x4xf32, #tpu.memory_space<vmem>>, vector<1x2x20x4xf32>
    tpu.vector_store %arg12[%c0_126, %c0_127, %c0_128, %c0_129], %96 {strides = array<i32>} : memref<1x20x20x4xf32, #tpu.memory_space<vmem>>, vector<1x2x20x4xf32>,
    %cst_130 = arith.constant 0.000000e+00 : f32
    %98 = vector.broadcast %cst_130 : f32 to vector<1x2x20x4xf32>
    %c0_131 = arith.constant 0 : index
    %c18 = arith.constant 18 : index
    %c0_132 = arith.constant 0 : index
    %c0_133 = arith.constant 0 : index
    %99 = vector.load %arg12[%c0_131, %c18, %c0_132, %c0_133] : memref<1x20x20x4xf32, #tpu.memory_space<vmem>>, vector<1x2x20x4xf32>
    tpu.vector_store %arg12[%c0_131, %c18, %c0_132, %c0_133], %98 {strides = array<i32>} : memref<1x20x20x4xf32, #tpu.memory_space<vmem>>, vector<1x2x20x4xf32>,
    %cst_134 = arith.constant 0.000000e+00 : f32
    %100 = vector.broadcast %cst_134 : f32 to vector<1x20x2x4xf32>
    %c0_135 = arith.constant 0 : index
    %c0_136 = arith.constant 0 : index
    %c0_137 = arith.constant 0 : index
    %c0_138 = arith.constant 0 : index
    %101 = vector.load %arg12[%c0_135, %c0_136, %c0_137, %c0_138] : memref<1x20x20x4xf32, #tpu.memory_space<vmem>>, vector<1x20x2x4xf32>
    tpu.vector_store %arg12[%c0_135, %c0_136, %c0_137, %c0_138], %100 {strides = array<i32>} : memref<1x20x20x4xf32, #tpu.memory_space<vmem>>, vector<1x20x2x4xf32>,
    %cst_139 = arith.constant 0.000000e+00 : f32
    %102 = vector.broadcast %cst_139 : f32 to vector<1x20x2x4xf32>
    %c0_140 = arith.constant 0 : index
    %c0_141 = arith.constant 0 : index
    %c18_142 = arith.constant 18 : index
    %c0_143 = arith.constant 0 : index
    %103 = vector.load %arg12[%c0_140, %c0_141, %c18_142, %c0_143] : memref<1x20x20x4xf32, #tpu.memory_space<vmem>>, vector<1x20x2x4xf32>
    tpu.vector_store %arg12[%c0_140, %c0_141, %c18_142, %c0_143], %102 {strides = array<i32>} : memref<1x20x20x4xf32, #tpu.memory_space<vmem>>, vector<1x20x2x4xf32>,
    %104 = vector.shape_cast %35 : vector<256x4xf32> to vector<1x16x16x4xf32>
    %c0_144 = arith.constant 0 : index
    %c2_145 = arith.constant 2 : index
    %c2_146 = arith.constant 2 : index
    %c0_147 = arith.constant 0 : index
    %105 = vector.load %arg12[%c0_144, %c2_145, %c2_146, %c0_147] : memref<1x20x20x4xf32, #tpu.memory_space<vmem>>, vector<1x16x16x4xf32>
    tpu.vector_store %arg12[%c0_144, %c2_145, %c2_146, %c0_147], %104 {strides = array<i32>} : memref<1x20x20x4xf32, #tpu.memory_space<vmem>>, vector<1x16x16x4xf32>,
    %c0_148 = arith.constant 0 : index
    %c0_149 = arith.constant 0 : index
    %c0_150 = arith.constant 0 : index
    %c0_151 = arith.constant 0 : index
    %106 = vector.load %arg12[%c0_148, %c0_149, %c0_150, %c0_151] : memref<1x20x20x4xf32, #tpu.memory_space<vmem>>, vector<1x16x16x4xf32>
    %107 = vector.shape_cast %106 : vector<1x16x16x4xf32> to vector<256x4xf32>
    %c0_152 = arith.constant 0 : index
    %c0_153 = arith.constant 0 : index
    %108 = vector.load %arg7[%c0_152, %c0_153] : memref<100x8xf32, #tpu.memory_space<vmem>>, vector<4x8xf32>
    %cst_154 = arith.constant dense<0.000000e+00> : vector<256x8xf32>
    %109 = tpu.matmul %107, %108, %cst_154 {dimension_numbers = #tpu.dot_dimension_numbers<[1], [0], [0], [1], [0, 0, 1, 1], [], []>} : vector<256x4xf32>, vector<4x8xf32>, vector<256x8xf32> -> vector<256x8xf32>
    %c0_155 = arith.constant 0 : index
    %c0_156 = arith.constant 0 : index
    %c1_157 = arith.constant 1 : index
    %c0_158 = arith.constant 0 : index
    %110 = vector.load %arg12[%c0_155, %c0_156, %c1_157, %c0_158] : memref<1x20x20x4xf32, #tpu.memory_space<vmem>>, vector<1x16x16x4xf32>
    %111 = vector.shape_cast %110 : vector<1x16x16x4xf32> to vector<256x4xf32>
    %c4 = arith.constant 4 : index
    %c0_159 = arith.constant 0 : index
    %112 = vector.load %arg7[%c4, %c0_159] : memref<100x8xf32, #tpu.memory_space<vmem>>, vector<4x8xf32>
    %cst_160 = arith.constant dense<0.000000e+00> : vector<256x8xf32>
    %113 = tpu.matmul %111, %112, %cst_160 {dimension_numbers = #tpu.dot_dimension_numbers<[1], [0], [0], [1], [0, 0, 1, 1], [], []>} : vector<256x4xf32>, vector<4x8xf32>, vector<256x8xf32> -> vector<256x8xf32>
    %114 = arith.addf %109, %113 : vector<256x8xf32>
    %c0_161 = arith.constant 0 : index
    %c0_162 = arith.constant 0 : index
    %c2_163 = arith.constant 2 : index
    %c0_164 = arith.constant 0 : index
    %115 = vector.load %arg12[%c0_161, %c0_162, %c2_163, %c0_164] : memref<1x20x20x4xf32, #tpu.memory_space<vmem>>, vector<1x16x16x4xf32>
    %116 = vector.shape_cast %115 : vector<1x16x16x4xf32> to vector<256x4xf32>
    %c8_165 = arith.constant 8 : index
    %c0_166 = arith.constant 0 : index
    %117 = vector.load %arg7[%c8_165, %c0_166] : memref<100x8xf32, #tpu.memory_space<vmem>>, vector<4x8xf32>
    %cst_167 = arith.constant dense<0.000000e+00> : vector<256x8xf32>
    %118 = tpu.matmul %116, %117, %cst_167 {dimension_numbers = #tpu.dot_dimension_numbers<[1], [0], [0], [1], [0, 0, 1, 1], [], []>} : vector<256x4xf32>, vector<4x8xf32>, vector<256x8xf32> -> vector<256x8xf32>
    %119 = arith.addf %114, %118 : vector<256x8xf32>
    %c0_168 = arith.constant 0 : index
    %c0_169 = arith.constant 0 : index
    %c3 = arith.constant 3 : index
    %c0_170 = arith.constant 0 : index
    %120 = vector.load %arg12[%c0_168, %c0_169, %c3, %c0_170] : memref<1x20x20x4xf32, #tpu.memory_space<vmem>>, vector<1x16x16x4xf32>
    %121 = vector.shape_cast %120 : vector<1x16x16x4xf32> to vector<256x4xf32>
    %c12 = arith.constant 12 : index
    %c0_171 = arith.constant 0 : index
    %122 = vector.load %arg7[%c12, %c0_171] : memref<100x8xf32, #tpu.memory_space<vmem>>, vector<4x8xf32>
    %cst_172 = arith.constant dense<0.000000e+00> : vector<256x8xf32>
    %123 = tpu.matmul %121, %122, %cst_172 {dimension_numbers = #tpu.dot_dimension_numbers<[1], [0], [0], [1], [0, 0, 1, 1], [], []>} : vector<256x4xf32>, vector<4x8xf32>, vector<256x8xf32> -> vector<256x8xf32>
    %124 = arith.addf %119, %123 : vector<256x8xf32>
    %c0_173 = arith.constant 0 : index
    %c0_174 = arith.constant 0 : index
    %c4_175 = arith.constant 4 : index
    %c0_176 = arith.constant 0 : index
    %125 = vector.load %arg12[%c0_173, %c0_174, %c4_175, %c0_176] : memref<1x20x20x4xf32, #tpu.memory_space<vmem>>, vector<1x16x16x4xf32>
    %126 = vector.shape_cast %125 : vector<1x16x16x4xf32> to vector<256x4xf32>
    %c16_177 = arith.constant 16 : index
    %c0_178 = arith.constant 0 : index
    %127 = vector.load %arg7[%c16_177, %c0_178] : memref<100x8xf32, #tpu.memory_space<vmem>>, vector<4x8xf32>
    %cst_179 = arith.constant dense<0.000000e+00> : vector<256x8xf32>
    %128 = tpu.matmul %126, %127, %cst_179 {dimension_numbers = #tpu.dot_dimension_numbers<[1], [0], [0], [1], [0, 0, 1, 1], [], []>} : vector<256x4xf32>, vector<4x8xf32>, vector<256x8xf32> -> vector<256x8xf32>
    %129 = arith.addf %124, %128 : vector<256x8xf32>
    %c0_180 = arith.constant 0 : index
    %c1_181 = arith.constant 1 : index
    %c0_182 = arith.constant 0 : index
    %c0_183 = arith.constant 0 : index
    %130 = vector.load %arg12[%c0_180, %c1_181, %c0_182, %c0_183] : memref<1x20x20x4xf32, #tpu.memory_space<vmem>>, vector<1x16x16x4xf32>
    %131 = vector.shape_cast %130 : vector<1x16x16x4xf32> to vector<256x4xf32>
    %c20 = arith.constant 20 : index
    %c0_184 = arith.constant 0 : index
    %132 = vector.load %arg7[%c20, %c0_184] : memref<100x8xf32, #tpu.memory_space<vmem>>, vector<4x8xf32>
    %cst_185 = arith.constant dense<0.000000e+00> : vector<256x8xf32>
    %133 = tpu.matmul %131, %132, %cst_185 {dimension_numbers = #tpu.dot_dimension_numbers<[1], [0], [0], [1], [0, 0, 1, 1], [], []>} : vector<256x4xf32>, vector<4x8xf32>, vector<256x8xf32> -> vector<256x8xf32>
    %134 = arith.addf %129, %133 : vector<256x8xf32>
    %c0_186 = arith.constant 0 : index
    %c1_187 = arith.constant 1 : index
    %c1_188 = arith.constant 1 : index
    %c0_189 = arith.constant 0 : index
    %135 = vector.load %arg12[%c0_186, %c1_187, %c1_188, %c0_189] : memref<1x20x20x4xf32, #tpu.memory_space<vmem>>, vector<1x16x16x4xf32>
    %136 = vector.shape_cast %135 : vector<1x16x16x4xf32> to vector<256x4xf32>
    %c24_190 = arith.constant 24 : index
    %c0_191 = arith.constant 0 : index
    %137 = vector.load %arg7[%c24_190, %c0_191] : memref<100x8xf32, #tpu.memory_space<vmem>>, vector<4x8xf32>
    %cst_192 = arith.constant dense<0.000000e+00> : vector<256x8xf32>
    %138 = tpu.matmul %136, %137, %cst_192 {dimension_numbers = #tpu.dot_dimension_numbers<[1], [0], [0], [1], [0, 0, 1, 1], [], []>} : vector<256x4xf32>, vector<4x8xf32>, vector<256x8xf32> -> vector<256x8xf32>
    %139 = arith.addf %134, %138 : vector<256x8xf32>
    %c0_193 = arith.constant 0 : index
    %c1_194 = arith.constant 1 : index
    %c2_195 = arith.constant 2 : index
    %c0_196 = arith.constant 0 : index
    %140 = vector.load %arg12[%c0_193, %c1_194, %c2_195, %c0_196] : memref<1x20x20x4xf32, #tpu.memory_space<vmem>>, vector<1x16x16x4xf32>
    %141 = vector.shape_cast %140 : vector<1x16x16x4xf32> to vector<256x4xf32>
    %c28 = arith.constant 28 : index
    %c0_197 = arith.constant 0 : index
    %142 = vector.load %arg7[%c28, %c0_197] : memref<100x8xf32, #tpu.memory_space<vmem>>, vector<4x8xf32>
    %cst_198 = arith.constant dense<0.000000e+00> : vector<256x8xf32>
    %143 = tpu.matmul %141, %142, %cst_198 {dimension_numbers = #tpu.dot_dimension_numbers<[1], [0], [0], [1], [0, 0, 1, 1], [], []>} : vector<256x4xf32>, vector<4x8xf32>, vector<256x8xf32> -> vector<256x8xf32>
    %144 = arith.addf %139, %143 : vector<256x8xf32>
    %c0_199 = arith.constant 0 : index
    %c1_200 = arith.constant 1 : index
    %c3_201 = arith.constant 3 : index
    %c0_202 = arith.constant 0 : index
    %145 = vector.load %arg12[%c0_199, %c1_200, %c3_201, %c0_202] : memref<1x20x20x4xf32, #tpu.memory_space<vmem>>, vector<1x16x16x4xf32>
    %146 = vector.shape_cast %145 : vector<1x16x16x4xf32> to vector<256x4xf32>
    %c32_203 = arith.constant 32 : index
    %c0_204 = arith.constant 0 : index
    %147 = vector.load %arg7[%c32_203, %c0_204] : memref<100x8xf32, #tpu.memory_space<vmem>>, vector<4x8xf32>
    %cst_205 = arith.constant dense<0.000000e+00> : vector<256x8xf32>
    %148 = tpu.matmul %146, %147, %cst_205 {dimension_numbers = #tpu.dot_dimension_numbers<[1], [0], [0], [1], [0, 0, 1, 1], [], []>} : vector<256x4xf32>, vector<4x8xf32>, vector<256x8xf32> -> vector<256x8xf32>
    %149 = arith.addf %144, %148 : vector<256x8xf32>
    %c0_206 = arith.constant 0 : index
    %c1_207 = arith.constant 1 : index
    %c4_208 = arith.constant 4 : index
    %c0_209 = arith.constant 0 : index
    %150 = vector.load %arg12[%c0_206, %c1_207, %c4_208, %c0_209] : memref<1x20x20x4xf32, #tpu.memory_space<vmem>>, vector<1x16x16x4xf32>
    %151 = vector.shape_cast %150 : vector<1x16x16x4xf32> to vector<256x4xf32>
    %c36 = arith.constant 36 : index
    %c0_210 = arith.constant 0 : index
    %152 = vector.load %arg7[%c36, %c0_210] : memref<100x8xf32, #tpu.memory_space<vmem>>, vector<4x8xf32>
    %cst_211 = arith.constant dense<0.000000e+00> : vector<256x8xf32>
    %153 = tpu.matmul %151, %152, %cst_211 {dimension_numbers = #tpu.dot_dimension_numbers<[1], [0], [0], [1], [0, 0, 1, 1], [], []>} : vector<256x4xf32>, vector<4x8xf32>, vector<256x8xf32> -> vector<256x8xf32>
    %154 = arith.addf %149, %153 : vector<256x8xf32>
    %c0_212 = arith.constant 0 : index
    %c2_213 = arith.constant 2 : index
    %c0_214 = arith.constant 0 : index
    %c0_215 = arith.constant 0 : index
    %155 = vector.load %arg12[%c0_212, %c2_213, %c0_214, %c0_215] : memref<1x20x20x4xf32, #tpu.memory_space<vmem>>, vector<1x16x16x4xf32>
    %156 = vector.shape_cast %155 : vector<1x16x16x4xf32> to vector<256x4xf32>
    %c40_216 = arith.constant 40 : index
    %c0_217 = arith.constant 0 : index
    %157 = vector.load %arg7[%c40_216, %c0_217] : memref<100x8xf32, #tpu.memory_space<vmem>>, vector<4x8xf32>
    %cst_218 = arith.constant dense<0.000000e+00> : vector<256x8xf32>
    %158 = tpu.matmul %156, %157, %cst_218 {dimension_numbers = #tpu.dot_dimension_numbers<[1], [0], [0], [1], [0, 0, 1, 1], [], []>} : vector<256x4xf32>, vector<4x8xf32>, vector<256x8xf32> -> vector<256x8xf32>
    %159 = arith.addf %154, %158 : vector<256x8xf32>
    %c0_219 = arith.constant 0 : index
    %c2_220 = arith.constant 2 : index
    %c1_221 = arith.constant 1 : index
    %c0_222 = arith.constant 0 : index
    %160 = vector.load %arg12[%c0_219, %c2_220, %c1_221, %c0_222] : memref<1x20x20x4xf32, #tpu.memory_space<vmem>>, vector<1x16x16x4xf32>
    %161 = vector.shape_cast %160 : vector<1x16x16x4xf32> to vector<256x4xf32>
    %c44 = arith.constant 44 : index
    %c0_223 = arith.constant 0 : index
    %162 = vector.load %arg7[%c44, %c0_223] : memref<100x8xf32, #tpu.memory_space<vmem>>, vector<4x8xf32>
    %cst_224 = arith.constant dense<0.000000e+00> : vector<256x8xf32>
    %163 = tpu.matmul %161, %162, %cst_224 {dimension_numbers = #tpu.dot_dimension_numbers<[1], [0], [0], [1], [0, 0, 1, 1], [], []>} : vector<256x4xf32>, vector<4x8xf32>, vector<256x8xf32> -> vector<256x8xf32>
    %164 = arith.addf %159, %163 : vector<256x8xf32>
    %c0_225 = arith.constant 0 : index
    %c2_226 = arith.constant 2 : index
    %c2_227 = arith.constant 2 : index
    %c0_228 = arith.constant 0 : index
    %165 = vector.load %arg12[%c0_225, %c2_226, %c2_227, %c0_228] : memref<1x20x20x4xf32, #tpu.memory_space<vmem>>, vector<1x16x16x4xf32>
    %166 = vector.shape_cast %165 : vector<1x16x16x4xf32> to vector<256x4xf32>
    %c48_229 = arith.constant 48 : index
    %c0_230 = arith.constant 0 : index
    %167 = vector.load %arg7[%c48_229, %c0_230] : memref<100x8xf32, #tpu.memory_space<vmem>>, vector<4x8xf32>
    %cst_231 = arith.constant dense<0.000000e+00> : vector<256x8xf32>
    %168 = tpu.matmul %166, %167, %cst_231 {dimension_numbers = #tpu.dot_dimension_numbers<[1], [0], [0], [1], [0, 0, 1, 1], [], []>} : vector<256x4xf32>, vector<4x8xf32>, vector<256x8xf32> -> vector<256x8xf32>
    %169 = arith.addf %164, %168 : vector<256x8xf32>
    %c0_232 = arith.constant 0 : index
    %c2_233 = arith.constant 2 : index
    %c3_234 = arith.constant 3 : index
    %c0_235 = arith.constant 0 : index
    %170 = vector.load %arg12[%c0_232, %c2_233, %c3_234, %c0_235] : memref<1x20x20x4xf32, #tpu.memory_space<vmem>>, vector<1x16x16x4xf32>
    %171 = vector.shape_cast %170 : vector<1x16x16x4xf32> to vector<256x4xf32>
    %c52 = arith.constant 52 : index
    %c0_236 = arith.constant 0 : index
    %172 = vector.load %arg7[%c52, %c0_236] : memref<100x8xf32, #tpu.memory_space<vmem>>, vector<4x8xf32>
    %cst_237 = arith.constant dense<0.000000e+00> : vector<256x8xf32>
    %173 = tpu.matmul %171, %172, %cst_237 {dimension_numbers = #tpu.dot_dimension_numbers<[1], [0], [0], [1], [0, 0, 1, 1], [], []>} : vector<256x4xf32>, vector<4x8xf32>, vector<256x8xf32> -> vector<256x8xf32>
    %174 = arith.addf %169, %173 : vector<256x8xf32>
    %c0_238 = arith.constant 0 : index
    %c2_239 = arith.constant 2 : index
    %c4_240 = arith.constant 4 : index
    %c0_241 = arith.constant 0 : index
    %175 = vector.load %arg12[%c0_238, %c2_239, %c4_240, %c0_241] : memref<1x20x20x4xf32, #tpu.memory_space<vmem>>, vector<1x16x16x4xf32>
    %176 = vector.shape_cast %175 : vector<1x16x16x4xf32> to vector<256x4xf32>
    %c56_242 = arith.constant 56 : index
    %c0_243 = arith.constant 0 : index
    %177 = vector.load %arg7[%c56_242, %c0_243] : memref<100x8xf32, #tpu.memory_space<vmem>>, vector<4x8xf32>
    %cst_244 = arith.constant dense<0.000000e+00> : vector<256x8xf32>
    %178 = tpu.matmul %176, %177, %cst_244 {dimension_numbers = #tpu.dot_dimension_numbers<[1], [0], [0], [1], [0, 0, 1, 1], [], []>} : vector<256x4xf32>, vector<4x8xf32>, vector<256x8xf32> -> vector<256x8xf32>
    %179 = arith.addf %174, %178 : vector<256x8xf32>
    %c0_245 = arith.constant 0 : index
    %c3_246 = arith.constant 3 : index
    %c0_247 = arith.constant 0 : index
    %c0_248 = arith.constant 0 : index
    %180 = vector.load %arg12[%c0_245, %c3_246, %c0_247, %c0_248] : memref<1x20x20x4xf32, #tpu.memory_space<vmem>>, vector<1x16x16x4xf32>
    %181 = vector.shape_cast %180 : vector<1x16x16x4xf32> to vector<256x4xf32>
    %c60 = arith.constant 60 : index
    %c0_249 = arith.constant 0 : index
    %182 = vector.load %arg7[%c60, %c0_249] : memref<100x8xf32, #tpu.memory_space<vmem>>, vector<4x8xf32>
    %cst_250 = arith.constant dense<0.000000e+00> : vector<256x8xf32>
    %183 = tpu.matmul %181, %182, %cst_250 {dimension_numbers = #tpu.dot_dimension_numbers<[1], [0], [0], [1], [0, 0, 1, 1], [], []>} : vector<256x4xf32>, vector<4x8xf32>, vector<256x8xf32> -> vector<256x8xf32>
    %184 = arith.addf %179, %183 : vector<256x8xf32>
    %c0_251 = arith.constant 0 : index
    %c3_252 = arith.constant 3 : index
    %c1_253 = arith.constant 1 : index
    %c0_254 = arith.constant 0 : index
    %185 = vector.load %arg12[%c0_251, %c3_252, %c1_253, %c0_254] : memref<1x20x20x4xf32, #tpu.memory_space<vmem>>, vector<1x16x16x4xf32>
    %186 = vector.shape_cast %185 : vector<1x16x16x4xf32> to vector<256x4xf32>
    %c64_255 = arith.constant 64 : index
    %c0_256 = arith.constant 0 : index
    %187 = vector.load %arg7[%c64_255, %c0_256] : memref<100x8xf32, #tpu.memory_space<vmem>>, vector<4x8xf32>
    %cst_257 = arith.constant dense<0.000000e+00> : vector<256x8xf32>
    %188 = tpu.matmul %186, %187, %cst_257 {dimension_numbers = #tpu.dot_dimension_numbers<[1], [0], [0], [1], [0, 0, 1, 1], [], []>} : vector<256x4xf32>, vector<4x8xf32>, vector<256x8xf32> -> vector<256x8xf32>
    %189 = arith.addf %184, %188 : vector<256x8xf32>
    %c0_258 = arith.constant 0 : index
    %c3_259 = arith.constant 3 : index
    %c2_260 = arith.constant 2 : index
    %c0_261 = arith.constant 0 : index
    %190 = vector.load %arg12[%c0_258, %c3_259, %c2_260, %c0_261] : memref<1x20x20x4xf32, #tpu.memory_space<vmem>>, vector<1x16x16x4xf32>
    %191 = vector.shape_cast %190 : vector<1x16x16x4xf32> to vector<256x4xf32>
    %c68 = arith.constant 68 : index
    %c0_262 = arith.constant 0 : index
    %192 = vector.load %arg7[%c68, %c0_262] : memref<100x8xf32, #tpu.memory_space<vmem>>, vector<4x8xf32>
    %cst_263 = arith.constant dense<0.000000e+00> : vector<256x8xf32>
    %193 = tpu.matmul %191, %192, %cst_263 {dimension_numbers = #tpu.dot_dimension_numbers<[1], [0], [0], [1], [0, 0, 1, 1], [], []>} : vector<256x4xf32>, vector<4x8xf32>, vector<256x8xf32> -> vector<256x8xf32>
    %194 = arith.addf %189, %193 : vector<256x8xf32>
    %c0_264 = arith.constant 0 : index
    %c3_265 = arith.constant 3 : index
    %c3_266 = arith.constant 3 : index
    %c0_267 = arith.constant 0 : index
    %195 = vector.load %arg12[%c0_264, %c3_265, %c3_266, %c0_267] : memref<1x20x20x4xf32, #tpu.memory_space<vmem>>, vector<1x16x16x4xf32>
    %196 = vector.shape_cast %195 : vector<1x16x16x4xf32> to vector<256x4xf32>
    %c72 = arith.constant 72 : index
    %c0_268 = arith.constant 0 : index
    %197 = vector.load %arg7[%c72, %c0_268] : memref<100x8xf32, #tpu.memory_space<vmem>>, vector<4x8xf32>
    %cst_269 = arith.constant dense<0.000000e+00> : vector<256x8xf32>
    %198 = tpu.matmul %196, %197, %cst_269 {dimension_numbers = #tpu.dot_dimension_numbers<[1], [0], [0], [1], [0, 0, 1, 1], [], []>} : vector<256x4xf32>, vector<4x8xf32>, vector<256x8xf32> -> vector<256x8xf32>
    %199 = arith.addf %194, %198 : vector<256x8xf32>
    %c0_270 = arith.constant 0 : index
    %c3_271 = arith.constant 3 : index
    %c4_272 = arith.constant 4 : index
    %c0_273 = arith.constant 0 : index
    %200 = vector.load %arg12[%c0_270, %c3_271, %c4_272, %c0_273] : memref<1x20x20x4xf32, #tpu.memory_space<vmem>>, vector<1x16x16x4xf32>
    %201 = vector.shape_cast %200 : vector<1x16x16x4xf32> to vector<256x4xf32>
    %c76 = arith.constant 76 : index
    %c0_274 = arith.constant 0 : index
    %202 = vector.load %arg7[%c76, %c0_274] : memref<100x8xf32, #tpu.memory_space<vmem>>, vector<4x8xf32>
    %cst_275 = arith.constant dense<0.000000e+00> : vector<256x8xf32>
    %203 = tpu.matmul %201, %202, %cst_275 {dimension_numbers = #tpu.dot_dimension_numbers<[1], [0], [0], [1], [0, 0, 1, 1], [], []>} : vector<256x4xf32>, vector<4x8xf32>, vector<256x8xf32> -> vector<256x8xf32>
    %204 = arith.addf %199, %203 : vector<256x8xf32>
    %c0_276 = arith.constant 0 : index
    %c4_277 = arith.constant 4 : index
    %c0_278 = arith.constant 0 : index
    %c0_279 = arith.constant 0 : index
    %205 = vector.load %arg12[%c0_276, %c4_277, %c0_278, %c0_279] : memref<1x20x20x4xf32, #tpu.memory_space<vmem>>, vector<1x16x16x4xf32>
    %206 = vector.shape_cast %205 : vector<1x16x16x4xf32> to vector<256x4xf32>
    %c80 = arith.constant 80 : index
    %c0_280 = arith.constant 0 : index
    %207 = vector.load %arg7[%c80, %c0_280] : memref<100x8xf32, #tpu.memory_space<vmem>>, vector<4x8xf32>
    %cst_281 = arith.constant dense<0.000000e+00> : vector<256x8xf32>
    %208 = tpu.matmul %206, %207, %cst_281 {dimension_numbers = #tpu.dot_dimension_numbers<[1], [0], [0], [1], [0, 0, 1, 1], [], []>} : vector<256x4xf32>, vector<4x8xf32>, vector<256x8xf32> -> vector<256x8xf32>
    %209 = arith.addf %204, %208 : vector<256x8xf32>
    %c0_282 = arith.constant 0 : index
    %c4_283 = arith.constant 4 : index
    %c1_284 = arith.constant 1 : index
    %c0_285 = arith.constant 0 : index
    %210 = vector.load %arg12[%c0_282, %c4_283, %c1_284, %c0_285] : memref<1x20x20x4xf32, #tpu.memory_space<vmem>>, vector<1x16x16x4xf32>
    %211 = vector.shape_cast %210 : vector<1x16x16x4xf32> to vector<256x4xf32>
    %c84 = arith.constant 84 : index
    %c0_286 = arith.constant 0 : index
    %212 = vector.load %arg7[%c84, %c0_286] : memref<100x8xf32, #tpu.memory_space<vmem>>, vector<4x8xf32>
    %cst_287 = arith.constant dense<0.000000e+00> : vector<256x8xf32>
    %213 = tpu.matmul %211, %212, %cst_287 {dimension_numbers = #tpu.dot_dimension_numbers<[1], [0], [0], [1], [0, 0, 1, 1], [], []>} : vector<256x4xf32>, vector<4x8xf32>, vector<256x8xf32> -> vector<256x8xf32>
    %214 = arith.addf %209, %213 : vector<256x8xf32>
    %c0_288 = arith.constant 0 : index
    %c4_289 = arith.constant 4 : index
    %c2_290 = arith.constant 2 : index
    %c0_291 = arith.constant 0 : index
    %215 = vector.load %arg12[%c0_288, %c4_289, %c2_290, %c0_291] : memref<1x20x20x4xf32, #tpu.memory_space<vmem>>, vector<1x16x16x4xf32>
    %216 = vector.shape_cast %215 : vector<1x16x16x4xf32> to vector<256x4xf32>
    %c88 = arith.constant 88 : index
    %c0_292 = arith.constant 0 : index
    %217 = vector.load %arg7[%c88, %c0_292] : memref<100x8xf32, #tpu.memory_space<vmem>>, vector<4x8xf32>
    %cst_293 = arith.constant dense<0.000000e+00> : vector<256x8xf32>
    %218 = tpu.matmul %216, %217, %cst_293 {dimension_numbers = #tpu.dot_dimension_numbers<[1], [0], [0], [1], [0, 0, 1, 1], [], []>} : vector<256x4xf32>, vector<4x8xf32>, vector<256x8xf32> -> vector<256x8xf32>
    %219 = arith.addf %214, %218 : vector<256x8xf32>
    %c0_294 = arith.constant 0 : index
    %c4_295 = arith.constant 4 : index
    %c3_296 = arith.constant 3 : index
    %c0_297 = arith.constant 0 : index
    %220 = vector.load %arg12[%c0_294, %c4_295, %c3_296, %c0_297] : memref<1x20x20x4xf32, #tpu.memory_space<vmem>>, vector<1x16x16x4xf32>
    %221 = vector.shape_cast %220 : vector<1x16x16x4xf32> to vector<256x4xf32>
    %c92 = arith.constant 92 : index
    %c0_298 = arith.constant 0 : index
    %222 = vector.load %arg7[%c92, %c0_298] : memref<100x8xf32, #tpu.memory_space<vmem>>, vector<4x8xf32>
    %cst_299 = arith.constant dense<0.000000e+00> : vector<256x8xf32>
    %223 = tpu.matmul %221, %222, %cst_299 {dimension_numbers = #tpu.dot_dimension_numbers<[1], [0], [0], [1], [0, 0, 1, 1], [], []>} : vector<256x4xf32>, vector<4x8xf32>, vector<256x8xf32> -> vector<256x8xf32>
    %224 = arith.addf %219, %223 : vector<256x8xf32>
    %c0_300 = arith.constant 0 : index
    %c4_301 = arith.constant 4 : index
    %c4_302 = arith.constant 4 : index
    %c0_303 = arith.constant 0 : index
    %225 = vector.load %arg12[%c0_300, %c4_301, %c4_302, %c0_303] : memref<1x20x20x4xf32, #tpu.memory_space<vmem>>, vector<1x16x16x4xf32>
    %226 = vector.shape_cast %225 : vector<1x16x16x4xf32> to vector<256x4xf32>
    %c96 = arith.constant 96 : index
    %c0_304 = arith.constant 0 : index
    %227 = vector.load %arg7[%c96, %c0_304] : memref<100x8xf32, #tpu.memory_space<vmem>>, vector<4x8xf32>
    %cst_305 = arith.constant dense<0.000000e+00> : vector<256x8xf32>
    %228 = tpu.matmul %226, %227, %cst_305 {dimension_numbers = #tpu.dot_dimension_numbers<[1], [0], [0], [1], [0, 0, 1, 1], [], []>} : vector<256x4xf32>, vector<4x8xf32>, vector<256x8xf32> -> vector<256x8xf32>
    %229 = arith.addf %224, %228 : vector<256x8xf32>
    %c0_306 = arith.constant 0 : index
    %c0_307 = arith.constant 0 : index
    %230 = vector.load %arg8[%c0_306, %c0_307] : memref<1x8xf32, #tpu.memory_space<vmem>>, vector<1x8xf32>
    %231 = vector.broadcast %230 : vector<1x8xf32> to vector<256x8xf32>
    %232 = arith.addf %229, %231 : vector<256x8xf32>
    %cst_308 = arith.constant 0.000000e+00 : f32
    %233 = vector.broadcast %cst_308 : f32 to vector<256x8xf32>
    %234 = arith.maximumf %232, %233 : vector<256x8xf32>
    %235 = tpu.concatenate %33, %95, %234, %36 in 1 : vector<256x8xf32>, vector<256x16xf32>, vector<256x8xf32>, vector<256x8xf32> -> vector<256x40xf32>
    %236 = vector.shape_cast %235 : vector<256x40xf32> to vector<1x256x40xf32>
    %c0_309 = arith.constant 0 : index
    %c0_310 = arith.constant 0 : index
    %c0_311 = arith.constant 0 : index
    %237 = vector.load %arg9[%c0_309, %c0_310, %c0_311] : memref<1x256x40xf32, #tpu.memory_space<vmem>>, vector<1x256x40xf32>
    tpu.vector_store %arg9[%c0_309, %c0_310, %c0_311], %236 {strides = array<i32>} : memref<1x256x40xf32, #tpu.memory_space<vmem>>, vector<1x256x40xf32>,
    return
  }
  func.func @transform_0(%arg0: i32) -> (i32, i32, i32) {
    %c0_i32 = arith.constant 0 : i32
    %c0_i32_0 = arith.constant 0 : i32
    %c0_i32_1 = arith.constant 0 : i32
    return %arg0, %c0_i32, %c0_i32_0 : i32, i32, i32
  }
  func.func @transform_1(%arg0: i32) -> (i32, i32) {
    %c0_i32 = arith.constant 0 : i32
    %c0_i32_0 = arith.constant 0 : i32
    %c0_i32_1 = arith.constant 0 : i32
    return %c0_i32, %c0_i32_0 : i32, i32
  }
  func.func @transform_2(%arg0: i32) -> (i32, i32) {
    %c0_i32 = arith.constant 0 : i32
    %c0_i32_0 = arith.constant 0 : i32
    %c0_i32_1 = arith.constant 0 : i32
    return %c0_i32, %c0_i32_0 : i32, i32
  }
  func.func @transform_3(%arg0: i32) -> (i32, i32) {
    %c0_i32 = arith.constant 0 : i32
    %c0_i32_0 = arith.constant 0 : i32
    %c0_i32_1 = arith.constant 0 : i32
    return %c0_i32, %c0_i32_0 : i32, i32
  }
  func.func @transform_4(%arg0: i32) -> (i32, i32) {
    %c0_i32 = arith.constant 0 : i32
    %c0_i32_0 = arith.constant 0 : i32
    %c0_i32_1 = arith.constant 0 : i32
    return %c0_i32, %c0_i32_0 : i32, i32
  }
  func.func @transform_5(%arg0: i32) -> (i32, i32) {
    %c0_i32 = arith.constant 0 : i32
    %c0_i32_0 = arith.constant 0 : i32
    %c0_i32_1 = arith.constant 0 : i32
    return %c0_i32, %c0_i32_0 : i32, i32
  }
  func.func @transform_6(%arg0: i32) -> (i32, i32) {
    %c0_i32 = arith.constant 0 : i32
    %c0_i32_0 = arith.constant 0 : i32
    %c0_i32_1 = arith.constant 0 : i32
    return %c0_i32, %c0_i32_0 : i32, i32
  }
  func.func @transform_7(%arg0: i32) -> (i32, i32) {
    %c0_i32 = arith.constant 0 : i32
    %c0_i32_0 = arith.constant 0 : i32
    %c0_i32_1 = arith.constant 0 : i32
    return %c0_i32, %c0_i32_0 : i32, i32
  }
  func.func @transform_8(%arg0: i32) -> (i32, i32, i32) {
    %c0_i32 = arith.constant 0 : i32
    %c0_i32_0 = arith.constant 0 : i32
    %c0_i32_1 = arith.constant 0 : i32
    return %arg0, %c0_i32, %c0_i32_0 : i32, i32, i32
  }
}

</mosaic_0001>

<bundles_post_ra>
// kernel: inception_block.1
= control target key start
LH: loop header
LB: loop body
LE: loop exit
PB: predicated region body
PF: predicated region fallthrough
CT: control target
= control target key end

     0   :  { %13 = vsyncpa [#allocation6], 0  ;;  %s18218_s0 = inlined_call_operand.vmem [shape: f32[2,256,4], index: 0, kind: input, shape index: {}]   ;;  %s18219_s1 = inlined_call_operand.vmem [shape: f32[4,28], index: 1, kind: input, shape index: {}]   ;;  %s18220_s2 = inlined_call_operand.vmem [shape: f32[4,28], index: 2, kind: input, shape index: {}]   ;;  %s18221_s3 = inlined_call_operand.vmem [shape: f32[1,28], index: 3, kind: input, shape index: {}]   ;;  %s18222_s4 = inlined_call_operand.vmem [shape: f32[72,16], index: 4, kind: input, shape index: {}]   ;;  %s18223_s5 = inlined_call_operand.vmem [shape: f32[1,16], index: 5, kind: input, shape index: {}]   ;;  %s18224_s6 = inlined_call_operand.vmem [shape: f32[100,8], index: 6, kind: input, shape index: {}]   ;;  %s18225_s7 = inlined_call_operand.vmem [shape: f32[1,8], index: 7, kind: input, shape index: {}]   ;;  %s18226_s8 = inlined_call_operand.hbm [shape: f32[2,256,40], index: 8, kind: output, shape index: {}]  }
   0x1   :  { %15 = vsyncpa [#allocation6 + $0x1], 0  ;;  %s12885_s27 = smov 0   ;;  %s12887_s28 = smov 0  }
   0x2   :  { %s12889_s29 = smov 0   ;;  %s12891_s30 = smov 0  }
   0x3 LB: > { %s12906_s9 = sadd.s32 4294967295, %s12830_s30   ;;  %s11508_s10 = sadd.s32 4294967294, %s12830_s30   ;;  %s12830_s30 = sphi %s12891_s30, %s18976_s30   ;;  %s12826_s29 = sphi %s12889_s29, %s18975_s29   ;;  %s12822_s28 = sphi %s12887_s28, %s18974_s28   ;;  %s12818_s27 = sphi %s12885_s27, %s18973_s27  }
   0x4   : > { %s12910_s11 = sadd.s32 1, %s12830_s30   ;;  %s201_s12 = sadd.s32 1, %s12826_s29 }
   0x5   : > { %s198_s13 = ssub.s32 %s12830_s30, %s12910_s11  ;;  %p211_p0 = scmp.ne.s32.totalorder %s12826_s29, %s12822_s28 }
   0x6   : > { %p199_p1 = scmp.eq.s32.totalorder %s198_s13, 0  ;;  %p212_p2 = scmp.eq.s32.totalorder %s12906_s9, 1 }
   0x7   : > { %p217_p3 = scmp.ne.s32.totalorder %s12822_s28, %s12818_s27  ;;  %p218_p4 = scmp.eq.s32.totalorder %s11508_s10, 1 }
   0x8   : > { %s12921_s14 = scalar_select %p199_p1, %s12826_s29, %s201_s12  }
   0x9   : > { %p12923_p5 = por %p212_p2, %p211_p0  ;;  %p12927_p6 = por %p218_p4, %p217_p3 }
   0xa   : > { %p11511_p7 = scmp.ge.s32.totalorder %s12830_s30, 1  ;;  %p265_p8 = scmp.lt.s32.totalorder %s12830_s30, 3 }
   0xc   : > { %p266_p9 = pnand %p11511_p7, %p265_p8 }
   0xe   : > { %269 = sbr.rel (%p266_p9) target bundleno = 2910 (0xb5e), region = 52 }
  0x13   : > { %v659_v0 = vld [vmem:[%s18219_s1] sm:$0xf]  ;;  %vm757_vm0 = vcmask 1043456   ;;  %p299_p10 = scmp.lt.s32.totalorder %s12906_s9, 1  ;;  %vm336_vm1 = vcmask 31744   ;;  %vm345_vm2 = vcmask 24576  }
  0x14   : > { %v660_v1 = vld [vmem:[%s18220_s2] sm:$0xf]  ;;  %11548 = vmatpush.msk.msra.mxu1 %vm757_vm0, %v659_v0  ;;  %v12832_v2 = vmov -1e+30   ;;  %vm339_vm3 = vcmask 25600   ;;  %s12833_s12 = smov 120  }
  0x15   : > { %11515 = vmatpush.msk.msra.mxu0 %vm757_vm0, %v660_v1  ;;  %s300_s21 = scalar_select %p299_p10, %s12906_s9, 1  ;;  %337 = vst.msk [vmem:[#allocation2] sm:$0xff] %vm336_vm1, %v12832_v2  ;;  %vm1154_vm4 = vcmask 64512   ;;  %vm1163_vm5 = vcmask 57344   ;;  %vm1157_vm6 = vcmask 58368   ;;  %vm3834_vm7 = vcmask 27648  }
  0x16   : > { %338 = vst.msk [vmem:[#allocation2 + $0x8] sm:$0xff] %vm336_vm1, %v12832_v2  ;;  %s12835_s18 = smov 112   ;;  %s12838_s23 = smov 24   ;;  %vm11331_vm8 = vcmask 195584   ;;  %vm11364_vm9 = vcmask 261120   ;;  %vm11397_vm10 = vcmask 326656  }
  0x17   : > { %s12699_s22 = sshll.u32 %s300_s21, 8  ;;  %346 = vst.msk [vmem:[#allocation2] sm:$0x1] %vm345_vm2, %v12832_v2  ;;  %s296_s24 = sand.u32 1, %s12822_s28  }
  0x18   : > { %s12952_s25 = scalar_lea.vmem %s18218_s0, %s12699_s22  ;;  %347 = vst.msk [vmem:[#allocation2 + $0x18] sm:$0x1] %vm345_vm2, %v12832_v2  ;;  %s11512_s26 = sshll.u32 %s296_s24, 8 }
  0x19   : > { %v304_v3 = vld [vmem:[%s12952_s25] sm:$0xff]  ;;  %v305_v4 = vld [vmem:[%s12952_s25 + $0x8] sm:$0xff]  ;;  %v306_v5 = vld [vmem:[%s12952_s25 + $0x10] sm:$0xff]  ;;  %348 = vst.msk [vmem:[#allocation2 + $0x30] sm:$0x1] %vm345_vm2, %v12832_v2  ;;  %s17869_s10 = scalar_lea.vmem [#allocation5], %s11512_s26 }
  0x1a   : > { %383 = vst.msk [vmem:[#allocation2 + $0x19] sm:$0xff] %vm336_vm1, %v304_v3  ;;  %11549 = vmatmul.msk.f32.vlgmr.msra.gmra.mxu1 %vm336_vm1, %v304_v3  ;;  %v307_v6 = vld [vmem:[%s12952_s25 + $0x18] sm:$0xff]  ;;  %v308_v24 = vld [vmem:[%s12952_s25 + $0x20] sm:$0xff]  ;;  %v309_v27 = vld [vmem:[%s12952_s25 + $0x28] sm:$0xff]  ;;  %s11431_s20 = scalar_lea.sflag [#allocation6], %s296_s24 }
  0x1b   : > { %384 = vst.msk [vmem:[#allocation2 + $0x21] sm:$0xff] %vm336_vm1, %v305_v4  ;;  %v310_v30 = vld [vmem:[%s12952_s25 + $0x30] sm:$0xff]  ;;  %v311_v32 = vld [vmem:[%s12952_s25 + $0x38] sm:$0xff]  ;;  %v312_v41 = vld [vmem:[%s12952_s25 + $0x40] sm:$0xff] }
  0x1c   : > { %385 = vst.msk [vmem:[#allocation2 + $0x31] sm:$0xff] %vm336_vm1, %v306_v5  ;;  %v313_v46 = vld [vmem:[%s12952_s25 + $0x48] sm:$0xff]  ;;  %v314_v62 = vld [vmem:[%s12952_s25 + $0x50] sm:$0xff]  ;;  %v315_v63 = vld [vmem:[%s12952_s25 + $0x58] sm:$0xff] }
  0x1d   : > { %386 = vst.msk [vmem:[#allocation2 + $0x39] sm:$0xff] %vm336_vm1, %v307_v6  ;;  %v451_v7 = vld [vmem:[#allocation2 + $0x1] sm:$0xff] }
  0x1e   : > { %v415_v8 = vld [vmem:[#allocation2] sm:$0xff]  ;;  %342 = vst.msk [vmem:[#allocation2 + $0x198] sm:$0xff] %vm336_vm1, %v12832_v2  ;;  %v416_v33 = vld [vmem:[#allocation2 + $0x8] sm:$0xff] }
  0x1f   : > { %v487_v9 = vmax.f32 %v415_v8, %v451_v7  ;;  %v523_v10 = vld [vmem:[#allocation2 + $0x2] sm:$0xff]  ;;  %343 = vst.msk [vmem:[#allocation2 + $0x1a0] sm:$0xff] %vm336_vm1, %v12832_v2 }
  0x20   : > { %349 = vst.msk [vmem:[#allocation2 + $0x48] sm:$0x1] %vm345_vm2, %v12832_v2 }
  0x21   : > { %v417_v11 = vld [vmem:[#allocation2 + $0x18] sm:$0xff]  ;;  %350 = vst.msk [vmem:[#allocation2 + $0x60] sm:$0x1] %vm345_vm2, %v12832_v2  ;;  %v559_v15 = vmax.f32 %v487_v9, %v523_v10 }
  0x22   : > { %v453_v12 = vld [vmem:[#allocation2 + $0x19] sm:$0xff]  ;;  %351 = vst.msk [vmem:[#allocation2 + $0x78] sm:$0x1] %vm345_vm2, %v12832_v2  ;;  %11550 = vmatmul.msk.f32.gmra.mxu1 %vm336_vm1, %v305_v4  ;;  %v454_v26 = vld [vmem:[#allocation2 + $0x21] sm:$0xff] }
  0x23   : > { %v489_v13 = vmax.f32 %v417_v11, %v453_v12  ;;  %v525_v14 = vld [vmem:[#allocation2 + $0x1a] sm:$0xff]  ;;  %v419_v16 = vld [vmem:[#allocation2 + $0x30] sm:$0xff]  ;;  %352 = vst.msk [vmem:[#allocation2 + $0x90] sm:$0x1] %vm345_vm2, %v12832_v2 }
  0x24   : > { %v455_v17 = vld [vmem:[#allocation2 + $0x31] sm:$0xff]  ;;  %353 = vst.msk [vmem:[#allocation2 + $0xa8] sm:$0x1] %vm345_vm2, %v12832_v2  ;;  %v418_v25 = vld [vmem:[#allocation2 + $0x20] sm:$0xff] }
  0x25   : > { %v491_v18 = vmax.f32 %v419_v16, %v455_v17  ;;  %v527_v19 = vld [vmem:[#allocation2 + $0x32] sm:$0xff]  ;;  %v12980_v20 = vmax.f32 %v489_v13, %v525_v14  ;;  %354 = vst.msk [vmem:[#allocation2 + $0xc0] sm:$0x1] %vm345_vm2, %v12832_v2  ;;  %v490_v31 = vmax.f32 %v418_v25, %v454_v26  ;;  %v316_v14 = vld [vmem:[%s12952_s25 + $0x60] sm:$0xff] }
  0x26   : > { %355 = vst.msk [vmem:[#allocation2 + $0xd8] sm:$0x1] %vm345_vm2, %v12832_v2  ;;  %v420_v28 = vld [vmem:[#allocation2 + $0x38] sm:$0xff] }
  0x27   : > { %v12986_v21 = vmax.f32 %v491_v18, %v527_v19  ;;  %v595_v22 = vmax.f32 %v559_v15, %v12980_v20  ;;  %356 = vst.msk [vmem:[#allocation2 + $0xf0] sm:$0x1] %vm345_vm2, %v12832_v2  ;;  %v456_v29 = vld [vmem:[#allocation2 + $0x39] sm:$0xff]  ;;  %v317_v15 = vld [vmem:[%s12952_s25 + $0x68] sm:$0xff] }
  0x28   : > { %357 = vst.msk [vmem:[#allocation2 + $0x108] sm:$0x1] %vm345_vm2, %v12832_v2  ;;  %v492_v35 = vmax.f32 %v420_v28, %v456_v29 }
  0x29   : > { %v627_v23 = vmax.f32 %v595_v22, %v12986_v21  ;;  %358 = vst.msk [vmem:[#allocation2 + $0x120] sm:$0x1] %vm345_vm2, %v12832_v2  ;;  %v597_v52 = vmax.f32 %v12980_v20, %v12986_v21 }
  0x2a   : > { %359 = vst.msk [vmem:[#allocation2 + $0x138] sm:$0x1] %vm345_vm2, %v12832_v2  ;;  %11551 = vmatmul.msk.f32.gmra.mxu1 %vm336_vm1, %v306_v5 }
  0x2b   : > { %11516 = vmatmul.msk.f32.vlgmr.msra.gmra.mxu0 %vm336_vm1, %v627_v23  ;;  %360 = vst.msk [vmem:[#allocation2 + $0x150] sm:$0x1] %vm345_vm2, %v12832_v2 }
  0x2c   : > { %361 = vst.msk [vmem:[#allocation2 + $0x168] sm:$0x1] %vm345_vm2, %v12832_v2 }
  0x2d   : > { %362 = vst.msk [vmem:[#allocation2 + $0x180] sm:$0x1] %vm345_vm2, %v12832_v2 }
  0x2e   : > { %365 = vst.msk [vmem:[#allocation2 + $0x29] sm:$0x1] %vm345_vm2, %v12832_v2 }
  0x2f   : > { %366 = vst.msk [vmem:[#allocation2 + $0x41] sm:$0x1] %vm345_vm2, %v12832_v2 }
  0x30   : > { %367 = vst.msk [vmem:[#allocation2 + $0x59] sm:$0x1] %vm345_vm2, %v12832_v2 }
  0x31   : > { %368 = vst.msk [vmem:[#allocation2 + $0x71] sm:$0x1] %vm345_vm2, %v12832_v2 }
  0x32   : > { %369 = vst.msk [vmem:[#allocation2 + $0x89] sm:$0x1] %vm345_vm2, %v12832_v2  ;;  %11552 = vmatmul.msk.f32.gmra.mxu1 %vm336_vm1, %v307_v6 }
  0x33   : > { %370 = vst.msk [vmem:[#allocation2 + $0xa1] sm:$0x1] %vm345_vm2, %v12832_v2 }
  0x34   : > { %371 = vst.msk [vmem:[#allocation2 + $0xb9] sm:$0x1] %vm345_vm2, %v12832_v2 }
  0x35   : > { %372 = vst.msk [vmem:[#allocation2 + $0xd1] sm:$0x1] %vm345_vm2, %v12832_v2  ;;  %v526_v34 = vld [vmem:[#allocation2 + $0x22] sm:$0xff] }
  0x36   : > { %373 = vst.msk [vmem:[#allocation2 + $0xe9] sm:$0x1] %vm345_vm2, %v12832_v2  ;;  %v528_v37 = vld [vmem:[#allocation2 + $0x3a] sm:$0xff]  ;;  %v562_v40 = vmax.f32 %v490_v31, %v526_v34 }
  0x37   : > { %374 = vst.msk [vmem:[#allocation2 + $0x101] sm:$0x1] %vm345_vm2, %v12832_v2  ;;  %v564_v43 = vmax.f32 %v492_v35, %v528_v37  ;;  %v319_v31 = vld [vmem:[%s12952_s25 + $0x78] sm:$0xff] }
  0x38   : > { %375 = vst.msk [vmem:[#allocation2 + $0x119] sm:$0x1] %vm345_vm2, %v12832_v2 }
  0x39   : > { %376 = vst.msk [vmem:[#allocation2 + $0x131] sm:$0x1] %vm345_vm2, %v12832_v2  ;;  %v598_v59 = vmax.f32 %v562_v40, %v564_v43 }
  0x3a   : > { %377 = vst.msk [vmem:[#allocation2 + $0x149] sm:$0x1] %vm345_vm2, %v12832_v2  ;;  %11553 = vmatmul.msk.f32.gmra.mxu1 %vm336_vm1, %v308_v24 }
  0x3b   : > { %378 = vst.msk [vmem:[#allocation2 + $0x161] sm:$0x1] %vm345_vm2, %v12832_v2 }
  0x3c   : > { %379 = vst.msk [vmem:[#allocation2 + $0x179] sm:$0x1] %vm345_vm2, %v12832_v2 }
  0x3d   : > { %380 = vst.msk [vmem:[#allocation2 + $0x191] sm:$0x1] %vm345_vm2, %v12832_v2 }
  0x3e   : > { %363 = vst.msk [vmem:[#allocation2 + $0x198] sm:$0x1] %vm345_vm2, %v12832_v2 }
  0x3f   : > { %340 = vst.msk [vmem:[#allocation2 + $0x10] sm:$0x3] %vm339_vm3, %v12832_v2 }
  0x40   : > { %364 = vst.msk [vmem:[#allocation2 + $0x11] sm:$0x1] %vm345_vm2, %v12832_v2 }
  0x41   : > { %344 = vst.msk [vmem:[#allocation2 + $0x1a8] sm:$0x3] %vm339_vm3, %v12832_v2 }
  0x42   : > { %381 = vst.msk [vmem:[#allocation2 + $0x1a9] sm:$0x1] %vm345_vm2, %v12832_v2  ;;  %11554 = vmatmul.msk.f32.gmra.mxu1 %vm336_vm1, %v309_v27 }
  0x43   : > { %387 = vst.msk [vmem:[#allocation2 + $0x49] sm:$0xff] %vm336_vm1, %v308_v24 }
  0x44   : > { %388 = vst.msk [vmem:[#allocation2 + $0x51] sm:$0xff] %vm336_vm1, %v309_v27 }
  0x45   : > { %389 = vst.msk [vmem:[#allocation2 + $0x61] sm:$0xff] %vm336_vm1, %v310_v30 }
  0x46   : > { %v452_v36 = vld [vmem:[#allocation2 + $0x9] sm:$0xff]  ;;  %390 = vst.msk [vmem:[#allocation2 + $0x69] sm:$0xff] %vm336_vm1, %v311_v32 }
  0x47   : > { %v488_v38 = vmax.f32 %v416_v33, %v452_v36  ;;  %v524_v39 = vld [vmem:[#allocation2 + $0xa] sm:$0xff]  ;;  %391 = vst.msk [vmem:[#allocation2 + $0x79] sm:$0xff] %vm336_vm1, %v312_v41 }
  0x48   : > { %392 = vst.msk [vmem:[#allocation2 + $0x81] sm:$0xff] %vm336_vm1, %v313_v46 }
  0x49   : > { %v560_v42 = vmax.f32 %v488_v38, %v524_v39  ;;  %393 = vst.msk [vmem:[#allocation2 + $0x91] sm:$0xff] %vm336_vm1, %v314_v62 }
  0x4a   : > { %v421_v44 = vld [vmem:[#allocation2 + $0x48] sm:$0xff]  ;;  %11555 = vmatmul.msk.f32.gmra.mxu1 %vm336_vm1, %v310_v30  ;;  %394 = vst.msk [vmem:[#allocation2 + $0x99] sm:$0xff] %vm336_vm1, %v315_v63  ;;  %v318_v30 = vld [vmem:[%s12952_s25 + $0x70] sm:$0xff] }
  0x4b   : > { %v457_v45 = vld [vmem:[#allocation2 + $0x49] sm:$0xff]  ;;  %v596_v47 = vmax.f32 %v560_v42, %v562_v40  ;;  %v458_v54 = vld [vmem:[#allocation2 + $0x51] sm:$0xff]  ;;  %395 = vst.msk [vmem:[#allocation2 + $0xa9] sm:$0xff] %vm336_vm1, %v316_v14 }
  0x4c   : > { %v493_v48 = vmax.f32 %v421_v44, %v457_v45  ;;  %v529_v49 = vld [vmem:[#allocation2 + $0x4a] sm:$0xff]  ;;  %v530_v57 = vld [vmem:[#allocation2 + $0x52] sm:$0xff]  ;;  %v423_v60 = vld [vmem:[#allocation2 + $0x60] sm:$0xff]  ;;  %396 = vst.msk [vmem:[#allocation2 + $0xb1] sm:$0xff] %vm336_vm1, %v317_v15 }
  0x4d   : > { %v628_v50 = vmax.f32 %v596_v47, %v564_v43  ;;  %v422_v53 = vld [vmem:[#allocation2 + $0x50] sm:$0xff]  ;;  %v459_v61 = vld [vmem:[#allocation2 + $0x61] sm:$0xff]  ;;  %397 = vst.msk [vmem:[#allocation2 + $0xc1] sm:$0xff] %vm336_vm1, %v318_v30 }
  0x4e   : > { %v565_v51 = vmax.f32 %v493_v48, %v529_v49  ;;  %v494_v56 = vmax.f32 %v422_v53, %v458_v54  ;;  %v495_v1 = vmax.f32 %v423_v60, %v459_v61  ;;  %v531_v2 = vld [vmem:[#allocation2 + $0x62] sm:$0xff]  ;;  %v532_v9 = vld [vmem:[#allocation2 + $0x6a] sm:$0xff]  ;;  %v425_v12 = vld [vmem:[#allocation2 + $0x78] sm:$0xff]  ;;  %398 = vst.msk [vmem:[#allocation2 + $0xc9] sm:$0xff] %vm336_vm1, %v319_v31 }
  0x4f   : > { %11517 = vmatmul.msk.f32.gmra.mxu0 %vm336_vm1, %v628_v50  ;;  %v424_v5 = vld [vmem:[#allocation2 + $0x68] sm:$0xff]  ;;  %v461_v13 = vld [vmem:[#allocation2 + $0x79] sm:$0xff] }
  0x50   : > { %v629_v55 = vmax.f32 %v597_v52, %v565_v51  ;;  %v566_v58 = vmax.f32 %v494_v56, %v530_v57  ;;  %v567_v3 = vmax.f32 %v495_v1, %v531_v2  ;;  %v599_v4 = vmax.f32 %v12986_v21, %v565_v51  ;;  %v460_v6 = vld [vmem:[#allocation2 + $0x69] sm:$0xff]  ;;  %v533_v18 = vld [vmem:[#allocation2 + $0x7a] sm:$0xff]  ;;  %v463_v29 = vld [vmem:[#allocation2 + $0x91] sm:$0xff] }
  0x51   : > { %v496_v8 = vmax.f32 %v424_v5, %v460_v6  ;;  %v497_v17 = vmax.f32 %v425_v12, %v461_v13  ;;  %v426_v21 = vld [vmem:[#allocation2 + $0x80] sm:$0xff]  ;;  %v427_v28 = vld [vmem:[#allocation2 + $0x90] sm:$0xff]  ;;  %v428_v37 = vld [vmem:[#allocation2 + $0x98] sm:$0xff] }
  0x52   : > { %11556 = vmatmul.msk.f32.gmra.mxu1 %vm336_vm1, %v311_v32  ;;  %v630_v0 = vmax.f32 %v598_v59, %v566_v58  ;;  %v631_v7 = vmax.f32 %v599_v4, %v567_v3  ;;  %v600_v11 = vmax.f32 %v564_v43, %v566_v58  ;;  %v601_v20 = vmax.f32 %v565_v51, %v567_v3  ;;  %v462_v22 = vld [vmem:[#allocation2 + $0x81] sm:$0xff]  ;;  %v535_v34 = vld [vmem:[#allocation2 + $0x92] sm:$0xff]  ;;  %v465_v45 = vld [vmem:[#allocation2 + $0xa9] sm:$0xff] }
  0x53   : > { %v568_v10 = vmax.f32 %v496_v8, %v532_v9  ;;  %v569_v19 = vmax.f32 %v497_v17, %v533_v18  ;;  %v498_v24 = vmax.f32 %v426_v21, %v462_v22  ;;  %v534_v25 = vld [vmem:[#allocation2 + $0x82] sm:$0xff]  ;;  %v499_v33 = vmax.f32 %v427_v28, %v463_v29  ;;  %v464_v38 = vld [vmem:[#allocation2 + $0x99] sm:$0xff]  ;;  %v537_v50 = vld [vmem:[#allocation2 + $0xaa] sm:$0xff] }
  0x54   : > { %v500_v40 = vmax.f32 %v428_v37, %v464_v38  ;;  %v429_v44 = vld [vmem:[#allocation2 + $0xa8] sm:$0xff]  ;;  %v430_v53 = vld [vmem:[#allocation2 + $0xb0] sm:$0xff]  ;;  %v431_v60 = vld [vmem:[#allocation2 + $0xc0] sm:$0xff] }
  0x55   : > { %v632_v16 = vmax.f32 %v600_v11, %v568_v10  ;;  %v633_v23 = vmax.f32 %v601_v20, %v569_v19  ;;  %v570_v26 = vmax.f32 %v498_v24, %v534_v25  ;;  %v602_v27 = vmax.f32 %v566_v58, %v568_v10  ;;  %v321_v47 = vld [vmem:[%s12952_s25 + $0x88] sm:$0xff]  ;;  %v466_v54 = vld [vmem:[#allocation2 + $0xb1] sm:$0xff]  ;;  %v13117_v11 = vld [vmem:[%s18221_s3] ss:$0 sm:$0xff] }
  0x56   : > { %v571_v35 = vmax.f32 %v499_v33, %v535_v34  ;;  %v603_v36 = vmax.f32 %v567_v3, %v569_v19  ;;  %v501_v49 = vmax.f32 %v429_v44, %v465_v45  ;;  %400 = vst.msk [vmem:[#allocation2 + $0xe1] sm:$0xff] %vm336_vm1, %v321_v47  ;;  %v502_v56 = vmax.f32 %v430_v53, %v466_v54  ;;  %v538_v57 = vld [vmem:[#allocation2 + $0xb2] sm:$0xff]  ;;  %v467_v61 = vld [vmem:[#allocation2 + $0xc1] sm:$0xff]  ;;  %v468_v6 = vld [vmem:[#allocation2 + $0xc9] sm:$0xff] }
  0x57   : > { %11518 = vmatmul.msk.f32.gmra.mxu0 %vm336_vm1, %v629_v55  ;;  %v634_v32 = vmax.f32 %v602_v27, %v570_v26  ;;  %v604_v43 = vmax.f32 %v568_v10, %v570_v26  ;;  %v503_v1 = vmax.f32 %v431_v60, %v467_v61  ;;  %v539_v2 = vld [vmem:[#allocation2 + $0xc2] sm:$0xff]  ;;  %v540_v9 = vld [vmem:[#allocation2 + $0xca] sm:$0xff] }
  0x58   : > { %v635_v39 = vmax.f32 %v603_v36, %v571_v35  ;;  %v573_v51 = vmax.f32 %v501_v49, %v537_v50  ;;  %v605_v52 = vmax.f32 %v569_v19, %v571_v35  ;;  %v13104_v58 = vmax.f32 %v502_v56, %v538_v57  ;;  %v432_v5 = vld [vmem:[#allocation2 + $0xc8] sm:$0xff]  ;;  %v324_v18 = vld [vmem:[%s12952_s25 + $0xa0] sm:$0xff]  ;;  %v326_v38 = vld [vmem:[%s12952_s25 + $0xb0] sm:$0xff] }
  0x59   : > { %v575_v3 = vmax.f32 %v503_v1, %v539_v2  ;;  %v504_v8 = vmax.f32 %v432_v5, %v468_v6  ;;  %403 = vst.msk [vmem:[#allocation2 + $0x109] sm:$0xff] %vm336_vm1, %v324_v18  ;;  %v325_v20 = vld [vmem:[%s12952_s25 + $0xa8] sm:$0xff] }
  0x5a   : > { %11557 = vmatmul.msk.f32.gmra.mxu1 %vm336_vm1, %v312_v41  ;;  %v536_v41 = vld [vmem:[#allocation2 + $0x9a] sm:$0xff]  ;;  %v637_v55 = vmax.f32 %v605_v52, %v573_v51  ;;  %v607_v4 = vmax.f32 %v571_v35, %v573_v51  ;;  %404 = vst.msk [vmem:[#allocation2 + $0x111] sm:$0xff] %vm336_vm1, %v325_v20  ;;  %v329_v56 = vld [vmem:[%s12952_s25 + $0xc8] sm:$0xff] }
  0x5b   : > { %v572_v42 = vmax.f32 %v500_v40, %v536_v41  ;;  %v576_v12 = vmax.f32 %v504_v8, %v540_v9  ;;  %v609_v27 = vmax.f32 %v573_v51, %v575_v3  ;;  %405 = vst.msk [vmem:[#allocation2 + $0x121] sm:$0xff] %vm336_vm1, %v326_v38 }
  0x5c   : > { %408 = vst.msk [vmem:[#allocation2 + $0x141] sm:$0xff] %vm336_vm1, %v329_v56 }
  0x5d   : > { %v636_v48 = vmax.f32 %v604_v43, %v572_v42  ;;  %v606_v59 = vmax.f32 %v570_v26, %v572_v42  ;;  %v608_v13 = vmax.f32 %v572_v42, %v13104_v58  ;;  %v470_v29 = vld [vmem:[#allocation2 + $0xe1] sm:$0xff]  ;;  %v610_v34 = vmax.f32 %v13104_v58, %v576_v12 }
  0x5f   : > { %11519 = vmatmul.msk.f32.gmra.mxu0 %vm336_vm1, %v630_v0  ;;  %v638_v0 = vmax.f32 %v606_v59, %v13104_v58  ;;  %v640_v21 = vmax.f32 %v608_v13, %v576_v12 }
  0x60   : > { %v437_v53 = vld [vmem:[#allocation2 + $0x108] sm:$0xff] }
  0x61   : > { %v473_v54 = vld [vmem:[#allocation2 + $0x109] sm:$0xff]  ;;  %v546_v8 = vld [vmem:[#allocation2 + $0x112] sm:$0xff] }
  0x62   : > { %11558 = vmatmul.msk.f32.gmra.mxu1 %vm336_vm1, %v313_v46  ;;  %v320_v46 = vld [vmem:[%s12952_s25 + $0x80] sm:$0xff]  ;;  %v509_v58 = vmax.f32 %v437_v53, %v473_v54  ;;  %v545_v60 = vld [vmem:[#allocation2 + $0x10a] sm:$0xff] }
  0x63   : > { %399 = vst.msk [vmem:[#allocation2 + $0xd9] sm:$0xff] %vm336_vm1, %v320_v46  ;;  %v438_v2 = vld [vmem:[#allocation2 + $0x110] sm:$0xff] }
  0x67   : > { %11520 = vmatmul.msk.f32.gmra.mxu0 %vm336_vm1, %v631_v7  ;;  %v639_v7 = vmax.f32 %v607_v4, %v575_v3 }
  0x6a   : > { %11559 = vmatmul.msk.f32.gmra.mxu1 %vm336_vm1, %v314_v62  ;;  %v322_v62 = vld [vmem:[%s12952_s25 + $0x90] sm:$0xff]  ;;  %v434_v28 = vld [vmem:[#allocation2 + $0xe0] sm:$0xff] }
  0x6b   : > { %401 = vst.msk [vmem:[#allocation2 + $0xf1] sm:$0xff] %vm336_vm1, %v322_v62 }
  0x6f   : > { %11521 = vmatmul.msk.f32.gmra.mxu0 %vm336_vm1, %v632_v16  ;;  %v469_v16 = vld [vmem:[#allocation2 + $0xd9] sm:$0xff] }
  0x72   : > { %11560 = vmatmul.msk.f32.gmra.mxu1 %vm336_vm1, %v315_v63  ;;  %v323_v63 = vld [vmem:[%s12952_s25 + $0x98] sm:$0xff]  ;;  %v435_v35 = vld [vmem:[#allocation2 + $0xf0] sm:$0xff] }
  0x73   : > { %402 = vst.msk [vmem:[#allocation2 + $0xf9] sm:$0xff] %vm336_vm1, %v323_v63  ;;  %v471_v36 = vld [vmem:[#allocation2 + $0xf1] sm:$0xff] }
  0x74   : > { %v507_v41 = vmax.f32 %v435_v35, %v471_v36 }
  0x77   : > { %11522 = vmatmul.msk.f32.gmra.mxu0 %vm336_vm1, %v633_v23  ;;  %v541_v23 = vld [vmem:[#allocation2 + $0xda] sm:$0xff] }
  0x7a   : > { %11561 = vmatmul.msk.f32.gmra.mxu1 %vm336_vm1, %v316_v14  ;;  %v543_v42 = vld [vmem:[#allocation2 + $0xf2] sm:$0xff]  ;;  %v544_v50 = vld [vmem:[#allocation2 + $0xfa] sm:$0xff] }
  0x7b   : > { %v13144_v43 = vmax.f32 %v507_v41, %v543_v42  ;;  %v436_v45 = vld [vmem:[#allocation2 + $0xf8] sm:$0xff] }
  0x7f   : > { %11523 = vmatmul.msk.f32.gmra.mxu0 %vm336_vm1, %v634_v32  ;;  %v542_v32 = vld [vmem:[#allocation2 + $0xe2] sm:$0xff] }
  0x82   : > { %11562 = vmatmul.msk.f32.gmra.mxu1 %vm336_vm1, %v317_v15  ;;  %v433_v15 = vld [vmem:[#allocation2 + $0xd8] sm:$0xff] }
  0x83   : > { %v505_v22 = vmax.f32 %v433_v15, %v469_v16  ;;  %v439_v15 = vld [vmem:[#allocation2 + $0x120] sm:$0xff] }
  0x84   : > { %v475_v16 = vld [vmem:[#allocation2 + $0x121] sm:$0xff] }
  0x85   : > { %v577_v26 = vmax.f32 %v505_v22, %v541_v23 }
  0x87   : > { %11524 = vmatmul.msk.f32.gmra.mxu0 %vm336_vm1, %v635_v39  ;;  %v327_v39 = vld [vmem:[%s12952_s25 + $0xb8] sm:$0xff]  ;;  %v611_v44 = vmax.f32 %v575_v3, %v577_v26  ;;  %v613_v1 = vmax.f32 %v577_v26, %v13144_v43 }
  0x88   : > { %406 = vst.msk [vmem:[#allocation2 + $0x129] sm:$0xff] %vm336_vm1, %v327_v39  ;;  %v474_v3 = vld [vmem:[#allocation2 + $0x111] sm:$0xff] }
  0x89   : > { %v510_v6 = vmax.f32 %v438_v2, %v474_v3 }
  0x8a   : > { %11563 = vmatmul.msk.f32.gmra.mxu1 %vm336_vm1, %v318_v30  ;;  %v641_v30 = vmax.f32 %v609_v27, %v577_v26 }
  0x8b   : > { %v13171_v13 = vmax.f32 %v510_v6, %v546_v8  ;;  %v334_v6 = vld [vmem:[%s12952_s25 + $0xf0] sm:$0xff]  ;;  %v335_v8 = vld [vmem:[%s12952_s25 + $0xf8] sm:$0xff] }
  0x8c   : > { %413 = vst.msk [vmem:[#allocation2 + $0x181] sm:$0xff] %vm336_vm1, %v334_v6 }
  0x8d   : > { %414 = vst.msk [vmem:[#allocation2 + $0x189] sm:$0xff] %vm336_vm1, %v335_v8 }
  0x8f   : > { %11525 = vmatmul.msk.f32.gmra.mxu0 %vm336_vm1, %v636_v48  ;;  %v643_v48 = vmax.f32 %v611_v44, %v13144_v43  ;;  %v547_v23 = vld [vmem:[#allocation2 + $0x122] sm:$0xff]  ;;  %v548_v36 = vld [vmem:[#allocation2 + $0x12a] sm:$0xff] }
  0x92   : > { %11564 = vmatmul.msk.f32.gmra.mxu1 %vm336_vm1, %v319_v31  ;;  %v506_v31 = vmax.f32 %v434_v28, %v470_v29  ;;  %v440_v29 = vld [vmem:[#allocation2 + $0x128] sm:$0xff] }
  0x94   : > { %v13134_v33 = vmax.f32 %v506_v31, %v542_v32 }
  0x96   : > { %v642_v40 = vmax.f32 %v610_v34, %v13134_v33  ;;  %v612_v52 = vmax.f32 %v576_v12, %v13134_v33 }
  0x97   : > { %11526 = vmatmul.msk.f32.gmra.mxu0 %vm336_vm1, %v637_v55  ;;  %v990_v10 = vpop.f32.mrf.mxu1  ;;  %v328_v55 = vld [vmem:[%s12952_s25 + $0xc0] sm:$0xff] }
  0x98   : > { %407 = vst.msk [vmem:[#allocation2 + $0x139] sm:$0xff] %vm336_vm1, %v328_v55 }
  0x9a   : > { %11565 = vmatmul.msk.f32.gmra.mxu1 %vm336_vm1, %v320_v46  ;;  %v472_v46 = vld [vmem:[#allocation2 + $0xf9] sm:$0xff] }
  0x9b   : > { %v508_v49 = vmax.f32 %v436_v45, %v472_v46  ;;  %v333_v46 = vld [vmem:[%s12952_s25 + $0xe8] sm:$0xff] }
  0x9c   : > { %412 = vst.msk [vmem:[#allocation2 + $0x171] sm:$0xff] %vm336_vm1, %v333_v46 }
  0x9d   : > { %v13149_v51 = vmax.f32 %v508_v49, %v544_v50 }
  0x9f   : > { %11527 = vmatmul.msk.f32.gmra.mxu0 %vm336_vm1, %v638_v0  ;;  %v993_v25 = vpop.f32.mrf.mxu1  ;;  %v644_v57 = vmax.f32 %v612_v52, %v13149_v51  ;;  %v13160_v0 = vmax.f32 %v509_v58, %v545_v60  ;;  %v441_v41 = vld [vmem:[#allocation2 + $0x138] sm:$0xff] }
  0xa0   : > { %v477_v42 = vld [vmem:[#allocation2 + $0x139] sm:$0xff] }
  0xa1   : > { %v645_v5 = vmax.f32 %v613_v1, %v13160_v0  ;;  %v615_v28 = vmax.f32 %v13144_v43, %v13160_v0  ;;  %v332_v43 = vld [vmem:[%s12952_s25 + $0xe0] sm:$0xff] }
  0xa2   : > { %11566 = vmatmul.msk.f32.gmra.mxu1 %vm336_vm1, %v321_v47  ;;  %411 = vst.msk [vmem:[#allocation2 + $0x169] sm:$0xff] %vm336_vm1, %v332_v43  ;;  %v549_v50 = vld [vmem:[#allocation2 + $0x13a] sm:$0xff] }
  0xa7   : > { %11528 = vmatmul.msk.f32.gmra.mxu0 %vm336_vm1, %v639_v7  ;;  %v996_v37 = vpop.f32.mrf.mxu1 }
  0xa8   : > { %v778_v14 = vpop.f32.mrf.mxu0 }
  0xa9   : > { %v991_v17 = vadd.f32 %v990_v10, %v778_v14  ;;  %v614_v14 = vmax.f32 %v13134_v33, %v13149_v51 }
  0xaa   : > { %11567 = vmatmul.msk.f32.gmra.mxu1 %vm336_vm1, %v322_v62 }
  0xab   : > { %v1090_v19 = vadd.f32 %v13117_v11, %v991_v17  ;;  %v330_v17 = vld [vmem:[%s12952_s25 + $0xd0] sm:$0xff] }
  0xac   : > { %409 = vst.msk [vmem:[#allocation2 + $0x151] sm:$0xff] %vm336_vm1, %v330_v17 }
  0xad   : > { %v13127_v24 = vmax.f32 %v1090_v19, 0.0  ;;  %v331_v19 = vld [vmem:[%s12952_s25 + $0xd8] sm:$0xff]  ;;  %s12837_s25 = smov 8  }
  0xae   : > { %410 = vst.msk [vmem:[#allocation2 + $0x159] sm:$0xff] %vm336_vm1, %v331_v19 }
  0xaf   : > { %18416 = vst [vmem:[#allocation8_spill] sm:$0xff] %v13127_v24  ;;  %1232 = vrot.lane.b32.xlu0 %v13127_v24, %s12833_s12  ;;  %11529 = vmatmul.msk.f32.gmra.mxu0 %vm336_vm1, %v640_v21  ;;  %v999_v47 = vpop.f32.mrf.mxu1  ;;  %v511_v21 = vmax.f32 %v439_v15, %v475_v16 }
  0xb1   : > { %v13187_v27 = vmax.f32 %v511_v21, %v547_v23 }
  0xb2   : > { %11568 = vmatmul.msk.f32.gmra.mxu1 %vm336_vm1, %v323_v63 }
  0xb3   : > { %v647_v33 = vmax.f32 %v615_v28, %v13187_v27  ;;  %v617_v54 = vmax.f32 %v13160_v0, %v13187_v27  ;;  %v443_v3 = vld [vmem:[#allocation2 + $0x150] sm:$0xff] }
  0xb5   : > { %v480_v21 = vld [vmem:[#allocation2 + $0x159] sm:$0xff] }
  0xb6   : > { %v552_v28 = vld [vmem:[#allocation2 + $0x15a] sm:$0xff] }
  0xb7   : > { %11530 = vmatmul.msk.f32.gmra.mxu0 %vm336_vm1, %v641_v30  ;;  %v1002_v61 = vpop.f32.mrf.mxu1  ;;  %v476_v30 = vld [vmem:[#allocation2 + $0x129] sm:$0xff] }
  0xb8   : > { %v512_v34 = vmax.f32 %v440_v29, %v476_v30 }
  0xba   : > { %11569 = vmatmul.msk.f32.gmra.mxu1 %vm336_vm1, %v324_v18 }
  0xbf   : > { %11531 = vmatmul.msk.f32.gmra.mxu0 %vm336_vm1, %v642_v40  ;;  %v1005_v10 = vpop.f32.mrf.mxu1  ;;  %v616_v40 = vmax.f32 %v13149_v51, %v13171_v13 }
  0xc2   : > { %11570 = vmatmul.msk.f32.gmra.mxu1 %vm336_vm1, %v325_v20  ;;  %v646_v20 = vmax.f32 %v614_v14, %v13171_v13 }
  0xc7   : > { %11532 = vmatmul.msk.f32.gmra.mxu0 %vm336_vm1, %v643_v48  ;;  %v1008_v31 = vpop.f32.mrf.mxu1  ;;  %v513_v48 = vmax.f32 %v441_v41, %v477_v42  ;;  %v553_v41 = vld [vmem:[#allocation2 + $0x16a] sm:$0xff] }
  0xc9   : > { %v13215_v53 = vmax.f32 %v513_v48, %v549_v50  ;;  %v482_v48 = vld [vmem:[#allocation2 + $0x171] sm:$0xff] }
  0xca   : > { %11571 = vmatmul.msk.f32.gmra.mxu1 %vm336_vm1, %v326_v38 }
  0xcb   : > { %v649_v58 = vmax.f32 %v617_v54, %v13215_v53  ;;  %v554_v54 = vld [vmem:[#allocation2 + $0x172] sm:$0xff] }
  0xcc   : > { %v781_v59 = vpop.f32.mrf.mxu0 }
  0xcd   : > { %v994_v62 = vadd.f32 %v993_v25, %v781_v59 }
  0xcf   : > { %v1091_v63 = vadd.f32 %v13117_v11, %v994_v62  ;;  %11533 = vmatmul.msk.f32.gmra.mxu0 %vm336_vm1, %v644_v57  ;;  %v1011_v45 = vpop.f32.mrf.mxu1 }
  0xd1   : > { %v13163_v4 = vmax.f32 %v1091_v63, 0.0 }
  0xd2   : > { %11572 = vmatmul.msk.f32.gmra.mxu1 %vm336_vm1, %v327_v39  ;;  %v13199_v39 = vmax.f32 %v512_v34, %v548_v36  ;;  %v445_v34 = vld [vmem:[#allocation2 + $0x168] sm:$0xff] }
  0xd3   : > { %18417 = vst [vmem:[#allocation9_spill] sm:$0xff] %v13163_v4  ;;  %1234 = vrot.lane.b32.xlu0 %v13163_v4, %s12833_s12 }
  0xd4   : > { %v784_v7 = vpop.f32.mrf.mxu0  ;;  %v618_v2 = vmax.f32 %v13171_v13, %v13199_v39  ;;  %v551_v13 = vld [vmem:[#allocation2 + $0x152] sm:$0xff] }
  0xd5   : > { %v997_v9 = vadd.f32 %v996_v37, %v784_v7 }
  0xd7   : > { %v1092_v12 = vadd.f32 %v13117_v11, %v997_v9  ;;  %11534 = vmatmul.msk.f32.gmra.mxu0 %vm336_vm1, %v645_v5  ;;  %v1014_v62 = vpop.f32.mrf.mxu1  ;;  %v479_v5 = vld [vmem:[#allocation2 + $0x151] sm:$0xff] }
  0xd9   : > { %v13176_v18 = vmax.f32 %v1092_v12, 0.0 }
  0xda   : > { %11573 = vmatmul.msk.f32.gmra.mxu1 %vm336_vm1, %v328_v55  ;;  %v442_v55 = vld [vmem:[#allocation2 + $0x140] sm:$0xff] }
  0xdb   : > { %18418 = vst [vmem:[#allocation10_spill] sm:$0xff] %v13176_v18  ;;  %1236 = vrot.lane.b32.xlu1 %v13176_v18, %s12833_s12 }
  0xdc   : > { %v787_v22 = vpop.f32.mrf.mxu0 }
  0xdd   : > { %v1000_v25 = vadd.f32 %v999_v47, %v787_v22  ;;  %v648_v47 = vmax.f32 %v616_v40, %v13199_v39 }
  0xdf   : > { %v1093_v26 = vadd.f32 %v13117_v11, %v1000_v25  ;;  %11535 = vmatmul.msk.f32.gmra.mxu0 %vm336_vm1, %v646_v20  ;;  %v1017_v15 = vpop.f32.mrf.mxu1  ;;  %v444_v20 = vld [vmem:[#allocation2 + $0x158] sm:$0xff] }
  0xe0   : > { %v516_v25 = vmax.f32 %v444_v20, %v480_v21  ;;  %v556_v21 = vld [vmem:[#allocation2 + $0x18a] sm:$0xff] }
  0xe1   : > { %v13191_v32 = vmax.f32 %v1093_v26, 0.0 }
  0xe2   : > { %11574 = vmatmul.msk.f32.gmra.mxu1 %vm336_vm1, %v329_v56  ;;  %v478_v56 = vld [vmem:[#allocation2 + $0x141] sm:$0xff] }
  0xe3   : > { %18419 = vst [vmem:[#allocation11_spill] sm:$0xff] %v13191_v32  ;;  %1238 = vrot.lane.b32.xlu1 %v13191_v32, %s12833_s12  ;;  %v514_v59 = vmax.f32 %v442_v55, %v478_v56  ;;  %v1426_v55 = vld [vmem:[%s18222_s4 + $0x8] sm:$0xff]  ;;  %v1393_v56 = vld [vmem:[%s18222_s4] sm:$0xff] }
  0xe4   : > { %v790_v35 = vpop.f32.mrf.mxu0  ;;  %1538 = vmatpush.msra.mxu2 %v1426_v55  ;;  %1747 = vmatpush.msra.mxu3 %v1393_v56 }
  0xe5   : > { %v1003_v37 = vadd.f32 %v1002_v61, %v790_v35  ;;  %v550_v61 = vld [vmem:[#allocation2 + $0x142] sm:$0xff] }
  0xe6   : > { %v13227_v1 = vmax.f32 %v514_v59, %v550_v61  ;;  %v481_v35 = vld [vmem:[#allocation2 + $0x169] sm:$0xff] }
  0xe7   : > { %v1094_v38 = vadd.f32 %v13117_v11, %v1003_v37  ;;  %11536 = vmatmul.msk.f32.gmra.mxu0 %vm336_vm1, %v647_v33  ;;  %v1020_v33 = vpop.f32.mrf.mxu1 }
  0xe8   : > { %v650_v9 = vmax.f32 %v618_v2, %v13227_v1 }
  0xe9   : > { %v13204_v44 = vmax.f32 %v1094_v38, 0.0  ;;  %v517_v38 = vmax.f32 %v445_v34, %v481_v35 }
  0xea   : > { %11575 = vmatmul.msk.f32.gmra.mxu1 %vm336_vm1, %v330_v17 }
  0xeb   : > { %18420 = vst [vmem:[#allocation12_spill] sm:$0xff] %v13204_v44  ;;  %1240 = vrot.lane.b32.xlu2 %v13204_v44, %s12833_s12 }
  0xec   : > { %v793_v49 = vpop.f32.mrf.mxu0 }
  0xed   : > { %v1006_v51 = vadd.f32 %v1005_v10, %v793_v49  ;;  %v515_v10 = vmax.f32 %v443_v3, %v479_v5 }
  0xef   : > { %v1095_v52 = vadd.f32 %v13117_v11, %v1006_v51  ;;  %11537 = vmatmul.msk.f32.gmra.mxu0 %vm336_vm1, %v648_v47  ;;  %v13243_v17 = vmax.f32 %v515_v10, %v551_v13  ;;  %v446_v47 = vld [vmem:[#allocation2 + $0x170] sm:$0xff]  ;;  %v1023_v50 = vpop.f32.mrf.mxu1 }
  0xf1   : > { %v13219_v57 = vmax.f32 %v1095_v52, 0.0  ;;  %v518_v52 = vmax.f32 %v446_v47, %v482_v48  ;;  %v1877_v47 = vld [vmem:[%s18222_s4 + $0x10] sm:$0xff] }
  0xf2   : > { %11576 = vmatmul.msk.f32.gmra.mxu1 %vm336_vm1, %v331_v19  ;;  %v619_v19 = vmax.f32 %v13187_v27, %v13215_v53  ;;  %v13255_v27 = vmax.f32 %v516_v25, %v552_v28  ;;  %1989 = vmatpush.msrb.mxu0 %v1877_v47 }
  0xf3   : > { %18421 = vst [vmem:[#allocation13_spill] sm:$0xff] %v13219_v57  ;;  %1242 = vrot.lane.b32.xlu2 %v13219_v57, %s12833_s12  ;;  %v13306_v61 = vmax.f32 %v518_v52, %v554_v54 }
  0xf4   : > { %v796_v60 = vpop.f32.mrf.mxu0  ;;  %v651_v23 = vmax.f32 %v619_v19, %v13243_v17 }
  0xf5   : > { %v1009_v63 = vadd.f32 %v1008_v31, %v796_v60  ;;  %v620_v31 = vmax.f32 %v13199_v39, %v13227_v1 }
  0xf7   : > { %v1096_v0 = vadd.f32 %v13117_v11, %v1009_v63  ;;  %11538 = vmatmul.msk.f32.gmra.mxu0 %vm336_vm1, %v649_v58  ;;  %v652_v37 = vmax.f32 %v620_v31, %v13255_v27  ;;  %v447_v63 = vld [vmem:[#allocation2 + $0x180] sm:$0xff] }
  0xf8   : > { %v485_v31 = vld [vmem:[#allocation2 + $0x199] sm:$0xff] }
  0xf9   : > { %v13232_v7 = vmax.f32 %v1096_v0, 0.0  ;;  %v483_v0 = vld [vmem:[#allocation2 + $0x181] sm:$0xff] }
  0xfa   : > { %11577 = vmatmul.msk.f32.gmra.mxu1 %vm336_vm1, %v332_v43  ;;  %v18227_v43 = vmov 0.0   ;;  %v519_v3 = vmax.f32 %v447_v63, %v483_v0  ;;  %v450_v0 = vld [vmem:[#allocation2 + $0x1a0] sm:$0xff] }
  0xfb   : > { %18422 = vst [vmem:[#allocation14_spill] sm:$0xff] %v13232_v7  ;;  %1244 = vrot.lane.b32.xlu0 %v13232_v7, %s12833_s12 }
  0xfc   : > { %v799_v12 = vpop.f32.mrf.mxu0  ;;  %1155 = vst.msk [vmem:[#allocation3] sm:$0xff] %vm1154_vm4, %v18227_v43 }
  0xfd   : > { %v1012_v14 = vadd.f32 %v1011_v45, %v799_v12  ;;  %1156 = vst.msk [vmem:[#allocation3 + $0x8] sm:$0xff] %vm1154_vm4, %v18227_v43  ;;  %v13271_v45 = vmax.f32 %v517_v38, %v553_v41 }
  0xfe   : > { %1160 = vst.msk [vmem:[#allocation3 + $0x198] sm:$0xff] %vm1154_vm4, %v18227_v43 }
  0xff   : > { %v1097_v16 = vadd.f32 %v13117_v11, %v1012_v14  ;;  %11539 = vmatmul.msk.f32.gmra.mxu0 %vm336_vm1, %v650_v9  ;;  %1161 = vst.msk [vmem:[#allocation3 + $0x1a0] sm:$0xff] %vm1154_vm4, %v18227_v43  ;;  %v623_v13 = vmax.f32 %v13243_v17, %v13271_v45  ;;  %v448_v14 = vld [vmem:[#allocation2 + $0x188] sm:$0xff] }
 0x100   : > { %3832 = vst.msk [vmem:[#allocation4] sm:$0xff] %vm336_vm1, %v18227_v43 }
 0x101   : > { %v13247_v22 = vmax.f32 %v1097_v16, 0.0  ;;  %3833 = vst.msk [vmem:[#allocation4 + $0x8] sm:$0xff] %vm336_vm1, %v18227_v43 }
 0x102   : > { %11578 = vmatmul.msk.f32.gmra.mxu1 %vm336_vm1, %v333_v46  ;;  %v621_v46 = vmax.f32 %v13215_v53, %v13243_v17  ;;  %3836 = vst.msk [vmem:[#allocation4 + $0x18] sm:$0xff] %vm336_vm1, %v18227_v43 }
 0x103   : > { %18423 = vst [vmem:[#allocation15_spill] sm:$0xff] %v13247_v22  ;;  %1246 = vrot.lane.b32.xlu1 %v13247_v22, %s12833_s12 }
 0x104   : > { %v802_v26 = vpop.f32.mrf.mxu0  ;;  %v653_v51 = vmax.f32 %v621_v46, %v13271_v45  ;;  %3837 = vst.msk [vmem:[#allocation4 + $0x20] sm:$0xff] %vm336_vm1, %v18227_v43  ;;  %v1394_v59 = vld [vmem:[#allocation3 + $0x1] sm:$0xff] }
 0x105   : > { %v1015_v29 = vadd.f32 %v1014_v62, %v802_v26  ;;  %3840 = vst.msk [vmem:[#allocation4 + $0x1b0] sm:$0xff] %vm336_vm1, %v18227_v43  ;;  %11581 = vmatmul.msk.f32.vlgmr.msra.gmra.mxu2 %vm1154_vm4, %v1394_v59  ;;  %v622_v62 = vmax.f32 %v13227_v1, %v13255_v27  ;;  %v2699_v59 = vld [vmem:[%s18222_s4 + $0x28] sm:$0xff] }
 0x106   : > { %3841 = vst.msk [vmem:[#allocation4 + $0x1b8] sm:$0xff] %vm336_vm1, %v18227_v43  ;;  %2811 = vmatpush.msrb.mxu3 %v2699_v59 }
 0x107   : > { %v1098_v30 = vadd.f32 %v13117_v11, %v1015_v29  ;;  %11540 = vmatmul.msk.f32.gmra.mxu0 %vm336_vm1, %v651_v23  ;;  %3843 = vst.msk [vmem:[#allocation4 + $0x1c8] sm:$0xff] %vm336_vm1, %v18227_v43  ;;  %v654_v1 = vmax.f32 %v622_v62, %v13306_v61  ;;  %v624_v29 = vmax.f32 %v13255_v27, %v13306_v61 }
 0x108   : > { %3844 = vst.msk [vmem:[#allocation4 + $0x1d0] sm:$0xff] %vm336_vm1, %v18227_v43 }
 0x109   : > { %v13259_v36 = vmax.f32 %v1098_v30, 0.0  ;;  %3848 = vst.msk [vmem:[#allocation4 + $0x30] sm:$0x3] %vm339_vm3, %v18227_v43  ;;  %v449_v30 = vld [vmem:[#allocation2 + $0x198] sm:$0xff] }
 0x10a   : > { %11579 = vmatmul.msk.f32.gmra.mxu1 %vm336_vm1, %v334_v6  ;;  %3849 = vst.msk [vmem:[#allocation4 + $0x48] sm:$0x3] %vm339_vm3, %v18227_v43  ;;  %v1026_v6 = vpop.f32.mrf.mxu1  ;;  %v521_v34 = vmax.f32 %v449_v30, %v485_v31 }
 0x10b   : > { %18424 = vst [vmem:[#allocation16_spill] sm:$0xff] %v13259_v36  ;;  %1248 = vrot.lane.b32.xlu2 %v13259_v36, %s12833_s12 }
 0x10c   : > { %v805_v40 = vpop.f32.mrf.mxu0  ;;  %3850 = vst.msk [vmem:[#allocation4 + $0x60] sm:$0x3] %vm339_vm3, %v18227_v43 }
 0x10d   : > { %v1018_v42 = vadd.f32 %v1017_v15, %v805_v40  ;;  %3851 = vst.msk [vmem:[#allocation4 + $0x78] sm:$0x3] %vm339_vm3, %v18227_v43  ;;  %v484_v15 = vld [vmem:[#allocation2 + $0x189] sm:$0xff] }
 0x10e   : > { %3852 = vst.msk [vmem:[#allocation4 + $0x90] sm:$0x3] %vm339_vm3, %v18227_v43  ;;  %v520_v19 = vmax.f32 %v448_v14, %v484_v15 }
 0x10f   : > { %v1099_v39 = vadd.f32 %v13117_v11, %v1018_v42  ;;  %11541 = vmatmul.msk.f32.gmra.mxu0 %vm336_vm1, %v652_v37  ;;  %3853 = vst.msk [vmem:[#allocation4 + $0xa8] sm:$0x3] %vm339_vm3, %v18227_v43  ;;  %v557_v37 = vld [vmem:[#allocation2 + $0x19a] sm:$0xff] }
 0x110   : > { %3854 = vst.msk [vmem:[#allocation4 + $0xc0] sm:$0x3] %vm339_vm3, %v18227_v43  ;;  %v13357_v28 = vmax.f32 %v520_v19, %v556_v21  ;;  %v593_v41 = vmax.f32 %v521_v34, %v557_v37 }
 0x111   : > { %v13279_v49 = vmax.f32 %v1099_v39, 0.0  ;;  %3855 = vst.msk [vmem:[#allocation4 + $0xd8] sm:$0x3] %vm339_vm3, %v18227_v43  ;;  %v2151_v39 = vld [vmem:[%s18222_s4 + $0x18] sm:$0xff] }
 0x112   : > { %11580 = vmatmul.msk.f32.gmra.mxu1 %vm336_vm1, %v335_v8  ;;  %v555_v8 = vld [vmem:[#allocation2 + $0x182] sm:$0xff]  ;;  %3856 = vst.msk [vmem:[#allocation4 + $0xf0] sm:$0x3] %vm339_vm3, %v18227_v43  ;;  %v1029_v25 = vpop.f32.mrf.mxu1  ;;  %v656_v27 = vmax.f32 %v624_v29, %v13357_v28 }
 0x113   : > { %18425 = vst [vmem:[#allocation17_spill] sm:$0xff] %v13279_v49  ;;  %1250 = vrot.lane.b32.xlu0 %v13279_v49, %s12833_s12  ;;  %v591_v12 = vmax.f32 %v519_v3, %v555_v8  ;;  %2263 = vmatpush.msrb.mxu1 %v2151_v39  ;;  %v626_v8 = vmax.f32 %v13306_v61, %v13357_v28 }
 0x114   : > { %v808_v53 = vpop.f32.mrf.mxu0  ;;  %3857 = vst.msk [vmem:[#allocation4 + $0x108] sm:$0x3] %vm339_vm3, %v18227_v43 }
 0x115   : > { %v1021_v58 = vadd.f32 %v1020_v33, %v808_v53  ;;  %v655_v17 = vmax.f32 %v623_v13, %v591_v12  ;;  %3858 = vst.msk [vmem:[#allocation4 + $0x120] sm:$0x3] %vm339_vm3, %v18227_v43  ;;  %v625_v42 = vmax.f32 %v13271_v45, %v591_v12 }
 0x116   : > { %3859 = vst.msk [vmem:[#allocation4 + $0x138] sm:$0x3] %vm339_vm3, %v18227_v43 }
 0x117   : > { %v1100_v60 = vadd.f32 %v13117_v11, %v1021_v58  ;;  %11542 = vmatmul.msk.f32.gmra.mxu0 %vm336_vm1, %v653_v51  ;;  %3860 = vst.msk [vmem:[#allocation4 + $0x150] sm:$0x3] %vm339_vm3, %v18227_v43  ;;  %v657_v45 = vmax.f32 %v625_v42, %v593_v41  ;;  %v2425_v58 = vld [vmem:[%s18222_s4 + $0x20] sm:$0xff] }
 0x118   : > { %3861 = vst.msk [vmem:[#allocation4 + $0x168] sm:$0x3] %vm339_vm3, %v18227_v43  ;;  %2537 = vmatpush.msrb.mxu2 %v2425_v58 }
 0x119   : > { %v13314_v2 = vmax.f32 %v1100_v60, 0.0  ;;  %3862 = vst.msk [vmem:[#allocation4 + $0x180] sm:$0x3] %vm339_vm3, %v18227_v43 }
 0x11a   : > { %3863 = vst.msk [vmem:[#allocation4 + $0x198] sm:$0x3] %vm339_vm3, %v18227_v43  ;;  %v1032_v46 = vpop.f32.mrf.mxu1 }
 0x11b   : > { %18426 = vst [vmem:[#allocation18_spill] sm:$0xff] %v13314_v2  ;;  %1252 = vrot.lane.b32.xlu1 %v13314_v2, %s12833_s12 }
 0x11c   : > { %v811_v5 = vpop.f32.mrf.mxu0  ;;  %3868 = vst.msk [vmem:[#allocation4 + $0x42] sm:$0x3] %vm339_vm3, %v18227_v43 }
 0x11d   : > { %v1024_v9 = vadd.f32 %v1023_v50, %v811_v5  ;;  %3869 = vst.msk [vmem:[#allocation4 + $0x5a] sm:$0x3] %vm339_vm3, %v18227_v43  ;;  %v558_v5 = vld [vmem:[#allocation2 + $0x1a2] sm:$0xff] }
 0x11e   : > { %3870 = vst.msk [vmem:[#allocation4 + $0x72] sm:$0x3] %vm339_vm3, %v18227_v43 }
 0x11f   : > { %v1101_v10 = vadd.f32 %v13117_v11, %v1024_v9  ;;  %11543 = vmatmul.msk.f32.gmra.mxu0 %vm336_vm1, %v654_v1  ;;  %3871 = vst.msk [vmem:[#allocation4 + $0x8a] sm:$0x3] %vm339_vm3, %v18227_v43  ;;  %v486_v1 = vld [vmem:[#allocation2 + $0x1a1] sm:$0xff]  ;;  %v1362_v9 = vld [vmem:[#allocation3 + $0x8] sm:$0xff] }
 0x120   : > { %3872 = vst.msk [vmem:[#allocation4 + $0xa2] sm:$0x3] %vm339_vm3, %v18227_v43  ;;  %v522_v3 = vmax.f32 %v450_v0, %v486_v1 }
 0x121   : > { %v13339_v16 = vmax.f32 %v1101_v10, 0.0  ;;  %3873 = vst.msk [vmem:[#allocation4 + $0xba] sm:$0x3] %vm339_vm3, %v18227_v43 }
 0x122   : > { %3874 = vst.msk [vmem:[#allocation4 + $0xd2] sm:$0x3] %vm339_vm3, %v18227_v43  ;;  %v1035_v54 = vpop.f32.mrf.mxu1 }
 0x123   : > { %18427 = vst [vmem:[#allocation19_spill] sm:$0xff] %v13339_v16  ;;  %1254 = vrot.lane.b32.xlu2 %v13339_v16, %s12833_s12 }
 0x124   : > { %v814_v20 = vpop.f32.mrf.mxu0  ;;  %3875 = vst.msk [vmem:[#allocation4 + $0xea] sm:$0x3] %vm339_vm3, %v18227_v43 }
 0x125   : > { %v1027_v23 = vadd.f32 %v1026_v6, %v814_v20  ;;  %3876 = vst.msk [vmem:[#allocation4 + $0x102] sm:$0x3] %vm339_vm3, %v18227_v43  ;;  %v594_v6 = vmax.f32 %v522_v3, %v558_v5 }
 0x126   : > { %3877 = vst.msk [vmem:[#allocation4 + $0x11a] sm:$0x3] %vm339_vm3, %v18227_v43 }
 0x127   : > { %v1102_v26 = vadd.f32 %v13117_v11, %v1027_v23  ;;  %11544 = vmatmul.msk.f32.gmra.mxu0 %vm336_vm1, %v655_v17  ;;  %3878 = vst.msk [vmem:[#allocation4 + $0x132] sm:$0x3] %vm339_vm3, %v18227_v43  ;;  %v658_v10 = vmax.f32 %v626_v8, %v594_v6  ;;  %v1845_v17 = vld [vmem:[#allocation3 + $0x2] sm:$0xff] }
 0x128   : > { %3879 = vst.msk [vmem:[#allocation4 + $0x14a] sm:$0x3] %vm339_vm3, %v18227_v43 }
 0x129   : > { %v13365_v33 = vmax.f32 %v1102_v26, 0.0  ;;  %3880 = vst.msk [vmem:[#allocation4 + $0x162] sm:$0x3] %vm339_vm3, %v18227_v43  ;;  %v1233_v26 = vpop.permute.xlu0 %1232 }
 0x12a   : > { %3881 = vst.msk [vmem:[#allocation4 + $0x17a] sm:$0x3] %vm339_vm3, %v18227_v43  ;;  %v1038_v12 = vpop.f32.mrf.mxu1 }
 0x12b   : > { %18428 = vst [vmem:[#allocation20_spill] sm:$0xff] %v13365_v33  ;;  %1256 = vrot.lane.b32.xlu0 %v13365_v33, %s12833_s12 }
 0x12c   : > { %v817_v35 = vpop.f32.mrf.mxu0  ;;  %3882 = vst.msk [vmem:[#allocation4 + $0x192] sm:$0x3] %vm339_vm3, %v18227_v43 }
 0x12d   : > { %v1030_v38 = vadd.f32 %v1029_v25, %v817_v35  ;;  %3883 = vst.msk [vmem:[#allocation4 + $0x1aa] sm:$0x3] %vm339_vm3, %v18227_v43 }
 0x12e   : > { %1164 = vst.msk [vmem:[#allocation3] sm:$0x1] %vm1163_vm5, %v18227_v43 }
 0x12f   : > { %v1103_v40 = vadd.f32 %v13117_v11, %v1030_v38  ;;  %11545 = vmatmul.msk.f32.gmra.mxu0 %vm336_vm1, %v656_v27  ;;  %1165 = vst.msk [vmem:[#allocation3 + $0x18] sm:$0x1] %vm1163_vm5, %v18227_v43 }
 0x130   : > { %1166 = vst.msk [vmem:[#allocation3 + $0x30] sm:$0x1] %vm1163_vm5, %v18227_v43 }
 0x131   : > { %v13395_v48 = vmax.f32 %v1103_v40, 0.0  ;;  %1167 = vst.msk [vmem:[#allocation3 + $0x48] sm:$0x1] %vm1163_vm5, %v18227_v43 }
 0x132   : > { %1168 = vst.msk [vmem:[#allocation3 + $0x60] sm:$0x1] %vm1163_vm5, %v18227_v43  ;;  %v1041_v19 = vpop.f32.mrf.mxu1 }
 0x133   : > { %18429 = vst [vmem:[#allocation21_spill] sm:$0xff] %v13395_v48  ;;  %1258 = vrot.lane.b32.xlu1 %v13395_v48, %s12833_s12 }
 0x134   : > { %v820_v50 = vpop.f32.mrf.mxu0  ;;  %1169 = vst.msk [vmem:[#allocation3 + $0x78] sm:$0x1] %vm1163_vm5, %v18227_v43 }
 0x135   : > { %v1033_v51 = vadd.f32 %v1032_v46, %v820_v50  ;;  %1170 = vst.msk [vmem:[#allocation3 + $0x90] sm:$0x1] %vm1163_vm5, %v18227_v43  ;;  %v1361_v62 = vld [vmem:[#allocation3] sm:$0xff] }
 0x136   : > { %1171 = vst.msk [vmem:[#allocation3 + $0xa8] sm:$0x1] %vm1163_vm5, %v18227_v43  ;;  %11613 = vmatmul.msk.f32.vlgmr.msra.gmra.mxu3 %vm1154_vm4, %v1361_v62 }
 0x137   : > { %v1104_v52 = vadd.f32 %v13117_v11, %v1033_v51  ;;  %11546 = vmatmul.msk.f32.gmra.mxu0 %vm336_vm1, %v657_v45  ;;  %1172 = vst.msk [vmem:[#allocation3 + $0xc0] sm:$0x1] %vm1163_vm5, %v18227_v43 }
 0x138   : > { %1173 = vst.msk [vmem:[#allocation3 + $0xd8] sm:$0x1] %vm1163_vm5, %v18227_v43 }
 0x139   : > { %v13417_v53 = vmax.f32 %v1104_v52, 0.0  ;;  %1174 = vst.msk [vmem:[#allocation3 + $0xf0] sm:$0x1] %vm1163_vm5, %v18227_v43 }
 0x13a   : > { %1175 = vst.msk [vmem:[#allocation3 + $0x108] sm:$0x1] %vm1163_vm5, %v18227_v43  ;;  %v1044_v29 = vpop.f32.mrf.mxu1 }
 0x13b   : > { %18430 = vst [vmem:[#allocation22_spill] sm:$0xff] %v13417_v53  ;;  %1260 = vrot.lane.b32.xlu2 %v13417_v53, %s12833_s12 }
 0x13c   : > { %v823_v55 = vpop.f32.mrf.mxu0  ;;  %1176 = vst.msk [vmem:[#allocation3 + $0x120] sm:$0x1] %vm1163_vm5, %v18227_v43 }
 0x13d   : > { %v1036_v56 = vadd.f32 %v1035_v54, %v823_v55  ;;  %1177 = vst.msk [vmem:[#allocation3 + $0x138] sm:$0x1] %vm1163_vm5, %v18227_v43 }
 0x13e   : > { %1178 = vst.msk [vmem:[#allocation3 + $0x150] sm:$0x1] %vm1163_vm5, %v18227_v43  ;;  %11614 = vmatmul.msk.f32.gmra.mxu3 %vm1154_vm4, %v1362_v9 }
 0x13f   : > { %v1105_v60 = vadd.f32 %v13117_v11, %v1036_v56  ;;  %1179 = vst.msk [vmem:[#allocation3 + $0x168] sm:$0x1] %vm1163_vm5, %v18227_v43  ;;  %11547 = vmatmul.msk.f32.gmra.mxu0 %vm336_vm1, %v658_v10 }
 0x140   : > { %1180 = vst.msk [vmem:[#allocation3 + $0x180] sm:$0x1] %vm1163_vm5, %v18227_v43 }
 0x141   : > { %v13447_v63 = vmax.f32 %v1105_v60, 0.0  ;;  %1181 = vst.msk [vmem:[#allocation3 + $0x198] sm:$0x1] %vm1163_vm5, %v18227_v43 }
 0x142   : > { %1183 = vst.msk [vmem:[#allocation3 + $0x29] sm:$0x1] %vm1163_vm5, %v18227_v43  ;;  %v1047_v37 = vpop.f32.mrf.mxu1 }
 0x143   : > { %18431 = vst [vmem:[#allocation23_spill] sm:$0xff] %v13447_v63  ;;  %1262 = vrot.lane.b32.xlu0 %v13447_v63, %s12833_s12 }
 0x144   : > { %v826_v13 = vpop.f32.mrf.mxu0  ;;  %1184 = vst.msk [vmem:[#allocation3 + $0x41] sm:$0x1] %vm1163_vm5, %v18227_v43 }
 0x145   : > { %v1039_v61 = vadd.f32 %v1038_v12, %v826_v13  ;;  %1185 = vst.msk [vmem:[#allocation3 + $0x59] sm:$0x1] %vm1163_vm5, %v18227_v43  ;;  %v1241_v28 = vpop.permute.xlu2 %1240  ;;  %v1235_v40 = vpop.permute.xlu0 %1234 }
 0x146   : > { %1186 = vst.msk [vmem:[#allocation3 + $0x71] sm:$0x1] %vm1163_vm5, %v18227_v43 }
 0x147   : > { %v1106_v14 = vadd.f32 %v13117_v11, %v1039_v61  ;;  %1187 = vst.msk [vmem:[#allocation3 + $0x89] sm:$0x1] %vm1163_vm5, %v18227_v43  ;;  %11645 = vmatmul.msk.f32.vlgmr.msrb.gmra.mxu0 %vm1154_vm4, %v1845_v17 }
 0x148   : > { %1188 = vst.msk [vmem:[#allocation3 + $0xa1] sm:$0x1] %vm1163_vm5, %v18227_v43 }
 0x149   : > { %v13480_v15 = vmax.f32 %v1106_v14, 0.0  ;;  %1189 = vst.msk [vmem:[#allocation3 + $0xb9] sm:$0x1] %vm1163_vm5, %v18227_v43 }
 0x14a   : > { %1190 = vst.msk [vmem:[#allocation3 + $0xd1] sm:$0x1] %vm1163_vm5, %v18227_v43  ;;  %v1050_v51 = vpop.f32.mrf.mxu1 }
 0x14b   : > { %18432 = vst [vmem:[#allocation24_spill] sm:$0xff] %v13480_v15  ;;  %1264 = vrot.lane.b32.xlu1 %v13480_v15, %s12833_s12 }
 0x14c   : > { %v829_v20 = vpop.f32.mrf.mxu0  ;;  %1191 = vst.msk [vmem:[#allocation3 + $0xe9] sm:$0x1] %vm1163_vm5, %v18227_v43 }
 0x14d   : > { %v1042_v21 = vadd.f32 %v1041_v19, %v829_v20  ;;  %1192 = vst.msk [vmem:[#allocation3 + $0x101] sm:$0x1] %vm1163_vm5, %v18227_v43  ;;  %v1237_v27 = vpop.permute.xlu1 %1236  ;;  %v1243_v41 = vpop.permute.xlu2 %1242 }
 0x14e   : > { %1193 = vst.msk [vmem:[#allocation3 + $0x119] sm:$0x1] %vm1163_vm5, %v18227_v43 }
 0x14f   : > { %v1107_v23 = vadd.f32 %v13117_v11, %v1042_v21  ;;  %1194 = vst.msk [vmem:[#allocation3 + $0x131] sm:$0x1] %vm1163_vm5, %v18227_v43 }
 0x150   : > { %1195 = vst.msk [vmem:[#allocation3 + $0x149] sm:$0x1] %vm1163_vm5, %v18227_v43 }
 0x151   : > { %v13502_v25 = vmax.f32 %v1107_v23, 0.0  ;;  %1196 = vst.msk [vmem:[#allocation3 + $0x161] sm:$0x1] %vm1163_vm5, %v18227_v43 }
 0x152   : > { %1197 = vst.msk [vmem:[#allocation3 + $0x179] sm:$0x1] %vm1163_vm5, %v18227_v43  ;;  %v1053_v0 = vpop.f32.mrf.mxu1 }
 0x153   : > { %18433 = vst [vmem:[#allocation25_spill] sm:$0xff] %v13502_v25  ;;  %1266 = vrot.lane.b32.xlu2 %v13502_v25, %s12833_s12 }
 0x154   : > { %v832_v30 = vpop.f32.mrf.mxu0  ;;  %1198 = vst.msk [vmem:[#allocation3 + $0x191] sm:$0x1] %vm1163_vm5, %v18227_v43 }
 0x155   : > { %v1045_v31 = vadd.f32 %v1044_v29, %v832_v30  ;;  %3846 = vst.msk [vmem:[#allocation4] sm:$0x3] %vm339_vm3, %v18227_v43  ;;  %v1239_v46 = vpop.permute.xlu1 %1238 }
 0x156   : > { %3847 = vst.msk [vmem:[#allocation4 + $0x18] sm:$0x3] %vm339_vm3, %v18227_v43 }
 0x157   : > { %v1108_v34 = vadd.f32 %v13117_v11, %v1045_v31  ;;  %3864 = vst.msk [vmem:[#allocation4 + $0x1b0] sm:$0x3] %vm339_vm3, %v18227_v43 }
 0x158   : > { %3865 = vst.msk [vmem:[#allocation4 + $0x1c8] sm:$0x3] %vm339_vm3, %v18227_v43 }
 0x159   : > { %v13523_v35 = vmax.f32 %v1108_v34, 0.0  ;;  %1329 = vst.msk [vmem:[#allocation3 + $0x19] sm:$0xff] %vm1154_vm4, %v1233_v26 }
 0x15a   : > { %1158 = vst.msk [vmem:[#allocation3 + $0x10] sm:$0x3] %vm1157_vm6, %v18227_v43  ;;  %v1056_v13 = vpop.f32.mrf.mxu1 }
 0x15b   : > { %18434 = vst [vmem:[#allocation26_spill] sm:$0xff] %v13523_v35  ;;  %1268 = vrot.lane.b32.xlu0 %v13523_v35, %s12833_s12 }
 0x15c   : > { %v835_v38 = vpop.f32.mrf.mxu0  ;;  %1162 = vst.msk [vmem:[#allocation3 + $0x1a8] sm:$0x3] %vm1157_vm6, %v18227_v43 }
 0x15d   : > { %v1048_v42 = vadd.f32 %v1047_v37, %v835_v38  ;;  %1182 = vst.msk [vmem:[#allocation3 + $0x11] sm:$0x1] %vm1163_vm5, %v18227_v43 }
 0x15e   : > { %1199 = vst.msk [vmem:[#allocation3 + $0x1a9] sm:$0x1] %vm1163_vm5, %v18227_v43 }
 0x15f   : > { %v1109_v39 = vadd.f32 %v13117_v11, %v1048_v42  ;;  %1330 = vst.msk [vmem:[#allocation3 + $0x21] sm:$0xff] %vm1154_vm4, %v1235_v40 }
 0x160   : > { %1333 = vst.msk [vmem:[#allocation3 + $0x49] sm:$0xff] %vm1154_vm4, %v1241_v28  ;;  %v1363_v45 = vld [vmem:[#allocation3 + $0x18] sm:$0xff] }
 0x161   : > { %v13539_v47 = vmax.f32 %v1109_v39, 0.0  ;;  %1331 = vst.msk [vmem:[#allocation3 + $0x31] sm:$0xff] %vm1154_vm4, %v1237_v27  ;;  %v1395_v50 = vld [vmem:[#allocation3 + $0x9] sm:$0xff]  ;;  %11615 = vmatmul.msk.f32.gmra.mxu3 %vm1154_vm4, %v1363_v45  ;;  %11677 = vmatmul.msk.f32.vlgmr.msrb.gmra.mxu1 %vm1154_vm4, %v1363_v45  ;;  %v1396_v60 = vld [vmem:[#allocation3 + $0x19] sm:$0xff] }
 0x162   : > { %1334 = vst.msk [vmem:[#allocation3 + $0x51] sm:$0xff] %vm1154_vm4, %v1243_v41  ;;  %11582 = vmatmul.msk.f32.gmra.mxu2 %vm1154_vm4, %v1395_v50  ;;  %v1059_v28 = vpop.f32.mrf.mxu1 }
 0x163   : > { %18435 = vst [vmem:[#allocation27_spill] sm:$0xff] %v13539_v47  ;;  %1270 = vrot.lane.b32.xlu1 %v13539_v47, %s12833_s12 }
 0x164   : > { %1332 = vst.msk [vmem:[#allocation3 + $0x39] sm:$0xff] %vm1154_vm4, %v1239_v46  ;;  %v838_v52 = vpop.f32.mrf.mxu0  ;;  %v1846_v54 = vld [vmem:[#allocation3 + $0xa] sm:$0xff] }
 0x165   : > { %v1051_v55 = vadd.f32 %v1050_v51, %v838_v52  ;;  %v1249_v56 = vpop.permute.xlu2 %1248  ;;  %11646 = vmatmul.msk.f32.gmra.mxu0 %vm1154_vm4, %v1846_v54 }
 0x166   : > { %1337 = vst.msk [vmem:[#allocation3 + $0x79] sm:$0xff] %vm1154_vm4, %v1249_v56  ;;  %v1364_v59 = vld [vmem:[#allocation3 + $0x20] sm:$0xff] }
 0x167   : > { %v1110_v58 = vadd.f32 %v13117_v11, %v1051_v55  ;;  %v13559_v3 = vld [vmem:[#allocation3 + $0x1a] sm:$0xff]  ;;  %v1848_v14 = vld [vmem:[#allocation3 + $0x22] sm:$0xff] }
 0x168   : > { %v1365_v9 = vld [vmem:[#allocation3 + $0x30] sm:$0xff]  ;;  %v1397_v10 = vld [vmem:[#allocation3 + $0x21] sm:$0xff] }
 0x169   : > { %v13552_v62 = vmax.f32 %v1110_v58, 0.0  ;;  %11616 = vmatmul.msk.f32.gmra.mxu3 %vm1154_vm4, %v1364_v59  ;;  %11678 = vmatmul.msk.f32.gmra.mxu1 %vm1154_vm4, %v1364_v59  ;;  %v1398_v23 = vld [vmem:[#allocation3 + $0x31] sm:$0xff]  ;;  %v1367_v40 = vld [vmem:[#allocation3 + $0x48] sm:$0xff] }
 0x16a   : > { %11583 = vmatmul.msk.f32.gmra.mxu2 %vm1154_vm4, %v1396_v60  ;;  %v1062_v41 = vpop.f32.mrf.mxu1  ;;  %v1368_v52 = vld [vmem:[#allocation3 + $0x50] sm:$0xff] }
 0x16b   : > { %18436 = vst [vmem:[#allocation28_spill] sm:$0xff] %v13552_v62  ;;  %1272 = vrot.lane.b32.xlu2 %v13552_v62, %s12833_s12  ;;  %v1366_v21 = vld [vmem:[#allocation3 + $0x38] sm:$0xff]  ;;  %v1400_v54 = vld [vmem:[#allocation3 + $0x49] sm:$0xff] }
 0x16c   : > { %v841_v1 = vpop.f32.mrf.mxu0  ;;  %v1849_v30 = vld [vmem:[#allocation3 + $0x32] sm:$0xff]  ;;  %v1850_v39 = vld [vmem:[#allocation3 + $0x3a] sm:$0xff]  ;;  %v1851_v58 = vld [vmem:[#allocation3 + $0x4a] sm:$0xff] }
 0x16d   : > { %v1054_v5 = vadd.f32 %v1053_v0, %v841_v1  ;;  %v1245_v6 = vpop.permute.xlu0 %1244  ;;  %11647 = vmatmul.msk.f32.gmra.mxu0 %vm1154_vm4, %v13559_v3  ;;  %v1399_v37 = vld [vmem:[#allocation3 + $0x39] sm:$0xff] }
 0x16e   : > { %1335 = vst.msk [vmem:[#allocation3 + $0x61] sm:$0xff] %vm1154_vm4, %v1245_v6  ;;  %v1401_v6 = vld [vmem:[#allocation3 + $0x51] sm:$0xff] }
 0x16f   : > { %v1111_v8 = vadd.f32 %v13117_v11, %v1054_v5 }
 0x171   : > { %v13565_v12 = vmax.f32 %v1111_v8, 0.0  ;;  %11617 = vmatmul.msk.f32.gmra.mxu3 %vm1154_vm4, %v1365_v9  ;;  %11679 = vmatmul.msk.f32.gmra.mxu1 %vm1154_vm4, %v1365_v9 }
 0x172   : > { %11584 = vmatmul.msk.f32.gmra.mxu2 %vm1154_vm4, %v1397_v10  ;;  %v1065_v55 = vpop.f32.mrf.mxu1  ;;  %v1852_v10 = vld [vmem:[#allocation3 + $0x52] sm:$0xff] }
 0x173   : > { %18437 = vst [vmem:[#allocation29_spill] sm:$0xff] %v13565_v12  ;;  %1274 = vrot.lane.b32.xlu0 %v13565_v12, %s12833_s12 }
 0x174   : > { %v844_v61 = vpop.f32.mrf.mxu0 }
 0x175   : > { %v1057_v17 = vadd.f32 %v1056_v13, %v844_v61  ;;  %v1247_v19 = vpop.permute.xlu1 %1246  ;;  %11648 = vmatmul.msk.f32.gmra.mxu0 %vm1154_vm4, %v1848_v14  ;;  %v1369_v1 = vld [vmem:[#allocation3 + $0x60] sm:$0xff] }
 0x176   : > { %1336 = vst.msk [vmem:[#allocation3 + $0x69] sm:$0xff] %vm1154_vm4, %v1247_v19  ;;  %v1402_v19 = vld [vmem:[#allocation3 + $0x61] sm:$0xff] }
 0x177   : > { %v1112_v20 = vadd.f32 %v13117_v11, %v1057_v17 }
 0x179   : > { %v13575_v26 = vmax.f32 %v1112_v20, 0.0  ;;  %11618 = vmatmul.msk.f32.gmra.mxu3 %vm1154_vm4, %v1366_v21  ;;  %11680 = vmatmul.msk.f32.gmra.mxu1 %vm1154_vm4, %v1366_v21 }
 0x17a   : > { %11585 = vmatmul.msk.f32.gmra.mxu2 %vm1154_vm4, %v1398_v23  ;;  %v1068_v8 = vpop.f32.mrf.mxu1 }
 0x17b   : > { %18438 = vst [vmem:[#allocation30_spill] sm:$0xff] %v13575_v26  ;;  %1276 = vrot.lane.b32.xlu1 %v13575_v26, %s12833_s12 }
 0x17c   : > { %v847_v29 = vpop.f32.mrf.mxu0 }
 0x17d   : > { %v1060_v31 = vadd.f32 %v1059_v28, %v847_v29  ;;  %v1255_v27 = vpop.permute.xlu2 %1254  ;;  %11649 = vmatmul.msk.f32.gmra.mxu0 %vm1154_vm4, %v1849_v30  ;;  %v1370_v17 = vld [vmem:[#allocation3 + $0x68] sm:$0xff] }
 0x17e   : > { %1340 = vst.msk [vmem:[#allocation3 + $0x99] sm:$0xff] %vm1154_vm4, %v1255_v27  ;;  %v1853_v28 = vld [vmem:[#allocation3 + $0x62] sm:$0xff] }
 0x17f   : > { %v1113_v34 = vadd.f32 %v13117_v11, %v1060_v31  ;;  %v1403_v27 = vld [vmem:[#allocation3 + $0x69] sm:$0xff] }
 0x181   : > { %v13585_v38 = vmax.f32 %v1113_v34, 0.0  ;;  %11619 = vmatmul.msk.f32.gmra.mxu3 %vm1154_vm4, %v1367_v40  ;;  %11681 = vmatmul.msk.f32.gmra.mxu1 %vm1154_vm4, %v1367_v40 }
 0x182   : > { %11586 = vmatmul.msk.f32.gmra.mxu2 %vm1154_vm4, %v1399_v37  ;;  %v1071_v21 = vpop.f32.mrf.mxu1  ;;  %v1371_v37 = vld [vmem:[#allocation3 + $0x78] sm:$0xff] }
 0x183   : > { %18439 = vst [vmem:[#allocation31_spill] sm:$0xff] %v13585_v38  ;;  %1278 = vrot.lane.b32.xlu2 %v13585_v38, %s12833_s12 }
 0x184   : > { %v850_v42 = vpop.f32.mrf.mxu0 }
 0x185   : > { %v1063_v46 = vadd.f32 %v1062_v41, %v850_v42  ;;  %v1251_v45 = vpop.permute.xlu0 %1250  ;;  %11650 = vmatmul.msk.f32.gmra.mxu0 %vm1154_vm4, %v1850_v39  ;;  %v1854_v42 = vld [vmem:[#allocation3 + $0x6a] sm:$0xff] }
 0x186   : > { %1338 = vst.msk [vmem:[#allocation3 + $0x81] sm:$0xff] %vm1154_vm4, %v1251_v45 }
 0x187   : > { %v1114_v50 = vadd.f32 %v13117_v11, %v1063_v46  ;;  %v13607_v11 = vld [vmem:[%s18221_s3] ss:$0 sm:$0xff] }
 0x189   : > { %v13595_v51 = vmax.f32 %v1114_v50, 0.0  ;;  %11620 = vmatmul.msk.f32.gmra.mxu3 %vm1154_vm4, %v1368_v52  ;;  %11682 = vmatmul.msk.f32.gmra.mxu1 %vm1154_vm4, %v1368_v52 }
 0x18a   : > { %11587 = vmatmul.msk.f32.gmra.mxu2 %vm1154_vm4, %v1400_v54  ;;  %v1074_v40 = vpop.f32.mrf.mxu1  ;;  %v1404_v54 = vld [vmem:[#allocation3 + $0x79] sm:$0xff] }
 0x18b   : > { %18440 = vst [vmem:[#allocation32_spill] sm:$0xff] %v13595_v51  ;;  %1280 = vrot.lane.b32.xlu0 %v13595_v51, %s12833_s12 }
 0x18c   : > { %v853_v56 = vpop.f32.mrf.mxu0 }
 0x18d   : > { %v1066_v59 = vadd.f32 %v1065_v55, %v853_v56  ;;  %v1253_v60 = vpop.permute.xlu1 %1252  ;;  %11651 = vmatmul.msk.f32.gmra.mxu0 %vm1154_vm4, %v1851_v58  ;;  %v1372_v50 = vld [vmem:[#allocation3 + $0x80] sm:$0xff] }
 0x18e   : > { %1339 = vst.msk [vmem:[#allocation3 + $0x91] sm:$0xff] %vm1154_vm4, %v1253_v60  ;;  %v1855_v58 = vld [vmem:[#allocation3 + $0x7a] sm:$0xff] }
 0x18f   : > { %v1115_v0 = vadd.f32 %v13607_v11, %v1066_v59 }
 0x191   : > { %v13610_v5 = vmax.f32 %v1115_v0, 0.0  ;;  %11621 = vmatmul.msk.f32.gmra.mxu3 %vm1154_vm4, %v1369_v1  ;;  %11683 = vmatmul.msk.f32.gmra.mxu1 %vm1154_vm4, %v1369_v1 }
 0x192   : > { %11588 = vmatmul.msk.f32.gmra.mxu2 %vm1154_vm4, %v1401_v6  ;;  %v1077_v55 = vpop.f32.mrf.mxu1  ;;  %v1405_v6 = vld [vmem:[#allocation3 + $0x81] sm:$0xff] }
 0x193   : > { %18441 = vst [vmem:[#allocation33_spill] sm:$0xff] %v13610_v5  ;;  %1282 = vrot.lane.b32.xlu1 %v13610_v5, %s12833_s12 }
 0x194   : > { %v856_v9 = vpop.f32.mrf.mxu0 }
 0x195   : > { %v1069_v13 = vadd.f32 %v1068_v8, %v856_v9  ;;  %v1261_v61 = vpop.permute.xlu2 %1260  ;;  %11652 = vmatmul.msk.f32.gmra.mxu0 %vm1154_vm4, %v1852_v10  ;;  %v1373_v1 = vld [vmem:[#allocation3 + $0x90] sm:$0xff] }
 0x196   : > { %1343 = vst.msk [vmem:[#allocation3 + $0xc1] sm:$0xff] %vm1154_vm4, %v1261_v61 }
 0x197   : > { %v1116_v14 = vadd.f32 %v13607_v11, %v1069_v13  ;;  %v1856_v13 = vld [vmem:[#allocation3 + $0x82] sm:$0xff] }
 0x199   : > { %v13620_v20 = vmax.f32 %v1116_v14, 0.0  ;;  %11622 = vmatmul.msk.f32.gmra.mxu3 %vm1154_vm4, %v1370_v17  ;;  %11684 = vmatmul.msk.f32.gmra.mxu1 %vm1154_vm4, %v1370_v17 }
 0x19a   : > { %11589 = vmatmul.msk.f32.gmra.mxu2 %vm1154_vm4, %v1402_v19  ;;  %v1080_v9 = vpop.f32.mrf.mxu1  ;;  %v1406_v19 = vld [vmem:[#allocation3 + $0x91] sm:$0xff] }
 0x19b   : > { %18442 = vst [vmem:[#allocation34_spill] sm:$0xff] %v13620_v20  ;;  %1284 = vrot.lane.b32.xlu2 %v13620_v20, %s12833_s12 }
 0x19c   : > { %v859_v23 = vpop.f32.mrf.mxu0 }
 0x19d   : > { %v1072_v29 = vadd.f32 %v1071_v21, %v859_v23  ;;  %v1257_v30 = vpop.permute.xlu0 %1256  ;;  %11653 = vmatmul.msk.f32.gmra.mxu0 %vm1154_vm4, %v1853_v28  ;;  %v1374_v23 = vld [vmem:[#allocation3 + $0x98] sm:$0xff] }
 0x19e   : > { %1341 = vst.msk [vmem:[#allocation3 + $0xa9] sm:$0xff] %vm1154_vm4, %v1257_v30  ;;  %v1857_v28 = vld [vmem:[#allocation3 + $0x92] sm:$0xff] }
 0x19f   : > { %v1117_v31 = vadd.f32 %v13607_v11, %v1072_v29 }
 0x1a1   : > { %v13630_v34 = vmax.f32 %v1117_v31, 0.0  ;;  %11623 = vmatmul.msk.f32.gmra.mxu3 %vm1154_vm4, %v1371_v37  ;;  %11685 = vmatmul.msk.f32.gmra.mxu1 %vm1154_vm4, %v1371_v37  ;;  %v1407_v37 = vld [vmem:[#allocation3 + $0x99] sm:$0xff] }
 0x1a2   : > { %11590 = vmatmul.msk.f32.gmra.mxu2 %vm1154_vm4, %v1403_v27  ;;  %v1083_v31 = vpop.f32.mrf.mxu1 }
 0x1a3   : > { %18443 = vst [vmem:[#allocation35_spill] sm:$0xff] %v13630_v34  ;;  %1286 = vrot.lane.b32.xlu0 %v13630_v34, %s12833_s12 }
 0x1a4   : > { %v862_v41 = vpop.f32.mrf.mxu0 }
 0x1a5   : > { %v1075_v39 = vadd.f32 %v1074_v40, %v862_v41  ;;  %v1259_v46 = vpop.permute.xlu1 %1258  ;;  %11654 = vmatmul.msk.f32.gmra.mxu0 %vm1154_vm4, %v1854_v42  ;;  %v1375_v30 = vld [vmem:[#allocation3 + $0xa8] sm:$0xff]  ;;  %v1858_v41 = vld [vmem:[#allocation3 + $0x9a] sm:$0xff] }
 0x1a6   : > { %1342 = vst.msk [vmem:[#allocation3 + $0xb1] sm:$0xff] %vm1154_vm4, %v1259_v46 }
 0x1a7   : > { %v1118_v45 = vadd.f32 %v13607_v11, %v1075_v39 }
 0x1a9   : > { %v13640_v52 = vmax.f32 %v1118_v45, 0.0  ;;  %11624 = vmatmul.msk.f32.gmra.mxu3 %vm1154_vm4, %v1372_v50  ;;  %11686 = vmatmul.msk.f32.gmra.mxu1 %vm1154_vm4, %v1372_v50  ;;  %v1408_v50 = vld [vmem:[#allocation3 + $0xa9] sm:$0xff] }
 0x1aa   : > { %11591 = vmatmul.msk.f32.gmra.mxu2 %vm1154_vm4, %v1404_v54 }
 0x1ab   : > { %18444 = vst [vmem:[#allocation36_spill] sm:$0xff] %v13640_v52  ;;  %1288 = vrot.lane.b32.xlu1 %v13640_v52, %s12833_s12 }
 0x1ac   : > { %v865_v56 = vpop.f32.mrf.mxu0 }
 0x1ad   : > { %v1078_v59 = vadd.f32 %v1077_v55, %v865_v56  ;;  %v1267_v60 = vpop.permute.xlu2 %1266  ;;  %11655 = vmatmul.msk.f32.gmra.mxu0 %vm1154_vm4, %v1855_v58  ;;  %v1376_v46 = vld [vmem:[#allocation3 + $0xb0] sm:$0xff]  ;;  %v1377_v56 = vld [vmem:[#allocation3 + $0xc0] sm:$0xff] }
 0x1ae   : > { %1346 = vst.msk [vmem:[#allocation3 + $0xe1] sm:$0xff] %vm1154_vm4, %v1267_v60  ;;  %v1409_v55 = vld [vmem:[#allocation3 + $0xb1] sm:$0xff] }
 0x1af   : > { %v1119_v0 = vadd.f32 %v13607_v11, %v1078_v59  ;;  %v1860_v59 = vld [vmem:[#allocation3 + $0xb2] sm:$0xff] }
 0x1b1   : > { %v13650_v8 = vmax.f32 %v1119_v0, 0.0  ;;  %11625 = vmatmul.msk.f32.gmra.mxu3 %vm1154_vm4, %v1373_v1  ;;  %11687 = vmatmul.msk.f32.gmra.mxu1 %vm1154_vm4, %v1373_v1 }
 0x1b2   : > { %11592 = vmatmul.msk.f32.gmra.mxu2 %vm1154_vm4, %v1405_v6  ;;  %v1410_v6 = vld [vmem:[#allocation3 + $0xc1] sm:$0xff] }
 0x1b3   : > { %18445 = vst [vmem:[#allocation37_spill] sm:$0xff] %v13650_v8  ;;  %1290 = vrot.lane.b32.xlu2 %v13650_v8, %s12833_s12 }
 0x1b4   : > { %v868_v10 = vpop.f32.mrf.mxu0 }
 0x1b5   : > { %v1081_v61 = vadd.f32 %v1080_v9, %v868_v10  ;;  %v1263_v14 = vpop.permute.xlu0 %1262  ;;  %11656 = vmatmul.msk.f32.gmra.mxu0 %vm1154_vm4, %v1856_v13  ;;  %v13716_v10 = vpop.f32.mrf.mxu2 }
 0x1b6   : > { %1344 = vst.msk [vmem:[#allocation3 + $0xc9] sm:$0xff] %vm1154_vm4, %v1263_v14 }
 0x1b7   : > { %v1120_v17 = vadd.f32 %v13607_v11, %v1081_v61 }
 0x1b9   : > { %v13660_v21 = vmax.f32 %v1120_v17, 0.0  ;;  %11626 = vmatmul.msk.f32.gmra.mxu3 %vm1154_vm4, %v1374_v23  ;;  %11688 = vmatmul.msk.f32.gmra.mxu1 %vm1154_vm4, %v1374_v23  ;;  %v13696_v58 = vpop.f32.mrf.mxu3 }
 0x1ba   : > { %11593 = vmatmul.msk.f32.gmra.mxu2 %vm1154_vm4, %v1406_v19 }
 0x1bb   : > { %18446 = vst [vmem:[#allocation38_spill] sm:$0xff] %v13660_v21  ;;  %3886 = vrot.lane.b32.xlu2 %v13127_v24, %s12835_s18  ;;  %1292 = vrot.lane.b32.xlu0 %v13660_v21, %s12833_s12 }
 0x1bc   : > { %v871_v27 = vpop.f32.mrf.mxu0 }
 0x1bd   : > { %v1265_v29 = vpop.permute.xlu1 %1264  ;;  %11657 = vmatmul.msk.f32.gmra.mxu0 %vm1154_vm4, %v1857_v28  ;;  %v1084_v40 = vadd.f32 %v1083_v31, %v871_v27  ;;  %v1378_v60 = vld [vmem:[#allocation3 + $0xc8] sm:$0xff] }
 0x1be   : > { %1345 = vst.msk [vmem:[#allocation3 + $0xd9] sm:$0xff] %vm1154_vm4, %v1265_v29  ;;  %v1861_v13 = vld [vmem:[#allocation3 + $0xc2] sm:$0xff]  ;;  %v1862_v28 = vld [vmem:[#allocation3 + $0xca] sm:$0xff] }
 0x1bf   : > { %v1121_v42 = vadd.f32 %v13607_v11, %v1084_v40  ;;  %v1859_v11 = vld [vmem:[#allocation3 + $0xaa] sm:$0xff] }
 0x1c0   : > { %v1411_v19 = vld [vmem:[#allocation3 + $0xc9] sm:$0xff] }
 0x1c1   : > { %11627 = vmatmul.msk.f32.gmra.mxu3 %vm1154_vm4, %v1375_v30  ;;  %11689 = vmatmul.msk.f32.gmra.mxu1 %vm1154_vm4, %v1375_v30  ;;  %v13680_v39 = vmax.f32 %v1121_v42, 0.0  ;;  %v1752_v9 = vpop.f32.mrf.mxu3 }
 0x1c2   : > { %11594 = vmatmul.msk.f32.gmra.mxu2 %vm1154_vm4, %v1407_v37 }
 0x1c3   : > { %3892 = vrot.lane.b32.xlu2 %v13191_v32, %s12835_s18  ;;  %3888 = vrot.lane.b32.xlu0 %v13163_v4, %s12835_s18  ;;  %18447 = vst [vmem:[#allocation39_spill] sm:$0xff] %v13680_v39 }
 0x1c4   : > { %1294 = vrot.lane.b32.xlu1 %v13680_v39, %s12833_s12  ;;  %v13706_v1 = vpop.f32.mrf.mxu0  ;;  %s12836_s12 = smov 12  }
 0x1c5   : > { %11658 = vmatmul.msk.f32.gmra.mxu0 %vm1154_vm4, %v1858_v41  ;;  %v1273_v45 = vpop.permute.xlu2 %1272  ;;  %v1379_v14 = vld [vmem:[#allocation3 + $0xd8] sm:$0xff]  ;;  %v1380_v42 = vld [vmem:[#allocation3 + $0xe0] sm:$0xff] }
 0x1c6   : > { %1349 = vst.msk [vmem:[#allocation3 + $0x109] sm:$0xff] %vm1154_vm4, %v1273_v45  ;;  %v1412_v40 = vld [vmem:[#allocation3 + $0xd9] sm:$0xff] }
 0x1c9   : > { %11628 = vmatmul.msk.f32.gmra.mxu3 %vm1154_vm4, %v1376_v46  ;;  %11690 = vmatmul.msk.f32.gmra.mxu1 %vm1154_vm4, %v1376_v46 }
 0x1ca   : > { %11595 = vmatmul.msk.f32.gmra.mxu2 %vm1154_vm4, %v1408_v50  ;;  %v1863_v50 = vld [vmem:[#allocation3 + $0xda] sm:$0xff] }
 0x1cb   : > { %3898 = vrot.lane.b32.xlu2 %v13232_v7, %s12835_s18  ;;  %3894 = vrot.lane.b32.xlu0 %v13204_v44, %s12835_s18 }
 0x1cc   : > { %3890 = vrot.lane.b32.xlu1 %v13176_v18, %s12835_s18 }
 0x1cd   : > { %11659 = vmatmul.msk.f32.gmra.mxu0 %vm1154_vm4, %v1859_v11  ;;  %v1269_v54 = vpop.permute.xlu0 %1268 }
 0x1ce   : > { %1347 = vst.msk [vmem:[#allocation3 + $0xf1] sm:$0xff] %vm1154_vm4, %v1269_v54 }
 0x1d1   : > { %11629 = vmatmul.msk.f32.gmra.mxu3 %vm1154_vm4, %v1377_v56  ;;  %11691 = vmatmul.msk.f32.gmra.mxu1 %vm1154_vm4, %v1377_v56 }
 0x1d2   : > { %11596 = vmatmul.msk.f32.gmra.mxu2 %vm1154_vm4, %v1409_v55 }
 0x1d3   : > { %3904 = vrot.lane.b32.xlu2 %v13279_v49, %s12835_s18  ;;  %3900 = vrot.lane.b32.xlu0 %v13247_v22, %s12835_s18 }
 0x1d4   : > { %3896 = vrot.lane.b32.xlu1 %v13219_v57, %s12835_s18 }
 0x1d5   : > { %11660 = vmatmul.msk.f32.gmra.mxu0 %vm1154_vm4, %v1860_v59  ;;  %v1271_v0 = vpop.permute.xlu1 %1270  ;;  %v1381_v59 = vld [vmem:[#allocation3 + $0xf0] sm:$0xff] }
 0x1d6   : > { %1348 = vst.msk [vmem:[#allocation3 + $0xf9] sm:$0xff] %vm1154_vm4, %v1271_v0 }
 0x1d9   : > { %11630 = vmatmul.msk.f32.gmra.mxu3 %vm1154_vm4, %v1378_v60  ;;  %11692 = vmatmul.msk.f32.gmra.mxu1 %vm1154_vm4, %v1378_v60 }
 0x1da   : > { %11597 = vmatmul.msk.f32.gmra.mxu2 %vm1154_vm4, %v1410_v6  ;;  %v1413_v6 = vld [vmem:[#allocation3 + $0xe1] sm:$0xff] }
 0x1db   : > { %3910 = vrot.lane.b32.xlu2 %v13365_v33, %s12835_s18  ;;  %3906 = vrot.lane.b32.xlu0 %v13314_v2, %s12835_s18 }
 0x1dc   : > { %3902 = vrot.lane.b32.xlu1 %v13259_v36, %s12835_s18 }
 0x1dd   : > { %11661 = vmatmul.msk.f32.gmra.mxu0 %vm1154_vm4, %v1861_v13  ;;  %v1279_v17 = vpop.permute.xlu2 %1278 }
 0x1de   : > { %v13721_v61 = vpop.f32.mrf.mxu1  ;;  %1352 = vst.msk [vmem:[#allocation3 + $0x129] sm:$0xff] %vm1154_vm4, %v1279_v17 }
 0x1e1   : > { %11631 = vmatmul.msk.f32.gmra.mxu3 %vm1154_vm4, %v1379_v14  ;;  %11693 = vmatmul.msk.f32.gmra.mxu1 %vm1154_vm4, %v1379_v14  ;;  %v1864_v14 = vld [vmem:[#allocation3 + $0xe2] sm:$0xff] }
 0x1e2   : > { %v1994_v23 = vpop.f32.mrf.mxu0  ;;  %11598 = vmatmul.msk.f32.gmra.mxu2 %vm1154_vm4, %v1411_v19 }
 0x1e3   : > { %3916 = vrot.lane.b32.xlu2 %v13447_v63, %s12835_s18  ;;  %3912 = vrot.lane.b32.xlu0 %v13395_v48, %s12835_s18 }
 0x1e4   : > { %v1755_v29 = vpop.f32.mrf.mxu3  ;;  %3908 = vrot.lane.b32.xlu1 %v13339_v16, %s12835_s18 }
 0x1e5   : > { %11662 = vmatmul.msk.f32.gmra.mxu0 %vm1154_vm4, %v1862_v28  ;;  %v1543_v30 = vpop.f32.mrf.mxu2  ;;  %v1275_v37 = vpop.permute.xlu0 %1274 }
 0x1e6   : > { %v1753_v31 = vadd.f32 %v1752_v9, %v1543_v30  ;;  %v2268_v27 = vpop.f32.mrf.mxu1  ;;  %1350 = vst.msk [vmem:[#allocation3 + $0x111] sm:$0xff] %vm1154_vm4, %v1275_v37 }
 0x1e8   : > { %v2088_v41 = vadd.f32 %v1994_v23, %v1753_v31  ;;  %v1414_v31 = vld [vmem:[#allocation3 + $0xf1] sm:$0xff] }
 0x1e9   : > { %11632 = vmatmul.msk.f32.gmra.mxu3 %vm1154_vm4, %v1380_v42  ;;  %11694 = vmatmul.msk.f32.gmra.mxu1 %vm1154_vm4, %v1380_v42 }
 0x1ea   : > { %v1997_v46 = vpop.f32.mrf.mxu0  ;;  %11599 = vmatmul.msk.f32.gmra.mxu2 %vm1154_vm4, %v1412_v40  ;;  %v13742_v45 = vadd.f32 %v2268_v27, %v2088_v41  ;;  %v1865_v41 = vld [vmem:[#allocation3 + $0xf2] sm:$0xff] }
 0x1eb   : > { %3922 = vrot.lane.b32.xlu2 %v13523_v35, %s12835_s18  ;;  %3918 = vrot.lane.b32.xlu0 %v13480_v15, %s12835_s18 }
 0x1ec   : > { %v1758_v11 = vpop.f32.mrf.mxu3  ;;  %3914 = vrot.lane.b32.xlu1 %v13417_v53, %s12835_s18 }
 0x1ed   : > { %11663 = vmatmul.msk.f32.gmra.mxu0 %vm1154_vm4, %v1863_v50  ;;  %v1546_v54 = vpop.f32.mrf.mxu2  ;;  %v1277_v60 = vpop.permute.xlu1 %1276 }
 0x1ee   : > { %v1756_v55 = vadd.f32 %v1755_v29, %v1546_v54  ;;  %v2271_v56 = vpop.f32.mrf.mxu1  ;;  %1351 = vst.msk [vmem:[#allocation3 + $0x121] sm:$0xff] %vm1154_vm4, %v1277_v60  ;;  %v1382_v29 = vld [vmem:[#allocation3 + $0xf8] sm:$0xff] }
 0x1f0   : > { %v2089_v0 = vadd.f32 %v1997_v46, %v1756_v55  ;;  %v1415_v55 = vld [vmem:[#allocation3 + $0xf9] sm:$0xff] }
 0x1f1   : > { %11633 = vmatmul.msk.f32.gmra.mxu3 %vm1154_vm4, %v1381_v59  ;;  %11695 = vmatmul.msk.f32.gmra.mxu1 %vm1154_vm4, %v1381_v59  ;;  %v1383_v59 = vld [vmem:[#allocation3 + $0x108] sm:$0xff] }
 0x1f2   : > { %v2000_v9 = vpop.f32.mrf.mxu0  ;;  %11600 = vmatmul.msk.f32.gmra.mxu2 %vm1154_vm4, %v1413_v6  ;;  %v13755_v13 = vadd.f32 %v2271_v56, %v2089_v0  ;;  %v1866_v6 = vld [vmem:[#allocation3 + $0xfa] sm:$0xff] }
 0x1f3   : > { %3928 = vrot.lane.b32.xlu2 %v13565_v12, %s12835_s18  ;;  %3924 = vrot.lane.b32.xlu0 %v13539_v47, %s12835_s18 }
 0x1f4   : > { %v1761_v17 = vpop.f32.mrf.mxu3  ;;  %3920 = vrot.lane.b32.xlu1 %v13502_v25, %s12835_s18 }
 0x1f5   : > { %11664 = vmatmul.msk.f32.gmra.mxu0 %vm1154_vm4, %v1864_v14  ;;  %v1549_v19 = vpop.f32.mrf.mxu2  ;;  %v1285_v30 = vpop.permute.xlu2 %1284 }
 0x1f6   : > { %v1759_v23 = vadd.f32 %v1758_v11, %v1549_v19  ;;  %v2274_v28 = vpop.f32.mrf.mxu1  ;;  %1355 = vst.msk [vmem:[#allocation3 + $0x151] sm:$0xff] %vm1154_vm4, %v1285_v30  ;;  %v1416_v30 = vld [vmem:[#allocation3 + $0x109] sm:$0xff] }
 0x1f8   : > { %v2090_v27 = vadd.f32 %v2000_v9, %v1759_v23  ;;  %v1384_v23 = vld [vmem:[#allocation3 + $0x110] sm:$0xff] }
 0x1f9   : > { %11634 = vmatmul.msk.f32.gmra.mxu3 %vm1154_vm4, %v1382_v29  ;;  %11696 = vmatmul.msk.f32.gmra.mxu1 %vm1154_vm4, %v1382_v29 }
 0x1fa   : > { %v2003_v37 = vpop.f32.mrf.mxu0  ;;  %11601 = vmatmul.msk.f32.gmra.mxu2 %vm1154_vm4, %v1414_v31  ;;  %v13768_v40 = vadd.f32 %v2274_v28, %v2090_v27 }
 0x1fb   : > { %3934 = vrot.lane.b32.xlu2 %v13595_v51, %s12835_s18  ;;  %3930 = vrot.lane.b32.xlu0 %v13575_v26, %s12835_s18 }
 0x1fc   : > { %v1764_v42 = vpop.f32.mrf.mxu3  ;;  %3926 = vrot.lane.b32.xlu1 %v13552_v62, %s12835_s18 }
 0x1fd   : > { %11665 = vmatmul.msk.f32.gmra.mxu0 %vm1154_vm4, %v1865_v41  ;;  %v1552_v46 = vpop.f32.mrf.mxu2  ;;  %v1281_v54 = vpop.permute.xlu0 %1280 }
 0x1fe   : > { %v1762_v50 = vadd.f32 %v1761_v17, %v1552_v46  ;;  %v2277_v11 = vpop.f32.mrf.mxu1  ;;  %1353 = vst.msk [vmem:[#allocation3 + $0x139] sm:$0xff] %vm1154_vm4, %v1281_v54 }
 0x200   : > { %v2091_v56 = vadd.f32 %v2003_v37, %v1762_v50  ;;  %v1867_v37 = vld [vmem:[#allocation3 + $0x10a] sm:$0xff] }
 0x201   : > { %11635 = vmatmul.msk.f32.gmra.mxu3 %vm1154_vm4, %v1383_v59  ;;  %11697 = vmatmul.msk.f32.gmra.mxu1 %vm1154_vm4, %v1383_v59 }
 0x202   : > { %v2006_v60 = vpop.f32.mrf.mxu0  ;;  %11602 = vmatmul.msk.f32.gmra.mxu2 %vm1154_vm4, %v1415_v55  ;;  %v13781_v0 = vadd.f32 %v2277_v11, %v2091_v56  ;;  %v1385_v11 = vld [vmem:[#allocation3 + $0x120] sm:$0xff]  ;;  %v1417_v55 = vld [vmem:[#allocation3 + $0x111] sm:$0xff] }
 0x203   : > { %3940 = vrot.lane.b32.xlu2 %v13630_v34, %s12835_s18  ;;  %3936 = vrot.lane.b32.xlu0 %v13610_v5, %s12835_s18 }
 0x204   : > { %v1767_v9 = vpop.f32.mrf.mxu3  ;;  %3932 = vrot.lane.b32.xlu1 %v13585_v38, %s12835_s18 }
 0x205   : > { %11666 = vmatmul.msk.f32.gmra.mxu0 %vm1154_vm4, %v1866_v6  ;;  %v1555_v14 = vpop.f32.mrf.mxu2  ;;  %v1283_v28 = vpop.permute.xlu1 %1282  ;;  %v1868_v6 = vld [vmem:[#allocation3 + $0x112] sm:$0xff] }
 0x206   : > { %v1765_v17 = vadd.f32 %v1764_v42, %v1555_v14  ;;  %v2280_v19 = vpop.f32.mrf.mxu1  ;;  %1354 = vst.msk [vmem:[#allocation3 + $0x141] sm:$0xff] %vm1154_vm4, %v1283_v28  ;;  %v1418_v28 = vld [vmem:[#allocation3 + $0x121] sm:$0xff] }
 0x208   : > { %v2092_v29 = vadd.f32 %v2006_v60, %v1765_v17 }
 0x209   : > { %11636 = vmatmul.msk.f32.gmra.mxu3 %vm1154_vm4, %v1384_v23  ;;  %11698 = vmatmul.msk.f32.gmra.mxu1 %vm1154_vm4, %v1384_v23 }
 0x20a   : > { %v2009_v31 = vpop.f32.mrf.mxu0  ;;  %11603 = vmatmul.msk.f32.gmra.mxu2 %vm1154_vm4, %v1416_v30  ;;  %v13794_v27 = vadd.f32 %v2280_v19, %v2092_v29 }
 0x20b   : > { %3946 = vrot.lane.b32.xlu2 %v13660_v21, %s12835_s18  ;;  %3942 = vrot.lane.b32.xlu0 %v13640_v52, %s12835_s18  ;;  %v14046_v21 = vld [vmem:[#allocation3 + $0xaa] sm:$0xff] }
 0x20c   : > { %v1770_v41 = vpop.f32.mrf.mxu3  ;;  %3938 = vrot.lane.b32.xlu1 %v13620_v20, %s12835_s18 }
 0x20d   : > { %11667 = vmatmul.msk.f32.gmra.mxu0 %vm1154_vm4, %v1867_v37  ;;  %v1558_v42 = vpop.f32.mrf.mxu2  ;;  %v1291_v54 = vpop.permute.xlu2 %1290 }
 0x20e   : > { %v1768_v46 = vadd.f32 %v1767_v9, %v1558_v42  ;;  %v2283_v50 = vpop.f32.mrf.mxu1  ;;  %1358 = vst.msk [vmem:[#allocation3 + $0x171] sm:$0xff] %vm1154_vm4, %v1291_v54  ;;  %v1869_v42 = vld [vmem:[#allocation3 + $0x122] sm:$0xff] }
 0x210   : > { %v2093_v56 = vadd.f32 %v2009_v31, %v1768_v46  ;;  %v1386_v31 = vld [vmem:[#allocation3 + $0x128] sm:$0xff] }
 0x211   : > { %11637 = vmatmul.msk.f32.gmra.mxu3 %vm1154_vm4, %v1385_v11  ;;  %11699 = vmatmul.msk.f32.gmra.mxu1 %vm1154_vm4, %v1385_v11 }
 0x212   : > { %v2012_v59 = vpop.f32.mrf.mxu0  ;;  %11604 = vmatmul.msk.f32.gmra.mxu2 %vm1154_vm4, %v1417_v55  ;;  %v13807_v60 = vadd.f32 %v2283_v50, %v2093_v56  ;;  %v1387_v55 = vld [vmem:[#allocation3 + $0x138] sm:$0xff] }
 0x213   : > { %11203 = vrot.lane.b32.xlu2 %v13127_v24, %s12836_s12  ;;  %3948 = vrot.lane.b32.xlu0 %v13680_v39, %s12835_s18  ;;  %v14037_v39 = vld [vmem:[#allocation3 + $0x9a] sm:$0xff]  ;;  %v14154_v24 = vld [vmem:[#allocation3 + $0x12a] sm:$0xff] }
 0x214   : > { %v1773_v9 = vpop.f32.mrf.mxu3  ;;  %3944 = vrot.lane.b32.xlu1 %v13650_v8, %s12835_s18  ;;  %v14028_v8 = vld [vmem:[#allocation3 + $0x92] sm:$0xff] }
 0x215   : > { %11668 = vmatmul.msk.f32.gmra.mxu0 %vm1154_vm4, %v1868_v6  ;;  %v1561_v14 = vpop.f32.mrf.mxu2  ;;  %v1287_v23 = vpop.permute.xlu0 %1286 }
 0x216   : > { %v1771_v17 = vadd.f32 %v1770_v41, %v1561_v14  ;;  %v2286_v19 = vpop.f32.mrf.mxu1  ;;  %1356 = vst.msk [vmem:[#allocation3 + $0x159] sm:$0xff] %vm1154_vm4, %v1287_v23  ;;  %v3887_v29 = vpop.permute.xlu2 %3886  ;;  %v1419_v14 = vld [vmem:[#allocation3 + $0x129] sm:$0xff] }
 0x217   : > { %3983 = vst.msk [vmem:[#allocation4 + $0x32] sm:$0xff] %vm336_vm1, %v3887_v29 }
 0x218   : > { %v2094_v30 = vadd.f32 %v2012_v59, %v1771_v17 }
 0x219   : > { %11638 = vmatmul.msk.f32.gmra.mxu3 %vm1154_vm4, %v1386_v31  ;;  %11700 = vmatmul.msk.f32.gmra.mxu1 %vm1154_vm4, %v1386_v31  ;;  %v1388_v31 = vld [vmem:[#allocation3 + $0x140] sm:$0xff] }
 0x21a   : > { %v2015_v37 = vpop.f32.mrf.mxu0  ;;  %11605 = vmatmul.msk.f32.gmra.mxu2 %vm1154_vm4, %v1418_v28  ;;  %v13821_v41 = vadd.f32 %v2286_v19, %v2094_v30  ;;  %v1870_v19 = vld [vmem:[#allocation3 + $0x12a] sm:$0xff] }
 0x21b   : > { %11209 = vrot.lane.b32.xlu2 %v13191_v32, %s12836_s12  ;;  %11205 = vrot.lane.b32.xlu0 %v13163_v4, %s12836_s12  ;;  %v14124_v32 = vld [vmem:[#allocation3 + $0x10a] sm:$0xff]  ;;  %v14144_v4 = vld [vmem:[#allocation3 + $0x122] sm:$0xff] }
 0x21c   : > { %v1776_v46 = vpop.f32.mrf.mxu3  ;;  %11207 = vrot.lane.b32.xlu1 %v13176_v18, %s12836_s12  ;;  %v14164_v18 = vld [vmem:[#allocation3 + $0x13a] sm:$0xff] }
 0x21d   : > { %11669 = vmatmul.msk.f32.gmra.mxu0 %vm1154_vm4, %v1869_v42  ;;  %v1564_v50 = vpop.f32.mrf.mxu2  ;;  %v1289_v56 = vpop.permute.xlu1 %1288 }
 0x21e   : > { %v1774_v11 = vadd.f32 %v1773_v9, %v1564_v50  ;;  %v2289_v54 = vpop.f32.mrf.mxu1  ;;  %1357 = vst.msk [vmem:[#allocation3 + $0x169] sm:$0xff] %vm1154_vm4, %v1289_v56  ;;  %v3893_v59 = vpop.permute.xlu2 %3892 }
 0x21f   : > { %3986 = vst.msk [vmem:[#allocation4 + $0x52] sm:$0xff] %vm336_vm1, %v3893_v59 }
 0x220   : > { %v2095_v6 = vadd.f32 %v2015_v37, %v1774_v11  ;;  %v1420_v37 = vld [vmem:[#allocation3 + $0x139] sm:$0xff] }
 0x221   : > { %11639 = vmatmul.msk.f32.gmra.mxu3 %vm1154_vm4, %v1387_v55  ;;  %11701 = vmatmul.msk.f32.gmra.mxu1 %vm1154_vm4, %v1387_v55 }
 0x222   : > { %v2018_v17 = vpop.f32.mrf.mxu0  ;;  %11606 = vmatmul.msk.f32.gmra.mxu2 %vm1154_vm4, %v1419_v14  ;;  %v13835_v9 = vadd.f32 %v2289_v54, %v2095_v6  ;;  %v1871_v54 = vld [vmem:[#allocation3 + $0x13a] sm:$0xff] }
 0x223   : > { %11215 = vrot.lane.b32.xlu2 %v13232_v7, %s12836_s12  ;;  %11211 = vrot.lane.b32.xlu0 %v13204_v44, %s12836_s12  ;;  %v14094_v44 = vld [vmem:[#allocation3 + $0xe2] sm:$0xff] }
 0x224   : > { %v1779_v23 = vpop.f32.mrf.mxu3  ;;  %11213 = vrot.lane.b32.xlu1 %v13219_v57, %s12836_s12  ;;  %v14134_v57 = vld [vmem:[#allocation3 + $0x112] sm:$0xff] }
 0x225   : > { %11670 = vmatmul.msk.f32.gmra.mxu0 %vm1154_vm4, %v1870_v19  ;;  %v1567_v28 = vpop.f32.mrf.mxu2 }
 0x226   : > { %v1777_v29 = vadd.f32 %v1776_v46, %v1567_v28  ;;  %v2292_v30 = vpop.f32.mrf.mxu1  ;;  %v3899_v42 = vpop.permute.xlu2 %3898 }
 0x227   : > { %3989 = vst.msk [vmem:[#allocation4 + $0x7a] sm:$0xff] %vm336_vm1, %v3899_v42 }
 0x228   : > { %v2096_v50 = vadd.f32 %v2018_v17, %v1777_v29  ;;  %v1421_v17 = vld [vmem:[#allocation3 + $0x141] sm:$0xff]  ;;  %v1389_v29 = vld [vmem:[#allocation3 + $0x150] sm:$0xff] }
 0x229   : > { %11640 = vmatmul.msk.f32.gmra.mxu3 %vm1154_vm4, %v1388_v31  ;;  %11702 = vmatmul.msk.f32.gmra.mxu1 %vm1154_vm4, %v1388_v31  ;;  %v1872_v31 = vld [vmem:[#allocation3 + $0x142] sm:$0xff] }
 0x22a   : > { %v2021_v11 = vpop.f32.mrf.mxu0  ;;  %11607 = vmatmul.msk.f32.gmra.mxu2 %vm1154_vm4, %v1420_v37  ;;  %v13848_v46 = vadd.f32 %v2292_v30, %v2096_v50 }
 0x22b   : > { %11221 = vrot.lane.b32.xlu2 %v13279_v49, %s12836_s12  ;;  %11217 = vrot.lane.b32.xlu0 %v13247_v22, %s12836_s12 }
 0x22c   : > { %v1782_v55 = vpop.f32.mrf.mxu3  ;;  %11219 = vrot.lane.b32.xlu1 %v13259_v36, %s12836_s12  ;;  %v2410_v36 = vld [vmem:[#allocation3 + $0xe1] sm:$0xff] }
 0x22d   : > { %11671 = vmatmul.msk.f32.gmra.mxu0 %vm1154_vm4, %v1871_v54  ;;  %v1570_v56 = vpop.f32.mrf.mxu2  ;;  %v1293_v14 = vpop.permute.xlu0 %1292  ;;  %v1390_v54 = vld [vmem:[#allocation3 + $0x158] sm:$0xff] }
 0x22e   : > { %v1780_v59 = vadd.f32 %v1779_v23, %v1570_v56  ;;  %v2295_v6 = vpop.f32.mrf.mxu1  ;;  %v3905_v19 = vpop.permute.xlu2 %3904  ;;  %1359 = vst.msk [vmem:[#allocation3 + $0x181] sm:$0xff] %vm1154_vm4, %v1293_v14  ;;  %v1422_v14 = vld [vmem:[#allocation3 + $0x151] sm:$0xff] }
 0x22f   : > { %3992 = vst.msk [vmem:[#allocation4 + $0x9a] sm:$0xff] %vm336_vm1, %v3905_v19 }
 0x230   : > { %v2097_v28 = vadd.f32 %v2021_v11, %v1780_v59 }
 0x231   : > { %11641 = vmatmul.msk.f32.gmra.mxu3 %vm1154_vm4, %v1389_v29  ;;  %11703 = vmatmul.msk.f32.gmra.mxu1 %vm1154_vm4, %v1389_v29  ;;  %v4080_v29 = vld [vmem:[%s18224_s6 + $0x4] sm:$0xf] }
 0x232   : > { %v2024_v30 = vpop.f32.mrf.mxu0  ;;  %11608 = vmatmul.msk.f32.gmra.mxu2 %vm1154_vm4, %v1421_v17  ;;  %v13862_v23 = vadd.f32 %v2295_v6, %v2097_v28  ;;  %v2974_v28 = vld [vmem:[%s18222_s4 + $0x30] sm:$0xff]  ;;  %11869 = vmatpush.msk.msra.mxu3 %vm757_vm0, %v4080_v29 }
 0x233   : > { %11227 = vrot.lane.b32.xlu2 %v13365_v33, %s12836_s12  ;;  %11223 = vrot.lane.b32.xlu0 %v13314_v2, %s12836_s12  ;;  %v14064_v33 = vld [vmem:[#allocation3 + $0xc2] sm:$0xff]  ;;  %v14073_v2 = vld [vmem:[#allocation3 + $0xca] sm:$0xff] }
 0x234   : > { %v1785_v37 = vpop.f32.mrf.mxu3  ;;  %11225 = vrot.lane.b32.xlu1 %v13339_v16, %s12836_s12  ;;  %3086 = vmatpush.msra.mxu0 %v2974_v28  ;;  %v14082_v16 = vld [vmem:[#allocation3 + $0xda] sm:$0xff] }
 0x235   : > { %11672 = vmatmul.msk.f32.gmra.mxu0 %vm1154_vm4, %v1872_v31  ;;  %v1573_v42 = vpop.f32.mrf.mxu2  ;;  %v3889_v56 = vpop.permute.xlu0 %3888  ;;  %v1873_v31 = vld [vmem:[#allocation3 + $0x152] sm:$0xff] }
 0x236   : > { %v1783_v50 = vadd.f32 %v1782_v55, %v1573_v42  ;;  %v2298_v11 = vpop.f32.mrf.mxu1  ;;  %v3911_v59 = vpop.permute.xlu2 %3910  ;;  %3984 = vst.msk [vmem:[#allocation4 + $0x3a] sm:$0xff] %vm336_vm1, %v3889_v56  ;;  %v3522_v55 = vld [vmem:[%s18222_s4 + $0x40] sm:$0xff] }
 0x237   : > { %3995 = vst.msk [vmem:[#allocation4 + $0xc2] sm:$0xff] %vm336_vm1, %v3911_v59  ;;  %v1295_v19 = vpop.permute.xlu1 %1294  ;;  %3634 = vmatpush.msra.mxu2 %v3522_v55  ;;  %v1391_v59 = vld [vmem:[#allocation3 + $0x168] sm:$0xff] }
 0x238   : > { %v2098_v6 = vadd.f32 %v2024_v30, %v1783_v50  ;;  %1360 = vst.msk [vmem:[#allocation3 + $0x189] sm:$0xff] %vm1154_vm4, %v1295_v19 }
 0x239   : > { %11642 = vmatmul.msk.f32.gmra.mxu3 %vm1154_vm4, %v1390_v54  ;;  %11704 = vmatmul.msk.f32.gmra.mxu1 %vm1154_vm4, %v1390_v54 }
 0x23a   : > { %v2027_v17 = vpop.f32.mrf.mxu0  ;;  %11609 = vmatmul.msk.f32.gmra.mxu2 %vm1154_vm4, %v1422_v14  ;;  %v13886_v30 = vadd.f32 %v2298_v11, %v2098_v6  ;;  %v3248_v11 = vld [vmem:[%s18222_s4 + $0x38] sm:$0xff]  ;;  %v1423_v14 = vld [vmem:[#allocation3 + $0x159] sm:$0xff] }
 0x23b   : > { %11233 = vrot.lane.b32.xlu2 %v13447_v63, %s12836_s12  ;;  %11229 = vrot.lane.b32.xlu0 %v13395_v48, %s12836_s12 }
 0x23c   : > { %v1788_v42 = vpop.f32.mrf.mxu3  ;;  %3360 = vmatpush.msra.mxu1 %v3248_v11  ;;  %11231 = vrot.lane.b32.xlu1 %v13417_v53, %s12836_s12 }
 0x23d   : > { %11673 = vmatmul.msk.f32.gmra.mxu0 %vm1154_vm4, %v1873_v31  ;;  %v1576_v50 = vpop.f32.mrf.mxu2  ;;  %v3895_v6 = vpop.permute.xlu0 %3894  ;;  %v1874_v31 = vld [vmem:[#allocation3 + $0x15a] sm:$0xff] }
 0x23e   : > { %v1786_v54 = vadd.f32 %v1785_v37, %v1576_v50  ;;  %v2301_v56 = vpop.f32.mrf.mxu1  ;;  %v3917_v19 = vpop.permute.xlu2 %3916  ;;  %3987 = vst.msk [vmem:[#allocation4 + $0x62] sm:$0xff] %vm336_vm1, %v3895_v6  ;;  %v1424_v6 = vld [vmem:[#allocation3 + $0x169] sm:$0xff] }
 0x23f   : > { %3998 = vst.msk [vmem:[#allocation4 + $0xe2] sm:$0xff] %vm336_vm1, %v3917_v19  ;;  %v3891_v28 = vpop.permute.xlu1 %3890  ;;  %v1392_v19 = vld [vmem:[#allocation3 + $0x170] sm:$0xff] }
 0x240   : > { %v2099_v55 = vadd.f32 %v2027_v17, %v1786_v54  ;;  %3985 = vst.msk [vmem:[#allocation4 + $0x4a] sm:$0xff] %vm336_vm1, %v3891_v28 }
 0x241   : > { %11643 = vmatmul.msk.f32.gmra.mxu3 %vm1154_vm4, %v1391_v59  ;;  %11705 = vmatmul.msk.f32.gmra.mxu1 %vm1154_vm4, %v1391_v59 }
 0x242   : > { %v2030_v37 = vpop.f32.mrf.mxu0  ;;  %11610 = vmatmul.msk.f32.gmra.mxu2 %vm1154_vm4, %v1423_v14  ;;  %v13905_v29 = vadd.f32 %v2301_v56, %v2099_v55 }
 0x243   : > { %11239 = vrot.lane.b32.xlu2 %v13523_v35, %s12836_s12  ;;  %11235 = vrot.lane.b32.xlu0 %v13480_v15, %s12836_s12 }
 0x244   : > { %v1791_v50 = vpop.f32.mrf.mxu3  ;;  %11237 = vrot.lane.b32.xlu1 %v13502_v25, %s12836_s12  ;;  %v14055_v25 = vld [vmem:[#allocation3 + $0xb2] sm:$0xff] }
 0x245   : > { %11674 = vmatmul.msk.f32.gmra.mxu0 %vm1154_vm4, %v1874_v31  ;;  %v1579_v17 = vpop.f32.mrf.mxu2  ;;  %v3901_v11 = vpop.permute.xlu0 %3900  ;;  %v1875_v31 = vld [vmem:[#allocation3 + $0x16a] sm:$0xff] }
 0x246   : > { %v1789_v54 = vadd.f32 %v1788_v42, %v1579_v17  ;;  %v2304_v59 = vpop.f32.mrf.mxu1  ;;  %v3923_v14 = vpop.permute.xlu2 %3922  ;;  %3990 = vst.msk [vmem:[#allocation4 + $0x82] sm:$0xff] %vm336_vm1, %v3901_v11 }
 0x247   : > { %4001 = vst.msk [vmem:[#allocation4 + $0x10a] sm:$0xff] %vm336_vm1, %v3923_v14  ;;  %v3897_v28 = vpop.permute.xlu1 %3896  ;;  %v2149_v14 = vld [vmem:[#allocation3 + $0x180] sm:$0xff] }
 0x248   : > { %v2100_v56 = vadd.f32 %v2030_v37, %v1789_v54  ;;  %3988 = vst.msk [vmem:[#allocation4 + $0x6a] sm:$0xff] %vm336_vm1, %v3897_v28 }
 0x249   : > { %11644 = vmatmul.msk.f32.gmra.mxu3 %vm1154_vm4, %v1392_v19  ;;  %11706 = vmatmul.msk.f32.gmra.mxu1 %vm1154_vm4, %v1392_v19 }
 0x24a   : > { %v2033_v55 = vpop.f32.mrf.mxu0  ;;  %11611 = vmatmul.msk.f32.gmra.mxu2 %vm1154_vm4, %v1424_v6  ;;  %v13920_v42 = vadd.f32 %v2304_v59, %v2100_v56  ;;  %v1425_v6 = vld [vmem:[#allocation3 + $0x171] sm:$0xff] }
 0x24b   : > { %11245 = vrot.lane.b32.xlu2 %v13565_v12, %s12836_s12  ;;  %11241 = vrot.lane.b32.xlu0 %v13539_v47, %s12836_s12  ;;  %v2672_v12 = vld [vmem:[#allocation3 + $0x52] sm:$0xff]  ;;  %v2674_v47 = vld [vmem:[#allocation3 + $0x6a] sm:$0xff] }
 0x24c   : > { %v1794_v37 = vpop.f32.mrf.mxu3  ;;  %11243 = vrot.lane.b32.xlu1 %v13552_v62, %s12836_s12 }
 0x24d   : > { %11675 = vmatmul.msk.f32.gmra.mxu0 %vm1154_vm4, %v1875_v31  ;;  %v1582_v17 = vpop.f32.mrf.mxu2  ;;  %v3907_v19 = vpop.permute.xlu0 %3906 }
 0x24e   : > { %v1792_v54 = vadd.f32 %v1791_v50, %v1582_v17  ;;  %v2307_v11 = vpop.f32.mrf.mxu1  ;;  %v3929_v28 = vpop.permute.xlu2 %3928  ;;  %3993 = vst.msk [vmem:[#allocation4 + $0xaa] sm:$0xff] %vm336_vm1, %v3907_v19  ;;  %v13938_v17 = vld [vmem:[#allocation3 + $0x172] sm:$0xff]  ;;  %v2150_v19 = vld [vmem:[#allocation3 + $0x188] sm:$0xff] }
 0x24f   : > { %4004 = vst.msk [vmem:[#allocation4 + $0x12a] sm:$0xff] %vm336_vm1, %v3929_v28  ;;  %v3903_v50 = vpop.permute.xlu1 %3902 }
 0x250   : > { %v2101_v59 = vadd.f32 %v2033_v55, %v1792_v54  ;;  %3991 = vst.msk [vmem:[#allocation4 + $0x92] sm:$0xff] %vm336_vm1, %v3903_v50  ;;  %v2393_v50 = vld [vmem:[#allocation3 + $0x19] sm:$0xff] }
 0x251   : > { %11707 = vmatmul.msk.f32.gmra.mxu1 %vm1154_vm4, %v2149_v14  ;;  %11741 = vmatmul.msk.f32.vlgmr.msrb.gmra.mxu3 %vm1154_vm4, %v13559_v3 }
 0x252   : > { %v2036_v56 = vpop.f32.mrf.mxu0  ;;  %11612 = vmatmul.msk.f32.gmra.mxu2 %vm1154_vm4, %v1425_v6  ;;  %v13936_v31 = vadd.f32 %v2307_v11, %v2101_v59  ;;  %v2668_v59 = vld [vmem:[#allocation3 + $0x22] sm:$0xff] }
 0x253   : > { %11251 = vrot.lane.b32.xlu2 %v13595_v51, %s12836_s12  ;;  %11247 = vrot.lane.b32.xlu0 %v13575_v26, %s12836_s12  ;;  %v2670_v26 = vld [vmem:[#allocation3 + $0x3a] sm:$0xff] }
 0x254   : > { %v1797_v55 = vpop.f32.mrf.mxu3  ;;  %11249 = vrot.lane.b32.xlu1 %v13585_v38, %s12836_s12  ;;  %v2673_v38 = vld [vmem:[#allocation3 + $0x62] sm:$0xff] }
 0x255   : > { %11676 = vmatmul.msk.f32.gmra.mxu0 %vm1154_vm4, %v13938_v17  ;;  %v1585_v54 = vpop.f32.mrf.mxu2  ;;  %v3913_v6 = vpop.permute.xlu0 %3912 }
 0x256   : > { %v1795_v3 = vadd.f32 %v1794_v37, %v1585_v54  ;;  %v2310_v14 = vpop.f32.mrf.mxu1  ;;  %v3935_v28 = vpop.permute.xlu2 %3934  ;;  %3996 = vst.msk [vmem:[#allocation4 + $0xca] sm:$0xff] %vm336_vm1, %v3913_v6 }
 0x257   : > { %4007 = vst.msk [vmem:[#allocation4 + $0x152] sm:$0xff] %vm336_vm1, %v3935_v28  ;;  %v3909_v37 = vpop.permute.xlu1 %3908 }
 0x258   : > { %v2102_v11 = vadd.f32 %v2036_v56, %v1795_v3  ;;  %3994 = vst.msk [vmem:[#allocation4 + $0xb2] sm:$0xff] %vm336_vm1, %v3909_v37  ;;  %v2942_v56 = vld [vmem:[#allocation3 + $0x30] sm:$0xff] }
 0x259   : > { %11708 = vmatmul.msk.f32.gmra.mxu1 %vm1154_vm4, %v2150_v19  ;;  %11742 = vmatmul.msk.f32.gmra.mxu3 %vm1154_vm4, %v2668_v59 }
 0x25a   : > { %v2039_v43 = vpop.f32.mrf.mxu0  ;;  %11709 = vmatmul.msk.f32.vlgmr.msrb.gmra.mxu2 %vm1154_vm4, %v2393_v50  ;;  %v13954_v54 = vadd.f32 %v2310_v14, %v2102_v11  ;;  %v2395_v14 = vld [vmem:[#allocation3 + $0x31] sm:$0xff] }
 0x25b   : > { %11257 = vrot.lane.b32.xlu2 %v13630_v34, %s12836_s12  ;;  %11253 = vrot.lane.b32.xlu0 %v13610_v5, %s12836_s12  ;;  %v2669_v11 = vld [vmem:[#allocation3 + $0x32] sm:$0xff]  ;;  %v2394_v34 = vld [vmem:[#allocation3 + $0x21] sm:$0xff] }
 0x25c   : > { %v1800_v3 = vpop.f32.mrf.mxu3  ;;  %11255 = vrot.lane.b32.xlu1 %v13620_v20, %s12836_s12  ;;  %v2943_v5 = vld [vmem:[#allocation3 + $0x38] sm:$0xff] }
 0x25d   : > { %11773 = vmatmul.msk.f32.vlgmr.msra.gmra.mxu0 %vm1154_vm4, %v2942_v56  ;;  %v1588_v6 = vpop.f32.mrf.mxu2  ;;  %v3919_v59 = vpop.permute.xlu0 %3918 }
 0x25e   : > { %v1798_v19 = vadd.f32 %v1797_v55, %v1588_v6  ;;  %v2313_v28 = vpop.f32.mrf.mxu1  ;;  %v3941_v50 = vpop.permute.xlu2 %3940  ;;  %3999 = vst.msk [vmem:[#allocation4 + $0xf2] sm:$0xff] %vm336_vm1, %v3919_v59 }
 0x25f   : > { %4010 = vst.msk [vmem:[#allocation4 + $0x172] sm:$0xff] %vm336_vm1, %v3941_v50  ;;  %v3915_v55 = vpop.permute.xlu1 %3914 }
 0x260   : > { %v2103_v37 = vadd.f32 %v2039_v43, %v1798_v19  ;;  %3997 = vst.msk [vmem:[#allocation4 + $0xda] sm:$0xff] %vm336_vm1, %v3915_v55 }
 0x261   : > { %11743 = vmatmul.msk.f32.gmra.mxu3 %vm1154_vm4, %v2669_v11  ;;  %11805 = vmatmul.msk.f32.vlgmr.msra.gmra.mxu1 %vm1154_vm4, %v2395_v14 }
 0x262   : > { %v2042_v56 = vpop.f32.mrf.mxu0  ;;  %11710 = vmatmul.msk.f32.gmra.mxu2 %vm1154_vm4, %v2394_v34  ;;  %v13967_v6 = vadd.f32 %v2313_v28, %v2103_v37  ;;  %v2396_v34 = vld [vmem:[#allocation3 + $0x39] sm:$0xff]  ;;  %v2944_v37 = vld [vmem:[#allocation3 + $0x48] sm:$0xff] }
 0x263   : > { %11259 = vrot.lane.b32.xlu0 %v13640_v52, %s12836_s12  ;;  %v2671_v52 = vld [vmem:[#allocation3 + $0x4a] sm:$0xff] }
 0x264   : > { %v1803_v59 = vpop.f32.mrf.mxu3 }
 0x265   : > { %11774 = vmatmul.msk.f32.gmra.mxu0 %vm1154_vm4, %v2943_v5  ;;  %v1591_v43 = vpop.f32.mrf.mxu2  ;;  %v3925_v11 = vpop.permute.xlu0 %3924 }
 0x266   : > { %v1801_v19 = vadd.f32 %v1800_v3, %v1591_v43  ;;  %v2316_v50 = vpop.f32.mrf.mxu1  ;;  %v3947_v51 = vpop.permute.xlu2 %3946  ;;  %4002 = vst.msk [vmem:[#allocation4 + $0x112] sm:$0xff] %vm336_vm1, %v3925_v11  ;;  %v2397_v11 = vld [vmem:[#allocation3 + $0x49] sm:$0xff] }
 0x267   : > { %4013 = vst.msk [vmem:[#allocation4 + $0x19a] sm:$0xff] %vm336_vm1, %v3947_v51  ;;  %v3921_v28 = vpop.permute.xlu1 %3920 }
 0x268   : > { %v2104_v20 = vadd.f32 %v2042_v56, %v1801_v19  ;;  %4000 = vst.msk [vmem:[#allocation4 + $0xfa] sm:$0xff] %vm336_vm1, %v3921_v28 }
 0x269   : > { %11744 = vmatmul.msk.f32.gmra.mxu3 %vm1154_vm4, %v2670_v26  ;;  %11806 = vmatmul.msk.f32.gmra.mxu1 %vm1154_vm4, %v2396_v34 }
 0x26a   : > { %v2045_v5 = vpop.f32.mrf.mxu0  ;;  %11711 = vmatmul.msk.f32.gmra.mxu2 %vm1154_vm4, %v2395_v14  ;;  %v13978_v3 = vadd.f32 %v2316_v50, %v2104_v20 }
 0x26c   : > { %v1806_v55 = vpop.f32.mrf.mxu3 }
 0x26d   : > { %11775 = vmatmul.msk.f32.gmra.mxu0 %vm1154_vm4, %v2944_v37  ;;  %v1594_v56 = vpop.f32.mrf.mxu2  ;;  %v3931_v51 = vpop.permute.xlu0 %3930 }
 0x26e   : > { %v1804_v43 = vadd.f32 %v1803_v59, %v1594_v56  ;;  %v2319_v19 = vpop.f32.mrf.mxu1  ;;  %4005 = vst.msk [vmem:[#allocation4 + $0x13a] sm:$0xff] %vm336_vm1, %v3931_v51  ;;  %v2945_v59 = vld [vmem:[#allocation3 + $0x50] sm:$0xff] }
 0x26f   : > { %v3927_v20 = vpop.permute.xlu1 %3926  ;;  %v2398_v51 = vld [vmem:[#allocation3 + $0x51] sm:$0xff] }
 0x270   : > { %v2105_v26 = vadd.f32 %v2045_v5, %v1804_v43  ;;  %4003 = vst.msk [vmem:[#allocation4 + $0x122] sm:$0xff] %vm336_vm1, %v3927_v20 }
 0x271   : > { %11745 = vmatmul.msk.f32.gmra.mxu3 %vm1154_vm4, %v2671_v52  ;;  %11807 = vmatmul.msk.f32.gmra.mxu1 %vm1154_vm4, %v2397_v11 }
 0x272   : > { %v2048_v14 = vpop.f32.mrf.mxu0  ;;  %11712 = vmatmul.msk.f32.gmra.mxu2 %vm1154_vm4, %v2396_v34  ;;  %v13986_v50 = vadd.f32 %v2319_v19, %v2105_v26 }
 0x274   : > { %v1809_v28 = vpop.f32.mrf.mxu3 }
 0x275   : > { %11776 = vmatmul.msk.f32.gmra.mxu0 %vm1154_vm4, %v2945_v59  ;;  %v1597_v37 = vpop.f32.mrf.mxu2  ;;  %v3937_v43 = vpop.permute.xlu0 %3936 }
 0x276   : > { %v1807_v5 = vadd.f32 %v1806_v55, %v1597_v37  ;;  %v2322_v56 = vpop.f32.mrf.mxu1  ;;  %4008 = vst.msk [vmem:[#allocation4 + $0x15a] sm:$0xff] %vm336_vm1, %v3937_v43  ;;  %v2946_v55 = vld [vmem:[#allocation3 + $0x60] sm:$0xff] }
 0x277   : > { %v3933_v19 = vpop.permute.xlu1 %3932  ;;  %v2399_v43 = vld [vmem:[#allocation3 + $0x61] sm:$0xff] }
 0x278   : > { %v2106_v52 = vadd.f32 %v2048_v14, %v1807_v5  ;;  %4006 = vst.msk [vmem:[#allocation4 + $0x142] sm:$0xff] %vm336_vm1, %v3933_v19 }
 0x279   : > { %11746 = vmatmul.msk.f32.gmra.mxu3 %vm1154_vm4, %v2672_v12  ;;  %11808 = vmatmul.msk.f32.gmra.mxu1 %vm1154_vm4, %v2398_v51 }
 0x27a   : > { %v2051_v34 = vpop.f32.mrf.mxu0  ;;  %11713 = vmatmul.msk.f32.gmra.mxu2 %vm1154_vm4, %v2397_v11  ;;  %v13994_v26 = vadd.f32 %v2322_v56, %v2106_v52 }
 0x27c   : > { %v1812_v20 = vpop.f32.mrf.mxu3 }
 0x27d   : > { %11777 = vmatmul.msk.f32.gmra.mxu0 %vm1154_vm4, %v2946_v55  ;;  %v1600_v59 = vpop.f32.mrf.mxu2  ;;  %v3943_v5 = vpop.permute.xlu0 %3942 }
 0x27e   : > { %v1810_v14 = vadd.f32 %v1809_v28, %v1600_v59  ;;  %v2325_v37 = vpop.f32.mrf.mxu1  ;;  %4011 = vst.msk [vmem:[#allocation4 + $0x182] sm:$0xff] %vm336_vm1, %v3943_v5  ;;  %v2947_v28 = vld [vmem:[#allocation3 + $0x68] sm:$0xff] }
 0x27f   : > { %v3939_v56 = vpop.permute.xlu1 %3938  ;;  %v2400_v5 = vld [vmem:[#allocation3 + $0x69] sm:$0xff] }
 0x280   : > { %v2107_v12 = vadd.f32 %v2051_v34, %v1810_v14  ;;  %4009 = vst.msk [vmem:[#allocation4 + $0x16a] sm:$0xff] %vm336_vm1, %v3939_v56 }
 0x281   : > { %11747 = vmatmul.msk.f32.gmra.mxu3 %vm1154_vm4, %v2673_v38  ;;  %11809 = vmatmul.msk.f32.gmra.mxu1 %vm1154_vm4, %v2399_v43 }
 0x282   : > { %v2054_v11 = vpop.f32.mrf.mxu0  ;;  %11714 = vmatmul.msk.f32.gmra.mxu2 %vm1154_vm4, %v2398_v51  ;;  %v14002_v52 = vadd.f32 %v2325_v37, %v2107_v12 }
 0x284   : > { %v1815_v19 = vpop.f32.mrf.mxu3 }
 0x285   : > { %11778 = vmatmul.msk.f32.gmra.mxu0 %vm1154_vm4, %v2947_v28  ;;  %v1603_v55 = vpop.f32.mrf.mxu2  ;;  %v3949_v14 = vpop.permute.xlu0 %3948 }
 0x286   : > { %v1813_v34 = vadd.f32 %v1812_v20, %v1603_v55  ;;  %v2328_v59 = vpop.f32.mrf.mxu1  ;;  %4014 = vst.msk [vmem:[#allocation4 + $0x1a2] sm:$0xff] %vm336_vm1, %v3949_v14  ;;  %v2948_v20 = vld [vmem:[#allocation3 + $0x78] sm:$0xff] }
 0x287   : > { %v3945_v37 = vpop.permute.xlu1 %3944  ;;  %v2401_v14 = vld [vmem:[#allocation3 + $0x79] sm:$0xff] }
 0x288   : > { %v2108_v38 = vadd.f32 %v2054_v11, %v1813_v34  ;;  %4012 = vst.msk [vmem:[#allocation4 + $0x18a] sm:$0xff] %vm336_vm1, %v3945_v37 }
 0x289   : > { %11748 = vmatmul.msk.f32.gmra.mxu3 %vm1154_vm4, %v2674_v47  ;;  %11810 = vmatmul.msk.f32.gmra.mxu1 %vm1154_vm4, %v2400_v5  ;;  %v2675_v47 = vld [vmem:[#allocation3 + $0x7a] sm:$0xff] }
 0x28a   : > { %v2057_v51 = vpop.f32.mrf.mxu0  ;;  %11715 = vmatmul.msk.f32.gmra.mxu2 %vm1154_vm4, %v2399_v43  ;;  %v14010_v12 = vadd.f32 %v2328_v59, %v2108_v38  ;;  %v2949_v59 = vld [vmem:[#allocation3 + $0x80] sm:$0xff] }
 0x28c   : > { %v1818_v56 = vpop.f32.mrf.mxu3 }
 0x28d   : > { %11779 = vmatmul.msk.f32.gmra.mxu0 %vm1154_vm4, %v2948_v20  ;;  %v1606_v28 = vpop.f32.mrf.mxu2 }
 0x28e   : > { %v1816_v11 = vadd.f32 %v1815_v19, %v1606_v28  ;;  %v2331_v55 = vpop.f32.mrf.mxu1 }
 0x290   : > { %v2109_v34 = vadd.f32 %v2057_v51, %v1816_v11  ;;  %v2402_v51 = vld [vmem:[#allocation3 + $0x81] sm:$0xff] }
 0x291   : > { %11749 = vmatmul.msk.f32.gmra.mxu3 %vm1154_vm4, %v2675_v47  ;;  %11811 = vmatmul.msk.f32.gmra.mxu1 %vm1154_vm4, %v2401_v14  ;;  %v14019_v11 = vld [vmem:[#allocation3 + $0x82] sm:$0xff] }
 0x292   : > { %v2060_v35 = vpop.f32.mrf.mxu0  ;;  %11716 = vmatmul.msk.f32.gmra.mxu2 %vm1154_vm4, %v2400_v5  ;;  %v14016_v43 = vadd.f32 %v2331_v55, %v2109_v34  ;;  %v2950_v55 = vld [vmem:[#allocation3 + $0x90] sm:$0xff] }
 0x294   : > { %v1821_v38 = vpop.f32.mrf.mxu3 }
 0x295   : > { %11780 = vmatmul.msk.f32.gmra.mxu0 %vm1154_vm4, %v2949_v59  ;;  %v1609_v37 = vpop.f32.mrf.mxu2 }
 0x296   : > { %v1819_v20 = vadd.f32 %v1818_v56, %v1609_v37  ;;  %v2334_v19 = vpop.f32.mrf.mxu1 }
 0x298   : > { %v2110_v28 = vadd.f32 %v2060_v35, %v1819_v20  ;;  %v2403_v20 = vld [vmem:[#allocation3 + $0x91] sm:$0xff] }
 0x299   : > { %11750 = vmatmul.msk.f32.gmra.mxu3 %vm1154_vm4, %v14019_v11  ;;  %11812 = vmatmul.msk.f32.gmra.mxu1 %vm1154_vm4, %v2402_v51 }
 0x29a   : > { %v2063_v47 = vpop.f32.mrf.mxu0  ;;  %11717 = vmatmul.msk.f32.gmra.mxu2 %vm1154_vm4, %v2401_v14  ;;  %v14025_v5 = vadd.f32 %v2334_v19, %v2110_v28  ;;  %v2951_v19 = vld [vmem:[#allocation3 + $0x98] sm:$0xff] }
 0x29c   : > { %v1824_v34 = vpop.f32.mrf.mxu3 }
 0x29d   : > { %11781 = vmatmul.msk.f32.gmra.mxu0 %vm1154_vm4, %v2950_v55  ;;  %v1612_v56 = vpop.f32.mrf.mxu2 }
 0x29e   : > { %v1822_v59 = vadd.f32 %v1821_v38, %v1612_v56  ;;  %v2337_v35 = vpop.f32.mrf.mxu1 }
 0x2a0   : > { %v2111_v37 = vadd.f32 %v2063_v47, %v1822_v59  ;;  %v2404_v59 = vld [vmem:[#allocation3 + $0x99] sm:$0xff] }
 0x2a1   : > { %11751 = vmatmul.msk.f32.gmra.mxu3 %vm1154_vm4, %v14028_v8  ;;  %11813 = vmatmul.msk.f32.gmra.mxu1 %vm1154_vm4, %v2403_v20 }
 0x2a2   : > { %v2066_v62 = vpop.f32.mrf.mxu0  ;;  %11718 = vmatmul.msk.f32.gmra.mxu2 %vm1154_vm4, %v2402_v51  ;;  %v14034_v14 = vadd.f32 %v2337_v35, %v2111_v37  ;;  %v2952_v35 = vld [vmem:[#allocation3 + $0xa8] sm:$0xff] }
 0x2a4   : > { %v1827_v28 = vpop.f32.mrf.mxu3 }
 0x2a5   : > { %11782 = vmatmul.msk.f32.gmra.mxu0 %vm1154_vm4, %v2951_v19  ;;  %v1615_v38 = vpop.f32.mrf.mxu2 }
 0x2a6   : > { %v1825_v55 = vadd.f32 %v1824_v34, %v1615_v38  ;;  %v2340_v47 = vpop.f32.mrf.mxu1 }
 0x2a8   : > { %v2112_v56 = vadd.f32 %v2066_v62, %v1825_v55  ;;  %v2405_v55 = vld [vmem:[#allocation3 + $0xa9] sm:$0xff] }
 0x2a9   : > { %11752 = vmatmul.msk.f32.gmra.mxu3 %vm1154_vm4, %v14037_v39  ;;  %11814 = vmatmul.msk.f32.gmra.mxu1 %vm1154_vm4, %v2404_v59 }
 0x2aa   : > { %v2069_v15 = vpop.f32.mrf.mxu0  ;;  %11719 = vmatmul.msk.f32.gmra.mxu2 %vm1154_vm4, %v2403_v20  ;;  %v14043_v51 = vadd.f32 %v2340_v47, %v2112_v56  ;;  %v2953_v47 = vld [vmem:[#allocation3 + $0xb0] sm:$0xff] }
 0x2ac   : > { %v1830_v37 = vpop.f32.mrf.mxu3 }
 0x2ad   : > { %11783 = vmatmul.msk.f32.gmra.mxu0 %vm1154_vm4, %v2952_v35  ;;  %v1618_v34 = vpop.f32.mrf.mxu2 }
 0x2ae   : > { %v1828_v19 = vadd.f32 %v1827_v28, %v1618_v34  ;;  %v2343_v62 = vpop.f32.mrf.mxu1 }
 0x2b0   : > { %v2113_v38 = vadd.f32 %v2069_v15, %v1828_v19  ;;  %v2406_v19 = vld [vmem:[#allocation3 + $0xb1] sm:$0xff] }
 0x2b1   : > { %11753 = vmatmul.msk.f32.gmra.mxu3 %vm1154_vm4, %v14046_v21  ;;  %11815 = vmatmul.msk.f32.gmra.mxu1 %vm1154_vm4, %v2405_v55 }
 0x2b2   : > { %v2072_v63 = vpop.f32.mrf.mxu0  ;;  %11720 = vmatmul.msk.f32.gmra.mxu2 %vm1154_vm4, %v2404_v59  ;;  %v14052_v20 = vadd.f32 %v2343_v62, %v2113_v38  ;;  %v2954_v62 = vld [vmem:[#allocation3 + $0xc0] sm:$0xff] }
 0x2b4   : > { %v1833_v56 = vpop.f32.mrf.mxu3 }
 0x2b5   : > { %11784 = vmatmul.msk.f32.gmra.mxu0 %vm1154_vm4, %v2953_v47  ;;  %v1621_v28 = vpop.f32.mrf.mxu2 }
 0x2b6   : > { %v1831_v35 = vadd.f32 %v1830_v37, %v1621_v28  ;;  %v2346_v15 = vpop.f32.mrf.mxu1 }
 0x2b8   : > { %v2114_v34 = vadd.f32 %v2072_v63, %v1831_v35  ;;  %v2407_v35 = vld [vmem:[#allocation3 + $0xc1] sm:$0xff] }
 0x2b9   : > { %11754 = vmatmul.msk.f32.gmra.mxu3 %vm1154_vm4, %v14055_v25  ;;  %11816 = vmatmul.msk.f32.gmra.mxu1 %vm1154_vm4, %v2406_v19 }
 0x2ba   : > { %v2075_v48 = vpop.f32.mrf.mxu0  ;;  %11721 = vmatmul.msk.f32.gmra.mxu2 %vm1154_vm4, %v2405_v55  ;;  %v14061_v59 = vadd.f32 %v2346_v15, %v2114_v34  ;;  %v2955_v15 = vld [vmem:[#allocation3 + $0xc8] sm:$0xff] }
 0x2bc   : > { %v1836_v38 = vpop.f32.mrf.mxu3 }
 0x2bd   : > { %11785 = vmatmul.msk.f32.gmra.mxu0 %vm1154_vm4, %v2954_v62  ;;  %v1624_v37 = vpop.f32.mrf.mxu2 }
 0x2be   : > { %v1834_v47 = vadd.f32 %v1833_v56, %v1624_v37  ;;  %v2349_v63 = vpop.f32.mrf.mxu1 }
 0x2c0   : > { %v2115_v28 = vadd.f32 %v2075_v48, %v1834_v47  ;;  %v2408_v47 = vld [vmem:[#allocation3 + $0xc9] sm:$0xff] }
 0x2c1   : > { %11755 = vmatmul.msk.f32.gmra.mxu3 %vm1154_vm4, %v14064_v33  ;;  %11817 = vmatmul.msk.f32.gmra.mxu1 %vm1154_vm4, %v2407_v35 }
 0x2c2   : > { %v2078_v53 = vpop.f32.mrf.mxu0  ;;  %11722 = vmatmul.msk.f32.gmra.mxu2 %vm1154_vm4, %v2406_v19  ;;  %v14070_v55 = vadd.f32 %v2349_v63, %v2115_v28  ;;  %v2956_v63 = vld [vmem:[#allocation3 + $0xd8] sm:$0xff] }
 0x2c4   : > { %v1839_v34 = vpop.f32.mrf.mxu3 }
 0x2c5   : > { %11786 = vmatmul.msk.f32.gmra.mxu0 %vm1154_vm4, %v2955_v15  ;;  %v1627_v56 = vpop.f32.mrf.mxu2 }
 0x2c6   : > { %v1837_v62 = vadd.f32 %v1836_v38, %v1627_v56  ;;  %v2352_v48 = vpop.f32.mrf.mxu1 }
 0x2c8   : > { %v2116_v37 = vadd.f32 %v2078_v53, %v1837_v62  ;;  %v2409_v62 = vld [vmem:[#allocation3 + $0xd9] sm:$0xff] }
 0x2c9   : > { %11756 = vmatmul.msk.f32.gmra.mxu3 %vm1154_vm4, %v14073_v2  ;;  %11818 = vmatmul.msk.f32.gmra.mxu1 %vm1154_vm4, %v2408_v47 }
 0x2ca   : > { %v2081_v49 = vpop.f32.mrf.mxu0  ;;  %11723 = vmatmul.msk.f32.gmra.mxu2 %vm1154_vm4, %v2407_v35  ;;  %v14079_v19 = vadd.f32 %v2352_v48, %v2116_v37  ;;  %v2957_v48 = vld [vmem:[#allocation3 + $0xe0] sm:$0xff] }
 0x2cc   : > { %v1842_v28 = vpop.f32.mrf.mxu3 }
 0x2cd   : > { %11787 = vmatmul.msk.f32.gmra.mxu0 %vm1154_vm4, %v2956_v63  ;;  %v1630_v38 = vpop.f32.mrf.mxu2 }
 0x2ce   : > { %v1840_v15 = vadd.f32 %v1839_v34, %v1630_v38  ;;  %v2355_v53 = vpop.f32.mrf.mxu1 }
 0x2d0   : > { %v2117_v56 = vadd.f32 %v2081_v49, %v1840_v15  ;;  %v1750_v49 = vadd.f32 %v13696_v58, %v13716_v10 }
 0x2d1   : > { %11757 = vmatmul.msk.f32.gmra.mxu3 %vm1154_vm4, %v14082_v16  ;;  %11819 = vmatmul.msk.f32.gmra.mxu1 %vm1154_vm4, %v2409_v62 }
 0x2d2   : > { %v2084_v22 = vpop.f32.mrf.mxu0  ;;  %11724 = vmatmul.msk.f32.gmra.mxu2 %vm1154_vm4, %v2408_v47  ;;  %v14088_v35 = vadd.f32 %v2355_v53, %v2117_v56  ;;  %v2087_v15 = vadd.f32 %v13706_v1, %v1750_v49  ;;  %v2958_v56 = vld [vmem:[#allocation3 + $0xf0] sm:$0xff] }
 0x2d3   : > { %v14104_v49 = vld [vmem:[#allocation3 + $0xf2] sm:$0xff] }
 0x2d4   : > { %v2813_v37 = vpop.f32.mrf.mxu3  ;;  %v2361_v58 = vadd.f32 %v13721_v61, %v2087_v15  ;;  %v2959_v61 = vld [vmem:[#allocation3 + $0xf8] sm:$0xff] }
 0x2d5   : > { %11788 = vmatmul.msk.f32.gmra.mxu0 %vm1154_vm4, %v2957_v48  ;;  %v1633_v34 = vpop.f32.mrf.mxu2 }
 0x2d6   : > { %v1843_v63 = vadd.f32 %v1842_v28, %v1633_v34  ;;  %v2358_v38 = vpop.f32.mrf.mxu1  ;;  %v2411_v34 = vld [vmem:[#allocation3 + $0xf1] sm:$0xff] }
 0x2d8   : > { %v2118_v7 = vadd.f32 %v2084_v22, %v1843_v63 }
 0x2d9   : > { %11758 = vmatmul.msk.f32.gmra.mxu3 %vm1154_vm4, %v14094_v44  ;;  %11820 = vmatmul.msk.f32.gmra.mxu1 %vm1154_vm4, %v2410_v36 }
 0x2da   : > { %v3088_v47 = vpop.f32.mrf.mxu0  ;;  %11725 = vmatmul.msk.f32.gmra.mxu2 %vm1154_vm4, %v2409_v62  ;;  %v14100_v53 = vadd.f32 %v2358_v38, %v2118_v7 }
 0x2dc   : > { %v2816_v10 = vpop.f32.mrf.mxu3 }
 0x2dd   : > { %11789 = vmatmul.msk.f32.gmra.mxu0 %vm1154_vm4, %v2958_v56  ;;  %v2539_v22 = vpop.f32.mrf.mxu2 }
 0x2de   : > { %v2635_v1 = vadd.f32 %v2539_v22, %v2361_v58  ;;  %v3362_v28 = vpop.f32.mrf.mxu1  ;;  %v2412_v22 = vld [vmem:[#allocation3 + $0xf9] sm:$0xff] }
 0x2e0   : > { %v2909_v48 = vadd.f32 %v2813_v37, %v2635_v1  ;;  %v14114_v1 = vld [vmem:[#allocation3 + $0xfa] sm:$0xff] }
 0x2e1   : > { %11759 = vmatmul.msk.f32.gmra.mxu3 %vm1154_vm4, %v14104_v49  ;;  %11821 = vmatmul.msk.f32.gmra.mxu1 %vm1154_vm4, %v2411_v34 }
 0x2e2   : > { %v3091_v7 = vpop.f32.mrf.mxu0  ;;  %11726 = vmatmul.msk.f32.gmra.mxu2 %vm1154_vm4, %v2410_v36  ;;  %v3184_v62 = vadd.f32 %v3088_v47, %v2909_v48  ;;  %v2960_v48 = vld [vmem:[#allocation3 + $0x108] sm:$0xff] }
 0x2e4   : > { %v2819_v63 = vpop.f32.mrf.mxu3  ;;  %v14111_v38 = vadd.f32 %v3362_v28, %v3184_v62 }
 0x2e5   : > { %11790 = vmatmul.msk.f32.gmra.mxu0 %vm1154_vm4, %v2959_v61  ;;  %v2542_v15 = vpop.f32.mrf.mxu2 }
 0x2e6   : > { %v2636_v37 = vadd.f32 %v2542_v15, %v13742_v45  ;;  %v3365_v56 = vpop.f32.mrf.mxu1 }
 0x2e8   : > { %v2910_v58 = vadd.f32 %v2816_v10, %v2636_v37  ;;  %v2413_v37 = vld [vmem:[#allocation3 + $0x109] sm:$0xff] }
 0x2e9   : > { %11760 = vmatmul.msk.f32.gmra.mxu3 %vm1154_vm4, %v14114_v1  ;;  %11822 = vmatmul.msk.f32.gmra.mxu1 %vm1154_vm4, %v2412_v22 }
 0x2ea   : > { %v3094_v36 = vpop.f32.mrf.mxu0  ;;  %11727 = vmatmul.msk.f32.gmra.mxu2 %vm1154_vm4, %v2411_v34  ;;  %v3185_v47 = vadd.f32 %v3091_v7, %v2910_v58  ;;  %v2961_v58 = vld [vmem:[#allocation3 + $0x110] sm:$0xff] }
 0x2ec   : > { %v2822_v28 = vpop.f32.mrf.mxu3  ;;  %v14121_v62 = vadd.f32 %v3365_v56, %v3185_v47 }
 0x2ed   : > { %11791 = vmatmul.msk.f32.gmra.mxu0 %vm1154_vm4, %v2960_v48  ;;  %v2545_v45 = vpop.f32.mrf.mxu2 }
 0x2ee   : > { %v2637_v10 = vadd.f32 %v2545_v45, %v13755_v13  ;;  %v3368_v61 = vpop.f32.mrf.mxu1 }
 0x2f0   : > { %v2911_v15 = vadd.f32 %v2819_v63, %v2637_v10  ;;  %v2414_v10 = vld [vmem:[#allocation3 + $0x111] sm:$0xff] }
 0x2f1   : > { %11761 = vmatmul.msk.f32.gmra.mxu3 %vm1154_vm4, %v14124_v32  ;;  %11823 = vmatmul.msk.f32.gmra.mxu1 %vm1154_vm4, %v2413_v37 }
 0x2f2   : > { %v3097_v34 = vpop.f32.mrf.mxu0  ;;  %11728 = vmatmul.msk.f32.gmra.mxu2 %vm1154_vm4, %v2412_v22  ;;  %v3186_v7 = vadd.f32 %v3094_v36, %v2911_v15  ;;  %v2962_v15 = vld [vmem:[#allocation3 + $0x120] sm:$0xff] }
 0x2f4   : > { %v2825_v56 = vpop.f32.mrf.mxu3  ;;  %v14131_v47 = vadd.f32 %v3368_v61, %v3186_v7 }
 0x2f5   : > { %11792 = vmatmul.msk.f32.gmra.mxu0 %vm1154_vm4, %v2961_v58  ;;  %v2548_v13 = vpop.f32.mrf.mxu2 }
 0x2f6   : > { %v2638_v63 = vadd.f32 %v2548_v13, %v13768_v40  ;;  %v3371_v48 = vpop.f32.mrf.mxu1 }
 0x2f8   : > { %v2912_v45 = vadd.f32 %v2822_v28, %v2638_v63  ;;  %v2415_v63 = vld [vmem:[#allocation3 + $0x121] sm:$0xff] }
 0x2f9   : > { %11762 = vmatmul.msk.f32.gmra.mxu3 %vm1154_vm4, %v14134_v57  ;;  %11824 = vmatmul.msk.f32.gmra.mxu1 %vm1154_vm4, %v2414_v10 }
 0x2fa   : > { %v3100_v22 = vpop.f32.mrf.mxu0  ;;  %11729 = vmatmul.msk.f32.gmra.mxu2 %vm1154_vm4, %v2413_v37  ;;  %v3187_v36 = vadd.f32 %v3097_v34, %v2912_v45  ;;  %v2963_v45 = vld [vmem:[#allocation3 + $0x128] sm:$0xff] }
 0x2fc   : > { %v2828_v61 = vpop.f32.mrf.mxu3  ;;  %v14141_v7 = vadd.f32 %v3371_v48, %v3187_v36 }
 0x2fd   : > { %11793 = vmatmul.msk.f32.gmra.mxu0 %vm1154_vm4, %v2962_v15  ;;  %v2551_v40 = vpop.f32.mrf.mxu2 }
 0x2fe   : > { %v2639_v28 = vadd.f32 %v2551_v40, %v13781_v0  ;;  %v3374_v58 = vpop.f32.mrf.mxu1 }
 0x300   : > { %v2913_v13 = vadd.f32 %v2825_v56, %v2639_v28  ;;  %v2416_v28 = vld [vmem:[#allocation3 + $0x129] sm:$0xff] }
 0x301   : > { %11763 = vmatmul.msk.f32.gmra.mxu3 %vm1154_vm4, %v14144_v4  ;;  %11825 = vmatmul.msk.f32.gmra.mxu1 %vm1154_vm4, %v2415_v63 }
 0x302   : > { %v3103_v37 = vpop.f32.mrf.mxu0  ;;  %11730 = vmatmul.msk.f32.gmra.mxu2 %vm1154_vm4, %v2414_v10  ;;  %v3188_v34 = vadd.f32 %v3100_v22, %v2913_v13  ;;  %v2964_v13 = vld [vmem:[#allocation3 + $0x138] sm:$0xff] }
 0x304   : > { %v2831_v48 = vpop.f32.mrf.mxu3  ;;  %v14151_v36 = vadd.f32 %v3374_v58, %v3188_v34 }
 0x305   : > { %11794 = vmatmul.msk.f32.gmra.mxu0 %vm1154_vm4, %v2963_v45  ;;  %v2554_v0 = vpop.f32.mrf.mxu2 }
 0x306   : > { %v2640_v56 = vadd.f32 %v2554_v0, %v13794_v27  ;;  %v3377_v15 = vpop.f32.mrf.mxu1 }
 0x308   : > { %v2914_v40 = vadd.f32 %v2828_v61, %v2640_v56  ;;  %v2417_v56 = vld [vmem:[#allocation3 + $0x139] sm:$0xff] }
 0x309   : > { %11764 = vmatmul.msk.f32.gmra.mxu3 %vm1154_vm4, %v14154_v24  ;;  %11826 = vmatmul.msk.f32.gmra.mxu1 %vm1154_vm4, %v2416_v28 }
 0x30a   : > { %v3106_v10 = vpop.f32.mrf.mxu0  ;;  %11731 = vmatmul.msk.f32.gmra.mxu2 %vm1154_vm4, %v2415_v63  ;;  %v3189_v22 = vadd.f32 %v3103_v37, %v2914_v40  ;;  %v2965_v40 = vld [vmem:[#allocation3 + $0x140] sm:$0xff] }
 0x30c   : > { %v2834_v58 = vpop.f32.mrf.mxu3  ;;  %v14161_v34 = vadd.f32 %v3377_v15, %v3189_v22 }
 0x30d   : > { %11795 = vmatmul.msk.f32.gmra.mxu0 %vm1154_vm4, %v2964_v13  ;;  %v2557_v27 = vpop.f32.mrf.mxu2 }
 0x30e   : > { %18448 = vst [vmem:[#allocation40_spill] sm:$0xff] %v14161_v34  ;;  %v2641_v61 = vadd.f32 %v2557_v27, %v13807_v60  ;;  %v3380_v45 = vpop.f32.mrf.mxu1  ;;  %v14174_v34 = vld [vmem:[#allocation3 + $0x142] sm:$0xff] }
 0x310   : > { %v2915_v0 = vadd.f32 %v2831_v48, %v2641_v61  ;;  %v2418_v61 = vld [vmem:[#allocation3 + $0x141] sm:$0xff] }
 0x311   : > { %11765 = vmatmul.msk.f32.gmra.mxu3 %vm1154_vm4, %v14164_v18  ;;  %11827 = vmatmul.msk.f32.gmra.mxu1 %vm1154_vm4, %v2417_v56 }
 0x312   : > { %v3109_v63 = vpop.f32.mrf.mxu0  ;;  %11732 = vmatmul.msk.f32.gmra.mxu2 %vm1154_vm4, %v2416_v28  ;;  %v3190_v37 = vadd.f32 %v3106_v10, %v2915_v0  ;;  %v2966_v0 = vld [vmem:[#allocation3 + $0x150] sm:$0xff] }
 0x314   : > { %v2837_v15 = vpop.f32.mrf.mxu3  ;;  %v14171_v22 = vadd.f32 %v3380_v45, %v3190_v37 }
 0x315   : > { %11796 = vmatmul.msk.f32.gmra.mxu0 %vm1154_vm4, %v2965_v40  ;;  %v2560_v60 = vpop.f32.mrf.mxu2 }
 0x316   : > { %18449 = vst [vmem:[#allocation41_spill] sm:$0xff] %v14171_v22  ;;  %v2642_v48 = vadd.f32 %v2560_v60, %v13821_v41  ;;  %v3383_v13 = vpop.f32.mrf.mxu1  ;;  %v14184_v22 = vld [vmem:[#allocation3 + $0x152] sm:$0xff] }
 0x317   : > { %18451 = vst [vmem:[#allocation43_spill] sm:$0xff] %v14184_v22 }
 0x318   : > { %v2916_v27 = vadd.f32 %v2834_v58, %v2642_v48  ;;  %v2419_v48 = vld [vmem:[#allocation3 + $0x151] sm:$0xff] }
 0x319   : > { %11766 = vmatmul.msk.f32.gmra.mxu3 %vm1154_vm4, %v14174_v34  ;;  %11828 = vmatmul.msk.f32.gmra.mxu1 %vm1154_vm4, %v2418_v61 }
 0x31a   : > { %v3112_v28 = vpop.f32.mrf.mxu0  ;;  %11733 = vmatmul.msk.f32.gmra.mxu2 %vm1154_vm4, %v2417_v56  ;;  %v3191_v10 = vadd.f32 %v3109_v63, %v2916_v27  ;;  %v2967_v27 = vld [vmem:[#allocation3 + $0x158] sm:$0xff] }
 0x31c   : > { %v2840_v45 = vpop.f32.mrf.mxu3  ;;  %v14181_v37 = vadd.f32 %v3383_v13, %v3191_v10 }
 0x31d   : > { %11797 = vmatmul.msk.f32.gmra.mxu0 %vm1154_vm4, %v2966_v0  ;;  %v2563_v41 = vpop.f32.mrf.mxu2 }
 0x31e   : > { %18450 = vst [vmem:[#allocation42_spill] sm:$0xff] %v14181_v37  ;;  %v2643_v58 = vadd.f32 %v2563_v41, %v13835_v9  ;;  %v3386_v40 = vpop.f32.mrf.mxu1  ;;  %v2694_v37 = vld [vmem:[#allocation3 + $0x15a] sm:$0xff] }
 0x320   : > { %v2917_v60 = vadd.f32 %v2837_v15, %v2643_v58  ;;  %v2420_v58 = vld [vmem:[#allocation3 + $0x159] sm:$0xff] }
 0x321   : > { %11767 = vmatmul.msk.f32.gmra.mxu3 %vm1154_vm4, %v14184_v22  ;;  %11829 = vmatmul.msk.f32.gmra.mxu1 %vm1154_vm4, %v2419_v48 }
 0x322   : > { %v3115_v56 = vpop.f32.mrf.mxu0  ;;  %11734 = vmatmul.msk.f32.gmra.mxu2 %vm1154_vm4, %v2418_v61  ;;  %v3192_v63 = vadd.f32 %v3112_v28, %v2917_v60  ;;  %v2968_v28 = vld [vmem:[#allocation3 + $0x168] sm:$0xff] }
 0x324   : > { %v2843_v13 = vpop.f32.mrf.mxu3  ;;  %v14191_v10 = vadd.f32 %v3386_v40, %v3192_v63 }
 0x325   : > { %11798 = vmatmul.msk.f32.gmra.mxu0 %vm1154_vm4, %v2967_v27  ;;  %v2566_v9 = vpop.f32.mrf.mxu2 }
 0x326   : > { %v2644_v15 = vadd.f32 %v2566_v9, %v13848_v46  ;;  %v3389_v0 = vpop.f32.mrf.mxu1  ;;  %v2421_v9 = vld [vmem:[#allocation3 + $0x169] sm:$0xff] }
 0x328   : > { %v2918_v41 = vadd.f32 %v2840_v45, %v2644_v15  ;;  %v2695_v15 = vld [vmem:[#allocation3 + $0x16a] sm:$0xff] }
 0x329   : > { %11768 = vmatmul.msk.f32.gmra.mxu3 %vm1154_vm4, %v2694_v37  ;;  %11830 = vmatmul.msk.f32.gmra.mxu1 %vm1154_vm4, %v2420_v58 }
 0x32a   : > { %v3118_v22 = vpop.f32.mrf.mxu0  ;;  %11735 = vmatmul.msk.f32.gmra.mxu2 %vm1154_vm4, %v2419_v48  ;;  %v3193_v61 = vadd.f32 %v3115_v56, %v2918_v41  ;;  %v2969_v56 = vld [vmem:[#allocation3 + $0x170] sm:$0xff] }
 0x32c   : > { %v2846_v60 = vpop.f32.mrf.mxu3  ;;  %v14198_v40 = vadd.f32 %v3389_v0, %v3193_v61 }
 0x32d   : > { %11799 = vmatmul.msk.f32.gmra.mxu0 %vm1154_vm4, %v2968_v28  ;;  %v2569_v63 = vpop.f32.mrf.mxu2 }
 0x32e   : > { %v2645_v46 = vadd.f32 %v2569_v63, %v13862_v23  ;;  %v3392_v45 = vpop.f32.mrf.mxu1  ;;  %v2422_v63 = vld [vmem:[#allocation3 + $0x171] sm:$0xff] }
 0x330   : > { %v2919_v27 = vadd.f32 %v2843_v13, %v2645_v46 }
 0x331   : > { %11769 = vmatmul.msk.f32.gmra.mxu3 %vm1154_vm4, %v2695_v15  ;;  %11831 = vmatmul.msk.f32.gmra.mxu1 %vm1154_vm4, %v2421_v9 }
 0x332   : > { %v3121_v37 = vpop.f32.mrf.mxu0  ;;  %11736 = vmatmul.msk.f32.gmra.mxu2 %vm1154_vm4, %v2420_v58  ;;  %v3194_v48 = vadd.f32 %v3118_v22, %v2919_v27  ;;  %v4814_v58 = vld [vmem:[%s18224_s6 + $0xc] sm:$0xf] }
 0x333   : > { %11968 = vmatpush.msk.msrb.mxu2 %vm757_vm0, %v4814_v58 }
 0x334   : > { %v2849_v41 = vpop.f32.mrf.mxu3  ;;  %v14205_v0 = vadd.f32 %v3392_v45, %v3194_v48  ;;  %v18452_v45 = vmov 0.0  }
 0x335   : > { %11800 = vmatmul.msk.f32.gmra.mxu0 %vm1154_vm4, %v2969_v56  ;;  %v2572_v61 = vpop.f32.mrf.mxu2  ;;  %3835 = vst.msk [vmem:[#allocation4 + $0x10] sm:$0xf] %vm3834_vm7, %v18452_v45 }
 0x336   : > { %v2646_v23 = vadd.f32 %v2572_v61, %v13886_v30  ;;  %v3395_v13 = vpop.f32.mrf.mxu1  ;;  %v4047_v30 = vld [vmem:[%s18224_s6] sm:$0xf]  ;;  %3838 = vst.msk [vmem:[#allocation4 + $0x28] sm:$0xf] %vm3834_vm7, %v18452_v45  ;;  %v2423_v61 = vld [vmem:[#allocation3 + $0x181] sm:$0xff] }
 0x337   : > { %11902 = vmatpush.msk.msrb.mxu0 %vm757_vm0, %v4047_v30  ;;  %3842 = vst.msk [vmem:[#allocation4 + $0x1c0] sm:$0xf] %vm3834_vm7, %v18452_v45 }
 0x338   : > { %v2920_v28 = vadd.f32 %v2846_v60, %v2646_v23  ;;  %v2970_v60 = vld [vmem:[#allocation3 + $0x180] sm:$0xff]  ;;  %3845 = vst.msk [vmem:[#allocation4 + $0x1d8] sm:$0xf] %vm3834_vm7, %v18452_v45 }
 0x339   : > { %11770 = vmatmul.msk.f32.gmra.mxu3 %vm1154_vm4, %v13938_v17  ;;  %11832 = vmatmul.msk.f32.gmra.mxu1 %vm1154_vm4, %v2422_v63  ;;  %v5091_v17 = vld [vmem:[%s18224_s6 + $0x10] sm:$0xf]  ;;  %3866 = vst.msk [vmem:[#allocation4 + $0x12] sm:$0x3] %vm339_vm3, %v18452_v45 }
 0x33a   : > { %v3124_v46 = vpop.f32.mrf.mxu0  ;;  %11737 = vmatmul.msk.f32.gmra.mxu2 %vm1154_vm4, %v2421_v9  ;;  %v3195_v22 = vadd.f32 %v3121_v37, %v2920_v28  ;;  %12001 = vmatpush.msk.msrb.mxu3 %vm757_vm0, %v5091_v17  ;;  %v2697_v23 = vld [vmem:[#allocation3 + $0x182] sm:$0xff]  ;;  %3867 = vst.msk [vmem:[#allocation4 + $0x2a] sm:$0x3] %vm339_vm3, %v18452_v45 }
 0x33b   : > { %3884 = vst.msk [vmem:[#allocation4 + $0x1c2] sm:$0x3] %vm339_vm3, %v18452_v45  ;;  %v2971_v28 = vld [vmem:[#allocation3 + $0x188] sm:$0xff] }
 0x33c   : > { %v2852_v27 = vpop.f32.mrf.mxu3  ;;  %v14229_v9 = vadd.f32 %v3395_v13, %v3195_v22  ;;  %v4537_v13 = vld [vmem:[%s18224_s6 + $0x8] sm:$0xf]  ;;  %3885 = vst.msk [vmem:[#allocation4 + $0x1da] sm:$0x3] %vm339_vm3, %v18452_v45 }
 0x33d   : > { %11801 = vmatmul.msk.f32.gmra.mxu0 %vm1154_vm4, %v2970_v60  ;;  %v2575_v15 = vpop.f32.mrf.mxu2  ;;  %11935 = vmatpush.msk.msrb.mxu1 %vm757_vm0, %v4537_v13 }
 0x33e   : > { %v2647_v37 = vadd.f32 %v2575_v15, %v13905_v29  ;;  %v3398_v48 = vpop.f32.mrf.mxu1 }
 0x340   : > { %v2921_v56 = vadd.f32 %v2849_v41, %v2647_v37  ;;  %v2424_v37 = vld [vmem:[#allocation3 + $0x189] sm:$0xff] }
 0x341   : > { %11771 = vmatmul.msk.f32.gmra.mxu3 %vm1154_vm4, %v2697_v23  ;;  %11833 = vmatmul.msk.f32.gmra.mxu1 %vm1154_vm4, %v2423_v61  ;;  %v2698_v23 = vld [vmem:[#allocation3 + $0x18a] sm:$0xff] }
 0x342   : > { %v3127_v29 = vpop.f32.mrf.mxu0  ;;  %11738 = vmatmul.msk.f32.gmra.mxu2 %vm1154_vm4, %v2422_v63  ;;  %v3196_v41 = vadd.f32 %v3124_v46, %v2921_v56  ;;  %v2972_v46 = vld [vmem:[#allocation3 + $0x198] sm:$0xff] }
 0x344   : > { %v2855_v22 = vpop.f32.mrf.mxu3  ;;  %v14252_v58 = vadd.f32 %v3398_v48, %v3196_v41  ;;  %v3246_v41 = vld [vmem:[#allocation3 + $0x199] sm:$0xff] }
 0x345   : > { %11802 = vmatmul.msk.f32.gmra.mxu0 %vm1154_vm4, %v2971_v28  ;;  %v2578_v30 = vpop.f32.mrf.mxu2  ;;  %v4048_v28 = vld [vmem:[#allocation4 + $0x1] sm:$0xff] }
 0x346   : > { %v2648_v60 = vadd.f32 %v2578_v30, %v13920_v42  ;;  %v3401_v17 = vpop.f32.mrf.mxu1 }
 0x348   : > { %v2922_v15 = vadd.f32 %v2852_v27, %v2648_v60 }
 0x349   : > { %11772 = vmatmul.msk.f32.gmra.mxu3 %vm1154_vm4, %v2698_v23  ;;  %11834 = vmatmul.msk.f32.gmra.mxu1 %vm1154_vm4, %v2424_v37  ;;  %v2973_v23 = vld [vmem:[#allocation3 + $0x1a0] sm:$0xff] }
 0x34a   : > { %v3130_v63 = vpop.f32.mrf.mxu0  ;;  %11739 = vmatmul.msk.f32.gmra.mxu2 %vm1154_vm4, %v2423_v61  ;;  %v3197_v45 = vadd.f32 %v3127_v29, %v2922_v15 }
 0x34c   : > { %v2858_v56 = vpop.f32.mrf.mxu3  ;;  %v14259_v48 = vadd.f32 %v3401_v17, %v3197_v45  ;;  %v3247_v45 = vld [vmem:[#allocation3 + $0x1a1] sm:$0xff] }
 0x34d   : > { %11803 = vmatmul.msk.f32.gmra.mxu0 %vm1154_vm4, %v2972_v46  ;;  %v2581_v13 = vpop.f32.mrf.mxu2 }
 0x34e   : > { %v2649_v42 = vadd.f32 %v2581_v13, %v13936_v31  ;;  %v3404_v27 = vpop.f32.mrf.mxu1 }
 0x350   : > { %v2923_v30 = vadd.f32 %v2855_v22, %v2649_v42  ;;  %v4049_v22 = vld [vmem:[#allocation4 + $0x9] sm:$0xff] }
 0x351   : > { %11835 = vmatmul.msk.f32.gmra.mxu1 %vm1154_vm4, %v3246_v41  ;;  %11870 = vmatmul.msk.f32.vlgmr.msra.gmra.mxu3 %vm336_vm1, %v4048_v28  ;;  %v3490_v42 = vld [vmem:[#allocation3 + $0x32] sm:$0xff] }
 0x352   : > { %v3133_v60 = vpop.f32.mrf.mxu0  ;;  %11740 = vmatmul.msk.f32.gmra.mxu2 %vm1154_vm4, %v2424_v37  ;;  %v3198_v61 = vadd.f32 %v3130_v63, %v2923_v30  ;;  %v4015_v37 = vld [vmem:[#allocation4] sm:$0xff] }
 0x354   : > { %v2861_v29 = vpop.f32.mrf.mxu3  ;;  %v14266_v17 = vadd.f32 %v3404_v27, %v3198_v61  ;;  %v4505_v61 = vld [vmem:[#allocation4 + $0x2] sm:$0xff] }
 0x355   : > { %11804 = vmatmul.msk.f32.gmra.mxu0 %vm1154_vm4, %v2973_v23  ;;  %v2584_v15 = vpop.f32.mrf.mxu2 }
 0x356   : > { %v2650_v31 = vadd.f32 %v2584_v15, %v13954_v54  ;;  %v3407_v46 = vpop.f32.mrf.mxu1 }
 0x358   : > { %v2924_v13 = vadd.f32 %v2858_v56, %v2650_v31  ;;  %v4050_v56 = vld [vmem:[#allocation4 + $0x19] sm:$0xff]  ;;  %v3491_v31 = vld [vmem:[#allocation3 + $0x3a] sm:$0xff] }
 0x359   : > { %11836 = vmatmul.msk.f32.gmra.mxu1 %vm1154_vm4, %v3247_v45  ;;  %11871 = vmatmul.msk.f32.gmra.mxu3 %vm336_vm1, %v4049_v22  ;;  %v4016_v22 = vld [vmem:[#allocation4 + $0x8] sm:$0xff] }
 0x35a   : > { %v3136_v41 = vpop.f32.mrf.mxu0  ;;  %11837 = vmatmul.msk.f32.vlgmr.msra.gmra.mxu2 %vm1154_vm4, %v3490_v42  ;;  %v3199_v63 = vadd.f32 %v3133_v60, %v2924_v13 }
 0x35c   : > { %v2864_v28 = vpop.f32.mrf.mxu3  ;;  %v14273_v27 = vadd.f32 %v3407_v46, %v3199_v63  ;;  %v4506_v63 = vld [vmem:[#allocation4 + $0xa] sm:$0xff] }
 0x35d   : > { %11903 = vmatmul.msk.f32.vlgmr.msrb.gmra.mxu0 %vm336_vm1, %v4015_v37  ;;  %v2587_v54 = vpop.f32.mrf.mxu2 }
 0x35e   : > { %v2651_v30 = vadd.f32 %v2587_v54, %v13967_v6  ;;  %v3410_v23 = vpop.f32.mrf.mxu1 }
 0x360   : > { %v2925_v15 = vadd.f32 %v2861_v29, %v2651_v30  ;;  %v4051_v29 = vld [vmem:[#allocation4 + $0x21] sm:$0xff] }
 0x361   : > { %11872 = vmatmul.msk.f32.gmra.mxu3 %vm336_vm1, %v4050_v56  ;;  %11936 = vmatmul.msk.f32.vlgmr.msrb.gmra.mxu1 %vm336_vm1, %v4505_v61  ;;  %v3492_v30 = vld [vmem:[#allocation3 + $0x4a] sm:$0xff] }
 0x362   : > { %v3139_v45 = vpop.f32.mrf.mxu0  ;;  %11838 = vmatmul.msk.f32.gmra.mxu2 %vm1154_vm4, %v3491_v31  ;;  %v3200_v60 = vadd.f32 %v3136_v41, %v2925_v15  ;;  %v4017_v61 = vld [vmem:[#allocation4 + $0x18] sm:$0xff] }
 0x364   : > { %v2867_v13 = vpop.f32.mrf.mxu3  ;;  %v14280_v46 = vadd.f32 %v3410_v23, %v3200_v60 }
 0x365   : > { %11904 = vmatmul.msk.f32.gmra.mxu0 %vm336_vm1, %v4016_v22  ;;  %v2590_v6 = vpop.f32.mrf.mxu2 }
 0x366   : > { %v2652_v42 = vadd.f32 %v2590_v6, %v13978_v3  ;;  %v3413_v37 = vpop.f32.mrf.mxu1  ;;  %v4052_v6 = vld [vmem:[#allocation4 + $0x31] sm:$0xff] }
 0x368   : > { %v2926_v54 = vadd.f32 %v2864_v28, %v2652_v42  ;;  %v4507_v28 = vld [vmem:[#allocation4 + $0x1a] sm:$0xff]  ;;  %v3493_v42 = vld [vmem:[#allocation3 + $0x52] sm:$0xff] }
 0x369   : > { %11873 = vmatmul.msk.f32.gmra.mxu3 %vm336_vm1, %v4051_v29  ;;  %11937 = vmatmul.msk.f32.gmra.mxu1 %vm336_vm1, %v4506_v63  ;;  %v4018_v63 = vld [vmem:[#allocation4 + $0x20] sm:$0xff] }
 0x36a   : > { %v3142_v56 = vpop.f32.mrf.mxu0  ;;  %11839 = vmatmul.msk.f32.gmra.mxu2 %vm1154_vm4, %v3492_v30  ;;  %v3201_v41 = vadd.f32 %v3139_v45, %v2926_v54 }
 0x36c   : > { %v2870_v15 = vpop.f32.mrf.mxu3  ;;  %v14287_v23 = vadd.f32 %v3413_v37, %v3201_v41 }
 0x36d   : > { %11905 = vmatmul.msk.f32.gmra.mxu0 %vm336_vm1, %v4017_v61  ;;  %v2593_v3 = vpop.f32.mrf.mxu2  ;;  %v4508_v61 = vld [vmem:[#allocation4 + $0x22] sm:$0xff] }
 0x36e   : > { %v2653_v31 = vadd.f32 %v2593_v3, %v13986_v50  ;;  %v3416_v22 = vpop.f32.mrf.mxu1  ;;  %v4053_v3 = vld [vmem:[#allocation4 + $0x39] sm:$0xff] }
 0x370   : > { %v2927_v60 = vadd.f32 %v2867_v13, %v2653_v31  ;;  %v3494_v31 = vld [vmem:[#allocation3 + $0x62] sm:$0xff] }
 0x371   : > { %11874 = vmatmul.msk.f32.gmra.mxu3 %vm336_vm1, %v4052_v6  ;;  %11938 = vmatmul.msk.f32.gmra.mxu1 %vm336_vm1, %v4507_v28 }
 0x372   : > { %v3145_v29 = vpop.f32.mrf.mxu0  ;;  %11840 = vmatmul.msk.f32.gmra.mxu2 %vm1154_vm4, %v3493_v42  ;;  %v3202_v45 = vadd.f32 %v3142_v56, %v2927_v60  ;;  %v4019_v60 = vld [vmem:[#allocation4 + $0x30] sm:$0xff] }
 0x374   : > { %v2873_v54 = vpop.f32.mrf.mxu3  ;;  %v14294_v37 = vadd.f32 %v3416_v22, %v3202_v45  ;;  %v4054_v45 = vld [vmem:[#allocation4 + $0x49] sm:$0xff] }
 0x375   : > { %11906 = vmatmul.msk.f32.gmra.mxu0 %vm336_vm1, %v4018_v63  ;;  %v2596_v50 = vpop.f32.mrf.mxu2 }
 0x376   : > { %v2654_v30 = vadd.f32 %v2596_v50, %v13994_v26  ;;  %v3419_v13 = vpop.f32.mrf.mxu1  ;;  %v4509_v50 = vld [vmem:[#allocation4 + $0x32] sm:$0xff] }
 0x378   : > { %v2928_v41 = vadd.f32 %v2870_v15, %v2654_v30  ;;  %v3495_v30 = vld [vmem:[#allocation3 + $0x6a] sm:$0xff] }
 0x379   : > { %11875 = vmatmul.msk.f32.gmra.mxu3 %vm336_vm1, %v4053_v3  ;;  %11939 = vmatmul.msk.f32.gmra.mxu1 %vm336_vm1, %v4508_v61 }
 0x37a   : > { %v3148_v28 = vpop.f32.mrf.mxu0  ;;  %11841 = vmatmul.msk.f32.gmra.mxu2 %vm1154_vm4, %v3494_v31  ;;  %v3203_v56 = vadd.f32 %v3145_v29, %v2928_v41  ;;  %v4020_v41 = vld [vmem:[#allocation4 + $0x38] sm:$0xff] }
 0x37c   : > { %v2876_v6 = vpop.f32.mrf.mxu3  ;;  %v14301_v22 = vadd.f32 %v3419_v13, %v3203_v56 }
 0x37d   : > { %11907 = vmatmul.msk.f32.gmra.mxu0 %vm336_vm1, %v4019_v60  ;;  %v2599_v26 = vpop.f32.mrf.mxu2  ;;  %v4055_v60 = vld [vmem:[#allocation4 + $0x51] sm:$0xff] }
 0x37e   : > { %v2655_v42 = vadd.f32 %v2599_v26, %v14002_v52  ;;  %v3422_v15 = vpop.f32.mrf.mxu1  ;;  %v4510_v26 = vld [vmem:[#allocation4 + $0x3a] sm:$0xff] }
 0x380   : > { %v2929_v63 = vadd.f32 %v2873_v54, %v2655_v42  ;;  %v3496_v42 = vld [vmem:[#allocation3 + $0x7a] sm:$0xff] }
 0x381   : > { %11876 = vmatmul.msk.f32.gmra.mxu3 %vm336_vm1, %v4054_v45  ;;  %11940 = vmatmul.msk.f32.gmra.mxu1 %vm336_vm1, %v4509_v50 }
 0x382   : > { %v3151_v61 = vpop.f32.mrf.mxu0  ;;  %11842 = vmatmul.msk.f32.gmra.mxu2 %vm1154_vm4, %v3495_v30  ;;  %v3204_v29 = vadd.f32 %v3148_v28, %v2929_v63  ;;  %v4021_v63 = vld [vmem:[#allocation4 + $0x48] sm:$0xff] }
 0x384   : > { %v2879_v3 = vpop.f32.mrf.mxu3  ;;  %v14308_v13 = vadd.f32 %v3422_v15, %v3204_v29 }
 0x385   : > { %11908 = vmatmul.msk.f32.gmra.mxu0 %vm336_vm1, %v4020_v41  ;;  %v2602_v52 = vpop.f32.mrf.mxu2  ;;  %v4056_v41 = vld [vmem:[#allocation4 + $0x61] sm:$0xff] }
 0x386   : > { %v2656_v54 = vadd.f32 %v2602_v52, %v14010_v12  ;;  %v3425_v31 = vpop.f32.mrf.mxu1  ;;  %v4511_v52 = vld [vmem:[#allocation4 + $0x4a] sm:$0xff] }
 0x388   : > { %v2930_v56 = vadd.f32 %v2876_v6, %v2656_v54 }
 0x389   : > { %11877 = vmatmul.msk.f32.gmra.mxu3 %vm336_vm1, %v4055_v60  ;;  %11941 = vmatmul.msk.f32.gmra.mxu1 %vm336_vm1, %v4510_v26 }
 0x38a   : > { %v3154_v45 = vpop.f32.mrf.mxu0  ;;  %11843 = vmatmul.msk.f32.gmra.mxu2 %vm1154_vm4, %v3496_v42  ;;  %v3205_v28 = vadd.f32 %v3151_v61, %v2930_v56  ;;  %v4022_v56 = vld [vmem:[#allocation4 + $0x50] sm:$0xff] }
 0x38c   : > { %v2882_v50 = vpop.f32.mrf.mxu3  ;;  %v14315_v15 = vadd.f32 %v3425_v31, %v3205_v28  ;;  %v4057_v28 = vld [vmem:[#allocation4 + $0x69] sm:$0xff] }
 0x38d   : > { %11909 = vmatmul.msk.f32.gmra.mxu0 %vm336_vm1, %v4021_v63  ;;  %v2605_v12 = vpop.f32.mrf.mxu2  ;;  %v4512_v63 = vld [vmem:[#allocation4 + $0x52] sm:$0xff] }
 0x38e   : > { %v2657_v6 = vadd.f32 %v2605_v12, %v14016_v43  ;;  %v3428_v30 = vpop.f32.mrf.mxu1 }
 0x390   : > { %v2931_v29 = vadd.f32 %v2879_v3, %v2657_v6 }
 0x391   : > { %11878 = vmatmul.msk.f32.gmra.mxu3 %vm336_vm1, %v4056_v41  ;;  %11942 = vmatmul.msk.f32.gmra.mxu1 %vm336_vm1, %v4511_v52  ;;  %v4058_v52 = vld [vmem:[#allocation4 + $0x79] sm:$0xff] }
 0x392   : > { %v3157_v54 = vpop.f32.mrf.mxu0  ;;  %11844 = vmatmul.msk.f32.gmra.mxu2 %vm1154_vm4, %v14019_v11  ;;  %v3206_v61 = vadd.f32 %v3154_v45, %v2931_v29  ;;  %v4023_v45 = vld [vmem:[#allocation4 + $0x60] sm:$0xff] }
 0x394   : > { %v2885_v60 = vpop.f32.mrf.mxu3  ;;  %v14323_v31 = vadd.f32 %v3428_v30, %v3206_v61  ;;  %v4513_v61 = vld [vmem:[#allocation4 + $0x62] sm:$0xff] }
 0x395   : > { %11910 = vmatmul.msk.f32.gmra.mxu0 %vm336_vm1, %v4022_v56  ;;  %v2608_v43 = vpop.f32.mrf.mxu2 }
 0x396   : > { %v2658_v3 = vadd.f32 %v2608_v43, %v14025_v5  ;;  %v3431_v26 = vpop.f32.mrf.mxu1 }
 0x398   : > { %v2932_v42 = vadd.f32 %v2882_v50, %v2658_v3 }
 0x399   : > { %11879 = vmatmul.msk.f32.gmra.mxu3 %vm336_vm1, %v4057_v28  ;;  %11943 = vmatmul.msk.f32.gmra.mxu1 %vm336_vm1, %v4512_v63  ;;  %v4059_v28 = vld [vmem:[#allocation4 + $0x81] sm:$0xff]  ;;  %v4514_v63 = vld [vmem:[#allocation4 + $0x6a] sm:$0xff] }
 0x39a   : > { %v3160_v12 = vpop.f32.mrf.mxu0  ;;  %11845 = vmatmul.msk.f32.gmra.mxu2 %vm1154_vm4, %v14028_v8  ;;  %v3207_v11 = vadd.f32 %v3157_v54, %v2932_v42  ;;  %v4024_v54 = vld [vmem:[#allocation4 + $0x68] sm:$0xff] }
 0x39c   : > { %v2888_v6 = vpop.f32.mrf.mxu3  ;;  %v14331_v30 = vadd.f32 %v3431_v26, %v3207_v11 }
 0x39d   : > { %11911 = vmatmul.msk.f32.gmra.mxu0 %vm336_vm1, %v4023_v45  ;;  %v2611_v5 = vpop.f32.mrf.mxu2 }
 0x39e   : > { %v2659_v50 = vadd.f32 %v2611_v5, %v14034_v14  ;;  %v3434_v29 = vpop.f32.mrf.mxu1 }
 0x3a0   : > { %v2933_v41 = vadd.f32 %v2885_v60, %v2659_v50 }
 0x3a1   : > { %11880 = vmatmul.msk.f32.gmra.mxu3 %vm336_vm1, %v4058_v52  ;;  %11944 = vmatmul.msk.f32.gmra.mxu1 %vm336_vm1, %v4513_v61  ;;  %v4515_v52 = vld [vmem:[#allocation4 + $0x7a] sm:$0xff] }
 0x3a2   : > { %v3163_v56 = vpop.f32.mrf.mxu0  ;;  %11846 = vmatmul.msk.f32.gmra.mxu2 %vm1154_vm4, %v14037_v39  ;;  %v3208_v8 = vadd.f32 %v3160_v12, %v2933_v41  ;;  %v4025_v12 = vld [vmem:[#allocation4 + $0x78] sm:$0xff] }
 0x3a3   : > { %v4060_v41 = vld [vmem:[#allocation4 + $0x91] sm:$0xff] }
 0x3a4   : > { %v2891_v43 = vpop.f32.mrf.mxu3  ;;  %v14339_v3 = vadd.f32 %v3434_v29, %v3208_v8 }
 0x3a5   : > { %11912 = vmatmul.msk.f32.gmra.mxu0 %vm336_vm1, %v4024_v54  ;;  %v2614_v14 = vpop.f32.mrf.mxu2 }
 0x3a6   : > { %v2660_v60 = vadd.f32 %v2614_v14, %v14043_v51  ;;  %v3437_v26 = vpop.f32.mrf.mxu1 }
 0x3a8   : > { %v2934_v42 = vadd.f32 %v2888_v6, %v2660_v60 }
 0x3a9   : > { %11881 = vmatmul.msk.f32.gmra.mxu3 %vm336_vm1, %v4059_v28  ;;  %11945 = vmatmul.msk.f32.gmra.mxu1 %vm336_vm1, %v4514_v63  ;;  %v4027_v63 = vld [vmem:[#allocation4 + $0x90] sm:$0xff] }
 0x3aa   : > { %v3166_v11 = vpop.f32.mrf.mxu0  ;;  %11847 = vmatmul.msk.f32.gmra.mxu2 %vm1154_vm4, %v14046_v21  ;;  %v3209_v39 = vadd.f32 %v3163_v56, %v2934_v42  ;;  %v4026_v56 = vld [vmem:[#allocation4 + $0x80] sm:$0xff] }
 0x3ab   : > { %v4516_v42 = vld [vmem:[#allocation4 + $0x82] sm:$0xff] }
 0x3ac   : > { %v2894_v45 = vpop.f32.mrf.mxu3  ;;  %v14347_v5 = vadd.f32 %v3437_v26, %v3209_v39  ;;  %v4061_v26 = vld [vmem:[#allocation4 + $0x99] sm:$0xff] }
 0x3ad   : > { %11913 = vmatmul.msk.f32.gmra.mxu0 %vm336_vm1, %v4025_v12  ;;  %v2617_v51 = vpop.f32.mrf.mxu2 }
 0x3ae   : > { %v2661_v6 = vadd.f32 %v2617_v51, %v14052_v20  ;;  %v3440_v50 = vpop.f32.mrf.mxu1 }
 0x3b0   : > { %v2935_v29 = vadd.f32 %v2891_v43, %v2661_v6  ;;  %v4062_v6 = vld [vmem:[#allocation4 + $0xa9] sm:$0xff] }
 0x3b1   : > { %11882 = vmatmul.msk.f32.gmra.mxu3 %vm336_vm1, %v4060_v41  ;;  %11946 = vmatmul.msk.f32.gmra.mxu1 %vm336_vm1, %v4515_v52  ;;  %v4028_v41 = vld [vmem:[#allocation4 + $0x98] sm:$0xff] }
 0x3b2   : > { %v3169_v61 = vpop.f32.mrf.mxu0  ;;  %11848 = vmatmul.msk.f32.gmra.mxu2 %vm1154_vm4, %v14055_v25  ;;  %v3210_v21 = vadd.f32 %v3166_v11, %v2935_v29 }
 0x3b4   : > { %v2897_v8 = vpop.f32.mrf.mxu3  ;;  %v14355_v54 = vadd.f32 %v3440_v50, %v3210_v21  ;;  %v4517_v50 = vld [vmem:[#allocation4 + $0x92] sm:$0xff] }
 0x3b5   : > { %11914 = vmatmul.msk.f32.gmra.mxu0 %vm336_vm1, %v4026_v56  ;;  %v2620_v20 = vpop.f32.mrf.mxu2 }
 0x3b6   : > { %v2662_v43 = vadd.f32 %v2620_v20, %v14061_v59  ;;  %v3443_v14 = vpop.f32.mrf.mxu1  ;;  %v4063_v20 = vld [vmem:[#allocation4 + $0xb1] sm:$0xff] }
 0x3b8   : > { %v2936_v60 = vadd.f32 %v2894_v45, %v2662_v43  ;;  %v4518_v43 = vld [vmem:[#allocation4 + $0x9a] sm:$0xff] }
 0x3b9   : > { %11883 = vmatmul.msk.f32.gmra.mxu3 %vm336_vm1, %v4061_v26  ;;  %11947 = vmatmul.msk.f32.gmra.mxu1 %vm336_vm1, %v4516_v42 }
 0x3ba   : > { %v3172_v28 = vpop.f32.mrf.mxu0  ;;  %11849 = vmatmul.msk.f32.gmra.mxu2 %vm1154_vm4, %v14064_v33  ;;  %v3211_v25 = vadd.f32 %v3169_v61, %v2936_v60  ;;  %v4029_v60 = vld [vmem:[#allocation4 + $0xa8] sm:$0xff] }
 0x3bc   : > { %v2900_v11 = vpop.f32.mrf.mxu3  ;;  %v14363_v39 = vadd.f32 %v3443_v14, %v3211_v25 }
 0x3bd   : > { %11915 = vmatmul.msk.f32.gmra.mxu0 %vm336_vm1, %v4027_v63  ;;  %v2623_v59 = vpop.f32.mrf.mxu2 }
 0x3be   : > { %v2663_v12 = vadd.f32 %v2623_v59, %v14070_v55  ;;  %v3446_v45 = vpop.f32.mrf.mxu1  ;;  %v4519_v59 = vld [vmem:[#allocation4 + $0xaa] sm:$0xff] }
 0x3c0   : > { %v2937_v51 = vadd.f32 %v2897_v8, %v2663_v12 }
 0x3c1   : > { %11884 = vmatmul.msk.f32.gmra.mxu3 %vm336_vm1, %v4062_v6  ;;  %11948 = vmatmul.msk.f32.gmra.mxu1 %vm336_vm1, %v4517_v50 }
 0x3c2   : > { %v3175_v29 = vpop.f32.mrf.mxu0  ;;  %11850 = vmatmul.msk.f32.gmra.mxu2 %vm1154_vm4, %v14073_v2  ;;  %v3212_v33 = vadd.f32 %v3172_v28, %v2937_v51 }
 0x3c4   : > { %v2903_v52 = vpop.f32.mrf.mxu3  ;;  %v14371_v61 = vadd.f32 %v3446_v45, %v3212_v33  ;;  %v4030_v45 = vld [vmem:[#allocation4 + $0xb0] sm:$0xff] }
 0x3c5   : > { %11916 = vmatmul.msk.f32.gmra.mxu0 %vm336_vm1, %v4028_v41  ;;  %v2626_v55 = vpop.f32.mrf.mxu2  ;;  %v4065_v41 = vld [vmem:[#allocation4 + $0xc9] sm:$0xff] }
 0x3c6   : > { %v2664_v21 = vadd.f32 %v2626_v55, %v14079_v19  ;;  %v3449_v56 = vpop.f32.mrf.mxu1 }
 0x3c8   : > { %v2938_v8 = vadd.f32 %v2900_v11, %v2664_v21  ;;  %v4064_v11 = vld [vmem:[#allocation4 + $0xc1] sm:$0xff] }
 0x3c9   : > { %11885 = vmatmul.msk.f32.gmra.mxu3 %vm336_vm1, %v4063_v20  ;;  %11949 = vmatmul.msk.f32.gmra.mxu1 %vm336_vm1, %v4518_v43  ;;  %v4031_v21 = vld [vmem:[#allocation4 + $0xc0] sm:$0xff] }
 0x3ca   : > { %v3178_v14 = vpop.f32.mrf.mxu0  ;;  %11851 = vmatmul.msk.f32.gmra.mxu2 %vm1154_vm4, %v14082_v16  ;;  %v3213_v2 = vadd.f32 %v3175_v29, %v2938_v8 }
 0x3cc   : > { %v2906_v26 = vpop.f32.mrf.mxu3  ;;  %v14379_v42 = vadd.f32 %v3449_v56, %v3213_v2  ;;  %v14401_v56 = vld [vmem:[%s18223_s5] ss:$0 sm:$0xff] }
 0x3cd   : > { %11917 = vmatmul.msk.f32.gmra.mxu0 %vm336_vm1, %v4029_v60  ;;  %v2629_v19 = vpop.f32.mrf.mxu2  ;;  %v4066_v2 = vld [vmem:[#allocation4 + $0xd9] sm:$0xff]  ;;  %v4521_v60 = vld [vmem:[#allocation4 + $0xc2] sm:$0xff] }
 0x3ce   : > { %v2665_v28 = vadd.f32 %v2629_v19, %v14088_v35  ;;  %v3452_v25 = vpop.f32.mrf.mxu1 }
 0x3d0   : > { %v2939_v63 = vadd.f32 %v2903_v52, %v2665_v28  ;;  %v4520_v52 = vld [vmem:[#allocation4 + $0xb2] sm:$0xff]  ;;  %v4032_v28 = vld [vmem:[#allocation4 + $0xc8] sm:$0xff] }
 0x3d1   : > { %11886 = vmatmul.msk.f32.gmra.mxu3 %vm336_vm1, %v4064_v11  ;;  %11950 = vmatmul.msk.f32.gmra.mxu1 %vm336_vm1, %v4519_v59 }
 0x3d2   : > { %v3181_v12 = vpop.f32.mrf.mxu0  ;;  %11852 = vmatmul.msk.f32.gmra.mxu2 %vm1154_vm4, %v14094_v44  ;;  %v3214_v16 = vadd.f32 %v3178_v14, %v2939_v63 }
 0x3d4   : > { %v14386_v51 = vpop.f32.mrf.mxu3  ;;  %v14389_v6 = vadd.f32 %v3452_v25, %v3214_v16  ;;  %v4522_v16 = vld [vmem:[#allocation4 + $0xca] sm:$0xff] }
 0x3d5   : > { %11918 = vmatmul.msk.f32.gmra.mxu0 %vm336_vm1, %v4030_v45  ;;  %v2632_v35 = vpop.f32.mrf.mxu2 }
 0x3d6   : > { %v2666_v50 = vadd.f32 %v2632_v35, %v14100_v53  ;;  %v3455_v29 = vpop.f32.mrf.mxu1  ;;  %v4033_v35 = vld [vmem:[#allocation4 + $0xd8] sm:$0xff] }
 0x3d8   : > { %v2940_v33 = vadd.f32 %v2906_v26, %v2666_v50 }
 0x3d9   : > { %11887 = vmatmul.msk.f32.gmra.mxu3 %vm336_vm1, %v4065_v41  ;;  %11951 = vmatmul.msk.f32.gmra.mxu1 %vm336_vm1, %v4520_v52  ;;  %v4068_v52 = vld [vmem:[#allocation4 + $0xf1] sm:$0xff] }
 0x3da   : > { %v14394_v44 = vpop.f32.mrf.mxu0  ;;  %11853 = vmatmul.msk.f32.gmra.mxu2 %vm1154_vm4, %v14104_v49  ;;  %v3215_v55 = vadd.f32 %v3181_v12, %v2940_v33  ;;  %v4067_v12 = vld [vmem:[#allocation4 + $0xe1] sm:$0xff] }
 0x3dc   : > { %v14403_v53 = vpop.f32.mrf.mxu3  ;;  %v14406_v8 = vadd.f32 %v3455_v29, %v3215_v55  ;;  %v4523_v55 = vld [vmem:[#allocation4 + $0xda] sm:$0xff] }
 0x3dd   : > { %11919 = vmatmul.msk.f32.gmra.mxu0 %vm336_vm1, %v4031_v21  ;;  %v3636_v20 = vpop.f32.mrf.mxu2 }
 0x3de   : > { %v3732_v43 = vadd.f32 %v3636_v20, %v14111_v38  ;;  %v14409_v14 = vpop.f32.mrf.mxu1  ;;  %v4034_v20 = vld [vmem:[#allocation4 + $0xe0] sm:$0xff] }
 0x3e0   : > { %v3768_v49 = vadd.f32 %v14401_v56, %v3732_v43 }
 0x3e1   : > { %11888 = vmatmul.msk.f32.gmra.mxu3 %vm336_vm1, %v4066_v2  ;;  %11952 = vmatmul.msk.f32.gmra.mxu1 %vm336_vm1, %v4521_v60 }
 0x3e2   : > { %v14414_v26 = vpop.f32.mrf.mxu0  ;;  %11854 = vmatmul.msk.f32.gmra.mxu2 %vm1154_vm4, %v14114_v1  ;;  %v3800_v19 = vmax.f32 %v3768_v49, 0.0 }
 0x3e4   : > { %10979 = vrot.lane.b32.xlu1 %v3800_v19, %s12837_s25  ;;  %v14419_v38 = vpop.f32.mrf.mxu3  ;;  %v4069_v19 = vld [vmem:[#allocation4 + $0xf9] sm:$0xff] }
 0x3e5   : > { %11920 = vmatmul.msk.f32.gmra.mxu0 %vm336_vm1, %v4032_v28  ;;  %v3639_v25 = vpop.f32.mrf.mxu2  ;;  %v4524_v28 = vld [vmem:[#allocation4 + $0xe2] sm:$0xff] }
 0x3e6   : > { %v3733_v63 = vadd.f32 %v3639_v25, %v14121_v62  ;;  %v14423_v11 = vpop.f32.mrf.mxu1 }
 0x3e8   : > { %v3769_v59 = vadd.f32 %v14401_v56, %v3733_v63  ;;  %v4035_v63 = vld [vmem:[#allocation4 + $0xf0] sm:$0xff] }
 0x3e9   : > { %11889 = vmatmul.msk.f32.gmra.mxu3 %vm336_vm1, %v4067_v12  ;;  %11953 = vmatmul.msk.f32.gmra.mxu1 %vm336_vm1, %v4522_v16 }
 0x3ea   : > { %v14428_v1 = vpop.f32.mrf.mxu0  ;;  %11855 = vmatmul.msk.f32.gmra.mxu2 %vm1154_vm4, %v14124_v32  ;;  %v3801_v45 = vmax.f32 %v3769_v59, 0.0 }
 0x3ec   : > { %10981 = vrot.lane.b32.xlu2 %v3801_v45, %s12837_s25  ;;  %v14433_v62 = vpop.f32.mrf.mxu3 }
 0x3ed   : > { %11921 = vmatmul.msk.f32.gmra.mxu0 %vm336_vm1, %v4033_v35  ;;  %v3642_v50 = vpop.f32.mrf.mxu2  ;;  %v4070_v35 = vld [vmem:[#allocation4 + $0x109] sm:$0xff] }
 0x3ee   : > { %v3734_v29 = vadd.f32 %v3642_v50, %v14131_v47  ;;  %v14437_v33 = vpop.f32.mrf.mxu1  ;;  %v4525_v50 = vld [vmem:[#allocation4 + $0xf2] sm:$0xff] }
 0x3f0   : > { %v3770_v41 = vadd.f32 %v14401_v56, %v3734_v29 }
 0x3f1   : > { %11890 = vmatmul.msk.f32.gmra.mxu3 %vm336_vm1, %v4068_v52  ;;  %11954 = vmatmul.msk.f32.gmra.mxu1 %vm336_vm1, %v4523_v55  ;;  %v18453_v55 = vld [vmem:[#allocation40_spill] sm:$0xff] }
 0x3f2   : > { %v14442_v32 = vpop.f32.mrf.mxu0  ;;  %11856 = vmatmul.msk.f32.gmra.mxu2 %vm1154_vm4, %v14134_v57  ;;  %v3802_v21 = vmax.f32 %v3770_v41, 0.0  ;;  %v4036_v41 = vld [vmem:[#allocation4 + $0xf8] sm:$0xff] }
 0x3f4   : > { %10983 = vrot.lane.b32.xlu0 %v3802_v21, %s12837_s25  ;;  %v14447_v47 = vpop.f32.mrf.mxu3 }
 0x3f5   : > { %11922 = vmatmul.msk.f32.gmra.mxu0 %vm336_vm1, %v4034_v20  ;;  %v3645_v43 = vpop.f32.mrf.mxu2 }
 0x3f6   : > { %v3735_v49 = vadd.f32 %v3645_v43, %v14141_v7  ;;  %v14451_v2 = vpop.f32.mrf.mxu1 }
 0x3f8   : > { %v3771_v60 = vadd.f32 %v14401_v56, %v3735_v49  ;;  %v4071_v49 = vld [vmem:[#allocation4 + $0x111] sm:$0xff] }
 0x3f9   : > { %11891 = vmatmul.msk.f32.gmra.mxu3 %vm336_vm1, %v4069_v19  ;;  %11955 = vmatmul.msk.f32.gmra.mxu1 %vm336_vm1, %v4524_v28  ;;  %v4037_v28 = vld [vmem:[#allocation4 + $0x108] sm:$0xff] }
 0x3fa   : > { %v14456_v57 = vpop.f32.mrf.mxu0  ;;  %11857 = vmatmul.msk.f32.gmra.mxu2 %vm1154_vm4, %v14144_v4  ;;  %v3803_v25 = vmax.f32 %v3771_v60, 0.0  ;;  %v4526_v60 = vld [vmem:[#allocation4 + $0xfa] sm:$0xff] }
 0x3fc   : > { %10985 = vrot.lane.b32.xlu1 %v3803_v25, %s12837_s25  ;;  %v14461_v7 = vpop.f32.mrf.mxu3 }
 0x3fd   : > { %11923 = vmatmul.msk.f32.gmra.mxu0 %vm336_vm1, %v4035_v63  ;;  %v3648_v59 = vpop.f32.mrf.mxu2 }
 0x3fe   : > { %v3736_v12 = vadd.f32 %v3648_v59, %v14151_v36  ;;  %v14465_v16 = vpop.f32.mrf.mxu1  ;;  %v18454_v59 = vld [vmem:[#allocation41_spill] sm:$0xff] }
 0x400   : > { %v3772_v45 = vadd.f32 %v14401_v56, %v3736_v12 }
 0x401   : > { %11892 = vmatmul.msk.f32.gmra.mxu3 %vm336_vm1, %v4070_v35  ;;  %11956 = vmatmul.msk.f32.gmra.mxu1 %vm336_vm1, %v4525_v50  ;;  %v4072_v50 = vld [vmem:[#allocation4 + $0x121] sm:$0xff] }
 0x402   : > { %v14470_v4 = vpop.f32.mrf.mxu0  ;;  %11858 = vmatmul.msk.f32.gmra.mxu2 %vm1154_vm4, %v14154_v24  ;;  %v3804_v29 = vmax.f32 %v3772_v45, 0.0 }
 0x404   : > { %10987 = vrot.lane.b32.xlu2 %v3804_v29, %s12837_s25  ;;  %v14475_v36 = vpop.f32.mrf.mxu3  ;;  %v4527_v29 = vld [vmem:[#allocation4 + $0x10a] sm:$0xff] }
 0x405   : > { %11924 = vmatmul.msk.f32.gmra.mxu0 %vm336_vm1, %v4036_v41  ;;  %v3651_v52 = vpop.f32.mrf.mxu2 }
 0x406   : > { %v3737_v21 = vadd.f32 %v3651_v52, %v18453_v55  ;;  %v14479_v20 = vpop.f32.mrf.mxu1  ;;  %v4038_v52 = vld [vmem:[#allocation4 + $0x110] sm:$0xff] }
 0x408   : > { %v3773_v43 = vadd.f32 %v14401_v56, %v3737_v21 }
 0x409   : > { %11893 = vmatmul.msk.f32.gmra.mxu3 %vm336_vm1, %v4071_v49  ;;  %11957 = vmatmul.msk.f32.gmra.mxu1 %vm336_vm1, %v4526_v60 }
 0x40a   : > { %v14484_v24 = vpop.f32.mrf.mxu0  ;;  %11859 = vmatmul.msk.f32.gmra.mxu2 %vm1154_vm4, %v14164_v18  ;;  %v3805_v19 = vmax.f32 %v3773_v43, 0.0  ;;  %v18455_v43 = vld [vmem:[#allocation42_spill] sm:$0xff] }
 0x40c   : > { %10989 = vrot.lane.b32.xlu0 %v3805_v19, %s12837_s25  ;;  %v14489_v25 = vpop.f32.mrf.mxu3 }
 0x40d   : > { %11925 = vmatmul.msk.f32.gmra.mxu0 %vm336_vm1, %v4037_v28  ;;  %v3654_v63 = vpop.f32.mrf.mxu2  ;;  %v4073_v28 = vld [vmem:[#allocation4 + $0x129] sm:$0xff] }
 0x40e   : > { %v3738_v12 = vadd.f32 %v3654_v63, %v18454_v59  ;;  %v14493_v45 = vpop.f32.mrf.mxu1  ;;  %v4528_v63 = vld [vmem:[#allocation4 + $0x112] sm:$0xff] }
 0x40f   : > { %v18456_v59 = vld [vmem:[#allocation43_spill] sm:$0xff] }
 0x410   : > { %v3774_v35 = vadd.f32 %v14401_v56, %v3738_v12 }
 0x411   : > { %11894 = vmatmul.msk.f32.gmra.mxu3 %vm336_vm1, %v4072_v50  ;;  %11958 = vmatmul.msk.f32.gmra.mxu1 %vm336_vm1, %v4527_v29 }
 0x412   : > { %v14498_v18 = vpop.f32.mrf.mxu0  ;;  %11860 = vmatmul.msk.f32.gmra.mxu2 %vm1154_vm4, %v14174_v34  ;;  %v3806_v41 = vmax.f32 %v3774_v35, 0.0  ;;  %v4039_v35 = vld [vmem:[#allocation4 + $0x120] sm:$0xff] }
 0x414   : > { %10991 = vrot.lane.b32.xlu1 %v3806_v41, %s12837_s25  ;;  %v14503_v55 = vpop.f32.mrf.mxu3 }
 0x415   : > { %11926 = vmatmul.msk.f32.gmra.mxu0 %vm336_vm1, %v4038_v52  ;;  %v3657_v21 = vpop.f32.mrf.mxu2 }
 0x416   : > { %v3739_v49 = vadd.f32 %v3657_v21, %v18455_v43  ;;  %v14507_v60 = vpop.f32.mrf.mxu1  ;;  %v4074_v43 = vld [vmem:[#allocation4 + $0x139] sm:$0xff] }
 0x418   : > { %v3775_v19 = vadd.f32 %v14401_v56, %v3739_v49  ;;  %v4529_v49 = vld [vmem:[#allocation4 + $0x122] sm:$0xff] }
 0x419   : > { %11895 = vmatmul.msk.f32.gmra.mxu3 %vm336_vm1, %v4073_v28  ;;  %11959 = vmatmul.msk.f32.gmra.mxu1 %vm336_vm1, %v4528_v63  ;;  %v3515_v28 = vld [vmem:[#allocation3 + $0x15a] sm:$0xff] }
 0x41a   : > { %v14512_v34 = vpop.f32.mrf.mxu0  ;;  %11861 = vmatmul.msk.f32.gmra.mxu2 %vm1154_vm4, %v18456_v59  ;;  %v3807_v12 = vmax.f32 %v3775_v19, 0.0  ;;  %v4040_v59 = vld [vmem:[#allocation4 + $0x128] sm:$0xff] }
 0x41c   : > { %10993 = vrot.lane.b32.xlu2 %v3807_v12, %s12837_s25  ;;  %v14517_v50 = vpop.f32.mrf.mxu3 }
 0x41d   : > { %11927 = vmatmul.msk.f32.gmra.mxu0 %vm336_vm1, %v4039_v35  ;;  %v3660_v29 = vpop.f32.mrf.mxu2 }
 0x41e   : > { %v3740_v41 = vadd.f32 %v3660_v29, %v14191_v10  ;;  %v14521_v52 = vpop.f32.mrf.mxu1 }
 0x420   : > { %v3776_v21 = vadd.f32 %v14401_v56, %v3740_v41 }
 0x421   : > { %11896 = vmatmul.msk.f32.gmra.mxu3 %vm336_vm1, %v4074_v43  ;;  %11960 = vmatmul.msk.f32.gmra.mxu1 %vm336_vm1, %v4529_v49  ;;  %v4075_v43 = vld [vmem:[#allocation4 + $0x141] sm:$0xff]  ;;  %v4530_v49 = vld [vmem:[#allocation4 + $0x12a] sm:$0xff] }
 0x422   : > { %v14526_v19 = vpop.f32.mrf.mxu0  ;;  %11862 = vmatmul.msk.f32.gmra.mxu2 %vm1154_vm4, %v3515_v28  ;;  %v3808_v63 = vmax.f32 %v3776_v21, 0.0 }
 0x423   : > { %18457 = vst [vmem:[#allocation40_spill] sm:$0xff] %v14526_v19  ;;  %v3516_v19 = vld [vmem:[#allocation3 + $0x16a] sm:$0xff] }
 0x424   : > { %10995 = vrot.lane.b32.xlu0 %v3808_v63, %s12837_s25  ;;  %v14530_v10 = vpop.f32.mrf.mxu3  ;;  %v4041_v63 = vld [vmem:[#allocation4 + $0x138] sm:$0xff] }
 0x425   : > { %18458 = vst [vmem:[#allocation41_spill] sm:$0xff] %v14530_v10  ;;  %11928 = vmatmul.msk.f32.gmra.mxu0 %vm336_vm1, %v4040_v59  ;;  %v3663_v12 = vpop.f32.mrf.mxu2  ;;  %v4531_v10 = vld [vmem:[#allocation4 + $0x13a] sm:$0xff] }
 0x426   : > { %v3741_v35 = vadd.f32 %v3663_v12, %v14198_v40  ;;  %v14534_v29 = vpop.f32.mrf.mxu1 }
 0x428   : > { %v3777_v41 = vadd.f32 %v14401_v56, %v3741_v35 }
 0x429   : > { %11897 = vmatmul.msk.f32.gmra.mxu3 %vm336_vm1, %v4075_v43  ;;  %11961 = vmatmul.msk.f32.gmra.mxu1 %vm336_vm1, %v4530_v49  ;;  %v4076_v49 = vld [vmem:[#allocation4 + $0x151] sm:$0xff] }
 0x42a   : > { %v14539_v21 = vpop.f32.mrf.mxu0  ;;  %11863 = vmatmul.msk.f32.gmra.mxu2 %vm1154_vm4, %v3516_v19  ;;  %v3809_v28 = vmax.f32 %v3777_v41, 0.0 }
 0x42b   : > { %18459 = vst [vmem:[#allocation42_spill] sm:$0xff] %v14539_v21  ;;  %v3517_v21 = vld [vmem:[#allocation3 + $0x172] sm:$0xff] }
 0x42c   : > { %10997 = vrot.lane.b32.xlu1 %v3809_v28, %s12837_s25  ;;  %v14543_v40 = vpop.f32.mrf.mxu3  ;;  %v4042_v28 = vld [vmem:[#allocation4 + $0x140] sm:$0xff] }
 0x42d   : > { %18460 = vst [vmem:[#allocation43_spill] sm:$0xff] %v14543_v40  ;;  %11929 = vmatmul.msk.f32.gmra.mxu0 %vm336_vm1, %v4041_v63  ;;  %v3666_v59 = vpop.f32.mrf.mxu2  ;;  %v4532_v40 = vld [vmem:[#allocation4 + $0x142] sm:$0xff] }
 0x42e   : > { %v3742_v12 = vadd.f32 %v3666_v59, %v14205_v0  ;;  %v14547_v35 = vpop.f32.mrf.mxu1 }
 0x430   : > { %v3778_v43 = vadd.f32 %v14401_v56, %v3742_v12 }
 0x431   : > { %11898 = vmatmul.msk.f32.gmra.mxu3 %vm336_vm1, %v4076_v49  ;;  %11962 = vmatmul.msk.f32.gmra.mxu1 %vm336_vm1, %v4531_v10  ;;  %v4077_v10 = vld [vmem:[#allocation4 + $0x159] sm:$0xff] }
 0x432   : > { %v14552_v19 = vpop.f32.mrf.mxu0  ;;  %11864 = vmatmul.msk.f32.gmra.mxu2 %vm1154_vm4, %v3517_v21  ;;  %v3810_v41 = vmax.f32 %v3778_v43, 0.0 }
 0x433   : > { %18461 = vst [vmem:[#allocation44_spill] sm:$0xff] %v14552_v19  ;;  %v3518_v19 = vld [vmem:[#allocation3 + $0x182] sm:$0xff] }
 0x434   : > { %10999 = vrot.lane.b32.xlu2 %v3810_v41, %s12837_s25  ;;  %v14556_v0 = vpop.f32.mrf.mxu3  ;;  %v5369_v41 = vld [vmem:[%s18224_s6 + $0x14] sm:$0xf] }
 0x435   : > { %11930 = vmatmul.msk.f32.gmra.mxu0 %vm336_vm1, %v4042_v28  ;;  %v3669_v63 = vpop.f32.mrf.mxu2  ;;  %v4043_v28 = vld [vmem:[#allocation4 + $0x150] sm:$0xff] }
 0x436   : > { %v3743_v59 = vadd.f32 %v3669_v63, %v14229_v9  ;;  %v14560_v12 = vpop.f32.mrf.mxu1  ;;  %v5923_v9 = vld [vmem:[%s18224_s6 + $0x1c] sm:$0xf]  ;;  %12034 = vmatpush.msk.msra.mxu0 %vm757_vm0, %v5369_v41  ;;  %v4533_v41 = vld [vmem:[#allocation4 + $0x152] sm:$0xff] }
 0x437   : > { %12100 = vmatpush.msk.msra.mxu2 %vm757_vm0, %v5923_v9  ;;  %v4078_v9 = vld [vmem:[#allocation4 + $0x169] sm:$0xff] }
 0x438   : > { %v3779_v49 = vadd.f32 %v14401_v56, %v3743_v59 }
 0x439   : > { %11899 = vmatmul.msk.f32.gmra.mxu3 %vm336_vm1, %v4077_v10  ;;  %11963 = vmatmul.msk.f32.gmra.mxu1 %vm336_vm1, %v4532_v40  ;;  %v6200_v40 = vld [vmem:[%s18224_s6 + $0x20] sm:$0xf] }
 0x43a   : > { %v14565_v21 = vpop.f32.mrf.mxu0  ;;  %11865 = vmatmul.msk.f32.gmra.mxu2 %vm1154_vm4, %v3518_v19  ;;  %v3811_v43 = vmax.f32 %v3779_v49, 0.0  ;;  %12133 = vmatpush.msk.msra.mxu3 %vm757_vm0, %v6200_v40  ;;  %v4044_v40 = vld [vmem:[#allocation4 + $0x158] sm:$0xff] }
 0x43b   : > { %18462 = vst [vmem:[#allocation45_spill] sm:$0xff] %v14565_v21  ;;  %v5646_v21 = vld [vmem:[%s18224_s6 + $0x18] sm:$0xf] }
 0x43c   : > { %11001 = vrot.lane.b32.xlu0 %v3811_v43, %s12837_s25  ;;  %v14580_v19 = vpop.f32.mrf.mxu3  ;;  %v3519_v43 = vld [vmem:[#allocation3 + $0x18a] sm:$0xff]  ;;  %12067 = vmatpush.msk.msra.mxu1 %vm757_vm0, %v5646_v21 }
 0x43d   : > { %18463 = vst [vmem:[#allocation46_spill] sm:$0xff] %v14580_v19  ;;  %11931 = vmatmul.msk.f32.gmra.mxu0 %vm336_vm1, %v4043_v28  ;;  %v3672_v63 = vpop.f32.mrf.mxu2 }
 0x43e   : > { %v3744_v59 = vadd.f32 %v3672_v63, %v14252_v58  ;;  %v14585_v49 = vpop.f32.mrf.mxu1 }
 0x43f   : > { %18464 = vst [vmem:[#allocation47_spill] sm:$0xff] %v14585_v49  ;;  %v4079_v49 = vld [vmem:[#allocation4 + $0x171] sm:$0xff] }
 0x440   : > { %v3780_v10 = vadd.f32 %v14401_v56, %v3744_v59 }
 0x441   : > { %11900 = vmatmul.msk.f32.gmra.mxu3 %vm336_vm1, %v4078_v9  ;;  %11964 = vmatmul.msk.f32.gmra.mxu1 %vm336_vm1, %v4533_v41  ;;  %v3520_v41 = vld [vmem:[#allocation3 + $0x19a] sm:$0xff] }
 0x442   : > { %v14593_v28 = vpop.f32.mrf.mxu0  ;;  %11866 = vmatmul.msk.f32.gmra.mxu2 %vm1154_vm4, %v3519_v43  ;;  %v3812_v58 = vmax.f32 %v3780_v10, 0.0  ;;  %v4534_v43 = vld [vmem:[#allocation4 + $0x15a] sm:$0xff] }
 0x443   : > { %18465 = vst [vmem:[#allocation48_spill] sm:$0xff] %v14593_v28 }
 0x444   : > { %11003 = vrot.lane.b32.xlu1 %v3812_v58, %s12837_s25  ;;  %v14598_v63 = vpop.f32.mrf.mxu3  ;;  %v4045_v58 = vld [vmem:[#allocation4 + $0x168] sm:$0xff] }
 0x445   : > { %18466 = vst [vmem:[#allocation49_spill] sm:$0xff] %v14598_v63  ;;  %11932 = vmatmul.msk.f32.gmra.mxu0 %vm336_vm1, %v4044_v40  ;;  %v3675_v59 = vpop.f32.mrf.mxu2  ;;  %v3521_v63 = vld [vmem:[#allocation3 + $0x1a2] sm:$0xff] }
 0x446   : > { %v3745_v19 = vadd.f32 %v3675_v59, %v14259_v48  ;;  %v14602_v9 = vpop.f32.mrf.mxu1 }
 0x448   : > { %v3781_v28 = vadd.f32 %v14401_v56, %v3745_v19 }
 0x449   : > { %11901 = vmatmul.msk.f32.gmra.mxu3 %vm336_vm1, %v4079_v49  ;;  %11965 = vmatmul.msk.f32.gmra.mxu1 %vm336_vm1, %v4534_v43  ;;  %v5059_v49 = vld [vmem:[#allocation4 + $0x4] sm:$0xff] }
 0x44a   : > { %v14607_v21 = vpop.f32.mrf.mxu0  ;;  %11867 = vmatmul.msk.f32.gmra.mxu2 %vm1154_vm4, %v3520_v41  ;;  %v3813_v10 = vmax.f32 %v3781_v28, 0.0 }
 0x44b   : > { %18467 = vst [vmem:[#allocation50_spill] sm:$0xff] %v14607_v21  ;;  %v4535_v21 = vld [vmem:[#allocation4 + $0x16a] sm:$0xff] }
 0x44c   : > { %11005 = vrot.lane.b32.xlu2 %v3813_v10, %s12837_s25  ;;  %v14611_v48 = vpop.f32.mrf.mxu3  ;;  %v4046_v10 = vld [vmem:[#allocation4 + $0x170] sm:$0xff] }
 0x44d   : > { %18468 = vst [vmem:[#allocation51_spill] sm:$0xff] %v14611_v48  ;;  %11933 = vmatmul.msk.f32.gmra.mxu0 %vm336_vm1, %v4045_v58  ;;  %v3678_v40 = vpop.f32.mrf.mxu2  ;;  %v4782_v48 = vld [vmem:[#allocation4 + $0x3] sm:$0xff] }
 0x44e   : > { %v3746_v19 = vadd.f32 %v3678_v40, %v14266_v17  ;;  %v14615_v59 = vpop.f32.mrf.mxu1 }
 0x450   : > { %v3782_v43 = vadd.f32 %v14401_v56, %v3746_v19 }
 0x451   : > { %11966 = vmatmul.msk.f32.gmra.mxu1 %vm336_vm1, %v4535_v21  ;;  %12002 = vmatmul.msk.f32.vlgmr.msrb.gmra.mxu3 %vm336_vm1, %v5059_v49  ;;  %v5060_v21 = vld [vmem:[#allocation4 + $0xc] sm:$0xff] }
 0x452   : > { %v14620_v28 = vpop.f32.mrf.mxu0  ;;  %11868 = vmatmul.msk.f32.gmra.mxu2 %vm1154_vm4, %v3521_v63  ;;  %v3814_v41 = vmax.f32 %v3782_v43, 0.0  ;;  %v5337_v43 = vld [vmem:[#allocation4 + $0x18] sm:$0xff] }
 0x453   : > { %18469 = vst [vmem:[#allocation52_spill] sm:$0xff] %v14620_v28  ;;  %v4536_v28 = vld [vmem:[#allocation4 + $0x172] sm:$0xff] }
 0x454   : > { %11007 = vrot.lane.b32.xlu0 %v3814_v41, %s12837_s25  ;;  %v14624_v17 = vpop.f32.mrf.mxu3 }
 0x455   : > { %18470 = vst [vmem:[#allocation53_spill] sm:$0xff] %v14624_v17  ;;  %11934 = vmatmul.msk.f32.gmra.mxu0 %vm336_vm1, %v4046_v10  ;;  %v3681_v58 = vpop.f32.mrf.mxu2  ;;  %v5614_v17 = vld [vmem:[#allocation4 + $0x19] sm:$0xff] }
 0x456   : > { %v3747_v40 = vadd.f32 %v3681_v58, %v14273_v27  ;;  %v14628_v19 = vpop.f32.mrf.mxu1 }
 0x458   : > { %v3783_v49 = vadd.f32 %v14401_v56, %v3747_v40 }
 0x459   : > { %11967 = vmatmul.msk.f32.gmra.mxu1 %vm336_vm1, %v4536_v28  ;;  %12003 = vmatmul.msk.f32.gmra.mxu3 %vm336_vm1, %v5060_v21  ;;  %v5061_v28 = vld [vmem:[#allocation4 + $0x1c] sm:$0xff]  ;;  %v4783_v21 = vld [vmem:[#allocation4 + $0xb] sm:$0xff] }
 0x45a   : > { %v14633_v63 = vpop.f32.mrf.mxu0  ;;  %11969 = vmatmul.msk.f32.vlgmr.msrb.gmra.mxu2 %vm336_vm1, %v4782_v48  ;;  %v3815_v41 = vmax.f32 %v3783_v49, 0.0  ;;  %v5338_v49 = vld [vmem:[#allocation4 + $0x20] sm:$0xff] }
 0x45b   : > { %18471 = vst [vmem:[#allocation54_spill] sm:$0xff] %v14633_v63 }
 0x45c   : > { %11009 = vrot.lane.b32.xlu1 %v3815_v41, %s12837_s25  ;;  %v14637_v27 = vpop.f32.mrf.mxu3 }
 0x45d   : > { %18472 = vst [vmem:[#allocation55_spill] sm:$0xff] %v14637_v27  ;;  %12035 = vmatmul.msk.f32.vlgmr.msra.gmra.mxu0 %vm336_vm1, %v5337_v43  ;;  %v3684_v10 = vpop.f32.mrf.mxu2  ;;  %v5615_v27 = vld [vmem:[#allocation4 + $0x21] sm:$0xff] }
 0x45e   : > { %v3748_v58 = vadd.f32 %v3684_v10, %v14280_v46  ;;  %v14641_v40 = vpop.f32.mrf.mxu1 }
 0x460   : > { %v3784_v63 = vadd.f32 %v14401_v56, %v3748_v58 }
 0x461   : > { %12004 = vmatmul.msk.f32.gmra.mxu3 %vm336_vm1, %v5061_v28  ;;  %12068 = vmatmul.msk.f32.vlgmr.msra.gmra.mxu1 %vm336_vm1, %v5614_v17  ;;  %v5062_v28 = vld [vmem:[#allocation4 + $0x24] sm:$0xff]  ;;  %v4784_v17 = vld [vmem:[#allocation4 + $0x1b] sm:$0xff] }
 0x462   : > { %v14646_v48 = vpop.f32.mrf.mxu0  ;;  %11970 = vmatmul.msk.f32.gmra.mxu2 %vm336_vm1, %v4783_v21  ;;  %v3816_v43 = vmax.f32 %v3784_v63, 0.0 }
 0x463   : > { %18473 = vst [vmem:[#allocation56_spill] sm:$0xff] %v14646_v48 }
 0x464   : > { %11011 = vrot.lane.b32.xlu2 %v3816_v43, %s12837_s25  ;;  %v14650_v46 = vpop.f32.mrf.mxu3 }
 0x465   : > { %18474 = vst [vmem:[#allocation57_spill] sm:$0xff] %v14650_v46  ;;  %12036 = vmatmul.msk.f32.gmra.mxu0 %vm336_vm1, %v5338_v49  ;;  %v3687_v41 = vpop.f32.mrf.mxu2  ;;  %v5339_v49 = vld [vmem:[#allocation4 + $0x30] sm:$0xff] }
 0x466   : > { %v3749_v10 = vadd.f32 %v3687_v41, %v14287_v23  ;;  %v14654_v58 = vpop.f32.mrf.mxu1  ;;  %v5063_v46 = vld [vmem:[#allocation4 + $0x34] sm:$0xff] }
 0x468   : > { %v3785_v48 = vadd.f32 %v14401_v56, %v3749_v10 }
 0x469   : > { %12005 = vmatmul.msk.f32.gmra.mxu3 %vm336_vm1, %v5062_v28  ;;  %12069 = vmatmul.msk.f32.gmra.mxu1 %vm336_vm1, %v5615_v27  ;;  %v4785_v28 = vld [vmem:[#allocation4 + $0x23] sm:$0xff] }
 0x46a   : > { %v14659_v63 = vpop.f32.mrf.mxu0  ;;  %11971 = vmatmul.msk.f32.gmra.mxu2 %vm336_vm1, %v4784_v17  ;;  %v3817_v21 = vmax.f32 %v3785_v48, 0.0 }
 0x46b   : > { %18475 = vst [vmem:[#allocation58_spill] sm:$0xff] %v14659_v63  ;;  %v5616_v63 = vld [vmem:[#allocation4 + $0x31] sm:$0xff] }
 0x46c   : > { %11013 = vrot.lane.b32.xlu0 %v3817_v21, %s12837_s25  ;;  %v14663_v23 = vpop.f32.mrf.mxu3  ;;  %v5340_v21 = vld [vmem:[#allocation4 + $0x38] sm:$0xff] }
 0x46d   : > { %18476 = vst [vmem:[#allocation59_spill] sm:$0xff] %v14663_v23  ;;  %12037 = vmatmul.msk.f32.gmra.mxu0 %vm336_vm1, %v5339_v49  ;;  %v3690_v43 = vpop.f32.mrf.mxu2  ;;  %v5617_v23 = vld [vmem:[#allocation4 + $0x39] sm:$0xff] }
 0x46e   : > { %v3750_v41 = vadd.f32 %v3690_v43, %v14294_v37  ;;  %v14667_v10 = vpop.f32.mrf.mxu1 }
 0x470   : > { %v3786_v27 = vadd.f32 %v14401_v56, %v3750_v41 }
 0x471   : > { %12006 = vmatmul.msk.f32.gmra.mxu3 %vm336_vm1, %v5063_v46  ;;  %12070 = vmatmul.msk.f32.gmra.mxu1 %vm336_vm1, %v5616_v63  ;;  %v5064_v63 = vld [vmem:[#allocation4 + $0x3c] sm:$0xff] }
 0x472   : > { %v14672_v48 = vpop.f32.mrf.mxu0  ;;  %11972 = vmatmul.msk.f32.gmra.mxu2 %vm336_vm1, %v4785_v28  ;;  %v3818_v17 = vmax.f32 %v3786_v27, 0.0 }
 0x473   : > { %18477 = vst [vmem:[#allocation60_spill] sm:$0xff] %v14672_v48  ;;  %v4786_v48 = vld [vmem:[#allocation4 + $0x33] sm:$0xff] }
 0x474   : > { %11015 = vrot.lane.b32.xlu1 %v3818_v17, %s12837_s25  ;;  %v14676_v37 = vpop.f32.mrf.mxu3  ;;  %v5341_v17 = vld [vmem:[#allocation4 + $0x48] sm:$0xff] }
 0x475   : > { %18478 = vst [vmem:[#allocation61_spill] sm:$0xff] %v14676_v37  ;;  %12038 = vmatmul.msk.f32.gmra.mxu0 %vm336_vm1, %v5340_v21  ;;  %v3693_v49 = vpop.f32.mrf.mxu2  ;;  %v5618_v37 = vld [vmem:[#allocation4 + $0x49] sm:$0xff] }
 0x476   : > { %v3751_v43 = vadd.f32 %v3693_v49, %v14301_v22  ;;  %v14680_v41 = vpop.f32.mrf.mxu1 }
 0x478   : > { %v3787_v46 = vadd.f32 %v14401_v56, %v3751_v43 }
 0x479   : > { %12007 = vmatmul.msk.f32.gmra.mxu3 %vm336_vm1, %v5064_v63  ;;  %12071 = vmatmul.msk.f32.gmra.mxu1 %vm336_vm1, %v5617_v23  ;;  %v5065_v23 = vld [vmem:[#allocation4 + $0x4c] sm:$0xff] }
 0x47a   : > { %v14685_v28 = vpop.f32.mrf.mxu0  ;;  %11973 = vmatmul.msk.f32.gmra.mxu2 %vm336_vm1, %v4786_v48  ;;  %v3819_v27 = vmax.f32 %v3787_v46, 0.0 }
 0x47b   : > { %18479 = vst [vmem:[#allocation62_spill] sm:$0xff] %v14685_v28  ;;  %v4787_v28 = vld [vmem:[#allocation4 + $0x3b] sm:$0xff] }
 0x47c   : > { %11017 = vrot.lane.b32.xlu2 %v3819_v27, %s12837_s25  ;;  %v14689_v22 = vpop.f32.mrf.mxu3  ;;  %v5342_v27 = vld [vmem:[#allocation4 + $0x50] sm:$0xff] }
 0x47d   : > { %18480 = vst [vmem:[#allocation63_spill] sm:$0xff] %v14689_v22  ;;  %12039 = vmatmul.msk.f32.gmra.mxu0 %vm336_vm1, %v5341_v17  ;;  %v3696_v21 = vpop.f32.mrf.mxu2  ;;  %v5619_v22 = vld [vmem:[#allocation4 + $0x51] sm:$0xff] }
 0x47e   : > { %v3752_v49 = vadd.f32 %v3696_v21, %v14308_v13  ;;  %v14693_v43 = vpop.f32.mrf.mxu1 }
 0x480   : > { %v3788_v63 = vadd.f32 %v14401_v56, %v3752_v49 }
 0x481   : > { %12008 = vmatmul.msk.f32.gmra.mxu3 %vm336_vm1, %v5065_v23  ;;  %12072 = vmatmul.msk.f32.gmra.mxu1 %vm336_vm1, %v5618_v37  ;;  %v5066_v37 = vld [vmem:[#allocation4 + $0x54] sm:$0xff] }
 0x482   : > { %v14698_v48 = vpop.f32.mrf.mxu0  ;;  %11974 = vmatmul.msk.f32.gmra.mxu2 %vm336_vm1, %v4787_v28  ;;  %v3820_v46 = vmax.f32 %v3788_v63, 0.0 }
 0x483   : > { %18481 = vst [vmem:[#allocation64_spill] sm:$0xff] %v14698_v48  ;;  %v4788_v48 = vld [vmem:[#allocation4 + $0x4b] sm:$0xff] }
 0x484   : > { %11019 = vrot.lane.b32.xlu0 %v3820_v46, %s12837_s25  ;;  %v14702_v13 = vpop.f32.mrf.mxu3  ;;  %v5343_v46 = vld [vmem:[#allocation4 + $0x60] sm:$0xff] }
 0x485   : > { %18482 = vst [vmem:[#allocation65_spill] sm:$0xff] %v14702_v13  ;;  %12040 = vmatmul.msk.f32.gmra.mxu0 %vm336_vm1, %v5342_v27  ;;  %v3699_v17 = vpop.f32.mrf.mxu2  ;;  %v5620_v13 = vld [vmem:[#allocation4 + $0x61] sm:$0xff] }
 0x486   : > { %v3753_v21 = vadd.f32 %v3699_v17, %v14315_v15  ;;  %v14706_v49 = vpop.f32.mrf.mxu1 }
 0x488   : > { %v3789_v23 = vadd.f32 %v14401_v56, %v3753_v21 }
 0x489   : > { %12009 = vmatmul.msk.f32.gmra.mxu3 %vm336_vm1, %v5066_v37  ;;  %12073 = vmatmul.msk.f32.gmra.mxu1 %vm336_vm1, %v5619_v22  ;;  %v5067_v22 = vld [vmem:[#allocation4 + $0x64] sm:$0xff] }
 0x48a   : > { %v14711_v28 = vpop.f32.mrf.mxu0  ;;  %11975 = vmatmul.msk.f32.gmra.mxu2 %vm336_vm1, %v4788_v48  ;;  %v3821_v63 = vmax.f32 %v3789_v23, 0.0 }
 0x48b   : > { %18483 = vst [vmem:[#allocation66_spill] sm:$0xff] %v14711_v28  ;;  %v4789_v28 = vld [vmem:[#allocation4 + $0x53] sm:$0xff] }
 0x48c   : > { %11021 = vrot.lane.b32.xlu1 %v3821_v63, %s12837_s25  ;;  %v14715_v15 = vpop.f32.mrf.mxu3  ;;  %v5344_v63 = vld [vmem:[#allocation4 + $0x68] sm:$0xff] }
 0x48d   : > { %18484 = vst [vmem:[#allocation67_spill] sm:$0xff] %v14715_v15  ;;  %12041 = vmatmul.msk.f32.gmra.mxu0 %vm336_vm1, %v5343_v46  ;;  %v3702_v27 = vpop.f32.mrf.mxu2  ;;  %v5621_v15 = vld [vmem:[#allocation4 + $0x69] sm:$0xff] }
 0x48e   : > { %v3754_v17 = vadd.f32 %v3702_v27, %v14323_v31  ;;  %v14719_v21 = vpop.f32.mrf.mxu1 }
 0x490   : > { %v3790_v37 = vadd.f32 %v14401_v56, %v3754_v17 }
 0x491   : > { %12010 = vmatmul.msk.f32.gmra.mxu3 %vm336_vm1, %v5067_v22  ;;  %12074 = vmatmul.msk.f32.gmra.mxu1 %vm336_vm1, %v5620_v13  ;;  %v5068_v13 = vld [vmem:[#allocation4 + $0x6c] sm:$0xff] }
 0x492   : > { %v14724_v48 = vpop.f32.mrf.mxu0  ;;  %11976 = vmatmul.msk.f32.gmra.mxu2 %vm336_vm1, %v4789_v28  ;;  %v3822_v23 = vmax.f32 %v3790_v37, 0.0 }
 0x493   : > { %18485 = vst [vmem:[#allocation68_spill] sm:$0xff] %v14724_v48  ;;  %v4790_v48 = vld [vmem:[#allocation4 + $0x63] sm:$0xff] }
 0x494   : > { %11023 = vrot.lane.b32.xlu2 %v3822_v23, %s12837_s25  ;;  %v14728_v31 = vpop.f32.mrf.mxu3  ;;  %v5345_v23 = vld [vmem:[#allocation4 + $0x78] sm:$0xff] }
 0x495   : > { %18486 = vst [vmem:[#allocation69_spill] sm:$0xff] %v14728_v31  ;;  %12042 = vmatmul.msk.f32.gmra.mxu0 %vm336_vm1, %v5344_v63  ;;  %v3705_v46 = vpop.f32.mrf.mxu2  ;;  %v5622_v31 = vld [vmem:[#allocation4 + $0x79] sm:$0xff] }
 0x496   : > { %v3755_v27 = vadd.f32 %v3705_v46, %v14331_v30  ;;  %v14732_v17 = vpop.f32.mrf.mxu1 }
 0x498   : > { %v3791_v22 = vadd.f32 %v14401_v56, %v3755_v27 }
 0x499   : > { %12011 = vmatmul.msk.f32.gmra.mxu3 %vm336_vm1, %v5068_v13  ;;  %12075 = vmatmul.msk.f32.gmra.mxu1 %vm336_vm1, %v5621_v15  ;;  %v5069_v15 = vld [vmem:[#allocation4 + $0x7c] sm:$0xff] }
 0x49a   : > { %v14737_v28 = vpop.f32.mrf.mxu0  ;;  %11977 = vmatmul.msk.f32.gmra.mxu2 %vm336_vm1, %v4790_v48  ;;  %v3823_v37 = vmax.f32 %v3791_v22, 0.0 }
 0x49b   : > { %18487 = vst [vmem:[#allocation70_spill] sm:$0xff] %v14737_v28  ;;  %v4791_v28 = vld [vmem:[#allocation4 + $0x6b] sm:$0xff] }
 0x49c   : > { %11025 = vrot.lane.b32.xlu0 %v3823_v37, %s12837_s25  ;;  %v14741_v30 = vpop.f32.mrf.mxu3  ;;  %v5346_v37 = vld [vmem:[#allocation4 + $0x80] sm:$0xff] }
 0x49d   : > { %18488 = vst [vmem:[#allocation71_spill] sm:$0xff] %v14741_v30  ;;  %12043 = vmatmul.msk.f32.gmra.mxu0 %vm336_vm1, %v5345_v23  ;;  %v3708_v63 = vpop.f32.mrf.mxu2  ;;  %v5623_v30 = vld [vmem:[#allocation4 + $0x81] sm:$0xff] }
 0x49e   : > { %v3756_v46 = vadd.f32 %v3708_v63, %v14339_v3  ;;  %v14745_v27 = vpop.f32.mrf.mxu1 }
 0x4a0   : > { %v3792_v13 = vadd.f32 %v14401_v56, %v3756_v46 }
 0x4a1   : > { %12012 = vmatmul.msk.f32.gmra.mxu3 %vm336_vm1, %v5069_v15  ;;  %12076 = vmatmul.msk.f32.gmra.mxu1 %vm336_vm1, %v5622_v31  ;;  %v5070_v31 = vld [vmem:[#allocation4 + $0x84] sm:$0xff] }
 0x4a2   : > { %v14750_v48 = vpop.f32.mrf.mxu0  ;;  %11978 = vmatmul.msk.f32.gmra.mxu2 %vm336_vm1, %v4791_v28  ;;  %v3824_v22 = vmax.f32 %v3792_v13, 0.0 }
 0x4a3   : > { %18489 = vst [vmem:[#allocation72_spill] sm:$0xff] %v14750_v48  ;;  %v4792_v48 = vld [vmem:[#allocation4 + $0x7b] sm:$0xff] }
 0x4a4   : > { %11027 = vrot.lane.b32.xlu1 %v3824_v22, %s12837_s25  ;;  %v14754_v3 = vpop.f32.mrf.mxu3  ;;  %v5347_v22 = vld [vmem:[#allocation4 + $0x90] sm:$0xff] }
 0x4a5   : > { %18490 = vst [vmem:[#allocation73_spill] sm:$0xff] %v14754_v3  ;;  %12044 = vmatmul.msk.f32.gmra.mxu0 %vm336_vm1, %v5346_v37  ;;  %v3711_v23 = vpop.f32.mrf.mxu2  ;;  %v5624_v3 = vld [vmem:[#allocation4 + $0x91] sm:$0xff] }
 0x4a6   : > { %v3757_v63 = vadd.f32 %v3711_v23, %v14347_v5  ;;  %v14758_v46 = vpop.f32.mrf.mxu1 }
 0x4a8   : > { %v3793_v15 = vadd.f32 %v14401_v56, %v3757_v63 }
 0x4a9   : > { %12013 = vmatmul.msk.f32.gmra.mxu3 %vm336_vm1, %v5070_v31  ;;  %12077 = vmatmul.msk.f32.gmra.mxu1 %vm336_vm1, %v5623_v30  ;;  %v5071_v30 = vld [vmem:[#allocation4 + $0x94] sm:$0xff] }
 0x4aa   : > { %v14763_v28 = vpop.f32.mrf.mxu0  ;;  %11979 = vmatmul.msk.f32.gmra.mxu2 %vm336_vm1, %v4792_v48  ;;  %v3825_v13 = vmax.f32 %v3793_v15, 0.0 }
 0x4ab   : > { %18491 = vst [vmem:[#allocation74_spill] sm:$0xff] %v14763_v28  ;;  %v4793_v28 = vld [vmem:[#allocation4 + $0x83] sm:$0xff] }
 0x4ac   : > { %11029 = vrot.lane.b32.xlu2 %v3825_v13, %s12837_s25  ;;  %v14767_v5 = vpop.f32.mrf.mxu3  ;;  %v5348_v13 = vld [vmem:[#allocation4 + $0x98] sm:$0xff] }
 0x4ad   : > { %18492 = vst [vmem:[#allocation75_spill] sm:$0xff] %v14767_v5  ;;  %12045 = vmatmul.msk.f32.gmra.mxu0 %vm336_vm1, %v5347_v22  ;;  %v3714_v37 = vpop.f32.mrf.mxu2  ;;  %v5625_v5 = vld [vmem:[#allocation4 + $0x99] sm:$0xff] }
 0x4ae   : > { %v3758_v23 = vadd.f32 %v3714_v37, %v14355_v54  ;;  %v14771_v63 = vpop.f32.mrf.mxu1 }
 0x4b0   : > { %v3794_v31 = vadd.f32 %v14401_v56, %v3758_v23 }
 0x4b1   : > { %12014 = vmatmul.msk.f32.gmra.mxu3 %vm336_vm1, %v5071_v30  ;;  %12078 = vmatmul.msk.f32.gmra.mxu1 %vm336_vm1, %v5624_v3  ;;  %v5072_v3 = vld [vmem:[#allocation4 + $0x9c] sm:$0xff] }
 0x4b2   : > { %v14776_v48 = vpop.f32.mrf.mxu0  ;;  %11980 = vmatmul.msk.f32.gmra.mxu2 %vm336_vm1, %v4793_v28  ;;  %v3826_v15 = vmax.f32 %v3794_v31, 0.0 }
 0x4b3   : > { %18493 = vst [vmem:[#allocation76_spill] sm:$0xff] %v14776_v48  ;;  %v4794_v48 = vld [vmem:[#allocation4 + $0x93] sm:$0xff] }
 0x4b4   : > { %11031 = vrot.lane.b32.xlu0 %v3826_v15, %s12837_s25  ;;  %v14780_v54 = vpop.f32.mrf.mxu3  ;;  %v5349_v15 = vld [vmem:[#allocation4 + $0xa8] sm:$0xff] }
 0x4b5   : > { %18494 = vst [vmem:[#allocation77_spill] sm:$0xff] %v14780_v54  ;;  %12046 = vmatmul.msk.f32.gmra.mxu0 %vm336_vm1, %v5348_v13  ;;  %v3717_v22 = vpop.f32.mrf.mxu2  ;;  %v5626_v54 = vld [vmem:[#allocation4 + $0xa9] sm:$0xff] }
 0x4b6   : > { %v3759_v37 = vadd.f32 %v3717_v22, %v14363_v39  ;;  %v14784_v23 = vpop.f32.mrf.mxu1 }
 0x4b8   : > { %v3795_v30 = vadd.f32 %v14401_v56, %v3759_v37 }
 0x4b9   : > { %12015 = vmatmul.msk.f32.gmra.mxu3 %vm336_vm1, %v5072_v3  ;;  %12079 = vmatmul.msk.f32.gmra.mxu1 %vm336_vm1, %v5625_v5  ;;  %v5073_v5 = vld [vmem:[#allocation4 + $0xac] sm:$0xff] }
 0x4ba   : > { %v14789_v28 = vpop.f32.mrf.mxu0  ;;  %11981 = vmatmul.msk.f32.gmra.mxu2 %vm336_vm1, %v4794_v48  ;;  %v3827_v31 = vmax.f32 %v3795_v30, 0.0 }
 0x4bb   : > { %18495 = vst [vmem:[#allocation78_spill] sm:$0xff] %v14789_v28  ;;  %v4795_v28 = vld [vmem:[#allocation4 + $0x9b] sm:$0xff] }
 0x4bc   : > { %11033 = vrot.lane.b32.xlu1 %v3827_v31, %s12837_s25  ;;  %v14793_v39 = vpop.f32.mrf.mxu3  ;;  %v5350_v31 = vld [vmem:[#allocation4 + $0xb0] sm:$0xff] }
 0x4bd   : > { %18496 = vst [vmem:[#allocation79_spill] sm:$0xff] %v14793_v39  ;;  %12047 = vmatmul.msk.f32.gmra.mxu0 %vm336_vm1, %v5349_v15  ;;  %v3720_v13 = vpop.f32.mrf.mxu2  ;;  %v5627_v39 = vld [vmem:[#allocation4 + $0xb1] sm:$0xff] }
 0x4be   : > { %v3760_v22 = vadd.f32 %v3720_v13, %v14371_v61  ;;  %v14797_v37 = vpop.f32.mrf.mxu1 }
 0x4c0   : > { %v3796_v3 = vadd.f32 %v14401_v56, %v3760_v22 }
 0x4c1   : > { %12016 = vmatmul.msk.f32.gmra.mxu3 %vm336_vm1, %v5073_v5  ;;  %12080 = vmatmul.msk.f32.gmra.mxu1 %vm336_vm1, %v5626_v54  ;;  %v5074_v54 = vld [vmem:[#allocation4 + $0xb4] sm:$0xff] }
 0x4c2   : > { %v14802_v48 = vpop.f32.mrf.mxu0  ;;  %11982 = vmatmul.msk.f32.gmra.mxu2 %vm336_vm1, %v4795_v28  ;;  %v3828_v30 = vmax.f32 %v3796_v3, 0.0 }
 0x4c3   : > { %18497 = vst [vmem:[#allocation80_spill] sm:$0xff] %v14802_v48  ;;  %v4796_v48 = vld [vmem:[#allocation4 + $0xab] sm:$0xff] }
 0x4c4   : > { %11035 = vrot.lane.b32.xlu2 %v3828_v30, %s12837_s25  ;;  %v14806_v61 = vpop.f32.mrf.mxu3  ;;  %v5351_v30 = vld [vmem:[#allocation4 + $0xc0] sm:$0xff] }
 0x4c5   : > { %18498 = vst [vmem:[#allocation81_spill] sm:$0xff] %v14806_v61  ;;  %12048 = vmatmul.msk.f32.gmra.mxu0 %vm336_vm1, %v5350_v31  ;;  %v3723_v15 = vpop.f32.mrf.mxu2  ;;  %v5628_v61 = vld [vmem:[#allocation4 + $0xc1] sm:$0xff] }
 0x4c6   : > { %v3761_v13 = vadd.f32 %v3723_v15, %v14379_v42  ;;  %v14810_v22 = vpop.f32.mrf.mxu1 }
 0x4c8   : > { %v3797_v5 = vadd.f32 %v14401_v56, %v3761_v13 }
 0x4c9   : > { %12017 = vmatmul.msk.f32.gmra.mxu3 %vm336_vm1, %v5074_v54  ;;  %12081 = vmatmul.msk.f32.gmra.mxu1 %vm336_vm1, %v5627_v39  ;;  %v5075_v39 = vld [vmem:[#allocation4 + $0xc4] sm:$0xff] }
 0x4ca   : > { %v14815_v28 = vpop.f32.mrf.mxu0  ;;  %11983 = vmatmul.msk.f32.gmra.mxu2 %vm336_vm1, %v4796_v48  ;;  %v3829_v3 = vmax.f32 %v3797_v5, 0.0 }
 0x4cb   : > { %18499 = vst [vmem:[#allocation82_spill] sm:$0xff] %v14815_v28  ;;  %v4797_v28 = vld [vmem:[#allocation4 + $0xb3] sm:$0xff] }
 0x4cc   : > { %11037 = vrot.lane.b32.xlu0 %v3829_v3, %s12837_s25  ;;  %v14819_v42 = vpop.f32.mrf.mxu3  ;;  %v5352_v3 = vld [vmem:[#allocation4 + $0xc8] sm:$0xff] }
 0x4cd   : > { %18500 = vst [vmem:[#allocation83_spill] sm:$0xff] %v14819_v42  ;;  %12049 = vmatmul.msk.f32.gmra.mxu0 %vm336_vm1, %v5351_v30  ;;  %v3726_v31 = vpop.f32.mrf.mxu2  ;;  %v5629_v42 = vld [vmem:[#allocation4 + $0xc9] sm:$0xff] }
 0x4ce   : > { %v3762_v15 = vadd.f32 %v3726_v31, %v14389_v6  ;;  %v14823_v13 = vpop.f32.mrf.mxu1 }
 0x4cf   : > { %18501 = vst [vmem:[#allocation84_spill] sm:$0xff] %v14823_v13  ;;  %v4799_v13 = vld [vmem:[#allocation4 + $0xcb] sm:$0xff] }
 0x4d0   : > { %v3798_v54 = vadd.f32 %v14401_v56, %v3762_v15 }
 0x4d1   : > { %12018 = vmatmul.msk.f32.gmra.mxu3 %vm336_vm1, %v5075_v39  ;;  %12082 = vmatmul.msk.f32.gmra.mxu1 %vm336_vm1, %v5628_v61  ;;  %v4410_v39 = vadd.f32 %v14394_v44, %v14386_v51 }
 0x4d2   : > { %v14828_v48 = vpop.f32.mrf.mxu0  ;;  %11984 = vmatmul.msk.f32.gmra.mxu2 %vm336_vm1, %v4797_v28  ;;  %v3830_v5 = vmax.f32 %v3798_v54, 0.0  ;;  %v4798_v28 = vld [vmem:[#allocation4 + $0xc3] sm:$0xff] }
 0x4d3   : > { %18502 = vst [vmem:[#allocation85_spill] sm:$0xff] %v14828_v48  ;;  %v5076_v48 = vld [vmem:[#allocation4 + $0xcc] sm:$0xff] }
 0x4d4   : > { %11039 = vrot.lane.b32.xlu1 %v3830_v5, %s12837_s25  ;;  %v5208_v6 = vpop.f32.mrf.mxu3 }
 0x4d5   : > { %12050 = vmatmul.msk.f32.gmra.mxu0 %vm336_vm1, %v5352_v3  ;;  %v3729_v30 = vpop.f32.mrf.mxu2  ;;  %v5353_v3 = vld [vmem:[#allocation4 + $0xd8] sm:$0xff] }
 0x4d6   : > { %v3763_v31 = vadd.f32 %v3729_v30, %v14406_v8  ;;  %v14834_v15 = vpop.f32.mrf.mxu1  ;;  %v4750_v8 = vadd.f32 %v14409_v14, %v4410_v39  ;;  %v5354_v39 = vld [vmem:[#allocation4 + $0xe0] sm:$0xff] }
 0x4d7   : > { %18503 = vst [vmem:[#allocation86_spill] sm:$0xff] %v14834_v15  ;;  %v5630_v15 = vld [vmem:[#allocation4 + $0xd9] sm:$0xff] }
 0x4d8   : > { %v3799_v61 = vadd.f32 %v14401_v56, %v3763_v31 }
 0x4d9   : > { %12019 = vmatmul.msk.f32.gmra.mxu3 %vm336_vm1, %v5076_v48  ;;  %12083 = vmatmul.msk.f32.gmra.mxu1 %vm336_vm1, %v5629_v42  ;;  %v4413_v48 = vadd.f32 %v14414_v26, %v14403_v53  ;;  %v5077_v42 = vld [vmem:[#allocation4 + $0xdc] sm:$0xff] }
 0x4da   : > { %v5486_v54 = vpop.f32.mrf.mxu0  ;;  %11985 = vmatmul.msk.f32.gmra.mxu2 %vm336_vm1, %v4798_v28  ;;  %v3831_v5 = vmax.f32 %v3799_v61, 0.0 }
 0x4db   : > { %v4751_v28 = vadd.f32 %v14423_v11, %v4413_v48 }
 0x4dc   : > { %11041 = vrot.lane.b32.xlu2 %v3831_v5, %s12837_s25  ;;  %v5211_v30 = vpop.f32.mrf.mxu3 }
 0x4dd   : > { %12051 = vmatmul.msk.f32.gmra.mxu0 %vm336_vm1, %v5353_v3  ;;  %v4931_v51 = vpop.f32.mrf.mxu2 }
 0x4de   : > { %v5027_v44 = vadd.f32 %v4931_v51, %v4750_v8  ;;  %v5763_v56 = vpop.f32.mrf.mxu1  ;;  %v4416_v8 = vadd.f32 %v14428_v1, %v14419_v38 }
 0x4e0   : > { %v5304_v31 = vadd.f32 %v5208_v6, %v5027_v44  ;;  %v5631_v44 = vld [vmem:[#allocation4 + $0xe1] sm:$0xff] }
 0x4e1   : > { %12020 = vmatmul.msk.f32.gmra.mxu3 %vm336_vm1, %v5077_v42  ;;  %12084 = vmatmul.msk.f32.gmra.mxu1 %vm336_vm1, %v5630_v15  ;;  %v5078_v15 = vld [vmem:[#allocation4 + $0xe4] sm:$0xff]  ;;  %v4800_v42 = vld [vmem:[#allocation4 + $0xdb] sm:$0xff] }
 0x4e2   : > { %v5489_v61 = vpop.f32.mrf.mxu0  ;;  %11986 = vmatmul.msk.f32.gmra.mxu2 %vm336_vm1, %v4799_v13  ;;  %v5582_v14 = vadd.f32 %v5486_v54, %v5304_v31  ;;  %v5355_v54 = vld [vmem:[#allocation4 + $0xf0] sm:$0xff] }
 0x4e4   : > { %v5214_v5 = vpop.f32.mrf.mxu3  ;;  %v14852_v3 = vadd.f32 %v5763_v56, %v5582_v14  ;;  %v4752_v56 = vadd.f32 %v14437_v33, %v4416_v8 }
 0x4e5   : > { %12052 = vmatmul.msk.f32.gmra.mxu0 %vm336_vm1, %v5354_v39  ;;  %v4934_v53 = vpop.f32.mrf.mxu2  ;;  %v5079_v39 = vld [vmem:[#allocation4 + $0xf4] sm:$0xff] }
 0x4e6   : > { %v5028_v26 = vadd.f32 %v4934_v53, %v4751_v28  ;;  %v5766_v6 = vpop.f32.mrf.mxu1  ;;  %v5632_v28 = vld [vmem:[#allocation4 + $0xf1] sm:$0xff]  ;;  %v4801_v53 = vld [vmem:[#allocation4 + $0xe3] sm:$0xff] }
 0x4e8   : > { %v5305_v51 = vadd.f32 %v5211_v30, %v5028_v26  ;;  %v4419_v30 = vadd.f32 %v14442_v32, %v14433_v62  ;;  %v5356_v26 = vld [vmem:[#allocation4 + $0xf8] sm:$0xff] }
 0x4e9   : > { %12021 = vmatmul.msk.f32.gmra.mxu3 %vm336_vm1, %v5078_v15  ;;  %12085 = vmatmul.msk.f32.gmra.mxu1 %vm336_vm1, %v5631_v44  ;;  %v4422_v44 = vadd.f32 %v14456_v57, %v14447_v47 }
 0x4ea   : > { %v5492_v11 = vpop.f32.mrf.mxu0  ;;  %11987 = vmatmul.msk.f32.gmra.mxu2 %vm336_vm1, %v4800_v42  ;;  %v5583_v13 = vadd.f32 %v5489_v61, %v5305_v51  ;;  %v4753_v8 = vadd.f32 %v14451_v2, %v4419_v30 }
 0x4eb   : > { %v4754_v30 = vadd.f32 %v14465_v16, %v4422_v44  ;;  %v5082_v44 = vld [vmem:[#allocation4 + $0x114] sm:$0xff] }
 0x4ec   : > { %v5217_v48 = vpop.f32.mrf.mxu3 }
 0x4ed   : > { %12053 = vmatmul.msk.f32.gmra.mxu0 %vm336_vm1, %v5355_v54  ;;  %v4937_v31 = vpop.f32.mrf.mxu2  ;;  %v5080_v54 = vld [vmem:[#allocation4 + $0xfc] sm:$0xff] }
 0x4ee   : > { %v5029_v38 = vadd.f32 %v4937_v31, %v4752_v56  ;;  %v5769_v1 = vpop.f32.mrf.mxu1  ;;  %v5633_v56 = vld [vmem:[#allocation4 + $0xf9] sm:$0xff] }
 0x4ef   : > { %v4802_v31 = vld [vmem:[#allocation4 + $0xf3] sm:$0xff] }
 0x4f0   : > { %v5306_v14 = vadd.f32 %v5214_v5, %v5029_v38  ;;  %v14868_v5 = vadd.f32 %v5766_v6, %v5583_v13  ;;  %v5357_v38 = vld [vmem:[#allocation4 + $0x108] sm:$0xff] }
 0x4f1   : > { %12022 = vmatmul.msk.f32.gmra.mxu3 %vm336_vm1, %v5079_v39  ;;  %12086 = vmatmul.msk.f32.gmra.mxu1 %vm336_vm1, %v5632_v28  ;;  %v5081_v28 = vld [vmem:[#allocation4 + $0x10c] sm:$0xff] }
 0x4f2   : > { %v5495_v61 = vpop.f32.mrf.mxu0  ;;  %11988 = vmatmul.msk.f32.gmra.mxu2 %vm336_vm1, %v4801_v53  ;;  %v5584_v33 = vadd.f32 %v5492_v11, %v5306_v14  ;;  %v4425_v14 = vadd.f32 %v14470_v4, %v14461_v7  ;;  %v5634_v53 = vld [vmem:[#allocation4 + $0x109] sm:$0xff] }
 0x4f4   : > { %v5220_v51 = vpop.f32.mrf.mxu3 }
 0x4f5   : > { %12054 = vmatmul.msk.f32.gmra.mxu0 %vm336_vm1, %v5356_v26  ;;  %v4940_v15 = vpop.f32.mrf.mxu2  ;;  %v4803_v26 = vld [vmem:[#allocation4 + $0xfb] sm:$0xff] }
 0x4f6   : > { %v5030_v62 = vadd.f32 %v4940_v15, %v4753_v8  ;;  %v5772_v32 = vpop.f32.mrf.mxu1  ;;  %v5358_v8 = vld [vmem:[#allocation4 + $0x110] sm:$0xff]  ;;  %v4755_v15 = vadd.f32 %v14479_v20, %v4425_v14  ;;  %v5083_v14 = vld [vmem:[#allocation4 + $0x124] sm:$0xff] }
 0x4f8   : > { %v5307_v42 = vadd.f32 %v5217_v48, %v5030_v62  ;;  %v14877_v48 = vadd.f32 %v5769_v1, %v5584_v33 }
 0x4f9   : > { %12023 = vmatmul.msk.f32.gmra.mxu3 %vm336_vm1, %v5080_v54  ;;  %12087 = vmatmul.msk.f32.gmra.mxu1 %vm336_vm1, %v5633_v56  ;;  %v14888_v54 = vld [vmem:[#allocation4 + $0x10b] sm:$0xff] }
 0x4fa   : > { %v5498_v2 = vpop.f32.mrf.mxu0  ;;  %11989 = vmatmul.msk.f32.gmra.mxu2 %vm336_vm1, %v4802_v31  ;;  %v5585_v11 = vadd.f32 %v5495_v61, %v5307_v42  ;;  %v5635_v42 = vld [vmem:[#allocation4 + $0x111] sm:$0xff] }
 0x4fc   : > { %v5223_v6 = vpop.f32.mrf.mxu3  ;;  %v14892_v20 = vadd.f32 %v5772_v32, %v5585_v11  ;;  %v5636_v32 = vld [vmem:[#allocation4 + $0x121] sm:$0xff]  ;;  %v14900_v11 = vld [vmem:[#allocation4 + $0x113] sm:$0xff] }
 0x4fd   : > { %12055 = vmatmul.msk.f32.gmra.mxu0 %vm336_vm1, %v5357_v38  ;;  %v4943_v13 = vpop.f32.mrf.mxu2 }
 0x4fe   : > { %v5031_v47 = vadd.f32 %v4943_v13, %v4754_v30  ;;  %v5775_v57 = vpop.f32.mrf.mxu1  ;;  %v4431_v13 = vadd.f32 %v14498_v18, %v14489_v25 }
 0x500   : > { %v5308_v39 = vadd.f32 %v5220_v51, %v5031_v47  ;;  %v4428_v51 = vadd.f32 %v14484_v24, %v14475_v36 }
 0x501   : > { %12024 = vmatmul.msk.f32.gmra.mxu3 %vm336_vm1, %v5081_v28  ;;  %12088 = vmatmul.msk.f32.gmra.mxu1 %vm336_vm1, %v5634_v53  ;;  %v5360_v53 = vld [vmem:[#allocation4 + $0x128] sm:$0xff] }
 0x502   : > { %v5501_v16 = vpop.f32.mrf.mxu0  ;;  %11990 = vmatmul.msk.f32.gmra.mxu2 %vm336_vm1, %v4803_v26  ;;  %v5586_v61 = vadd.f32 %v5498_v2, %v5308_v39  ;;  %v5359_v2 = vld [vmem:[#allocation4 + $0x120] sm:$0xff]  ;;  %v4756_v38 = vadd.f32 %v14493_v45, %v4428_v51  ;;  %v4757_v26 = vadd.f32 %v14507_v60, %v4431_v13 }
 0x504   : > { %v5226_v1 = vpop.f32.mrf.mxu3  ;;  %v14904_v45 = vadd.f32 %v5775_v57, %v5586_v61  ;;  %v5637_v57 = vld [vmem:[#allocation4 + $0x129] sm:$0xff] }
 0x505   : > { %12056 = vmatmul.msk.f32.gmra.mxu0 %vm336_vm1, %v5358_v8  ;;  %v4946_v33 = vpop.f32.mrf.mxu2  ;;  %v14912_v61 = vld [vmem:[#allocation4 + $0x123] sm:$0xff] }
 0x506   : > { %v5032_v7 = vadd.f32 %v4946_v33, %v4755_v15  ;;  %v5778_v4 = vpop.f32.mrf.mxu1  ;;  %v4434_v15 = vadd.f32 %v14512_v34, %v14503_v55  ;;  %v5084_v33 = vld [vmem:[#allocation4 + $0x12c] sm:$0xff] }
 0x508   : > { %v5309_v62 = vadd.f32 %v5223_v6, %v5032_v7 }
 0x509   : > { %12025 = vmatmul.msk.f32.gmra.mxu3 %vm336_vm1, %v5082_v44  ;;  %12089 = vmatmul.msk.f32.gmra.mxu1 %vm336_vm1, %v5635_v42  ;;  %v4758_v44 = vadd.f32 %v14521_v52, %v4434_v15  ;;  %v5086_v15 = vld [vmem:[#allocation4 + $0x144] sm:$0xff] }
 0x50a   : > { %v5504_v56 = vpop.f32.mrf.mxu0  ;;  %11991 = vmatmul.msk.f32.gmra.mxu2 %vm336_vm1, %v14888_v54  ;;  %v5587_v31 = vadd.f32 %v5501_v16, %v5309_v62  ;;  %v5361_v62 = vld [vmem:[#allocation4 + $0x138] sm:$0xff] }
 0x50c   : > { %v5229_v36 = vpop.f32.mrf.mxu3  ;;  %v14916_v60 = vadd.f32 %v5778_v4, %v5587_v31  ;;  %v5638_v4 = vld [vmem:[#allocation4 + $0x139] sm:$0xff]  ;;  %v14924_v31 = vld [vmem:[#allocation4 + $0x12b] sm:$0xff] }
 0x50d   : > { %12057 = vmatmul.msk.f32.gmra.mxu0 %vm336_vm1, %v5359_v2  ;;  %v4949_v24 = vpop.f32.mrf.mxu2  ;;  %v18504_v2 = vld [vmem:[#allocation40_spill] sm:$0xff] }
 0x50e   : > { %v5033_v30 = vadd.f32 %v4949_v24, %v4756_v38  ;;  %v5781_v6 = vpop.f32.mrf.mxu1  ;;  %v4437_v38 = vadd.f32 %v18504_v2, %v14517_v50  ;;  %v5085_v24 = vld [vmem:[#allocation4 + $0x13c] sm:$0xff] }
 0x50f   : > { %v18508_v2 = vld [vmem:[#allocation44_spill] sm:$0xff] }
 0x510   : > { %v5310_v47 = vadd.f32 %v5226_v1, %v5033_v30 }
 0x511   : > { %12026 = vmatmul.msk.f32.gmra.mxu3 %vm336_vm1, %v5083_v14  ;;  %12090 = vmatmul.msk.f32.gmra.mxu1 %vm336_vm1, %v5636_v32  ;;  %v4759_v14 = vadd.f32 %v14534_v29, %v4437_v38 }
 0x512   : > { %v5507_v39 = vpop.f32.mrf.mxu0  ;;  %11992 = vmatmul.msk.f32.gmra.mxu2 %vm336_vm1, %v14900_v11  ;;  %v5588_v28 = vadd.f32 %v5504_v56, %v5310_v47  ;;  %v5362_v47 = vld [vmem:[#allocation4 + $0x140] sm:$0xff] }
 0x514   : > { %v5232_v25 = vpop.f32.mrf.mxu3  ;;  %v14928_v52 = vadd.f32 %v5781_v6, %v5588_v28  ;;  %v5639_v6 = vld [vmem:[#allocation4 + $0x141] sm:$0xff] }
 0x515   : > { %12058 = vmatmul.msk.f32.gmra.mxu0 %vm336_vm1, %v5360_v53  ;;  %v4952_v18 = vpop.f32.mrf.mxu2  ;;  %v14936_v28 = vld [vmem:[#allocation4 + $0x13b] sm:$0xff] }
 0x516   : > { %v5034_v16 = vadd.f32 %v4952_v18, %v4757_v26  ;;  %v5784_v8 = vpop.f32.mrf.mxu1  ;;  %v18505_v26 = vld [vmem:[#allocation41_spill] sm:$0xff] }
 0x518   : > { %v5311_v1 = vadd.f32 %v5229_v36, %v5034_v16 }
 0x519   : > { %12027 = vmatmul.msk.f32.gmra.mxu3 %vm336_vm1, %v5084_v33  ;;  %12091 = vmatmul.msk.f32.gmra.mxu1 %vm336_vm1, %v5637_v57  ;;  %v5363_v57 = vld [vmem:[#allocation4 + $0x150] sm:$0xff] }
 0x51a   : > { %v5510_v7 = vpop.f32.mrf.mxu0  ;;  %11993 = vmatmul.msk.f32.gmra.mxu2 %vm336_vm1, %v14912_v61  ;;  %v5589_v51 = vadd.f32 %v5507_v39, %v5311_v1 }
 0x51c   : > { %v5235_v55 = vpop.f32.mrf.mxu3  ;;  %v14940_v29 = vadd.f32 %v5784_v8, %v5589_v51  ;;  %v5640_v8 = vld [vmem:[#allocation4 + $0x151] sm:$0xff]  ;;  %v14948_v51 = vld [vmem:[#allocation4 + $0x143] sm:$0xff] }
 0x51d   : > { %12059 = vmatmul.msk.f32.gmra.mxu0 %vm336_vm1, %v5361_v62  ;;  %v4955_v34 = vpop.f32.mrf.mxu2 }
 0x51e   : > { %v5035_v42 = vadd.f32 %v4955_v34, %v4758_v44  ;;  %v5787_v56 = vpop.f32.mrf.mxu1 }
 0x520   : > { %v5312_v36 = vadd.f32 %v5232_v25, %v5035_v42  ;;  %v18506_v25 = vld [vmem:[#allocation42_spill] sm:$0xff]  ;;  %v18507_v42 = vld [vmem:[#allocation43_spill] sm:$0xff] }
 0x521   : > { %12028 = vmatmul.msk.f32.gmra.mxu3 %vm336_vm1, %v5085_v24  ;;  %12092 = vmatmul.msk.f32.gmra.mxu1 %vm336_vm1, %v5638_v4  ;;  %v4440_v18 = vadd.f32 %v18506_v25, %v18505_v26  ;;  %v4443_v38 = vadd.f32 %v18508_v2, %v18507_v42  ;;  %v5087_v24 = vld [vmem:[#allocation4 + $0x154] sm:$0xff]  ;;  %v18509_v25 = vld [vmem:[#allocation45_spill] sm:$0xff] }
 0x522   : > { %v5513_v30 = vpop.f32.mrf.mxu0  ;;  %11994 = vmatmul.msk.f32.gmra.mxu2 %vm336_vm1, %v14924_v31  ;;  %v5590_v13 = vadd.f32 %v5510_v7, %v5312_v36 }
 0x523   : > { %v4760_v7 = vadd.f32 %v14547_v35, %v4440_v18  ;;  %v4446_v18 = vadd.f32 %v18509_v25, %v14556_v0  ;;  %v7031_v0 = vld [vmem:[%s18224_s6 + $0x2c] sm:$0xf] }
 0x524   : > { %v5238_v50 = vpop.f32.mrf.mxu3  ;;  %v14952_v35 = vadd.f32 %v5787_v56, %v5590_v13  ;;  %v5641_v56 = vld [vmem:[#allocation4 + $0x159] sm:$0xff]  ;;  %12232 = vmatpush.msk.msrb.mxu2 %vm757_vm0, %v7031_v0 }
 0x525   : > { %12060 = vmatmul.msk.f32.gmra.mxu0 %vm336_vm1, %v5362_v47  ;;  %v4958_v32 = vpop.f32.mrf.mxu2  ;;  %v5364_v47 = vld [vmem:[#allocation4 + $0x158] sm:$0xff] }
 0x526   : > { %v5036_v39 = vadd.f32 %v4958_v32, %v4759_v14  ;;  %v5790_v53 = vpop.f32.mrf.mxu1  ;;  %v4761_v14 = vadd.f32 %v14560_v12, %v4443_v38  ;;  %v14960_v13 = vld [vmem:[#allocation4 + $0x153] sm:$0xff] }
 0x527   : > { %v18511_v38 = vld [vmem:[#allocation46_spill] sm:$0xff] }
 0x528   : > { %v5313_v16 = vadd.f32 %v5235_v55, %v5036_v39 }
 0x529   : > { %12029 = vmatmul.msk.f32.gmra.mxu3 %vm336_vm1, %v5086_v15  ;;  %12093 = vmatmul.msk.f32.gmra.mxu1 %vm336_vm1, %v5639_v6  ;;  %v5088_v15 = vld [vmem:[#allocation4 + $0x15c] sm:$0xff] }
 0x52a   : > { %v5516_v1 = vpop.f32.mrf.mxu0  ;;  %11995 = vmatmul.msk.f32.gmra.mxu2 %vm336_vm1, %v14936_v28  ;;  %v5591_v33 = vadd.f32 %v5513_v30, %v5313_v16 }
 0x52c   : > { %v5241_v62 = vpop.f32.mrf.mxu3  ;;  %v14964_v12 = vadd.f32 %v5790_v53, %v5591_v33  ;;  %v18510_v53 = vld [vmem:[#allocation47_spill] sm:$0xff] }
 0x52d   : > { %12061 = vmatmul.msk.f32.gmra.mxu0 %vm336_vm1, %v5363_v57  ;;  %v4961_v44 = vpop.f32.mrf.mxu2  ;;  %v6477_v57 = vld [vmem:[%s18224_s6 + $0x24] sm:$0xf]  ;;  %v4762_v33 = vadd.f32 %v18510_v53, %v4446_v18 }
 0x52e   : > { %v5037_v55 = vadd.f32 %v4961_v44, %v4760_v7  ;;  %v5793_v34 = vpop.f32.mrf.mxu1  ;;  %v7308_v7 = vld [vmem:[%s18224_s6 + $0x30] sm:$0xf]  ;;  %12166 = vmatpush.msk.msrb.mxu0 %vm757_vm0, %v6477_v57 }
 0x52f   : > { %12265 = vmatpush.msk.msrb.mxu3 %vm757_vm0, %v7308_v7  ;;  %v18513_v7 = vld [vmem:[#allocation49_spill] sm:$0xff] }
 0x530   : > { %v5314_v36 = vadd.f32 %v5238_v50, %v5037_v55 }
 0x531   : > { %12030 = vmatmul.msk.f32.gmra.mxu3 %vm336_vm1, %v5087_v24  ;;  %12094 = vmatmul.msk.f32.gmra.mxu1 %vm336_vm1, %v5640_v8 }
 0x532   : > { %v5519_v4 = vpop.f32.mrf.mxu0  ;;  %11996 = vmatmul.msk.f32.gmra.mxu2 %vm336_vm1, %v14948_v51  ;;  %v5592_v30 = vadd.f32 %v5516_v1, %v5314_v36  ;;  %v18512_v36 = vld [vmem:[#allocation48_spill] sm:$0xff] }
 0x533   : > { %v4449_v24 = vadd.f32 %v18512_v36, %v18511_v38  ;;  %v15014_v36 = vld [vmem:[#allocation4 + $0x180] sm:$0xff] }
 0x534   : > { %v5244_v32 = vpop.f32.mrf.mxu3  ;;  %v14994_v25 = vadd.f32 %v5793_v34, %v5592_v30  ;;  %v18514_v34 = vld [vmem:[#allocation50_spill] sm:$0xff]  ;;  %18515 = vst [vmem:[#allocation40_spill] sm:$0xff] %v15014_v36 }
 0x535   : > { %12062 = vmatmul.msk.f32.gmra.mxu0 %vm336_vm1, %v5364_v47  ;;  %v4964_v50 = vpop.f32.mrf.mxu2  ;;  %v5642_v47 = vld [vmem:[#allocation4 + $0x169] sm:$0xff]  ;;  %v4452_v30 = vadd.f32 %v18514_v34, %v18513_v7  ;;  %v15021_v7 = vld [vmem:[#allocation4 + $0x173] sm:$0xff] }
 0x536   : > { %v5038_v39 = vadd.f32 %v4964_v50, %v4761_v14  ;;  %v5796_v26 = vpop.f32.mrf.mxu1  ;;  %v6754_v14 = vld [vmem:[%s18224_s6 + $0x28] sm:$0xf]  ;;  %v14990_v50 = vld [vmem:[#allocation4 + $0x15b] sm:$0xff] }
 0x537   : > { %12199 = vmatpush.msk.msrb.mxu1 %vm757_vm0, %v6754_v14  ;;  %v6168_v14 = vld [vmem:[#allocation4 + $0x1b] sm:$0xff] }
 0x538   : > { %v5315_v16 = vadd.f32 %v5241_v62, %v5038_v39  ;;  %v14977_v62 = vld [vmem:[#allocation4 + $0x168] sm:$0xff] }
 0x539   : > { %12031 = vmatmul.msk.f32.gmra.mxu3 %vm336_vm1, %v5088_v15  ;;  %12095 = vmatmul.msk.f32.gmra.mxu1 %vm336_vm1, %v5641_v56 }
 0x53a   : > { %v5522_v6 = vpop.f32.mrf.mxu0  ;;  %11997 = vmatmul.msk.f32.gmra.mxu2 %vm336_vm1, %v14960_v13  ;;  %v5593_v1 = vadd.f32 %v5519_v4, %v5315_v16  ;;  %v5089_v4 = vld [vmem:[#allocation4 + $0x16c] sm:$0xff]  ;;  %v4763_v16 = vadd.f32 %v14602_v9, %v4449_v24  ;;  %v4764_v24 = vadd.f32 %v14615_v59, %v4452_v30 }
 0x53b   : > { %v15029_v30 = vld [vmem:[#allocation4 + $0x188] sm:$0xff] }
 0x53c   : > { %v5247_v44 = vpop.f32.mrf.mxu3  ;;  %18519 = vst [vmem:[#allocation42_spill] sm:$0xff] %v15029_v30 }
 0x53d   : > { %12063 = vmatmul.msk.f32.gmra.mxu0 %vm336_vm1, %v14977_v62  ;;  %v4967_v55 = vpop.f32.mrf.mxu2 }
 0x53e   : > { %v5039_v42 = vadd.f32 %v4967_v55, %v4762_v33  ;;  %v5799_v2 = vpop.f32.mrf.mxu1  ;;  %v5090_v33 = vld [vmem:[#allocation4 + $0x174] sm:$0xff] }
 0x53f   : > { %v5643_v55 = vld [vmem:[#allocation4 + $0x171] sm:$0xff] }
 0x540   : > { %v5316_v8 = vadd.f32 %v5244_v32, %v5039_v42  ;;  %v14999_v32 = vld [vmem:[#allocation4 + $0x170] sm:$0xff]  ;;  %v15010_v42 = vadd.f32 %v5796_v26, %v5593_v1 }
 0x541   : > { %12032 = vmatmul.msk.f32.gmra.mxu3 %vm336_vm1, %v5089_v4  ;;  %12096 = vmatmul.msk.f32.gmra.mxu1 %vm336_vm1, %v5642_v47 }
 0x542   : > { %v5525_v39 = vpop.f32.mrf.mxu0  ;;  %11998 = vmatmul.msk.f32.gmra.mxu2 %vm336_vm1, %v14990_v50  ;;  %v5594_v18 = vadd.f32 %v5522_v6, %v5316_v8  ;;  %v15006_v6 = vld [vmem:[#allocation4 + $0x16b] sm:$0xff] }
 0x544   : > { %v5250_v15 = vpop.f32.mrf.mxu3 }
 0x545   : > { %12064 = vmatmul.msk.f32.gmra.mxu0 %vm336_vm1, %v14999_v32  ;;  %v4970_v56 = vpop.f32.mrf.mxu2 }
 0x546   : > { %v5040_v0 = vadd.f32 %v4970_v56, %v4763_v16  ;;  %v5802_v57 = vpop.f32.mrf.mxu1  ;;  %v18516_v16 = vld [vmem:[#allocation51_spill] sm:$0xff]  ;;  %v18517_v56 = vld [vmem:[#allocation52_spill] sm:$0xff] }
 0x547   : > { %v4455_v26 = vadd.f32 %v18517_v56, %v18516_v16  ;;  %v5645_v56 = vld [vmem:[#allocation4 + $0x189] sm:$0xff] }
 0x548   : > { %v5317_v53 = vadd.f32 %v5247_v44, %v5040_v0  ;;  %v5644_v0 = vld [vmem:[#allocation4 + $0x181] sm:$0xff] }
 0x549   : > { %12033 = vmatmul.msk.f32.gmra.mxu3 %vm336_vm1, %v5090_v33  ;;  %12097 = vmatmul.msk.f32.gmra.mxu1 %vm336_vm1, %v5643_v55 }
 0x54a   : > { %v5528_v9 = vpop.f32.mrf.mxu0  ;;  %11999 = vmatmul.msk.f32.gmra.mxu2 %vm336_vm1, %v15006_v6  ;;  %v5595_v38 = vadd.f32 %v5525_v39, %v5317_v53  ;;  %v15025_v39 = vadd.f32 %v5799_v2, %v5594_v18  ;;  %v4765_v53 = vadd.f32 %v14628_v19, %v4455_v26  ;;  %v18521_v2 = vld [vmem:[#allocation54_spill] sm:$0xff]  ;;  %v6445_v19 = vld [vmem:[#allocation4 + $0x1c] sm:$0xff] }
 0x54c   : > { %v5253_v44 = vpop.f32.mrf.mxu3  ;;  %18518 = vst [vmem:[#allocation41_spill] sm:$0xff] %v15025_v39  ;;  %v15038_v26 = vadd.f32 %v5802_v57, %v5595_v38  ;;  %v6722_v39 = vld [vmem:[#allocation4 + $0x30] sm:$0xff]  ;;  %v6446_v38 = vld [vmem:[#allocation4 + $0x24] sm:$0xff] }
 0x54d   : > { %12065 = vmatmul.msk.f32.gmra.mxu0 %vm336_vm1, %v15014_v36  ;;  %v4973_v8 = vpop.f32.mrf.mxu2  ;;  %v6170_v36 = vld [vmem:[#allocation4 + $0x33] sm:$0xff] }
 0x54e   : > { %v5041_v4 = vadd.f32 %v4973_v8, %v4764_v24  ;;  %v5805_v47 = vpop.f32.mrf.mxu1  ;;  %v6169_v8 = vld [vmem:[#allocation4 + $0x23] sm:$0xff] }
 0x550   : > { %v5318_v1 = vadd.f32 %v5250_v15, %v5041_v4  ;;  %v5891_v4 = vld [vmem:[#allocation4 + $0x1a] sm:$0xff] }
 0x551   : > { %12098 = vmatmul.msk.f32.gmra.mxu1 %vm336_vm1, %v5644_v0  ;;  %12134 = vmatmul.msk.f32.vlgmr.msra.gmra.mxu3 %vm336_vm1, %v6168_v14  ;;  %v18520_v14 = vld [vmem:[#allocation53_spill] sm:$0xff] }
 0x552   : > { %v5531_v59 = vpop.f32.mrf.mxu0  ;;  %12000 = vmatmul.msk.f32.gmra.mxu2 %vm336_vm1, %v15021_v7  ;;  %v5596_v34 = vadd.f32 %v5528_v9, %v5318_v1  ;;  %v4458_v18 = vadd.f32 %v18521_v2, %v18520_v14  ;;  %v18522_v2 = vld [vmem:[#allocation55_spill] sm:$0xff] }
 0x554   : > { %v5256_v33 = vpop.f32.mrf.mxu3  ;;  %v4766_v0 = vadd.f32 %v14641_v40, %v4458_v18  ;;  %v15047_v40 = vadd.f32 %v5805_v47, %v5596_v34  ;;  %v15056_v47 = vld [vmem:[#allocation4 + $0x32] sm:$0xff] }
 0x555   : > { %12066 = vmatmul.msk.f32.gmra.mxu0 %vm336_vm1, %v15029_v30  ;;  %v4976_v15 = vpop.f32.mrf.mxu2 }
 0x556   : > { %v5042_v55 = vadd.f32 %v4976_v15, %v4765_v53  ;;  %v5808_v24 = vpop.f32.mrf.mxu1 }
 0x558   : > { %v5319_v16 = vadd.f32 %v5253_v44, %v5042_v55  ;;  %v5892_v55 = vld [vmem:[#allocation4 + $0x22] sm:$0xff] }
 0x559   : > { %12099 = vmatmul.msk.f32.gmra.mxu1 %vm336_vm1, %v5645_v56  ;;  %12135 = vmatmul.msk.f32.gmra.mxu3 %vm336_vm1, %v6169_v8  ;;  %v18523_v56 = vld [vmem:[#allocation56_spill] sm:$0xff] }
 0x55a   : > { %v5534_v9 = vpop.f32.mrf.mxu0  ;;  %12101 = vmatmul.msk.f32.vlgmr.msra.gmra.mxu2 %vm336_vm1, %v5891_v4  ;;  %v5597_v1 = vadd.f32 %v5531_v59, %v5319_v16  ;;  %v4461_v30 = vadd.f32 %v18523_v56, %v18522_v2  ;;  %v6723_v2 = vld [vmem:[#allocation4 + $0x38] sm:$0xff] }
 0x55c   : > { %v5259_v53 = vpop.f32.mrf.mxu3  ;;  %v4767_v4 = vadd.f32 %v14654_v58, %v4461_v30  ;;  %v15060_v34 = vadd.f32 %v5808_v24, %v5597_v1 }
 0x55d   : > { %12167 = vmatmul.msk.f32.vlgmr.msrb.gmra.mxu0 %vm336_vm1, %v6445_v19  ;;  %v4979_v15 = vpop.f32.mrf.mxu2 }
 0x55e   : > { %v5043_v14 = vadd.f32 %v4979_v15, %v4766_v0  ;;  %v5811_v44 = vpop.f32.mrf.mxu1  ;;  %v18524_v0 = vld [vmem:[#allocation57_spill] sm:$0xff] }
 0x560   : > { %v5320_v8 = vadd.f32 %v5256_v33, %v5043_v14  ;;  %v6171_v14 = vld [vmem:[#allocation4 + $0x3b] sm:$0xff] }
 0x561   : > { %12136 = vmatmul.msk.f32.gmra.mxu3 %vm336_vm1, %v6170_v36  ;;  %12200 = vmatmul.msk.f32.vlgmr.msrb.gmra.mxu1 %vm336_vm1, %v6722_v39  ;;  %v18525_v36 = vld [vmem:[#allocation58_spill] sm:$0xff] }
 0x562   : > { %v5537_v57 = vpop.f32.mrf.mxu0  ;;  %12102 = vmatmul.msk.f32.gmra.mxu2 %vm336_vm1, %v5892_v55  ;;  %v5598_v59 = vadd.f32 %v5534_v9, %v5320_v8  ;;  %v4464_v15 = vadd.f32 %v18525_v36, %v18524_v0  ;;  %v15064_v9 = vld [vmem:[#allocation4 + $0x34] sm:$0xff]  ;;  %v6724_v0 = vld [vmem:[#allocation4 + $0x48] sm:$0xff] }
 0x563   : > { %18526 = vst [vmem:[#allocation43_spill] sm:$0xff] %v15064_v9  ;;  %v15073_v36 = vld [vmem:[#allocation4 + $0x3a] sm:$0xff] }
 0x564   : > { %v5262_v18 = vpop.f32.mrf.mxu3  ;;  %v4768_v55 = vadd.f32 %v14667_v10, %v4464_v15 }
 0x565   : > { %12168 = vmatmul.msk.f32.gmra.mxu0 %vm336_vm1, %v6446_v38  ;;  %v4982_v16 = vpop.f32.mrf.mxu2 }
 0x566   : > { %v5044_v33 = vadd.f32 %v4982_v16, %v4767_v4  ;;  %v15052_v19 = vpop.f32.mrf.mxu1  ;;  %v18527_v4 = vld [vmem:[#allocation59_spill] sm:$0xff]  ;;  %v18528_v16 = vld [vmem:[#allocation60_spill] sm:$0xff] }
 0x567   : > { %v4467_v24 = vadd.f32 %v18528_v16, %v18527_v4  ;;  %v18531_v4 = vld [vmem:[#allocation62_spill] sm:$0xff] }
 0x568   : > { %v5321_v39 = vadd.f32 %v5259_v53, %v5044_v33  ;;  %v6172_v33 = vld [vmem:[#allocation4 + $0x4b] sm:$0xff]  ;;  %v6173_v16 = vld [vmem:[#allocation4 + $0x53] sm:$0xff] }
 0x569   : > { %12137 = vmatmul.msk.f32.gmra.mxu3 %vm336_vm1, %v6171_v14  ;;  %12201 = vmatmul.msk.f32.gmra.mxu1 %vm336_vm1, %v6723_v2  ;;  %v4769_v14 = vadd.f32 %v14680_v41, %v4467_v24  ;;  %v15096_v24 = vld [vmem:[#allocation4 + $0x4c] sm:$0xff] }
 0x56a   : > { %v5540_v58 = vpop.f32.mrf.mxu0  ;;  %12103 = vmatmul.msk.f32.gmra.mxu2 %vm336_vm1, %v15056_v47  ;;  %v5599_v30 = vadd.f32 %v5537_v57, %v5321_v39  ;;  %v15077_v57 = vadd.f32 %v5811_v44, %v5598_v59  ;;  %v15081_v39 = vld [vmem:[#allocation4 + $0x3c] sm:$0xff]  ;;  %18533 = vst [vmem:[#allocation47_spill] sm:$0xff] %v15096_v24 }
 0x56b   : > { %18529 = vst [vmem:[#allocation44_spill] sm:$0xff] %v15081_v39 }
 0x56c   : > { %v5265_v53 = vpop.f32.mrf.mxu3 }
 0x56d   : > { %12169 = vmatmul.msk.f32.gmra.mxu0 %vm336_vm1, %v15064_v9  ;;  %v4985_v56 = vpop.f32.mrf.mxu2  ;;  %v6726_v9 = vld [vmem:[#allocation4 + $0x60] sm:$0xff] }
 0x56e   : > { %v5045_v8 = vadd.f32 %v4985_v56, %v4768_v55  ;;  %v15069_v38 = vpop.f32.mrf.mxu1 }
 0x570   : > { %v5322_v1 = vadd.f32 %v5262_v18, %v5045_v8  ;;  %v18530_v8 = vld [vmem:[#allocation61_spill] sm:$0xff] }
 0x571   : > { %12138 = vmatmul.msk.f32.gmra.mxu3 %vm336_vm1, %v6172_v33  ;;  %12202 = vmatmul.msk.f32.gmra.mxu1 %vm336_vm1, %v6724_v0  ;;  %v4470_v44 = vadd.f32 %v18531_v4, %v18530_v8  ;;  %v6725_v33 = vld [vmem:[#allocation4 + $0x50] sm:$0xff]  ;;  %v18534_v8 = vld [vmem:[#allocation63_spill] sm:$0xff]  ;;  %v18535_v4 = vld [vmem:[#allocation64_spill] sm:$0xff] }
 0x572   : > { %v5543_v10 = vpop.f32.mrf.mxu0  ;;  %12104 = vmatmul.msk.f32.gmra.mxu2 %vm336_vm1, %v15073_v36  ;;  %v5600_v15 = vadd.f32 %v5540_v58, %v5322_v1  ;;  %v15090_v0 = vld [vmem:[#allocation4 + $0x4a] sm:$0xff] }
 0x573   : > { %18532 = vst [vmem:[#allocation45_spill] sm:$0xff] %v15090_v0  ;;  %v4770_v1 = vadd.f32 %v14693_v43, %v4470_v44  ;;  %v15111_v44 = vld [vmem:[#allocation4 + $0x54] sm:$0xff] }
 0x574   : > { %v5268_v18 = vpop.f32.mrf.mxu3  ;;  %18537 = vst [vmem:[#allocation48_spill] sm:$0xff] %v15111_v44 }
 0x575   : > { %12170 = vmatmul.msk.f32.gmra.mxu0 %vm336_vm1, %v15081_v39  ;;  %v4988_v2 = vpop.f32.mrf.mxu2  ;;  %v6174_v39 = vld [vmem:[#allocation4 + $0x63] sm:$0xff] }
 0x576   : > { %v5046_v55 = vadd.f32 %v4988_v2, %v4769_v14  ;;  %v15086_v56 = vpop.f32.mrf.mxu1 }
 0x578   : > { %v5323_v59 = vadd.f32 %v5265_v53, %v5046_v55 }
 0x579   : > { %12139 = vmatmul.msk.f32.gmra.mxu3 %vm336_vm1, %v6173_v16  ;;  %12203 = vmatmul.msk.f32.gmra.mxu1 %vm336_vm1, %v6725_v33  ;;  %v4473_v16 = vadd.f32 %v18535_v4, %v18534_v8  ;;  %v18539_v8 = vld [vmem:[#allocation66_spill] sm:$0xff] }
 0x57a   : > { %v5546_v41 = vpop.f32.mrf.mxu0  ;;  %12105 = vmatmul.msk.f32.gmra.mxu2 %vm336_vm1, %v15090_v0  ;;  %v5601_v58 = vadd.f32 %v5543_v10, %v5323_v59  ;;  %v15105_v0 = vld [vmem:[#allocation4 + $0x52] sm:$0xff] }
 0x57b   : > { %18536 = vst [vmem:[#allocation46_spill] sm:$0xff] %v15105_v0  ;;  %v4771_v59 = vadd.f32 %v14706_v49, %v4473_v16 }
 0x57c   : > { %v5271_v14 = vpop.f32.mrf.mxu3 }
 0x57d   : > { %12171 = vmatmul.msk.f32.gmra.mxu0 %vm336_vm1, %v15096_v24  ;;  %v4991_v53 = vpop.f32.mrf.mxu2 }
 0x57e   : > { %v5047_v2 = vadd.f32 %v4991_v53, %v4770_v1  ;;  %v15101_v55 = vpop.f32.mrf.mxu1 }
 0x580   : > { %v5324_v33 = vadd.f32 %v5268_v18, %v5047_v2  ;;  %v15117_v18 = vadd.f32 %v15052_v19, %v5599_v30  ;;  %v15131_v30 = vld [vmem:[#allocation4 + $0x64] sm:$0xff] }
 0x581   : > { %12140 = vmatmul.msk.f32.gmra.mxu3 %vm336_vm1, %v6174_v39  ;;  %12204 = vmatmul.msk.f32.gmra.mxu1 %vm336_vm1, %v6726_v9  ;;  %v18538_v9 = vld [vmem:[#allocation65_spill] sm:$0xff]  ;;  %18541 = vst [vmem:[#allocation50_spill] sm:$0xff] %v15131_v30 }
 0x582   : > { %v5549_v43 = vpop.f32.mrf.mxu0  ;;  %12106 = vmatmul.msk.f32.gmra.mxu2 %vm336_vm1, %v15105_v0  ;;  %v5602_v10 = vadd.f32 %v5546_v41, %v5324_v33  ;;  %v4476_v4 = vadd.f32 %v18539_v8, %v18538_v9  ;;  %v6175_v41 = vld [vmem:[#allocation4 + $0x6b] sm:$0xff]  ;;  %v15123_v0 = vld [vmem:[#allocation4 + $0x62] sm:$0xff]  ;;  %v18543_v8 = vld [vmem:[#allocation67_spill] sm:$0xff] }
 0x583   : > { %v6727_v33 = vld [vmem:[#allocation4 + $0x68] sm:$0xff]  ;;  %18540 = vst [vmem:[#allocation49_spill] sm:$0xff] %v15123_v0 }
 0x584   : > { %v5274_v1 = vpop.f32.mrf.mxu3  ;;  %v4772_v16 = vadd.f32 %v14719_v21, %v4476_v4 }
 0x585   : > { %12172 = vmatmul.msk.f32.gmra.mxu0 %vm336_vm1, %v15111_v44  ;;  %v4994_v53 = vpop.f32.mrf.mxu2  ;;  %v6728_v44 = vld [vmem:[#allocation4 + $0x78] sm:$0xff] }
 0x586   : > { %v5048_v39 = vadd.f32 %v4994_v53, %v4771_v59  ;;  %v15119_v2 = vpop.f32.mrf.mxu1 }
 0x588   : > { %v5325_v24 = vadd.f32 %v5271_v14, %v5048_v39  ;;  %v15137_v14 = vadd.f32 %v15069_v38, %v5600_v15  ;;  %v15151_v15 = vld [vmem:[#allocation4 + $0x6c] sm:$0xff] }
 0x589   : > { %12141 = vmatmul.msk.f32.gmra.mxu3 %vm336_vm1, %v6175_v41  ;;  %12205 = vmatmul.msk.f32.gmra.mxu1 %vm336_vm1, %v6727_v33  ;;  %v18544_v41 = vld [vmem:[#allocation68_spill] sm:$0xff]  ;;  %18546 = vst [vmem:[#allocation53_spill] sm:$0xff] %v15151_v15 }
 0x58a   : > { %v5552_v49 = vpop.f32.mrf.mxu0  ;;  %12107 = vmatmul.msk.f32.gmra.mxu2 %vm336_vm1, %v15123_v0  ;;  %v15129_v19 = vadd.f32 %v5549_v43, %v5325_v24  ;;  %18542 = vst [vmem:[#allocation51_spill] sm:$0xff] %v15137_v14  ;;  %v4479_v33 = vadd.f32 %v18544_v41, %v18543_v8  ;;  %v6176_v43 = vld [vmem:[#allocation4 + $0x7b] sm:$0xff]  ;;  %v15143_v0 = vld [vmem:[#allocation4 + $0x6a] sm:$0xff]  ;;  %v15255_v14 = vld [vmem:[#allocation4 + $0xb2] sm:$0xff] }
 0x58b   : > { %18545 = vst [vmem:[#allocation52_spill] sm:$0xff] %v15143_v0  ;;  %v18548_v8 = vld [vmem:[#allocation69_spill] sm:$0xff]  ;;  %v18549_v41 = vld [vmem:[#allocation70_spill] sm:$0xff] }
 0x58c   : > { %v5277_v59 = vpop.f32.mrf.mxu3  ;;  %v4773_v4 = vadd.f32 %v14732_v17, %v4479_v33  ;;  %18571 = vst [vmem:[#allocation66_spill] sm:$0xff] %v15255_v14 }
 0x58d   : > { %12173 = vmatmul.msk.f32.gmra.mxu0 %vm336_vm1, %v15131_v30  ;;  %v4997_v53 = vpop.f32.mrf.mxu2  ;;  %v6729_v30 = vld [vmem:[#allocation4 + $0x80] sm:$0xff] }
 0x58e   : > { %v5049_v39 = vadd.f32 %v4997_v53, %v4772_v16  ;;  %v15139_v9 = vpop.f32.mrf.mxu1  ;;  %v15157_v53 = vadd.f32 %v15086_v56, %v5601_v58  ;;  %v15171_v58 = vld [vmem:[#allocation4 + $0x7c] sm:$0xff] }
 0x58f   : > { %18551 = vst [vmem:[#allocation56_spill] sm:$0xff] %v15171_v58 }
 0x590   : > { %v5326_v24 = vadd.f32 %v5274_v1, %v5049_v39  ;;  %18547 = vst [vmem:[#allocation54_spill] sm:$0xff] %v15157_v53  ;;  %v6181_v53 = vld [vmem:[#allocation4 + $0xb3] sm:$0xff] }
 0x591   : > { %12142 = vmatmul.msk.f32.gmra.mxu3 %vm336_vm1, %v6176_v43  ;;  %12206 = vmatmul.msk.f32.gmra.mxu1 %vm336_vm1, %v6728_v44  ;;  %v4482_v43 = vadd.f32 %v18549_v41, %v18548_v8  ;;  %v18553_v8 = vld [vmem:[#allocation71_spill] sm:$0xff]  ;;  %v18554_v41 = vld [vmem:[#allocation72_spill] sm:$0xff] }
 0x592   : > { %v5555_v21 = vpop.f32.mrf.mxu0  ;;  %12108 = vmatmul.msk.f32.gmra.mxu2 %vm336_vm1, %v15143_v0  ;;  %v15149_v38 = vadd.f32 %v5552_v49, %v5326_v24  ;;  %v6177_v24 = vld [vmem:[#allocation4 + $0x83] sm:$0xff]  ;;  %v15163_v0 = vld [vmem:[#allocation4 + $0x7a] sm:$0xff] }
 0x593   : > { %18550 = vst [vmem:[#allocation55_spill] sm:$0xff] %v15163_v0  ;;  %v4774_v33 = vadd.f32 %v14745_v27, %v4482_v43 }
 0x594   : > { %v5280_v16 = vpop.f32.mrf.mxu3 }
 0x595   : > { %12174 = vmatmul.msk.f32.gmra.mxu0 %vm336_vm1, %v15151_v15  ;;  %v5000_v1 = vpop.f32.mrf.mxu2  ;;  %v6730_v15 = vld [vmem:[#allocation4 + $0x90] sm:$0xff] }
 0x596   : > { %v5050_v39 = vadd.f32 %v5000_v1, %v4773_v4  ;;  %v15159_v44 = vpop.f32.mrf.mxu1  ;;  %v15177_v1 = vadd.f32 %v15101_v55, %v5602_v10  ;;  %v15191_v10 = vld [vmem:[#allocation4 + $0x84] sm:$0xff] }
 0x597   : > { %18556 = vst [vmem:[#allocation59_spill] sm:$0xff] %v15191_v10 }
 0x598   : > { %v5327_v49 = vadd.f32 %v5277_v59, %v5050_v39  ;;  %18552 = vst [vmem:[#allocation57_spill] sm:$0xff] %v15177_v1  ;;  %v6180_v1 = vld [vmem:[#allocation4 + $0xab] sm:$0xff] }
 0x599   : > { %12143 = vmatmul.msk.f32.gmra.mxu3 %vm336_vm1, %v6177_v24  ;;  %12207 = vmatmul.msk.f32.gmra.mxu1 %vm336_vm1, %v6729_v30  ;;  %v4485_v24 = vadd.f32 %v18554_v41, %v18553_v8  ;;  %v18557_v8 = vld [vmem:[#allocation73_spill] sm:$0xff] }
 0x59a   : > { %v5558_v17 = vpop.f32.mrf.mxu0  ;;  %12109 = vmatmul.msk.f32.gmra.mxu2 %vm336_vm1, %v15163_v0  ;;  %v15169_v56 = vadd.f32 %v5555_v21, %v5327_v49  ;;  %v6178_v49 = vld [vmem:[#allocation4 + $0x93] sm:$0xff]  ;;  %v15183_v0 = vld [vmem:[#allocation4 + $0x82] sm:$0xff] }
 0x59b   : > { %18555 = vst [vmem:[#allocation58_spill] sm:$0xff] %v15183_v0  ;;  %v4775_v43 = vadd.f32 %v14758_v46, %v4485_v24 }
 0x59c   : > { %v5283_v4 = vpop.f32.mrf.mxu3 }
 0x59d   : > { %12175 = vmatmul.msk.f32.gmra.mxu0 %vm336_vm1, %v15171_v58  ;;  %v5003_v59 = vpop.f32.mrf.mxu2  ;;  %v6179_v58 = vld [vmem:[#allocation4 + $0x9b] sm:$0xff] }
 0x59e   : > { %v5051_v39 = vadd.f32 %v5003_v59, %v4774_v33  ;;  %v15179_v30 = vpop.f32.mrf.mxu1 }
 0x5a0   : > { %v5328_v21 = vadd.f32 %v5280_v16, %v5051_v39 }
 0x5a1   : > { %12144 = vmatmul.msk.f32.gmra.mxu3 %vm336_vm1, %v6178_v49  ;;  %12208 = vmatmul.msk.f32.gmra.mxu1 %vm336_vm1, %v6730_v15  ;;  %v18558_v15 = vld [vmem:[#allocation74_spill] sm:$0xff] }
 0x5a2   : > { %v5561_v27 = vpop.f32.mrf.mxu0  ;;  %12110 = vmatmul.msk.f32.gmra.mxu2 %vm336_vm1, %v15183_v0  ;;  %v15189_v55 = vadd.f32 %v5558_v17, %v5328_v21  ;;  %v4488_v41 = vadd.f32 %v18558_v15, %v18557_v8  ;;  %v6731_v0 = vld [vmem:[#allocation4 + $0x98] sm:$0xff] }
 0x5a3   : > { %v15200_v17 = vld [vmem:[#allocation4 + $0x92] sm:$0xff] }
 0x5a4   : > { %v5286_v33 = vpop.f32.mrf.mxu3  ;;  %18559 = vst [vmem:[#allocation60_spill] sm:$0xff] %v15200_v17  ;;  %v15208_v21 = vld [vmem:[#allocation4 + $0x94] sm:$0xff] }
 0x5a5   : > { %12176 = vmatmul.msk.f32.gmra.mxu0 %vm336_vm1, %v15191_v10  ;;  %v5006_v16 = vpop.f32.mrf.mxu2  ;;  %18560 = vst [vmem:[#allocation61_spill] sm:$0xff] %v15208_v21 }
 0x5a6   : > { %v5052_v59 = vadd.f32 %v5006_v16, %v4775_v43  ;;  %v15196_v39 = vpop.f32.mrf.mxu1  ;;  %v4776_v43 = vadd.f32 %v14771_v63, %v4488_v41 }
 0x5a8   : > { %v5329_v49 = vadd.f32 %v5283_v4, %v5052_v59 }
 0x5a9   : > { %12145 = vmatmul.msk.f32.gmra.mxu3 %vm336_vm1, %v6179_v58  ;;  %12209 = vmatmul.msk.f32.gmra.mxu1 %vm336_vm1, %v6731_v0  ;;  %v18561_v58 = vld [vmem:[#allocation75_spill] sm:$0xff]  ;;  %v18562_v0 = vld [vmem:[#allocation76_spill] sm:$0xff] }
 0x5aa   : > { %v5564_v46 = vpop.f32.mrf.mxu0  ;;  %12111 = vmatmul.msk.f32.gmra.mxu2 %vm336_vm1, %v15200_v17  ;;  %v15206_v24 = vadd.f32 %v5561_v27, %v5329_v49  ;;  %v4491_v15 = vadd.f32 %v18562_v0, %v18561_v58  ;;  %v6732_v17 = vld [vmem:[#allocation4 + $0xa8] sm:$0xff]  ;;  %v15217_v27 = vld [vmem:[#allocation4 + $0x9a] sm:$0xff] }
 0x5ab   : > { %18563 = vst [vmem:[#allocation62_spill] sm:$0xff] %v15217_v27  ;;  %v15225_v49 = vld [vmem:[#allocation4 + $0x9c] sm:$0xff] }
 0x5ac   : > { %v5289_v16 = vpop.f32.mrf.mxu3  ;;  %18564 = vst [vmem:[#allocation63_spill] sm:$0xff] %v15225_v49 }
 0x5ad   : > { %12177 = vmatmul.msk.f32.gmra.mxu0 %vm336_vm1, %v15208_v21  ;;  %v5009_v4 = vpop.f32.mrf.mxu2 }
 0x5ae   : > { %v5053_v59 = vadd.f32 %v5009_v4, %v4776_v43  ;;  %v15213_v8 = vpop.f32.mrf.mxu1  ;;  %v4777_v43 = vadd.f32 %v14784_v23, %v4491_v15  ;;  %v15242_v15 = vld [vmem:[#allocation4 + $0xac] sm:$0xff] }
 0x5af   : > { %18568 = vst [vmem:[#allocation65_spill] sm:$0xff] %v15242_v15 }
 0x5b0   : > { %v5330_v10 = vadd.f32 %v5286_v33, %v5053_v59 }
 0x5b1   : > { %12146 = vmatmul.msk.f32.gmra.mxu3 %vm336_vm1, %v6180_v1  ;;  %12210 = vmatmul.msk.f32.gmra.mxu1 %vm336_vm1, %v6732_v17  ;;  %v18565_v1 = vld [vmem:[#allocation77_spill] sm:$0xff]  ;;  %v18566_v17 = vld [vmem:[#allocation78_spill] sm:$0xff] }
 0x5b2   : > { %v5567_v63 = vpop.f32.mrf.mxu0  ;;  %12112 = vmatmul.msk.f32.gmra.mxu2 %vm336_vm1, %v15217_v27  ;;  %v15223_v41 = vadd.f32 %v5564_v46, %v5330_v10  ;;  %v4494_v0 = vadd.f32 %v18566_v17, %v18565_v1  ;;  %v6733_v27 = vld [vmem:[#allocation4 + $0xb0] sm:$0xff]  ;;  %v18570_v17 = vld [vmem:[#allocation80_spill] sm:$0xff] }
 0x5b3   : > { %v15234_v10 = vld [vmem:[#allocation4 + $0xaa] sm:$0xff] }
 0x5b4   : > { %v5292_v4 = vpop.f32.mrf.mxu3  ;;  %18567 = vst [vmem:[#allocation64_spill] sm:$0xff] %v15234_v10 }
 0x5b5   : > { %12178 = vmatmul.msk.f32.gmra.mxu0 %vm336_vm1, %v15225_v49  ;;  %v5012_v33 = vpop.f32.mrf.mxu2  ;;  %v6182_v49 = vld [vmem:[#allocation4 + $0xc3] sm:$0xff] }
 0x5b6   : > { %v5054_v59 = vadd.f32 %v5012_v33, %v4777_v43  ;;  %v15230_v58 = vpop.f32.mrf.mxu1  ;;  %v4778_v43 = vadd.f32 %v14797_v37, %v4494_v0 }
 0x5b8   : > { %v5331_v21 = vadd.f32 %v5289_v16, %v5054_v59 }
 0x5b9   : > { %12147 = vmatmul.msk.f32.gmra.mxu3 %vm336_vm1, %v6181_v53  ;;  %12211 = vmatmul.msk.f32.gmra.mxu1 %vm336_vm1, %v6733_v27  ;;  %v15251_v53 = vadd.f32 %v15119_v2, %v15129_v19  ;;  %v18569_v27 = vld [vmem:[#allocation79_spill] sm:$0xff] }
 0x5ba   : > { %v5570_v23 = vpop.f32.mrf.mxu0  ;;  %12113 = vmatmul.msk.f32.gmra.mxu2 %vm336_vm1, %v15234_v10  ;;  %v15240_v46 = vadd.f32 %v5567_v63, %v5331_v21  ;;  %v4497_v21 = vadd.f32 %v18570_v17, %v18569_v27  ;;  %v6734_v10 = vld [vmem:[#allocation4 + $0xc0] sm:$0xff]  ;;  %v15263_v2 = vld [vmem:[#allocation4 + $0xb4] sm:$0xff] }
 0x5bb   : > { %18572 = vst [vmem:[#allocation67_spill] sm:$0xff] %v15263_v2  ;;  %v18574_v27 = vld [vmem:[#allocation82_spill] sm:$0xff] }
 0x5bc   : > { %v5295_v33 = vpop.f32.mrf.mxu3  ;;  %v4779_v19 = vadd.f32 %v14810_v22, %v4497_v21  ;;  %v12752_v22 = vld [vmem:[#allocation4 + $0xc8] sm:$0xff] }
 0x5bd   : > { %12179 = vmatmul.msk.f32.gmra.mxu0 %vm336_vm1, %v15242_v15  ;;  %v5015_v16 = vpop.f32.mrf.mxu2  ;;  %v15276_v15 = vld [vmem:[#allocation4 + $0xc2] sm:$0xff] }
 0x5be   : > { %v5055_v59 = vadd.f32 %v5015_v16, %v4778_v43  ;;  %v15247_v1 = vpop.f32.mrf.mxu1  ;;  %18575 = vst [vmem:[#allocation68_spill] sm:$0xff] %v15276_v15 }
 0x5c0   : > { %v5332_v63 = vadd.f32 %v5292_v4, %v5055_v59 }
 0x5c1   : > { %12148 = vmatmul.msk.f32.gmra.mxu3 %vm336_vm1, %v6182_v49  ;;  %12212 = vmatmul.msk.f32.gmra.mxu1 %vm336_vm1, %v6734_v10  ;;  %v15272_v49 = vadd.f32 %v15139_v9, %v15149_v38  ;;  %v18573_v10 = vld [vmem:[#allocation81_spill] sm:$0xff]  ;;  %v18577_v38 = vld [vmem:[#allocation84_spill] sm:$0xff] }
 0x5c2   : > { %v5573_v37 = vpop.f32.mrf.mxu0  ;;  %12114 = vmatmul.msk.f32.gmra.mxu2 %vm336_vm1, %v15255_v14  ;;  %v15261_v0 = vadd.f32 %v5570_v23, %v5332_v63  ;;  %v4500_v23 = vadd.f32 %v18574_v27, %v18573_v10  ;;  %v6183_v63 = vld [vmem:[#allocation4 + $0xcb] sm:$0xff] }
 0x5c3   : > { %v15284_v9 = vld [vmem:[#allocation4 + $0xc4] sm:$0xff] }
 0x5c4   : > { %v5298_v43 = vpop.f32.mrf.mxu3  ;;  %18576 = vst [vmem:[#allocation69_spill] sm:$0xff] %v15284_v9  ;;  %v15297_v14 = vld [vmem:[#allocation4 + $0xca] sm:$0xff] }
 0x5c5   : > { %12180 = vmatmul.msk.f32.gmra.mxu0 %vm336_vm1, %v15263_v2  ;;  %v5018_v4 = vpop.f32.mrf.mxu2  ;;  %v18579_v2 = vld [vmem:[#allocation85_spill] sm:$0xff] }
 0x5c6   : > { %v5056_v16 = vadd.f32 %v5018_v4, %v4779_v19  ;;  %v15268_v59 = vpop.f32.mrf.mxu1  ;;  %v4780_v4 = vadd.f32 %v18577_v38, %v4500_v23  ;;  %v12753_v23 = vld [vmem:[#allocation4 + $0xd8] sm:$0xff] }
 0x5c8   : > { %v5333_v17 = vadd.f32 %v5295_v33, %v5056_v16 }
 0x5c9   : > { %12149 = vmatmul.msk.f32.gmra.mxu3 %vm336_vm1, %v6183_v63  ;;  %12213 = vmatmul.msk.f32.gmra.mxu1 %vm336_vm1, %v12752_v22  ;;  %v15293_v63 = vadd.f32 %v15159_v44, %v15169_v56  ;;  %v18578_v22 = vld [vmem:[#allocation83_spill] sm:$0xff]  ;;  %v15305_v44 = vld [vmem:[#allocation4 + $0xcc] sm:$0xff] }
 0x5ca   : > { %v5576_v21 = vpop.f32.mrf.mxu0  ;;  %12115 = vmatmul.msk.f32.gmra.mxu2 %vm336_vm1, %v15276_v15  ;;  %v15282_v19 = vadd.f32 %v5573_v37, %v5333_v17  ;;  %v4503_v37 = vadd.f32 %v18579_v2, %v18578_v22  ;;  %v6184_v15 = vld [vmem:[#allocation4 + $0xdb] sm:$0xff]  ;;  %18580 = vst [vmem:[#allocation70_spill] sm:$0xff] %v15305_v44  ;;  %v18581_v56 = vld [vmem:[#allocation86_spill] sm:$0xff]  ;;  %v15314_v22 = vadd.f32 %v15179_v30, %v15189_v55 }
 0x5cc   : > { %v5301_v10 = vpop.f32.mrf.mxu3 }
 0x5cd   : > { %12181 = vmatmul.msk.f32.gmra.mxu0 %vm336_vm1, %v15284_v9  ;;  %v5021_v33 = vpop.f32.mrf.mxu2  ;;  %v15316_v9 = vld [vmem:[#allocation4 + $0xda] sm:$0xff] }
 0x5ce   : > { %v5057_v16 = vadd.f32 %v5021_v33, %v4780_v4  ;;  %v15289_v27 = vpop.f32.mrf.mxu1  ;;  %v4781_v33 = vadd.f32 %v18581_v56, %v4503_v37 }
 0x5d0   : > { %v5334_v17 = vadd.f32 %v5298_v43, %v5057_v16 }
 0x5d1   : > { %12150 = vmatmul.msk.f32.gmra.mxu3 %vm336_vm1, %v6184_v15  ;;  %12214 = vmatmul.msk.f32.gmra.mxu1 %vm336_vm1, %v12753_v23 }
 0x5d2   : > { %v5579_v38 = vpop.f32.mrf.mxu0  ;;  %12116 = vmatmul.msk.f32.gmra.mxu2 %vm336_vm1, %v15297_v14  ;;  %v15303_v4 = vadd.f32 %v5576_v21, %v5334_v17  ;;  %v12754_v21 = vld [vmem:[#allocation4 + $0xe3] sm:$0xff] }
 0x5d3   : > { %v12755_v17 = vld [vmem:[#allocation4 + $0xe0] sm:$0xff] }
 0x5d4   : > { %v6317_v2 = vpop.f32.mrf.mxu3 }
 0x5d5   : > { %12182 = vmatmul.msk.f32.gmra.mxu0 %vm336_vm1, %v15305_v44  ;;  %v5024_v43 = vpop.f32.mrf.mxu2 }
 0x5d6   : > { %v5058_v16 = vadd.f32 %v5024_v43, %v4781_v33  ;;  %v15310_v15 = vpop.f32.mrf.mxu1  ;;  %v15324_v33 = vld [vmem:[#allocation4 + $0xdc] sm:$0xff] }
 0x5d7   : > { %18582 = vst [vmem:[#allocation71_spill] sm:$0xff] %v15324_v33 }
 0x5d8   : > { %v5335_v23 = vadd.f32 %v5301_v10, %v5058_v16  ;;  %v15333_v16 = vadd.f32 %v15196_v39, %v15206_v24 }
 0x5d9   : > { %12151 = vmatmul.msk.f32.gmra.mxu3 %vm336_vm1, %v12754_v21  ;;  %12215 = vmatmul.msk.f32.gmra.mxu1 %vm336_vm1, %v12755_v17  ;;  %v15335_v17 = vld [vmem:[#allocation4 + $0xe2] sm:$0xff] }
 0x5da   : > { %v6594_v37 = vpop.f32.mrf.mxu0  ;;  %12117 = vmatmul.msk.f32.gmra.mxu2 %vm336_vm1, %v15316_v9  ;;  %v15322_v56 = vadd.f32 %v5579_v38, %v5335_v23  ;;  %18583 = vst [vmem:[#allocation72_spill] sm:$0xff] %v15335_v17  ;;  %v12756_v38 = vld [vmem:[#allocation4 + $0xf3] sm:$0xff] }
 0x5db   : > { %v12757_v23 = vld [vmem:[#allocation4 + $0xf0] sm:$0xff] }
 0x5dc   : > { %v6320_v43 = vpop.f32.mrf.mxu3 }
 0x5dd   : > { %12183 = vmatmul.msk.f32.gmra.mxu0 %vm336_vm1, %v15324_v33  ;;  %v6040_v30 = vpop.f32.mrf.mxu2 }
 0x5de   : > { %v6136_v55 = vadd.f32 %v6040_v30, %v14852_v3  ;;  %v15329_v10 = vpop.f32.mrf.mxu1  ;;  %v15343_v30 = vld [vmem:[#allocation4 + $0xe4] sm:$0xff] }
 0x5df   : > { %18584 = vst [vmem:[#allocation73_spill] sm:$0xff] %v15343_v30 }
 0x5e0   : > { %v6413_v21 = vadd.f32 %v6317_v2, %v6136_v55  ;;  %v15352_v55 = vadd.f32 %v15213_v8, %v15223_v41 }
 0x5e1   : > { %12152 = vmatmul.msk.f32.gmra.mxu3 %vm336_vm1, %v12756_v38  ;;  %12216 = vmatmul.msk.f32.gmra.mxu1 %vm336_vm1, %v12757_v23  ;;  %v15354_v23 = vld [vmem:[#allocation4 + $0xf2] sm:$0xff] }
 0x5e2   : > { %v6597_v44 = vpop.f32.mrf.mxu0  ;;  %12118 = vmatmul.msk.f32.gmra.mxu2 %vm336_vm1, %v15335_v17  ;;  %v15341_v3 = vadd.f32 %v6594_v37, %v6413_v21  ;;  %v12758_v37 = vld [vmem:[#allocation4 + $0xfb] sm:$0xff] }
 0x5e3   : > { %v12759_v21 = vld [vmem:[#allocation4 + $0xf8] sm:$0xff] }
 0x5e4   : > { %v6323_v33 = vpop.f32.mrf.mxu3 }
 0x5e5   : > { %12184 = vmatmul.msk.f32.gmra.mxu0 %vm336_vm1, %v15343_v30  ;;  %v6043_v39 = vpop.f32.mrf.mxu2 }
 0x5e6   : > { %v6137_v24 = vadd.f32 %v6043_v39, %v14868_v5  ;;  %v15348_v2 = vpop.f32.mrf.mxu1  ;;  %v15362_v39 = vld [vmem:[#allocation4 + $0xf4] sm:$0xff] }
 0x5e7   : > { %18585 = vst [vmem:[#allocation74_spill] sm:$0xff] %v15362_v39 }
 0x5e8   : > { %v6414_v38 = vadd.f32 %v6320_v43, %v6137_v24  ;;  %v15371_v24 = vadd.f32 %v15230_v58, %v15240_v46 }
 0x5e9   : > { %12153 = vmatmul.msk.f32.gmra.mxu3 %vm336_vm1, %v12758_v37  ;;  %12217 = vmatmul.msk.f32.gmra.mxu1 %vm336_vm1, %v12759_v21  ;;  %v15373_v21 = vld [vmem:[#allocation4 + $0xfa] sm:$0xff] }
 0x5ea   : > { %v6600_v17 = vpop.f32.mrf.mxu0  ;;  %12119 = vmatmul.msk.f32.gmra.mxu2 %vm336_vm1, %v15354_v23  ;;  %v15360_v5 = vadd.f32 %v6597_v44, %v6414_v38  ;;  %v12760_v44 = vld [vmem:[#allocation4 + $0x108] sm:$0xff] }
 0x5ec   : > { %v6326_v30 = vpop.f32.mrf.mxu3 }
 0x5ed   : > { %12185 = vmatmul.msk.f32.gmra.mxu0 %vm336_vm1, %v15362_v39  ;;  %v6046_v8 = vpop.f32.mrf.mxu2 }
 0x5ee   : > { %v6138_v41 = vadd.f32 %v6046_v8, %v14877_v48  ;;  %v15367_v43 = vpop.f32.mrf.mxu1  ;;  %v15382_v8 = vld [vmem:[#allocation4 + $0xfc] sm:$0xff] }
 0x5ef   : > { %18586 = vst [vmem:[#allocation75_spill] sm:$0xff] %v15382_v8 }
 0x5f0   : > { %v6415_v37 = vadd.f32 %v6323_v33, %v6138_v41 }
 0x5f1   : > { %12154 = vmatmul.msk.f32.gmra.mxu3 %vm336_vm1, %v14888_v54  ;;  %12218 = vmatmul.msk.f32.gmra.mxu1 %vm336_vm1, %v12760_v44  ;;  %v15391_v54 = vadd.f32 %v15247_v1, %v15261_v0  ;;  %v15393_v44 = vld [vmem:[#allocation4 + $0x10a] sm:$0xff] }
 0x5f2   : > { %v6603_v38 = vpop.f32.mrf.mxu0  ;;  %12120 = vmatmul.msk.f32.gmra.mxu2 %vm336_vm1, %v15373_v21  ;;  %v15380_v48 = vadd.f32 %v6600_v17, %v6415_v37  ;;  %v12761_v17 = vld [vmem:[#allocation4 + $0x110] sm:$0xff] }
 0x5f4   : > { %v6329_v39 = vpop.f32.mrf.mxu3 }
 0x5f5   : > { %12186 = vmatmul.msk.f32.gmra.mxu0 %vm336_vm1, %v15382_v8  ;;  %v6049_v58 = vpop.f32.mrf.mxu2 }
 0x5f6   : > { %v6139_v46 = vadd.f32 %v6049_v58, %v14892_v20  ;;  %v15387_v33 = vpop.f32.mrf.mxu1  ;;  %v15402_v58 = vld [vmem:[#allocation4 + $0x10c] sm:$0xff] }
 0x5f7   : > { %18587 = vst [vmem:[#allocation76_spill] sm:$0xff] %v15402_v58 }
 0x5f8   : > { %v6416_v41 = vadd.f32 %v6326_v30, %v6139_v46 }
 0x5f9   : > { %12155 = vmatmul.msk.f32.gmra.mxu3 %vm336_vm1, %v14900_v11  ;;  %12219 = vmatmul.msk.f32.gmra.mxu1 %vm336_vm1, %v12761_v17  ;;  %v15411_v11 = vadd.f32 %v15268_v59, %v15282_v19  ;;  %v15413_v17 = vld [vmem:[#allocation4 + $0x112] sm:$0xff] }
 0x5fa   : > { %v6606_v37 = vpop.f32.mrf.mxu0  ;;  %12121 = vmatmul.msk.f32.gmra.mxu2 %vm336_vm1, %v15393_v44  ;;  %v15400_v20 = vadd.f32 %v6603_v38, %v6416_v41  ;;  %v12762_v38 = vld [vmem:[#allocation4 + $0x120] sm:$0xff] }
 0x5fc   : > { %v6332_v8 = vpop.f32.mrf.mxu3 }
 0x5fd   : > { %12187 = vmatmul.msk.f32.gmra.mxu0 %vm336_vm1, %v15402_v58  ;;  %v6052_v1 = vpop.f32.mrf.mxu2 }
 0x5fe   : > { %v6140_v0 = vadd.f32 %v6052_v1, %v14904_v45  ;;  %v15407_v30 = vpop.f32.mrf.mxu1  ;;  %v15422_v1 = vld [vmem:[#allocation4 + $0x114] sm:$0xff] }
 0x5ff   : > { %18588 = vst [vmem:[#allocation77_spill] sm:$0xff] %v15422_v1 }
 0x600   : > { %v6417_v46 = vadd.f32 %v6329_v39, %v6140_v0 }
 0x601   : > { %12156 = vmatmul.msk.f32.gmra.mxu3 %vm336_vm1, %v14912_v61  ;;  %12220 = vmatmul.msk.f32.gmra.mxu1 %vm336_vm1, %v12762_v38  ;;  %v15431_v61 = vadd.f32 %v15289_v27, %v15303_v4  ;;  %v15433_v38 = vld [vmem:[#allocation4 + $0x122] sm:$0xff] }
 0x602   : > { %v6609_v41 = vpop.f32.mrf.mxu0  ;;  %12122 = vmatmul.msk.f32.gmra.mxu2 %vm336_vm1, %v15413_v17  ;;  %v15420_v45 = vadd.f32 %v6606_v37, %v6417_v46  ;;  %v12763_v37 = vld [vmem:[#allocation4 + $0x128] sm:$0xff] }
 0x604   : > { %v6335_v58 = vpop.f32.mrf.mxu3 }
 0x605   : > { %12188 = vmatmul.msk.f32.gmra.mxu0 %vm336_vm1, %v15422_v1  ;;  %v6055_v59 = vpop.f32.mrf.mxu2 }
 0x606   : > { %v6141_v19 = vadd.f32 %v6055_v59, %v14916_v60  ;;  %v15427_v39 = vpop.f32.mrf.mxu1  ;;  %v15442_v59 = vld [vmem:[#allocation4 + $0x124] sm:$0xff] }
 0x607   : > { %18589 = vst [vmem:[#allocation78_spill] sm:$0xff] %v15442_v59 }
 0x608   : > { %v6418_v0 = vadd.f32 %v6332_v8, %v6141_v19 }
 0x609   : > { %12157 = vmatmul.msk.f32.gmra.mxu3 %vm336_vm1, %v14924_v31  ;;  %12221 = vmatmul.msk.f32.gmra.mxu1 %vm336_vm1, %v12763_v37  ;;  %v15451_v31 = vadd.f32 %v15310_v15, %v15322_v56  ;;  %v15453_v37 = vld [vmem:[#allocation4 + $0x12a] sm:$0xff] }
 0x60a   : > { %v6612_v46 = vpop.f32.mrf.mxu0  ;;  %12123 = vmatmul.msk.f32.gmra.mxu2 %vm336_vm1, %v15433_v38  ;;  %v15440_v60 = vadd.f32 %v6609_v41, %v6418_v0  ;;  %v12764_v41 = vld [vmem:[#allocation4 + $0x138] sm:$0xff] }
 0x60c   : > { %v6338_v1 = vpop.f32.mrf.mxu3 }
 0x60d   : > { %12189 = vmatmul.msk.f32.gmra.mxu0 %vm336_vm1, %v15442_v59  ;;  %v6058_v27 = vpop.f32.mrf.mxu2 }
 0x60e   : > { %v6142_v4 = vadd.f32 %v6058_v27, %v14928_v52  ;;  %v15447_v8 = vpop.f32.mrf.mxu1  ;;  %v15462_v27 = vld [vmem:[#allocation4 + $0x12c] sm:$0xff] }
 0x60f   : > { %18590 = vst [vmem:[#allocation79_spill] sm:$0xff] %v15462_v27 }
 0x610   : > { %v6419_v19 = vadd.f32 %v6335_v58, %v6142_v4 }
 0x611   : > { %12158 = vmatmul.msk.f32.gmra.mxu3 %vm336_vm1, %v14936_v28  ;;  %12222 = vmatmul.msk.f32.gmra.mxu1 %vm336_vm1, %v12764_v41  ;;  %v15471_v28 = vadd.f32 %v15329_v10, %v15341_v3  ;;  %v15473_v41 = vld [vmem:[#allocation4 + $0x13a] sm:$0xff] }
 0x612   : > { %v6615_v0 = vpop.f32.mrf.mxu0  ;;  %12124 = vmatmul.msk.f32.gmra.mxu2 %vm336_vm1, %v15453_v37  ;;  %v15460_v52 = vadd.f32 %v6612_v46, %v6419_v19  ;;  %v12765_v46 = vld [vmem:[#allocation4 + $0x140] sm:$0xff] }
 0x614   : > { %v6341_v59 = vpop.f32.mrf.mxu3 }
 0x615   : > { %12190 = vmatmul.msk.f32.gmra.mxu0 %vm336_vm1, %v15462_v27  ;;  %v6061_v15 = vpop.f32.mrf.mxu2 }
 0x616   : > { %v6143_v56 = vadd.f32 %v6061_v15, %v14940_v29  ;;  %v15467_v58 = vpop.f32.mrf.mxu1  ;;  %v15482_v15 = vld [vmem:[#allocation4 + $0x13c] sm:$0xff] }
 0x617   : > { %18591 = vst [vmem:[#allocation80_spill] sm:$0xff] %v15482_v15 }
 0x618   : > { %v6420_v4 = vadd.f32 %v6338_v1, %v6143_v56 }
 0x619   : > { %12159 = vmatmul.msk.f32.gmra.mxu3 %vm336_vm1, %v14948_v51  ;;  %12223 = vmatmul.msk.f32.gmra.mxu1 %vm336_vm1, %v12765_v46  ;;  %v15491_v51 = vadd.f32 %v15348_v2, %v15360_v5  ;;  %v15493_v46 = vld [vmem:[#allocation4 + $0x142] sm:$0xff] }
 0x61a   : > { %v6618_v19 = vpop.f32.mrf.mxu0  ;;  %12125 = vmatmul.msk.f32.gmra.mxu2 %vm336_vm1, %v15473_v41  ;;  %v15480_v29 = vadd.f32 %v6615_v0, %v6420_v4  ;;  %v12766_v0 = vld [vmem:[#allocation4 + $0x150] sm:$0xff] }
 0x61c   : > { %v6344_v27 = vpop.f32.mrf.mxu3 }
 0x61d   : > { %12191 = vmatmul.msk.f32.gmra.mxu0 %vm336_vm1, %v15482_v15  ;;  %v6064_v10 = vpop.f32.mrf.mxu2 }
 0x61e   : > { %v6144_v3 = vadd.f32 %v6064_v10, %v14952_v35  ;;  %v15487_v1 = vpop.f32.mrf.mxu1  ;;  %v15502_v10 = vld [vmem:[#allocation4 + $0x144] sm:$0xff] }
 0x61f   : > { %18592 = vst [vmem:[#allocation81_spill] sm:$0xff] %v15502_v10 }
 0x620   : > { %v6421_v56 = vadd.f32 %v6341_v59, %v6144_v3 }
 0x621   : > { %12160 = vmatmul.msk.f32.gmra.mxu3 %vm336_vm1, %v14960_v13  ;;  %12224 = vmatmul.msk.f32.gmra.mxu1 %vm336_vm1, %v12766_v0  ;;  %v15511_v13 = vadd.f32 %v15367_v43, %v15380_v48  ;;  %v15513_v0 = vld [vmem:[#allocation4 + $0x152] sm:$0xff] }
 0x622   : > { %v6621_v4 = vpop.f32.mrf.mxu0  ;;  %12126 = vmatmul.msk.f32.gmra.mxu2 %vm336_vm1, %v15493_v46  ;;  %v15500_v35 = vadd.f32 %v6618_v19, %v6421_v56  ;;  %v12767_v19 = vld [vmem:[#allocation4 + $0x158] sm:$0xff] }
 0x624   : > { %v6347_v15 = vpop.f32.mrf.mxu3 }
 0x625   : > { %12192 = vmatmul.msk.f32.gmra.mxu0 %vm336_vm1, %v15502_v10  ;;  %v6067_v2 = vpop.f32.mrf.mxu2 }
 0x626   : > { %v6145_v5 = vadd.f32 %v6067_v2, %v14964_v12  ;;  %v15507_v59 = vpop.f32.mrf.mxu1  ;;  %v15522_v2 = vld [vmem:[#allocation4 + $0x154] sm:$0xff] }
 0x627   : > { %18593 = vst [vmem:[#allocation82_spill] sm:$0xff] %v15522_v2 }
 0x628   : > { %v6422_v3 = vadd.f32 %v6344_v27, %v6145_v5 }
 0x629   : > { %12161 = vmatmul.msk.f32.gmra.mxu3 %vm336_vm1, %v14990_v50  ;;  %12225 = vmatmul.msk.f32.gmra.mxu1 %vm336_vm1, %v12767_v19  ;;  %v15531_v50 = vadd.f32 %v15387_v33, %v15400_v20  ;;  %v15533_v19 = vld [vmem:[#allocation4 + $0x15a] sm:$0xff] }
 0x62a   : > { %v6624_v56 = vpop.f32.mrf.mxu0  ;;  %12127 = vmatmul.msk.f32.gmra.mxu2 %vm336_vm1, %v15513_v0  ;;  %v15520_v12 = vadd.f32 %v6621_v4, %v6422_v3  ;;  %v15543_v3 = vld [vmem:[#allocation4 + $0x15c] sm:$0xff] }
 0x62b   : > { %18594 = vst [vmem:[#allocation84_spill] sm:$0xff] %v15543_v3 }
 0x62c   : > { %v6350_v10 = vpop.f32.mrf.mxu3 }
 0x62d   : > { %12193 = vmatmul.msk.f32.gmra.mxu0 %vm336_vm1, %v15522_v2  ;;  %v6070_v43 = vpop.f32.mrf.mxu2  ;;  %v6198_v2 = vld [vmem:[#allocation4 + $0x183] sm:$0xff] }
 0x62e   : > { %v6146_v48 = vadd.f32 %v6070_v43, %v14994_v25  ;;  %v15527_v27 = vpop.f32.mrf.mxu1 }
 0x630   : > { %v6423_v5 = vadd.f32 %v6347_v15, %v6146_v48  ;;  %v15554_v48 = vld [vmem:[#allocation4 + $0x16a] sm:$0xff] }
 0x631   : > { %12162 = vmatmul.msk.f32.gmra.mxu3 %vm336_vm1, %v15006_v6  ;;  %12226 = vmatmul.msk.f32.gmra.mxu1 %vm336_vm1, %v14977_v62  ;;  %v15552_v62 = vadd.f32 %v15407_v30, %v15420_v45  ;;  %v8140_v30 = vld [vmem:[%s18224_s6 + $0x3c] sm:$0xf]  ;;  %v7585_v45 = vld [vmem:[%s18224_s6 + $0x34] sm:$0xf] }
 0x632   : > { %v6627_v4 = vpop.f32.mrf.mxu0  ;;  %12128 = vmatmul.msk.f32.gmra.mxu2 %vm336_vm1, %v15533_v19  ;;  %v15541_v25 = vadd.f32 %v6624_v56, %v6423_v5  ;;  %12298 = vmatpush.msk.msra.mxu0 %vm757_vm0, %v7585_v45  ;;  %v15590_v45 = vld [vmem:[#allocation4 + $0x172] sm:$0xff] }
 0x633   : > { %12364 = vmatpush.msk.msra.mxu2 %vm757_vm0, %v8140_v30  ;;  %v7862_v30 = vld [vmem:[%s18224_s6 + $0x38] sm:$0xf]  ;;  %18597 = vst [vmem:[#allocation85_spill] sm:$0xff] %v15590_v45 }
 0x634   : > { %v6353_v43 = vpop.f32.mrf.mxu3  ;;  %12331 = vmatpush.msk.msra.mxu1 %vm757_vm0, %v7862_v30  ;;  %v18601_v30 = vld [vmem:[#allocation42_spill] sm:$0xff] }
 0x635   : > { %12194 = vmatmul.msk.f32.gmra.mxu0 %vm336_vm1, %v15543_v3  ;;  %v6073_v33 = vpop.f32.mrf.mxu2 }
 0x636   : > { %v6147_v20 = vadd.f32 %v6073_v33, %v15010_v42  ;;  %v15548_v15 = vpop.f32.mrf.mxu1 }
 0x638   : > { %v6424_v6 = vadd.f32 %v6350_v10, %v6147_v20  ;;  %v15573_v10 = vld [vmem:[#allocation4 + $0x16c] sm:$0xff] }
 0x639   : > { %12163 = vmatmul.msk.f32.gmra.mxu3 %vm336_vm1, %v15021_v7  ;;  %12227 = vmatmul.msk.f32.gmra.mxu1 %vm336_vm1, %v14999_v32  ;;  %v8417_v7 = vld [vmem:[%s18224_s6 + $0x40] sm:$0xf]  ;;  %18595 = vst [vmem:[#allocation83_spill] sm:$0xff] %v15573_v10 }
 0x63a   : > { %v6630_v56 = vpop.f32.mrf.mxu0  ;;  %12129 = vmatmul.msk.f32.gmra.mxu2 %vm336_vm1, %v15554_v48  ;;  %v15562_v42 = vadd.f32 %v6627_v4, %v6424_v6  ;;  %12397 = vmatpush.msk.msra.mxu3 %vm757_vm0, %v8417_v7  ;;  %v18596_v4 = vld [vmem:[#allocation41_spill] sm:$0xff]  ;;  %v15585_v6 = vadd.f32 %v15427_v39, %v15440_v60  ;;  %v18598_v7 = vld [vmem:[#allocation40_spill] sm:$0xff]  ;;  %v15600_v39 = vld [vmem:[#allocation4 + $0x174] sm:$0xff] }
 0x63b   : > { %18599 = vst [vmem:[#allocation86_spill] sm:$0xff] %v15600_v39 }
 0x63c   : > { %v6356_v32 = vpop.f32.mrf.mxu3 }
 0x63d   : > { %12195 = vmatmul.msk.f32.gmra.mxu0 %vm336_vm1, %v15573_v10  ;;  %v6076_v5 = vpop.f32.mrf.mxu2 }
 0x63e   : > { %v6148_v33 = vadd.f32 %v6076_v5, %v18596_v4  ;;  %v15581_v20 = vpop.f32.mrf.mxu1 }
 0x640   : > { %v6425_v3 = vadd.f32 %v6353_v43, %v6148_v33 }
 0x641   : > { %12164 = vmatmul.msk.f32.gmra.mxu3 %vm336_vm1, %v6198_v2  ;;  %12228 = vmatmul.msk.f32.gmra.mxu1 %vm336_vm1, %v18598_v7  ;;  %v15609_v7 = vadd.f32 %v15447_v8, %v15460_v52 }
 0x642   : > { %v6633_v5 = vpop.f32.mrf.mxu0  ;;  %12130 = vmatmul.msk.f32.gmra.mxu2 %vm336_vm1, %v15590_v45  ;;  %v15597_v4 = vadd.f32 %v6630_v56, %v6425_v3  ;;  %v6199_v3 = vld [vmem:[#allocation4 + $0x18b] sm:$0xff]  ;;  %v15611_v56 = vld [vmem:[#allocation4 + $0x182] sm:$0xff] }
 0x643   : > { %18600 = vst [vmem:[#allocation41_spill] sm:$0xff] %v15611_v56 }
 0x644   : > { %v6359_v60 = vpop.f32.mrf.mxu3 }
 0x645   : > { %12196 = vmatmul.msk.f32.gmra.mxu0 %vm336_vm1, %v15600_v39  ;;  %v6079_v43 = vpop.f32.mrf.mxu2 }
 0x646   : > { %v6149_v2 = vadd.f32 %v6079_v43, %v15038_v26  ;;  %v15605_v33 = vpop.f32.mrf.mxu1  ;;  %v15620_v43 = vld [vmem:[#allocation4 + $0x184] sm:$0xff] }
 0x647   : > { %18602 = vst [vmem:[#allocation40_spill] sm:$0xff] %v15620_v43 }
 0x648   : > { %v6426_v10 = vadd.f32 %v6356_v32, %v6149_v2  ;;  %v15629_v2 = vadd.f32 %v15467_v58, %v15480_v29 }
 0x649   : > { %12165 = vmatmul.msk.f32.gmra.mxu3 %vm336_vm1, %v6199_v3  ;;  %12229 = vmatmul.msk.f32.gmra.mxu1 %vm336_vm1, %v18601_v30  ;;  %v6752_v30 = vld [vmem:[#allocation4 + $0x198] sm:$0xff] }
 0x64a   : > { %v6636_v45 = vpop.f32.mrf.mxu0  ;;  %12131 = vmatmul.msk.f32.gmra.mxu2 %vm336_vm1, %v15611_v56  ;;  %v15618_v26 = vadd.f32 %v6633_v5, %v6426_v10  ;;  %v15631_v56 = vld [vmem:[#allocation4 + $0x18a] sm:$0xff] }
 0x64b   : > { %18603 = vst [vmem:[#allocation42_spill] sm:$0xff] %v15631_v56  ;;  %v15640_v5 = vld [vmem:[#allocation4 + $0x18c] sm:$0xff] }
 0x64c   : > { %v6362_v39 = vpop.f32.mrf.mxu3  ;;  %18604 = vst [vmem:[#allocation87_spill] sm:$0xff] %v15640_v5 }
 0x64d   : > { %12197 = vmatmul.msk.f32.gmra.mxu0 %vm336_vm1, %v15620_v43  ;;  %v6082_v8 = vpop.f32.mrf.mxu2  ;;  %v6999_v43 = vld [vmem:[#allocation4 + $0x31] sm:$0xff] }
 0x64e   : > { %v6150_v52 = vadd.f32 %v6082_v8, %v15047_v40  ;;  %v15625_v32 = vpop.f32.mrf.mxu1 }
 0x650   : > { %v6427_v3 = vadd.f32 %v6359_v60, %v6150_v52 }
 0x651   : > { %12230 = vmatmul.msk.f32.gmra.mxu1 %vm336_vm1, %v6752_v30  ;;  %12266 = vmatmul.msk.f32.vlgmr.msrb.gmra.mxu3 %vm336_vm1, %v15056_v47  ;;  %v15649_v47 = vadd.f32 %v15487_v1, %v15500_v35  ;;  %v6753_v30 = vld [vmem:[#allocation4 + $0x1a0] sm:$0xff] }
 0x652   : > { %v6639_v10 = vpop.f32.mrf.mxu0  ;;  %12132 = vmatmul.msk.f32.gmra.mxu2 %vm336_vm1, %v15631_v56  ;;  %v15638_v40 = vadd.f32 %v6636_v45, %v6427_v3  ;;  %v15722_v56 = vld [vmem:[#allocation4 + $0x61] sm:$0xff] }
 0x654   : > { %v6365_v8 = vpop.f32.mrf.mxu3 }
 0x655   : > { %12198 = vmatmul.msk.f32.gmra.mxu0 %vm336_vm1, %v15640_v5  ;;  %v6085_v58 = vpop.f32.mrf.mxu2 }
 0x656   : > { %v6151_v29 = vadd.f32 %v6085_v58, %v15060_v34  ;;  %v15645_v60 = vpop.f32.mrf.mxu1  ;;  %v7553_v34 = vld [vmem:[#allocation4 + $0x33] sm:$0xff] }
 0x658   : > { %v6428_v52 = vadd.f32 %v6362_v39, %v6151_v29  ;;  %v15663_v39 = vadd.f32 %v15507_v59, %v15520_v12 }
 0x659   : > { %12231 = vmatmul.msk.f32.gmra.mxu1 %vm336_vm1, %v6753_v30  ;;  %12267 = vmatmul.msk.f32.gmra.mxu3 %vm336_vm1, %v15073_v36  ;;  %v7000_v36 = vld [vmem:[#allocation4 + $0x39] sm:$0xff]  ;;  %v18605_v30 = vld [vmem:[#allocation45_spill] sm:$0xff] }
 0x65a   : > { %v6642_v45 = vpop.f32.mrf.mxu0  ;;  %12233 = vmatmul.msk.f32.vlgmr.msrb.gmra.mxu2 %vm336_vm1, %v6999_v43  ;;  %v15655_v3 = vadd.f32 %v6639_v10, %v6428_v52  ;;  %v18606_v43 = vld [vmem:[#allocation43_spill] sm:$0xff] }
 0x65c   : > { %v6368_v58 = vpop.f32.mrf.mxu3 }
 0x65d   : > { %12299 = vmatmul.msk.f32.vlgmr.msra.gmra.mxu0 %vm336_vm1, %v7553_v34  ;;  %v6088_v5 = vpop.f32.mrf.mxu2 }
 0x65e   : > { %v6152_v1 = vadd.f32 %v6088_v5, %v15077_v57  ;;  %v15659_v35 = vpop.f32.mrf.mxu1  ;;  %v7554_v57 = vld [vmem:[#allocation4 + $0x3b] sm:$0xff] }
 0x660   : > { %v6429_v29 = vadd.f32 %v6365_v8, %v6152_v1  ;;  %v15678_v8 = vadd.f32 %v15527_v27, %v15541_v25  ;;  %v18611_v25 = vld [vmem:[#allocation51_spill] sm:$0xff] }
 0x661   : > { %12268 = vmatmul.msk.f32.gmra.mxu3 %vm336_vm1, %v18605_v30  ;;  %12332 = vmatmul.msk.f32.vlgmr.msra.gmra.mxu1 %vm336_vm1, %v18606_v43  ;;  %v15680_v30 = vld [vmem:[#allocation4 + $0x49] sm:$0xff] }
 0x662   : > { %v6645_v10 = vpop.f32.mrf.mxu0  ;;  %12234 = vmatmul.msk.f32.gmra.mxu2 %vm336_vm1, %v7000_v36  ;;  %v15670_v52 = vadd.f32 %v6642_v45, %v6429_v29  ;;  %18607 = vst [vmem:[#allocation45_spill] sm:$0xff] %v15680_v30  ;;  %v18608_v43 = vld [vmem:[#allocation46_spill] sm:$0xff]  ;;  %v18609_v45 = vld [vmem:[#allocation44_spill] sm:$0xff] }
 0x663   : > { %v15690_v36 = vld [vmem:[#allocation4 + $0x4b] sm:$0xff] }
 0x664   : > { %v6371_v5 = vpop.f32.mrf.mxu3  ;;  %18610 = vst [vmem:[#allocation43_spill] sm:$0xff] %v15690_v36 }
 0x665   : > { %12300 = vmatmul.msk.f32.gmra.mxu0 %vm336_vm1, %v7554_v57  ;;  %v6091_v34 = vpop.f32.mrf.mxu2 }
 0x666   : > { %v6153_v59 = vadd.f32 %v6091_v34, %v15117_v18  ;;  %v15674_v12 = vpop.f32.mrf.mxu1 }
 0x668   : > { %v6430_v1 = vadd.f32 %v6368_v58, %v6153_v59  ;;  %v15699_v59 = vadd.f32 %v15548_v15, %v15562_v42  ;;  %v18616_v42 = vld [vmem:[#allocation54_spill] sm:$0xff] }
 0x669   : > { %12269 = vmatmul.msk.f32.gmra.mxu3 %vm336_vm1, %v18608_v43  ;;  %12333 = vmatmul.msk.f32.gmra.mxu1 %vm336_vm1, %v18609_v45  ;;  %v15701_v45 = vld [vmem:[#allocation4 + $0x51] sm:$0xff] }
 0x66a   : > { %v6648_v29 = vpop.f32.mrf.mxu0  ;;  %12235 = vmatmul.msk.f32.gmra.mxu2 %vm336_vm1, %v15680_v30  ;;  %v15688_v18 = vadd.f32 %v6645_v10, %v6430_v1  ;;  %18612 = vst [vmem:[#allocation46_spill] sm:$0xff] %v15701_v45  ;;  %v18613_v10 = vld [vmem:[#allocation49_spill] sm:$0xff]  ;;  %v18614_v1 = vld [vmem:[#allocation47_spill] sm:$0xff] }
 0x66b   : > { %18618 = vst [vmem:[#allocation49_spill] sm:$0xff] %v15722_v56 }
 0x66c   : > { %v6374_v57 = vpop.f32.mrf.mxu3 }
 0x66d   : > { %12301 = vmatmul.msk.f32.gmra.mxu0 %vm336_vm1, %v15690_v36  ;;  %v6094_v27 = vpop.f32.mrf.mxu2 }
 0x66e   : > { %v6154_v58 = vadd.f32 %v6094_v27, %v18611_v25  ;;  %v15695_v34 = vpop.f32.mrf.mxu1  ;;  %v15711_v25 = vld [vmem:[#allocation4 + $0x53] sm:$0xff] }
 0x66f   : > { %18615 = vst [vmem:[#allocation44_spill] sm:$0xff] %v15711_v25 }
 0x670   : > { %v6431_v43 = vadd.f32 %v6371_v5, %v6154_v58 }
 0x671   : > { %12270 = vmatmul.msk.f32.gmra.mxu3 %vm336_vm1, %v18613_v10  ;;  %12334 = vmatmul.msk.f32.gmra.mxu1 %vm336_vm1, %v18614_v1  ;;  %v15720_v10 = vadd.f32 %v15581_v20, %v15597_v4  ;;  %v18622_v4 = vld [vmem:[#allocation57_spill] sm:$0xff] }
 0x672   : > { %v6651_v30 = vpop.f32.mrf.mxu0  ;;  %12236 = vmatmul.msk.f32.gmra.mxu2 %vm336_vm1, %v15701_v45  ;;  %v15709_v27 = vadd.f32 %v6648_v29, %v6431_v43  ;;  %v18619_v29 = vld [vmem:[#allocation52_spill] sm:$0xff] }
 0x673   : > { %18617 = vst [vmem:[#allocation51_spill] sm:$0xff] %v15720_v10  ;;  %v18620_v43 = vld [vmem:[#allocation48_spill] sm:$0xff]  ;;  %v15743_v10 = vld [vmem:[#allocation4 + $0x69] sm:$0xff] }
 0x674   : > { %v6377_v36 = vpop.f32.mrf.mxu3  ;;  %18623 = vst [vmem:[#allocation54_spill] sm:$0xff] %v15743_v10 }
 0x675   : > { %12302 = vmatmul.msk.f32.gmra.mxu0 %vm336_vm1, %v15711_v25  ;;  %v6097_v15 = vpop.f32.mrf.mxu2 }
 0x676   : > { %v6155_v5 = vadd.f32 %v6097_v15, %v18616_v42  ;;  %v15716_v58 = vpop.f32.mrf.mxu1  ;;  %v15732_v42 = vld [vmem:[#allocation4 + $0x63] sm:$0xff] }
 0x677   : > { %18621 = vst [vmem:[#allocation47_spill] sm:$0xff] %v15732_v42 }
 0x678   : > { %v6432_v1 = vadd.f32 %v6374_v57, %v6155_v5 }
 0x679   : > { %12271 = vmatmul.msk.f32.gmra.mxu3 %vm336_vm1, %v18619_v29  ;;  %12335 = vmatmul.msk.f32.gmra.mxu1 %vm336_vm1, %v18620_v43  ;;  %v15741_v29 = vadd.f32 %v15605_v33, %v15618_v26 }
 0x67a   : > { %v6654_v45 = vpop.f32.mrf.mxu0  ;;  %12237 = vmatmul.msk.f32.gmra.mxu2 %vm336_vm1, %v15722_v56  ;;  %v15730_v15 = vadd.f32 %v6651_v30, %v6432_v1  ;;  %v18624_v30 = vld [vmem:[#allocation55_spill] sm:$0xff]  ;;  %v18625_v1 = vld [vmem:[#allocation50_spill] sm:$0xff] }
 0x67c   : > { %v6380_v25 = vpop.f32.mrf.mxu3 }
 0x67d   : > { %12303 = vmatmul.msk.f32.gmra.mxu0 %vm336_vm1, %v15732_v42  ;;  %v6100_v20 = vpop.f32.mrf.mxu2 }
 0x67e   : > { %v6156_v57 = vadd.f32 %v6100_v20, %v18622_v4  ;;  %v15737_v5 = vpop.f32.mrf.mxu1  ;;  %v15753_v4 = vld [vmem:[#allocation4 + $0x6b] sm:$0xff] }
 0x67f   : > { %18626 = vst [vmem:[#allocation52_spill] sm:$0xff] %v15753_v4 }
 0x680   : > { %v6433_v43 = vadd.f32 %v6377_v36, %v6156_v57  ;;  %v15762_v57 = vadd.f32 %v15625_v32, %v15638_v40 }
 0x681   : > { %12272 = vmatmul.msk.f32.gmra.mxu3 %vm336_vm1, %v18624_v30  ;;  %12336 = vmatmul.msk.f32.gmra.mxu1 %vm336_vm1, %v18625_v1  ;;  %v15764_v1 = vld [vmem:[#allocation4 + $0x79] sm:$0xff] }
 0x682   : > { %v6657_v56 = vpop.f32.mrf.mxu0  ;;  %12238 = vmatmul.msk.f32.gmra.mxu2 %vm336_vm1, %v15743_v10  ;;  %v15751_v20 = vadd.f32 %v6654_v45, %v6433_v43  ;;  %18627 = vst [vmem:[#allocation48_spill] sm:$0xff] %v15764_v1  ;;  %v18628_v45 = vld [vmem:[#allocation58_spill] sm:$0xff]  ;;  %v18629_v43 = vld [vmem:[#allocation53_spill] sm:$0xff] }
 0x684   : > { %v6383_v42 = vpop.f32.mrf.mxu3 }
 0x685   : > { %12304 = vmatmul.msk.f32.gmra.mxu0 %vm336_vm1, %v15753_v4  ;;  %v6103_v33 = vpop.f32.mrf.mxu2 }
 0x686   : > { %v6157_v26 = vadd.f32 %v6103_v33, %v15251_v53  ;;  %v15758_v36 = vpop.f32.mrf.mxu1  ;;  %v15774_v33 = vld [vmem:[#allocation4 + $0x7b] sm:$0xff] }
 0x687   : > { %18630 = vst [vmem:[#allocation57_spill] sm:$0xff] %v15774_v33 }
 0x688   : > { %v6434_v30 = vadd.f32 %v6380_v25, %v6157_v26  ;;  %v15783_v26 = vadd.f32 %v15645_v60, %v15655_v3 }
 0x689   : > { %12273 = vmatmul.msk.f32.gmra.mxu3 %vm336_vm1, %v18628_v45  ;;  %12337 = vmatmul.msk.f32.gmra.mxu1 %vm336_vm1, %v18629_v43  ;;  %v15785_v43 = vld [vmem:[#allocation4 + $0x81] sm:$0xff] }
 0x68a   : > { %v6660_v10 = vpop.f32.mrf.mxu0  ;;  %12239 = vmatmul.msk.f32.gmra.mxu2 %vm336_vm1, %v15764_v1  ;;  %v15772_v53 = vadd.f32 %v6657_v56, %v6434_v30  ;;  %18631 = vst [vmem:[#allocation55_spill] sm:$0xff] %v15785_v43  ;;  %v18632_v56 = vld [vmem:[#allocation60_spill] sm:$0xff] }
 0x68b   : > { %v18633_v30 = vld [vmem:[#allocation56_spill] sm:$0xff] }
 0x68c   : > { %v6386_v4 = vpop.f32.mrf.mxu3 }
 0x68d   : > { %12305 = vmatmul.msk.f32.gmra.mxu0 %vm336_vm1, %v15774_v33  ;;  %v6106_v32 = vpop.f32.mrf.mxu2 }
 0x68e   : > { %v6158_v40 = vadd.f32 %v6106_v32, %v15272_v49  ;;  %v15779_v25 = vpop.f32.mrf.mxu1  ;;  %v15795_v32 = vld [vmem:[#allocation4 + $0x83] sm:$0xff] }
 0x68f   : > { %18634 = vst [vmem:[#allocation50_spill] sm:$0xff] %v15795_v32 }
 0x690   : > { %v6435_v45 = vadd.f32 %v6383_v42, %v6158_v40  ;;  %v15804_v40 = vadd.f32 %v15659_v35, %v15670_v52 }
 0x691   : > { %12274 = vmatmul.msk.f32.gmra.mxu3 %vm336_vm1, %v18632_v56  ;;  %12338 = vmatmul.msk.f32.gmra.mxu1 %vm336_vm1, %v18633_v30  ;;  %v15806_v30 = vld [vmem:[#allocation4 + $0x91] sm:$0xff] }
 0x692   : > { %v6663_v1 = vpop.f32.mrf.mxu0  ;;  %12240 = vmatmul.msk.f32.gmra.mxu2 %vm336_vm1, %v15785_v43  ;;  %v15793_v49 = vadd.f32 %v6660_v10, %v6435_v45  ;;  %18635 = vst [vmem:[#allocation58_spill] sm:$0xff] %v15806_v30  ;;  %v18636_v10 = vld [vmem:[#allocation62_spill] sm:$0xff]  ;;  %v18637_v45 = vld [vmem:[#allocation59_spill] sm:$0xff] }
 0x694   : > { %v6389_v33 = vpop.f32.mrf.mxu3 }
 0x695   : > { %12306 = vmatmul.msk.f32.gmra.mxu0 %vm336_vm1, %v15795_v32  ;;  %v6109_v60 = vpop.f32.mrf.mxu2 }
 0x696   : > { %v6159_v3 = vadd.f32 %v6109_v60, %v15293_v63  ;;  %v15800_v42 = vpop.f32.mrf.mxu1  ;;  %v15816_v60 = vld [vmem:[#allocation4 + $0x93] sm:$0xff] }
 0x697   : > { %18638 = vst [vmem:[#allocation53_spill] sm:$0xff] %v15816_v60 }
 0x698   : > { %v6436_v56 = vadd.f32 %v6386_v4, %v6159_v3  ;;  %v15825_v3 = vadd.f32 %v15674_v12, %v15688_v18 }
 0x699   : > { %12275 = vmatmul.msk.f32.gmra.mxu3 %vm336_vm1, %v18636_v10  ;;  %12339 = vmatmul.msk.f32.gmra.mxu1 %vm336_vm1, %v18637_v45  ;;  %v15827_v45 = vld [vmem:[#allocation4 + $0x99] sm:$0xff] }
 0x69a   : > { %v6666_v43 = vpop.f32.mrf.mxu0  ;;  %12241 = vmatmul.msk.f32.gmra.mxu2 %vm336_vm1, %v15806_v30  ;;  %v15814_v63 = vadd.f32 %v6663_v1, %v6436_v56  ;;  %18639 = vst [vmem:[#allocation60_spill] sm:$0xff] %v15827_v45  ;;  %v18640_v1 = vld [vmem:[#allocation64_spill] sm:$0xff]  ;;  %v18641_v56 = vld [vmem:[#allocation61_spill] sm:$0xff] }
 0x69c   : > { %v6392_v32 = vpop.f32.mrf.mxu3 }
 0x69d   : > { %12307 = vmatmul.msk.f32.gmra.mxu0 %vm336_vm1, %v15816_v60  ;;  %v6112_v35 = vpop.f32.mrf.mxu2 }
 0x69e   : > { %v6160_v52 = vadd.f32 %v6112_v35, %v15314_v22  ;;  %v15821_v4 = vpop.f32.mrf.mxu1  ;;  %v15837_v35 = vld [vmem:[#allocation4 + $0x9b] sm:$0xff] }
 0x69f   : > { %18642 = vst [vmem:[#allocation56_spill] sm:$0xff] %v15837_v35 }
 0x6a0   : > { %v6437_v10 = vadd.f32 %v6389_v33, %v6160_v52  ;;  %v15846_v52 = vadd.f32 %v15695_v34, %v15709_v27 }
 0x6a1   : > { %12276 = vmatmul.msk.f32.gmra.mxu3 %vm336_vm1, %v18640_v1  ;;  %12340 = vmatmul.msk.f32.gmra.mxu1 %vm336_vm1, %v18641_v56  ;;  %v15848_v56 = vld [vmem:[#allocation4 + $0xa9] sm:$0xff] }
 0x6a2   : > { %v6669_v30 = vpop.f32.mrf.mxu0  ;;  %12242 = vmatmul.msk.f32.gmra.mxu2 %vm336_vm1, %v15827_v45  ;;  %v15835_v22 = vadd.f32 %v6666_v43, %v6437_v10  ;;  %18643 = vst [vmem:[#allocation62_spill] sm:$0xff] %v15846_v52  ;;  %v18645_v43 = vld [vmem:[#allocation66_spill] sm:$0xff]  ;;  %v18646_v10 = vld [vmem:[#allocation63_spill] sm:$0xff]  ;;  %v15886_v52 = vld [vmem:[#allocation4 + $0xc1] sm:$0xff] }
 0x6a3   : > { %18644 = vst [vmem:[#allocation59_spill] sm:$0xff] %v15848_v56 }
 0x6a4   : > { %v6395_v60 = vpop.f32.mrf.mxu3 }
 0x6a5   : > { %12308 = vmatmul.msk.f32.gmra.mxu0 %vm336_vm1, %v15837_v35  ;;  %v6115_v12 = vpop.f32.mrf.mxu2 }
 0x6a6   : > { %v6161_v18 = vadd.f32 %v6115_v12, %v15333_v16  ;;  %v15842_v33 = vpop.f32.mrf.mxu1  ;;  %v15858_v12 = vld [vmem:[#allocation4 + $0xab] sm:$0xff] }
 0x6a7   : > { %18647 = vst [vmem:[#allocation64_spill] sm:$0xff] %v15858_v12 }
 0x6a8   : > { %v6438_v1 = vadd.f32 %v6392_v32, %v6161_v18 }
 0x6a9   : > { %12277 = vmatmul.msk.f32.gmra.mxu3 %vm336_vm1, %v18645_v43  ;;  %12341 = vmatmul.msk.f32.gmra.mxu1 %vm336_vm1, %v18646_v10  ;;  %v15865_v43 = vld [vmem:[#allocation4 + $0xb1] sm:$0xff]  ;;  %v18648_v10 = vld [vmem:[#allocation68_spill] sm:$0xff] }
 0x6aa   : > { %v6672_v45 = vpop.f32.mrf.mxu0  ;;  %12243 = vmatmul.msk.f32.gmra.mxu2 %vm336_vm1, %v15848_v56  ;;  %v15856_v16 = vadd.f32 %v6669_v30, %v6438_v1  ;;  %v18649_v56 = vld [vmem:[#allocation65_spill] sm:$0xff] }
 0x6ac   : > { %v6398_v35 = vpop.f32.mrf.mxu3 }
 0x6ad   : > { %12309 = vmatmul.msk.f32.gmra.mxu0 %vm336_vm1, %v15858_v12  ;;  %v6118_v34 = vpop.f32.mrf.mxu2  ;;  %v15875_v12 = vld [vmem:[#allocation4 + $0xb3] sm:$0xff] }
 0x6ae   : > { %v6162_v27 = vadd.f32 %v6118_v34, %v15352_v55  ;;  %v15863_v32 = vpop.f32.mrf.mxu1  ;;  %18650 = vst [vmem:[#allocation61_spill] sm:$0xff] %v15875_v12  ;;  %v15879_v55 = vadd.f32 %v15716_v58, %v15730_v15 }
 0x6b0   : > { %v6439_v18 = vadd.f32 %v6395_v60, %v6162_v27 }
 0x6b1   : > { %12278 = vmatmul.msk.f32.gmra.mxu3 %vm336_vm1, %v18648_v10  ;;  %12342 = vmatmul.msk.f32.gmra.mxu1 %vm336_vm1, %v18649_v56 }
 0x6b2   : > { %v6675_v30 = vpop.f32.mrf.mxu0  ;;  %12244 = vmatmul.msk.f32.gmra.mxu2 %vm336_vm1, %v15865_v43  ;;  %v15873_v1 = vadd.f32 %v6672_v45, %v6439_v18  ;;  %v18651_v45 = vld [vmem:[#allocation67_spill] sm:$0xff]  ;;  %v15896_v18 = vld [vmem:[#allocation4 + $0xc3] sm:$0xff] }
 0x6b3   : > { %18652 = vst [vmem:[#allocation66_spill] sm:$0xff] %v15896_v18 }
 0x6b4   : > { %v6401_v60 = vpop.f32.mrf.mxu3 }
 0x6b5   : > { %12310 = vmatmul.msk.f32.gmra.mxu0 %vm336_vm1, %v15875_v12  ;;  %v6121_v34 = vpop.f32.mrf.mxu2  ;;  %v15907_v12 = vld [vmem:[#allocation4 + $0xc9] sm:$0xff] }
 0x6b6   : > { %v6163_v27 = vadd.f32 %v6121_v34, %v15371_v24  ;;  %v15884_v56 = vpop.f32.mrf.mxu1  ;;  %v15900_v24 = vadd.f32 %v15737_v5, %v15751_v20  ;;  %18653 = vst [vmem:[#allocation63_spill] sm:$0xff] %v15907_v12 }
 0x6b8   : > { %v6440_v10 = vadd.f32 %v6398_v35, %v6163_v27 }
 0x6b9   : > { %12279 = vmatmul.msk.f32.gmra.mxu3 %vm336_vm1, %v15297_v14  ;;  %12343 = vmatmul.msk.f32.gmra.mxu1 %vm336_vm1, %v18651_v45 }
 0x6ba   : > { %v6678_v58 = vpop.f32.mrf.mxu0  ;;  %12245 = vmatmul.msk.f32.gmra.mxu2 %vm336_vm1, %v15886_v52  ;;  %v15894_v15 = vadd.f32 %v6675_v30, %v6440_v10  ;;  %v18654_v30 = vld [vmem:[#allocation69_spill] sm:$0xff] }
 0x6bb   : > { %v15917_v10 = vld [vmem:[#allocation4 + $0xcb] sm:$0xff] }
 0x6bc   : > { %v6404_v35 = vpop.f32.mrf.mxu3  ;;  %18655 = vst [vmem:[#allocation68_spill] sm:$0xff] %v15917_v10 }
 0x6bd   : > { %12311 = vmatmul.msk.f32.gmra.mxu0 %vm336_vm1, %v15896_v18  ;;  %v6124_v14 = vpop.f32.mrf.mxu2  ;;  %v15928_v18 = vld [vmem:[#allocation4 + $0xd9] sm:$0xff] }
 0x6be   : > { %v6164_v34 = vadd.f32 %v6124_v14, %v15391_v54  ;;  %v15905_v27 = vpop.f32.mrf.mxu1  ;;  %v15921_v54 = vadd.f32 %v15758_v36, %v15772_v53 }
 0x6c0   : > { %v6441_v45 = vadd.f32 %v6401_v60, %v6164_v34 }
 0x6c1   : > { %12280 = vmatmul.msk.f32.gmra.mxu3 %vm336_vm1, %v15316_v9  ;;  %12344 = vmatmul.msk.f32.gmra.mxu1 %vm336_vm1, %v18654_v30 }
 0x6c2   : > { %v6681_v5 = vpop.f32.mrf.mxu0  ;;  %12246 = vmatmul.msk.f32.gmra.mxu2 %vm336_vm1, %v15907_v12  ;;  %v15915_v20 = vadd.f32 %v6678_v58, %v6441_v45  ;;  %v18656_v58 = vld [vmem:[#allocation72_spill] sm:$0xff]  ;;  %v18657_v45 = vld [vmem:[#allocation70_spill] sm:$0xff] }
 0x6c3   : > { %v15949_v12 = vld [vmem:[#allocation4 + $0xe1] sm:$0xff] }
 0x6c4   : > { %v6407_v60 = vpop.f32.mrf.mxu3 }
 0x6c5   : > { %12312 = vmatmul.msk.f32.gmra.mxu0 %vm336_vm1, %v15917_v10  ;;  %v6127_v9 = vpop.f32.mrf.mxu2  ;;  %v15938_v10 = vld [vmem:[#allocation4 + $0xdb] sm:$0xff] }
 0x6c6   : > { %v6165_v14 = vadd.f32 %v6127_v9, %v15411_v11  ;;  %v15926_v34 = vpop.f32.mrf.mxu1  ;;  %18658 = vst [vmem:[#allocation65_spill] sm:$0xff] %v15938_v10  ;;  %v15942_v11 = vadd.f32 %v15779_v25, %v15793_v49 }
 0x6c8   : > { %v6442_v30 = vadd.f32 %v6404_v35, %v6165_v14 }
 0x6c9   : > { %12281 = vmatmul.msk.f32.gmra.mxu3 %vm336_vm1, %v18656_v58  ;;  %12345 = vmatmul.msk.f32.gmra.mxu1 %vm336_vm1, %v18657_v45 }
 0x6ca   : > { %v6684_v36 = vpop.f32.mrf.mxu0  ;;  %12247 = vmatmul.msk.f32.gmra.mxu2 %vm336_vm1, %v15928_v18  ;;  %v15936_v53 = vadd.f32 %v6681_v5, %v6442_v30  ;;  %v18659_v5 = vld [vmem:[#allocation71_spill] sm:$0xff]  ;;  %v15959_v30 = vld [vmem:[#allocation4 + $0xe3] sm:$0xff] }
 0x6cb   : > { %18660 = vst [vmem:[#allocation67_spill] sm:$0xff] %v15959_v30 }
 0x6cc   : > { %v6410_v35 = vpop.f32.mrf.mxu3 }
 0x6cd   : > { %12313 = vmatmul.msk.f32.gmra.mxu0 %vm336_vm1, %v15938_v10  ;;  %v6130_v9 = vpop.f32.mrf.mxu2  ;;  %v15970_v10 = vld [vmem:[#allocation4 + $0xf1] sm:$0xff] }
 0x6ce   : > { %v6166_v14 = vadd.f32 %v6130_v9, %v15431_v61  ;;  %v15947_v58 = vpop.f32.mrf.mxu1  ;;  %v15963_v61 = vadd.f32 %v15800_v42, %v15814_v63 }
 0x6d0   : > { %v6443_v45 = vadd.f32 %v6407_v60, %v6166_v14 }
 0x6d1   : > { %12282 = vmatmul.msk.f32.gmra.mxu3 %vm336_vm1, %v15354_v23  ;;  %12346 = vmatmul.msk.f32.gmra.mxu1 %vm336_vm1, %v18659_v5 }
 0x6d2   : > { %v6687_v25 = vpop.f32.mrf.mxu0  ;;  %12248 = vmatmul.msk.f32.gmra.mxu2 %vm336_vm1, %v15949_v12  ;;  %v15957_v49 = vadd.f32 %v6684_v36, %v6443_v45  ;;  %v18661_v36 = vld [vmem:[#allocation73_spill] sm:$0xff]  ;;  %v15980_v45 = vld [vmem:[#allocation4 + $0xf3] sm:$0xff] }
 0x6d3   : > { %18662 = vst [vmem:[#allocation69_spill] sm:$0xff] %v15980_v45 }
 0x6d4   : > { %v7425_v60 = vpop.f32.mrf.mxu3 }
 0x6d5   : > { %12314 = vmatmul.msk.f32.gmra.mxu0 %vm336_vm1, %v15959_v30  ;;  %v6133_v23 = vpop.f32.mrf.mxu2  ;;  %v15991_v30 = vld [vmem:[#allocation4 + $0xf9] sm:$0xff] }
 0x6d6   : > { %v6167_v9 = vadd.f32 %v6133_v23, %v15451_v31  ;;  %v15968_v14 = vpop.f32.mrf.mxu1  ;;  %v15984_v31 = vadd.f32 %v15821_v4, %v15835_v22 }
 0x6d8   : > { %v6444_v5 = vadd.f32 %v6410_v35, %v6167_v9 }
 0x6d9   : > { %12283 = vmatmul.msk.f32.gmra.mxu3 %vm336_vm1, %v15373_v21  ;;  %12347 = vmatmul.msk.f32.gmra.mxu1 %vm336_vm1, %v18661_v36 }
 0x6da   : > { %v7702_v42 = vpop.f32.mrf.mxu0  ;;  %12249 = vmatmul.msk.f32.gmra.mxu2 %vm336_vm1, %v15970_v10  ;;  %v15978_v63 = vadd.f32 %v6687_v25, %v6444_v5  ;;  %v18663_v25 = vld [vmem:[#allocation74_spill] sm:$0xff]  ;;  %v16001_v5 = vld [vmem:[#allocation4 + $0xfb] sm:$0xff] }
 0x6db   : > { %18664 = vst [vmem:[#allocation72_spill] sm:$0xff] %v16001_v5 }
 0x6dc   : > { %v7428_v35 = vpop.f32.mrf.mxu3 }
 0x6dd   : > { %12315 = vmatmul.msk.f32.gmra.mxu0 %vm336_vm1, %v15980_v45  ;;  %v7148_v21 = vpop.f32.mrf.mxu2  ;;  %v16012_v45 = vld [vmem:[#allocation4 + $0x109] sm:$0xff] }
 0x6de   : > { %v7244_v23 = vadd.f32 %v7148_v21, %v15471_v28  ;;  %v15989_v9 = vpop.f32.mrf.mxu1  ;;  %v16005_v28 = vadd.f32 %v15842_v33, %v15856_v16 }
 0x6e0   : > { %v7521_v36 = vadd.f32 %v7425_v60, %v7244_v23 }
 0x6e1   : > { %12284 = vmatmul.msk.f32.gmra.mxu3 %vm336_vm1, %v15393_v44  ;;  %12348 = vmatmul.msk.f32.gmra.mxu1 %vm336_vm1, %v18663_v25 }
 0x6e2   : > { %v7705_v4 = vpop.f32.mrf.mxu0  ;;  %12250 = vmatmul.msk.f32.gmra.mxu2 %vm336_vm1, %v15991_v30  ;;  %v15999_v22 = vadd.f32 %v7702_v42, %v7521_v36  ;;  %v18665_v42 = vld [vmem:[#allocation75_spill] sm:$0xff]  ;;  %v16022_v36 = vld [vmem:[#allocation4 + $0x10b] sm:$0xff] }
 0x6e3   : > { %18666 = vst [vmem:[#allocation70_spill] sm:$0xff] %v16022_v36 }
 0x6e4   : > { %v7431_v60 = vpop.f32.mrf.mxu3 }
 0x6e5   : > { %12316 = vmatmul.msk.f32.gmra.mxu0 %vm336_vm1, %v16001_v5  ;;  %v7151_v44 = vpop.f32.mrf.mxu2  ;;  %v16033_v5 = vld [vmem:[#allocation4 + $0x111] sm:$0xff] }
 0x6e6   : > { %v7245_v21 = vadd.f32 %v7151_v44, %v15491_v51  ;;  %v16010_v23 = vpop.f32.mrf.mxu1  ;;  %v16026_v51 = vadd.f32 %v15863_v32, %v15873_v1 }
 0x6e8   : > { %v7522_v25 = vadd.f32 %v7428_v35, %v7245_v21 }
 0x6e9   : > { %12285 = vmatmul.msk.f32.gmra.mxu3 %vm336_vm1, %v15413_v17  ;;  %12349 = vmatmul.msk.f32.gmra.mxu1 %vm336_vm1, %v18665_v42 }
 0x6ea   : > { %v7708_v33 = vpop.f32.mrf.mxu0  ;;  %12251 = vmatmul.msk.f32.gmra.mxu2 %vm336_vm1, %v16012_v45  ;;  %v16020_v16 = vadd.f32 %v7705_v4, %v7522_v25  ;;  %v18667_v4 = vld [vmem:[#allocation76_spill] sm:$0xff]  ;;  %v16043_v25 = vld [vmem:[#allocation4 + $0x113] sm:$0xff] }
 0x6eb   : > { %18668 = vst [vmem:[#allocation71_spill] sm:$0xff] %v16043_v25 }
 0x6ec   : > { %v7434_v35 = vpop.f32.mrf.mxu3 }
 0x6ed   : > { %12317 = vmatmul.msk.f32.gmra.mxu0 %vm336_vm1, %v16022_v36  ;;  %v7154_v17 = vpop.f32.mrf.mxu2  ;;  %v16054_v36 = vld [vmem:[#allocation4 + $0x121] sm:$0xff] }
 0x6ee   : > { %v7246_v44 = vadd.f32 %v7154_v17, %v15511_v13  ;;  %v16031_v21 = vpop.f32.mrf.mxu1  ;;  %v16047_v13 = vadd.f32 %v15884_v56, %v15894_v15 }
 0x6f0   : > { %v7523_v42 = vadd.f32 %v7431_v60, %v7246_v44 }
 0x6f1   : > { %12286 = vmatmul.msk.f32.gmra.mxu3 %vm336_vm1, %v15433_v38  ;;  %12350 = vmatmul.msk.f32.gmra.mxu1 %vm336_vm1, %v18667_v4 }
 0x6f2   : > { %v7711_v32 = vpop.f32.mrf.mxu0  ;;  %12252 = vmatmul.msk.f32.gmra.mxu2 %vm336_vm1, %v16033_v5  ;;  %v16041_v1 = vadd.f32 %v7708_v33, %v7523_v42  ;;  %v18669_v33 = vld [vmem:[#allocation77_spill] sm:$0xff] }
 0x6f3   : > { %v16064_v42 = vld [vmem:[#allocation4 + $0x123] sm:$0xff] }
 0x6f4   : > { %v7437_v60 = vpop.f32.mrf.mxu3  ;;  %18670 = vst [vmem:[#allocation73_spill] sm:$0xff] %v16064_v42 }
 0x6f5   : > { %12318 = vmatmul.msk.f32.gmra.mxu0 %vm336_vm1, %v16043_v25  ;;  %v7157_v38 = vpop.f32.mrf.mxu2  ;;  %v16075_v25 = vld [vmem:[#allocation4 + $0x129] sm:$0xff] }
 0x6f6   : > { %v7247_v17 = vadd.f32 %v7157_v38, %v15531_v50  ;;  %v16052_v44 = vpop.f32.mrf.mxu1  ;;  %v16068_v50 = vadd.f32 %v15905_v27, %v15915_v20 }
 0x6f8   : > { %v7524_v4 = vadd.f32 %v7434_v35, %v7247_v17 }
 0x6f9   : > { %12287 = vmatmul.msk.f32.gmra.mxu3 %vm336_vm1, %v15453_v37  ;;  %12351 = vmatmul.msk.f32.gmra.mxu1 %vm336_vm1, %v18669_v33 }
 0x6fa   : > { %v7714_v56 = vpop.f32.mrf.mxu0  ;;  %12253 = vmatmul.msk.f32.gmra.mxu2 %vm336_vm1, %v16054_v36  ;;  %v16062_v15 = vadd.f32 %v7711_v32, %v7524_v4  ;;  %v18671_v32 = vld [vmem:[#allocation78_spill] sm:$0xff] }
 0x6fb   : > { %v16085_v4 = vld [vmem:[#allocation4 + $0x12b] sm:$0xff] }
 0x6fc   : > { %v7440_v35 = vpop.f32.mrf.mxu3  ;;  %18672 = vst [vmem:[#allocation74_spill] sm:$0xff] %v16085_v4 }
 0x6fd   : > { %12319 = vmatmul.msk.f32.gmra.mxu0 %vm336_vm1, %v16064_v42  ;;  %v7160_v37 = vpop.f32.mrf.mxu2  ;;  %v16096_v42 = vld [vmem:[#allocation4 + $0x139] sm:$0xff] }
 0x6fe   : > { %v7248_v38 = vadd.f32 %v7160_v37, %v15552_v62  ;;  %v16073_v17 = vpop.f32.mrf.mxu1  ;;  %v16089_v62 = vadd.f32 %v15926_v34, %v15936_v53 }
 0x700   : > { %v7525_v33 = vadd.f32 %v7437_v60, %v7248_v38 }
 0x701   : > { %12288 = vmatmul.msk.f32.gmra.mxu3 %vm336_vm1, %v15473_v41  ;;  %12352 = vmatmul.msk.f32.gmra.mxu1 %vm336_vm1, %v18671_v32 }
 0x702   : > { %v7717_v27 = vpop.f32.mrf.mxu0  ;;  %12254 = vmatmul.msk.f32.gmra.mxu2 %vm336_vm1, %v16075_v25  ;;  %v16083_v20 = vadd.f32 %v7714_v56, %v7525_v33  ;;  %v18673_v56 = vld [vmem:[#allocation79_spill] sm:$0xff] }
 0x703   : > { %v16106_v33 = vld [vmem:[#allocation4 + $0x13b] sm:$0xff] }
 0x704   : > { %v7443_v60 = vpop.f32.mrf.mxu3  ;;  %18674 = vst [vmem:[#allocation75_spill] sm:$0xff] %v16106_v33 }
 0x705   : > { %12320 = vmatmul.msk.f32.gmra.mxu0 %vm336_vm1, %v16085_v4  ;;  %v7163_v41 = vpop.f32.mrf.mxu2  ;;  %v16117_v4 = vld [vmem:[#allocation4 + $0x141] sm:$0xff] }
 0x706   : > { %v7249_v37 = vadd.f32 %v7163_v41, %v15585_v6  ;;  %v16094_v38 = vpop.f32.mrf.mxu1  ;;  %v16110_v6 = vadd.f32 %v15947_v58, %v15957_v49 }
 0x708   : > { %v7526_v32 = vadd.f32 %v7440_v35, %v7249_v37 }
 0x709   : > { %12289 = vmatmul.msk.f32.gmra.mxu3 %vm336_vm1, %v15493_v46  ;;  %12353 = vmatmul.msk.f32.gmra.mxu1 %vm336_vm1, %v18673_v56 }
 0x70a   : > { %v7720_v34 = vpop.f32.mrf.mxu0  ;;  %12255 = vmatmul.msk.f32.gmra.mxu2 %vm336_vm1, %v16096_v42  ;;  %v16104_v53 = vadd.f32 %v7717_v27, %v7526_v32  ;;  %v18675_v27 = vld [vmem:[#allocation80_spill] sm:$0xff] }
 0x70b   : > { %v16127_v32 = vld [vmem:[#allocation4 + $0x143] sm:$0xff] }
 0x70c   : > { %v7446_v35 = vpop.f32.mrf.mxu3  ;;  %18676 = vst [vmem:[#allocation76_spill] sm:$0xff] %v16127_v32 }
 0x70d   : > { %12321 = vmatmul.msk.f32.gmra.mxu0 %vm336_vm1, %v16106_v33  ;;  %v7166_v46 = vpop.f32.mrf.mxu2  ;;  %v16138_v33 = vld [vmem:[#allocation4 + $0x151] sm:$0xff] }
 0x70e   : > { %v7250_v41 = vadd.f32 %v7166_v46, %v15609_v7  ;;  %v16115_v37 = vpop.f32.mrf.mxu1  ;;  %v16131_v7 = vadd.f32 %v15968_v14, %v15978_v63  ;;  %18677 = vst [vmem:[#allocation77_spill] sm:$0xff] %v16138_v33 }
 0x710   : > { %v7527_v56 = vadd.f32 %v7443_v60, %v7250_v41 }
 0x711   : > { %12290 = vmatmul.msk.f32.gmra.mxu3 %vm336_vm1, %v15513_v0  ;;  %12354 = vmatmul.msk.f32.gmra.mxu1 %vm336_vm1, %v18675_v27 }
 0x712   : > { %v7723_v58 = vpop.f32.mrf.mxu0  ;;  %12256 = vmatmul.msk.f32.gmra.mxu2 %vm336_vm1, %v16117_v4  ;;  %v16125_v49 = vadd.f32 %v7720_v34, %v7527_v56  ;;  %v18678_v34 = vld [vmem:[#allocation81_spill] sm:$0xff]  ;;  %v16148_v56 = vld [vmem:[#allocation4 + $0x153] sm:$0xff] }
 0x713   : > { %18679 = vst [vmem:[#allocation78_spill] sm:$0xff] %v16148_v56 }
 0x714   : > { %v7449_v60 = vpop.f32.mrf.mxu3 }
 0x715   : > { %12322 = vmatmul.msk.f32.gmra.mxu0 %vm336_vm1, %v16127_v32  ;;  %v7169_v0 = vpop.f32.mrf.mxu2  ;;  %v16159_v32 = vld [vmem:[#allocation4 + $0x159] sm:$0xff] }
 0x716   : > { %v7251_v46 = vadd.f32 %v7169_v0, %v15629_v2  ;;  %v16136_v41 = vpop.f32.mrf.mxu1  ;;  %v16152_v2 = vadd.f32 %v15989_v9, %v15999_v22  ;;  %18680 = vst [vmem:[#allocation79_spill] sm:$0xff] %v16159_v32 }
 0x718   : > { %v7528_v27 = vadd.f32 %v7446_v35, %v7251_v46 }
 0x719   : > { %12291 = vmatmul.msk.f32.gmra.mxu3 %vm336_vm1, %v15533_v19  ;;  %12355 = vmatmul.msk.f32.gmra.mxu1 %vm336_vm1, %v18678_v34 }
 0x71a   : > { %v7726_v14 = vpop.f32.mrf.mxu0  ;;  %12257 = vmatmul.msk.f32.gmra.mxu2 %vm336_vm1, %v16138_v33  ;;  %v16146_v63 = vadd.f32 %v7723_v58, %v7528_v27  ;;  %v18681_v58 = vld [vmem:[#allocation82_spill] sm:$0xff]  ;;  %v16169_v27 = vld [vmem:[#allocation4 + $0x15b] sm:$0xff] }
 0x71b   : > { %18682 = vst [vmem:[#allocation80_spill] sm:$0xff] %v16169_v27  ;;  %v7306_v33 = vld [vmem:[#allocation4 + $0x19a] sm:$0xff] }
 0x71c   : > { %v7452_v35 = vpop.f32.mrf.mxu3 }
 0x71d   : > { %12323 = vmatmul.msk.f32.gmra.mxu0 %vm336_vm1, %v16148_v56  ;;  %v7172_v19 = vpop.f32.mrf.mxu2  ;;  %v16180_v56 = vld [vmem:[#allocation4 + $0x169] sm:$0xff] }
 0x71e   : > { %v7252_v0 = vadd.f32 %v7172_v19, %v15649_v47  ;;  %v16157_v46 = vpop.f32.mrf.mxu1  ;;  %v16173_v47 = vadd.f32 %v16010_v23, %v16020_v16  ;;  %18683 = vst [vmem:[#allocation81_spill] sm:$0xff] %v16180_v56 }
 0x720   : > { %v7529_v34 = vadd.f32 %v7449_v60, %v7252_v0 }
 0x721   : > { %12292 = vmatmul.msk.f32.gmra.mxu3 %vm336_vm1, %v15554_v48  ;;  %12356 = vmatmul.msk.f32.gmra.mxu1 %vm336_vm1, %v18681_v58 }
 0x722   : > { %v7729_v9 = vpop.f32.mrf.mxu0  ;;  %12258 = vmatmul.msk.f32.gmra.mxu2 %vm336_vm1, %v16159_v32  ;;  %v16167_v22 = vadd.f32 %v7726_v14, %v7529_v34  ;;  %v18684_v14 = vld [vmem:[#allocation85_spill] sm:$0xff]  ;;  %v18685_v34 = vld [vmem:[#allocation84_spill] sm:$0xff]  ;;  %v16201_v32 = vld [vmem:[#allocation4 + $0x171] sm:$0xff] }
 0x723   : > { %18687 = vst [vmem:[#allocation85_spill] sm:$0xff] %v16201_v32 }
 0x724   : > { %v7455_v60 = vpop.f32.mrf.mxu3 }
 0x725   : > { %12324 = vmatmul.msk.f32.gmra.mxu0 %vm336_vm1, %v16169_v27  ;;  %v7175_v48 = vpop.f32.mrf.mxu2  ;;  %v16190_v27 = vld [vmem:[#allocation4 + $0x16b] sm:$0xff] }
 0x726   : > { %v7253_v19 = vadd.f32 %v7175_v48, %v15663_v39  ;;  %v16178_v0 = vpop.f32.mrf.mxu1  ;;  %18686 = vst [vmem:[#allocation82_spill] sm:$0xff] %v16190_v27  ;;  %v16194_v39 = vadd.f32 %v16031_v21, %v16041_v1 }
 0x728   : > { %v7530_v58 = vadd.f32 %v7452_v35, %v7253_v19 }
 0x729   : > { %12293 = vmatmul.msk.f32.gmra.mxu3 %vm336_vm1, %v18684_v14  ;;  %12357 = vmatmul.msk.f32.gmra.mxu1 %vm336_vm1, %v18685_v34 }
 0x72a   : > { %v7732_v23 = vpop.f32.mrf.mxu0  ;;  %12259 = vmatmul.msk.f32.gmra.mxu2 %vm336_vm1, %v16180_v56  ;;  %v16188_v16 = vadd.f32 %v7729_v9, %v7530_v58  ;;  %v18688_v9 = vld [vmem:[#allocation41_spill] sm:$0xff]  ;;  %v18689_v58 = vld [vmem:[#allocation83_spill] sm:$0xff] }
 0x72b   : > { %v16222_v56 = vld [vmem:[#allocation4 + $0x181] sm:$0xff] }
 0x72c   : > { %v7458_v35 = vpop.f32.mrf.mxu3  ;;  %18691 = vst [vmem:[#allocation41_spill] sm:$0xff] %v16222_v56 }
 0x72d   : > { %12325 = vmatmul.msk.f32.gmra.mxu0 %vm336_vm1, %v16190_v27  ;;  %v7178_v48 = vpop.f32.mrf.mxu2  ;;  %v16211_v27 = vld [vmem:[#allocation4 + $0x173] sm:$0xff] }
 0x72e   : > { %v7254_v19 = vadd.f32 %v7178_v48, %v15678_v8  ;;  %v16199_v14 = vpop.f32.mrf.mxu1  ;;  %18690 = vst [vmem:[#allocation84_spill] sm:$0xff] %v16211_v27  ;;  %v16215_v8 = vadd.f32 %v16052_v44, %v16062_v15 }
 0x730   : > { %v7531_v34 = vadd.f32 %v7455_v60, %v7254_v19 }
 0x731   : > { %12294 = vmatmul.msk.f32.gmra.mxu3 %vm336_vm1, %v18688_v9  ;;  %12358 = vmatmul.msk.f32.gmra.mxu1 %vm336_vm1, %v18689_v58 }
 0x732   : > { %v7735_v21 = vpop.f32.mrf.mxu0  ;;  %12260 = vmatmul.msk.f32.gmra.mxu2 %vm336_vm1, %v16201_v32  ;;  %v16209_v1 = vadd.f32 %v7732_v23, %v7531_v34  ;;  %v18692_v23 = vld [vmem:[#allocation42_spill] sm:$0xff] }
 0x733   : > { %v18693_v34 = vld [vmem:[#allocation86_spill] sm:$0xff] }
 0x734   : > { %v7461_v60 = vpop.f32.mrf.mxu3 }
 0x735   : > { %12326 = vmatmul.msk.f32.gmra.mxu0 %vm336_vm1, %v16211_v27  ;;  %v7181_v48 = vpop.f32.mrf.mxu2 }
 0x736   : > { %v7255_v19 = vadd.f32 %v7181_v48, %v15699_v59  ;;  %v16220_v9 = vpop.f32.mrf.mxu1  ;;  %v9248_v59 = vld [vmem:[%s18224_s6 + $0x4c] sm:$0xf]  ;;  %v9526_v48 = vld [vmem:[%s18224_s6 + $0x50] sm:$0xf] }
 0x737   : > { %12496 = vmatpush.msk.msrb.mxu2 %vm757_vm0, %v9248_v59  ;;  %12529 = vmatpush.msk.msrb.mxu3 %vm757_vm0, %v9526_v48  ;;  %v8971_v59 = vld [vmem:[%s18224_s6 + $0x48] sm:$0xf] }
 0x738   : > { %v7532_v58 = vadd.f32 %v7458_v35, %v7255_v19  ;;  %v8694_v35 = vld [vmem:[%s18224_s6 + $0x44] sm:$0xf]  ;;  %12463 = vmatpush.msk.msrb.mxu1 %vm757_vm0, %v8971_v59  ;;  %v18700_v59 = vld [vmem:[#allocation87_spill] sm:$0xff] }
 0x739   : > { %12295 = vmatmul.msk.f32.gmra.mxu3 %vm336_vm1, %v18692_v23  ;;  %12359 = vmatmul.msk.f32.gmra.mxu1 %vm336_vm1, %v18693_v34  ;;  %v16241_v19 = vld [vmem:[#allocation4 + $0x183] sm:$0xff]  ;;  %v18695_v34 = vld [vmem:[#allocation51_spill] sm:$0xff] }
 0x73a   : > { %v7738_v44 = vpop.f32.mrf.mxu0  ;;  %12261 = vmatmul.msk.f32.gmra.mxu2 %vm336_vm1, %v16222_v56  ;;  %v16230_v15 = vadd.f32 %v7735_v21, %v7532_v58  ;;  %18694 = vst [vmem:[#allocation83_spill] sm:$0xff] %v16241_v19  ;;  %12430 = vmatpush.msk.msrb.mxu0 %vm757_vm0, %v8694_v35  ;;  %v16247_v21 = vadd.f32 %v16073_v17, %v16083_v20  ;;  %v16258_v35 = vld [vmem:[#allocation4 + $0x189] sm:$0xff]  ;;  %v18697_v17 = vld [vmem:[#allocation40_spill] sm:$0xff] }
 0x73b   : > { %18696 = vst [vmem:[#allocation42_spill] sm:$0xff] %v16258_v35 }
 0x73c   : > { %v7464_v58 = vpop.f32.mrf.mxu3 }
 0x73d   : > { %12327 = vmatmul.msk.f32.gmra.mxu0 %vm336_vm1, %v16241_v19  ;;  %v7184_v23 = vpop.f32.mrf.mxu2 }
 0x73e   : > { %v7256_v27 = vadd.f32 %v7184_v23, %v18695_v34  ;;  %v16253_v56 = vpop.f32.mrf.mxu1 }
 0x740   : > { %v7533_v32 = vadd.f32 %v7461_v60, %v7256_v27  ;;  %v16268_v27 = vld [vmem:[#allocation4 + $0x18b] sm:$0xff]  ;;  %v16272_v60 = vadd.f32 %v16094_v38, %v16104_v53 }
 0x741   : > { %12296 = vmatmul.msk.f32.gmra.mxu3 %vm336_vm1, %v7306_v33  ;;  %12360 = vmatmul.msk.f32.gmra.mxu1 %vm336_vm1, %v18697_v17  ;;  %18698 = vst [vmem:[#allocation86_spill] sm:$0xff] %v16268_v27 }
 0x742   : > { %v7741_v20 = vpop.f32.mrf.mxu0  ;;  %12262 = vmatmul.msk.f32.gmra.mxu2 %vm336_vm1, %v16258_v35  ;;  %v16265_v48 = vadd.f32 %v7738_v44, %v7533_v32  ;;  %v7307_v32 = vld [vmem:[#allocation4 + $0x1a2] sm:$0xff]  ;;  %v16279_v44 = vld [vmem:[#allocation4 + $0x199] sm:$0xff] }
 0x743   : > { %18699 = vst [vmem:[#allocation51_spill] sm:$0xff] %v16279_v44  ;;  %v7860_v35 = vld [vmem:[#allocation4 + $0x19c] sm:$0xff] }
 0x744   : > { %v7467_v23 = vpop.f32.mrf.mxu3 }
 0x745   : > { %12328 = vmatmul.msk.f32.gmra.mxu0 %vm336_vm1, %v16268_v27  ;;  %v7187_v33 = vpop.f32.mrf.mxu2  ;;  %v16288_v27 = vld [vmem:[#allocation4 + $0x19b] sm:$0xff] }
 0x746   : > { %v7257_v34 = vadd.f32 %v7187_v33, %v15741_v29  ;;  %v16277_v17 = vpop.f32.mrf.mxu1  ;;  %18701 = vst [vmem:[#allocation40_spill] sm:$0xff] %v16288_v27  ;;  %v16292_v29 = vadd.f32 %v16115_v37, %v16125_v49 }
 0x748   : > { %v7534_v19 = vadd.f32 %v7464_v58, %v7257_v34 }
 0x749   : > { %12297 = vmatmul.msk.f32.gmra.mxu3 %vm336_vm1, %v7307_v32  ;;  %12361 = vmatmul.msk.f32.gmra.mxu1 %vm336_vm1, %v18700_v59 }
 0x74a   : > { %v7744_v38 = vpop.f32.mrf.mxu0  ;;  %12263 = vmatmul.msk.f32.gmra.mxu2 %vm336_vm1, %v16279_v44  ;;  %v16286_v53 = vadd.f32 %v7741_v20, %v7534_v19  ;;  %v16299_v44 = vld [vmem:[#allocation4 + $0x1a1] sm:$0xff] }
 0x74b   : > { %18702 = vst [vmem:[#allocation87_spill] sm:$0xff] %v16299_v44  ;;  %v18703_v19 = vld [vmem:[#allocation45_spill] sm:$0xff] }
 0x74c   : > { %v7470_v58 = vpop.f32.mrf.mxu3  ;;  %v16308_v20 = vld [vmem:[#allocation4 + $0x1a3] sm:$0xff] }
 0x74d   : > { %12329 = vmatmul.msk.f32.gmra.mxu0 %vm336_vm1, %v16288_v27  ;;  %v7190_v33 = vpop.f32.mrf.mxu2  ;;  %18704 = vst [vmem:[#allocation45_spill] sm:$0xff] %v16308_v20  ;;  %v7861_v27 = vld [vmem:[#allocation4 + $0x1a4] sm:$0xff] }
 0x74e   : > { %v7258_v34 = vadd.f32 %v7190_v33, %v15762_v57  ;;  %v16297_v32 = vpop.f32.mrf.mxu1  ;;  %v16312_v57 = vadd.f32 %v16136_v41, %v16146_v63  ;;  %v8662_v63 = vld [vmem:[#allocation4 + $0x4a] sm:$0xff] }
 0x750   : > { %v7535_v59 = vadd.f32 %v7467_v23, %v7258_v34  ;;  %18705 = vst [vmem:[#allocation88_spill] sm:$0xff] %v16312_v57  ;;  %v18707_v57 = vld [vmem:[#allocation49_spill] sm:$0xff] }
 0x751   : > { %12362 = vmatmul.msk.f32.gmra.mxu1 %vm336_vm1, %v7860_v35  ;;  %12398 = vmatmul.msk.f32.vlgmr.msra.gmra.mxu3 %vm336_vm1, %v18703_v19 }
 0x752   : > { %v7747_v37 = vpop.f32.mrf.mxu0  ;;  %12264 = vmatmul.msk.f32.gmra.mxu2 %vm336_vm1, %v16299_v44  ;;  %v16306_v49 = vadd.f32 %v7744_v38, %v7535_v59  ;;  %v8108_v44 = vld [vmem:[#allocation4 + $0x48] sm:$0xff]  ;;  %v18706_v38 = vld [vmem:[#allocation46_spill] sm:$0xff] }
 0x754   : > { %v7473_v23 = vpop.f32.mrf.mxu3 }
 0x755   : > { %12330 = vmatmul.msk.f32.gmra.mxu0 %vm336_vm1, %v16308_v20  ;;  %v7193_v35 = vpop.f32.mrf.mxu2  ;;  %v16327_v20 = vadd.f32 %v16157_v46, %v16167_v22  ;;  %v8663_v22 = vld [vmem:[#allocation4 + $0x52] sm:$0xff] }
 0x756   : > { %v7259_v33 = vadd.f32 %v7193_v35, %v15783_v26  ;;  %v16317_v34 = vpop.f32.mrf.mxu1 }
 0x758   : > { %v7536_v19 = vadd.f32 %v7470_v58, %v7259_v33 }
 0x759   : > { %12363 = vmatmul.msk.f32.gmra.mxu1 %vm336_vm1, %v7861_v27  ;;  %12399 = vmatmul.msk.f32.gmra.mxu3 %vm336_vm1, %v18706_v38  ;;  %v8109_v38 = vld [vmem:[#allocation4 + $0x50] sm:$0xff] }
 0x75a   : > { %v7750_v59 = vpop.f32.mrf.mxu0  ;;  %12365 = vmatmul.msk.f32.vlgmr.msra.gmra.mxu2 %vm336_vm1, %v8108_v44  ;;  %v16323_v41 = vadd.f32 %v7747_v37, %v7536_v19  ;;  %v18708_v44 = vld [vmem:[#allocation43_spill] sm:$0xff]  ;;  %v16342_v19 = vadd.f32 %v16178_v0, %v16188_v16  ;;  %v16358_v16 = vld [vmem:[#allocation4 + $0x62] sm:$0xff] }
 0x75b   : > { %18712 = vst [vmem:[#allocation49_spill] sm:$0xff] %v16358_v16 }
 0x75c   : > { %v7476_v26 = vpop.f32.mrf.mxu3 }
 0x75d   : > { %12431 = vmatmul.msk.f32.vlgmr.msrb.gmra.mxu0 %vm336_vm1, %v8662_v63  ;;  %v7196_v58 = vpop.f32.mrf.mxu2 }
 0x75e   : > { %v7260_v35 = vadd.f32 %v7196_v58, %v15804_v40  ;;  %v16331_v27 = vpop.f32.mrf.mxu1 }
 0x760   : > { %v7537_v33 = vadd.f32 %v7473_v23, %v7260_v35  ;;  %v16348_v35 = vld [vmem:[#allocation4 + $0x60] sm:$0xff] }
 0x761   : > { %12400 = vmatmul.msk.f32.gmra.mxu3 %vm336_vm1, %v18707_v57  ;;  %12464 = vmatmul.msk.f32.vlgmr.msrb.gmra.mxu1 %vm336_vm1, %v18708_v44  ;;  %18709 = vst [vmem:[#allocation46_spill] sm:$0xff] %v16348_v35  ;;  %v18710_v44 = vld [vmem:[#allocation54_spill] sm:$0xff] }
 0x762   : > { %v7753_v37 = vpop.f32.mrf.mxu0  ;;  %12366 = vmatmul.msk.f32.gmra.mxu2 %vm336_vm1, %v8109_v38  ;;  %v16338_v46 = vadd.f32 %v7750_v59, %v7537_v33  ;;  %v18711_v59 = vld [vmem:[#allocation44_spill] sm:$0xff] }
 0x764   : > { %v7479_v40 = vpop.f32.mrf.mxu3 }
 0x765   : > { %12432 = vmatmul.msk.f32.gmra.mxu0 %vm336_vm1, %v8663_v22  ;;  %v7199_v23 = vpop.f32.mrf.mxu2  ;;  %v18713_v22 = vld [vmem:[#allocation62_spill] sm:$0xff] }
 0x766   : > { %v7261_v63 = vadd.f32 %v7199_v23, %v15825_v3  ;;  %v16346_v57 = vpop.f32.mrf.mxu1  ;;  %v16362_v3 = vadd.f32 %v16199_v14, %v16209_v1 }
 0x768   : > { %v7538_v58 = vadd.f32 %v7476_v26, %v7261_v63 }
 0x769   : > { %12401 = vmatmul.msk.f32.gmra.mxu3 %vm336_vm1, %v18710_v44  ;;  %12465 = vmatmul.msk.f32.gmra.mxu1 %vm336_vm1, %v18711_v59  ;;  %v16369_v59 = vld [vmem:[#allocation4 + $0x68] sm:$0xff] }
 0x76a   : > { %v7756_v33 = vpop.f32.mrf.mxu0  ;;  %12367 = vmatmul.msk.f32.gmra.mxu2 %vm336_vm1, %v16348_v35  ;;  %v16356_v0 = vadd.f32 %v7753_v37, %v7538_v58  ;;  %18714 = vst [vmem:[#allocation43_spill] sm:$0xff] %v16369_v59  ;;  %v18715_v37 = vld [vmem:[#allocation48_spill] sm:$0xff]  ;;  %v18716_v58 = vld [vmem:[#allocation47_spill] sm:$0xff] }
 0x76b   : > { %v16390_v35 = vld [vmem:[#allocation4 + $0x78] sm:$0xff] }
 0x76c   : > { %v7482_v26 = vpop.f32.mrf.mxu3  ;;  %18718 = vst [vmem:[#allocation44_spill] sm:$0xff] %v16390_v35 }
 0x76d   : > { %12433 = vmatmul.msk.f32.gmra.mxu0 %vm336_vm1, %v16358_v16  ;;  %v7202_v38 = vpop.f32.mrf.mxu2  ;;  %v16379_v16 = vld [vmem:[#allocation4 + $0x6a] sm:$0xff] }
 0x76e   : > { %v7262_v23 = vadd.f32 %v7202_v38, %v18713_v22  ;;  %v16367_v63 = vpop.f32.mrf.mxu1  ;;  %18717 = vst [vmem:[#allocation54_spill] sm:$0xff] %v16379_v16  ;;  %v16383_v38 = vadd.f32 %v16220_v9, %v16230_v15 }
 0x770   : > { %v7539_v44 = vadd.f32 %v7479_v40, %v7262_v23 }
 0x771   : > { %12402 = vmatmul.msk.f32.gmra.mxu3 %vm336_vm1, %v18715_v37  ;;  %12466 = vmatmul.msk.f32.gmra.mxu1 %vm336_vm1, %v18716_v58 }
 0x772   : > { %v7759_v14 = vpop.f32.mrf.mxu0  ;;  %12368 = vmatmul.msk.f32.gmra.mxu2 %vm336_vm1, %v16369_v59  ;;  %v16377_v1 = vadd.f32 %v7756_v33, %v7539_v44  ;;  %v18719_v33 = vld [vmem:[#allocation55_spill] sm:$0xff]  ;;  %v18720_v44 = vld [vmem:[#allocation52_spill] sm:$0xff] }
 0x773   : > { %v16411_v59 = vld [vmem:[#allocation4 + $0x80] sm:$0xff] }
 0x774   : > { %v7485_v40 = vpop.f32.mrf.mxu3  ;;  %18722 = vst [vmem:[#allocation48_spill] sm:$0xff] %v16411_v59 }
 0x775   : > { %12434 = vmatmul.msk.f32.gmra.mxu0 %vm336_vm1, %v16379_v16  ;;  %v7205_v22 = vpop.f32.mrf.mxu2  ;;  %v16400_v16 = vld [vmem:[#allocation4 + $0x7a] sm:$0xff] }
 0x776   : > { %v7263_v23 = vadd.f32 %v7205_v22, %v15879_v55  ;;  %v16388_v37 = vpop.f32.mrf.mxu1  ;;  %18721 = vst [vmem:[#allocation62_spill] sm:$0xff] %v16400_v16  ;;  %v16404_v55 = vadd.f32 %v16253_v56, %v16265_v48 }
 0x778   : > { %v7540_v58 = vadd.f32 %v7482_v26, %v7263_v23 }
 0x779   : > { %12403 = vmatmul.msk.f32.gmra.mxu3 %vm336_vm1, %v18719_v33  ;;  %12467 = vmatmul.msk.f32.gmra.mxu1 %vm336_vm1, %v18720_v44 }
 0x77a   : > { %v7762_v9 = vpop.f32.mrf.mxu0  ;;  %12369 = vmatmul.msk.f32.gmra.mxu2 %vm336_vm1, %v16390_v35  ;;  %v16398_v15 = vadd.f32 %v7759_v14, %v7540_v58  ;;  %v18723_v14 = vld [vmem:[#allocation58_spill] sm:$0xff]  ;;  %v18724_v58 = vld [vmem:[#allocation57_spill] sm:$0xff] }
 0x77b   : > { %v16432_v35 = vld [vmem:[#allocation4 + $0x90] sm:$0xff] }
 0x77c   : > { %v7488_v26 = vpop.f32.mrf.mxu3  ;;  %18726 = vst [vmem:[#allocation55_spill] sm:$0xff] %v16432_v35 }
 0x77d   : > { %12435 = vmatmul.msk.f32.gmra.mxu0 %vm336_vm1, %v16400_v16  ;;  %v7208_v22 = vpop.f32.mrf.mxu2  ;;  %v16421_v16 = vld [vmem:[#allocation4 + $0x82] sm:$0xff] }
 0x77e   : > { %v7264_v23 = vadd.f32 %v7208_v22, %v15900_v24  ;;  %v16409_v33 = vpop.f32.mrf.mxu1  ;;  %18725 = vst [vmem:[#allocation47_spill] sm:$0xff] %v16421_v16  ;;  %v16425_v24 = vadd.f32 %v16277_v17, %v16286_v53 }
 0x780   : > { %v7541_v44 = vadd.f32 %v7485_v40, %v7264_v23 }
 0x781   : > { %12404 = vmatmul.msk.f32.gmra.mxu3 %vm336_vm1, %v18723_v14  ;;  %12468 = vmatmul.msk.f32.gmra.mxu1 %vm336_vm1, %v18724_v58 }
 0x782   : > { %v7765_v56 = vpop.f32.mrf.mxu0  ;;  %12370 = vmatmul.msk.f32.gmra.mxu2 %vm336_vm1, %v16411_v59  ;;  %v16419_v48 = vadd.f32 %v7762_v9, %v7541_v44  ;;  %v18727_v9 = vld [vmem:[#allocation60_spill] sm:$0xff]  ;;  %v18728_v44 = vld [vmem:[#allocation50_spill] sm:$0xff]  ;;  %v16453_v59 = vld [vmem:[#allocation4 + $0x98] sm:$0xff] }
 0x784   : > { %v7491_v40 = vpop.f32.mrf.mxu3 }
 0x785   : > { %12436 = vmatmul.msk.f32.gmra.mxu0 %vm336_vm1, %v16421_v16  ;;  %v7211_v22 = vpop.f32.mrf.mxu2  ;;  %v16442_v16 = vld [vmem:[#allocation4 + $0x92] sm:$0xff] }
 0x786   : > { %v7265_v23 = vadd.f32 %v7211_v22, %v15921_v54  ;;  %v16430_v14 = vpop.f32.mrf.mxu1  ;;  %18729 = vst [vmem:[#allocation52_spill] sm:$0xff] %v16442_v16  ;;  %v16446_v54 = vadd.f32 %v16297_v32, %v16306_v49 }
 0x788   : > { %v7542_v58 = vadd.f32 %v7488_v26, %v7265_v23 }
 0x789   : > { %12405 = vmatmul.msk.f32.gmra.mxu3 %vm336_vm1, %v18727_v9  ;;  %12469 = vmatmul.msk.f32.gmra.mxu1 %vm336_vm1, %v18728_v44 }
 0x78a   : > { %v7768_v17 = vpop.f32.mrf.mxu0  ;;  %12371 = vmatmul.msk.f32.gmra.mxu2 %vm336_vm1, %v16432_v35  ;;  %v16440_v53 = vadd.f32 %v7765_v56, %v7542_v58  ;;  %v18730_v56 = vld [vmem:[#allocation59_spill] sm:$0xff]  ;;  %v18731_v58 = vld [vmem:[#allocation53_spill] sm:$0xff] }
 0x78b   : > { %v16474_v35 = vld [vmem:[#allocation4 + $0xa8] sm:$0xff] }
 0x78c   : > { %v7494_v26 = vpop.f32.mrf.mxu3  ;;  %18733 = vst [vmem:[#allocation57_spill] sm:$0xff] %v16474_v35 }
 0x78d   : > { %12437 = vmatmul.msk.f32.gmra.mxu0 %vm336_vm1, %v16442_v16  ;;  %v7214_v22 = vpop.f32.mrf.mxu2  ;;  %v16463_v16 = vld [vmem:[#allocation4 + $0x9a] sm:$0xff] }
 0x78e   : > { %v7266_v23 = vadd.f32 %v7214_v22, %v15942_v11  ;;  %v16451_v9 = vpop.f32.mrf.mxu1  ;;  %18732 = vst [vmem:[#allocation58_spill] sm:$0xff] %v16463_v16  ;;  %v16467_v11 = vadd.f32 %v16317_v34, %v16323_v41 }
 0x790   : > { %v7543_v44 = vadd.f32 %v7491_v40, %v7266_v23 }
 0x791   : > { %12406 = vmatmul.msk.f32.gmra.mxu3 %vm336_vm1, %v18730_v56  ;;  %12470 = vmatmul.msk.f32.gmra.mxu1 %vm336_vm1, %v18731_v58 }
 0x792   : > { %v7771_v32 = vpop.f32.mrf.mxu0  ;;  %12372 = vmatmul.msk.f32.gmra.mxu2 %vm336_vm1, %v16453_v59  ;;  %v16461_v49 = vadd.f32 %v7768_v17, %v7543_v44  ;;  %v18734_v17 = vld [vmem:[#allocation56_spill] sm:$0xff]  ;;  %v16484_v44 = vld [vmem:[#allocation4 + $0xaa] sm:$0xff] }
 0x793   : > { %18735 = vst [vmem:[#allocation60_spill] sm:$0xff] %v16484_v44 }
 0x794   : > { %v7497_v40 = vpop.f32.mrf.mxu3 }
 0x795   : > { %12438 = vmatmul.msk.f32.gmra.mxu0 %vm336_vm1, %v16463_v16  ;;  %v7217_v22 = vpop.f32.mrf.mxu2  ;;  %v16495_v16 = vld [vmem:[#allocation4 + $0xb0] sm:$0xff] }
 0x796   : > { %v7267_v23 = vadd.f32 %v7217_v22, %v15963_v61  ;;  %v16472_v56 = vpop.f32.mrf.mxu1  ;;  %v16488_v61 = vadd.f32 %v16331_v27, %v16338_v46  ;;  %18736 = vst [vmem:[#allocation50_spill] sm:$0xff] %v16495_v16 }
 0x798   : > { %v7544_v58 = vadd.f32 %v7494_v26, %v7267_v23 }
 0x799   : > { %12407 = vmatmul.msk.f32.gmra.mxu3 %vm336_vm1, %v15865_v43  ;;  %12471 = vmatmul.msk.f32.gmra.mxu1 %vm336_vm1, %v18734_v17 }
 0x79a   : > { %v7774_v34 = vpop.f32.mrf.mxu0  ;;  %12373 = vmatmul.msk.f32.gmra.mxu2 %vm336_vm1, %v16474_v35  ;;  %v16482_v41 = vadd.f32 %v7771_v32, %v7544_v58  ;;  %v18737_v32 = vld [vmem:[#allocation64_spill] sm:$0xff]  ;;  %v16505_v58 = vld [vmem:[#allocation4 + $0xb2] sm:$0xff]  ;;  %v16533_v35 = vld [vmem:[#allocation4 + $0xc8] sm:$0xff] }
 0x79b   : > { %18738 = vst [vmem:[#allocation59_spill] sm:$0xff] %v16505_v58 }
 0x79c   : > { %v7500_v26 = vpop.f32.mrf.mxu3 }
 0x79d   : > { %12439 = vmatmul.msk.f32.gmra.mxu0 %vm336_vm1, %v16484_v44  ;;  %v7220_v43 = vpop.f32.mrf.mxu2  ;;  %v16512_v44 = vld [vmem:[#allocation4 + $0xc0] sm:$0xff] }
 0x79e   : > { %v7268_v22 = vadd.f32 %v7220_v43, %v15984_v31  ;;  %v16493_v23 = vpop.f32.mrf.mxu1 }
 0x7a0   : > { %v7545_v17 = vadd.f32 %v7497_v40, %v7268_v22 }
 0x7a1   : > { %12408 = vmatmul.msk.f32.gmra.mxu3 %vm336_vm1, %v15886_v52  ;;  %12472 = vmatmul.msk.f32.gmra.mxu1 %vm336_vm1, %v18737_v32  ;;  %v18739_v32 = vld [vmem:[#allocation63_spill] sm:$0xff] }
 0x7a2   : > { %v7777_v27 = vpop.f32.mrf.mxu0  ;;  %12374 = vmatmul.msk.f32.gmra.mxu2 %vm336_vm1, %v16495_v16  ;;  %v16503_v46 = vadd.f32 %v7774_v34, %v7545_v17  ;;  %v18740_v16 = vld [vmem:[#allocation61_spill] sm:$0xff] }
 0x7a4   : > { %v7503_v31 = vpop.f32.mrf.mxu3 }
 0x7a5   : > { %12440 = vmatmul.msk.f32.gmra.mxu0 %vm336_vm1, %v16505_v58  ;;  %v7223_v40 = vpop.f32.mrf.mxu2 }
 0x7a6   : > { %v7269_v43 = vadd.f32 %v7223_v40, %v16005_v28  ;;  %v16510_v22 = vpop.f32.mrf.mxu1  ;;  %v16524_v28 = vadd.f32 %v16346_v57, %v16356_v0  ;;  %v16526_v40 = vld [vmem:[#allocation4 + $0xc2] sm:$0xff] }
 0x7a7   : > { %18741 = vst [vmem:[#allocation53_spill] sm:$0xff] %v16526_v40 }
 0x7a8   : > { %v7546_v52 = vadd.f32 %v7500_v26, %v7269_v43 }
 0x7a9   : > { %12409 = vmatmul.msk.f32.gmra.mxu3 %vm336_vm1, %v18739_v32  ;;  %12473 = vmatmul.msk.f32.gmra.mxu1 %vm336_vm1, %v18740_v16 }
 0x7aa   : > { %v7780_v34 = vpop.f32.mrf.mxu0  ;;  %12375 = vmatmul.msk.f32.gmra.mxu2 %vm336_vm1, %v16512_v44  ;;  %v16520_v17 = vadd.f32 %v7777_v27, %v7546_v52  ;;  %v18742_v27 = vld [vmem:[#allocation66_spill] sm:$0xff] }
 0x7ab   : > { %v16547_v52 = vld [vmem:[#allocation4 + $0xca] sm:$0xff] }
 0x7ac   : > { %v7506_v26 = vpop.f32.mrf.mxu3  ;;  %18743 = vst [vmem:[#allocation56_spill] sm:$0xff] %v16547_v52 }
 0x7ad   : > { %12441 = vmatmul.msk.f32.gmra.mxu0 %vm336_vm1, %v16526_v40  ;;  %v7226_v43 = vpop.f32.mrf.mxu2  ;;  %v16554_v40 = vld [vmem:[#allocation4 + $0xd8] sm:$0xff] }
 0x7ae   : > { %v7270_v32 = vadd.f32 %v7226_v43, %v16026_v51  ;;  %v16531_v16 = vpop.f32.mrf.mxu1  ;;  %v16545_v51 = vadd.f32 %v16367_v63, %v16377_v1 }
 0x7b0   : > { %v7547_v58 = vadd.f32 %v7503_v31, %v7270_v32 }
 0x7b1   : > { %12410 = vmatmul.msk.f32.gmra.mxu3 %vm336_vm1, %v15928_v18  ;;  %12474 = vmatmul.msk.f32.gmra.mxu1 %vm336_vm1, %v18742_v27 }
 0x7b2   : > { %v7783_v57 = vpop.f32.mrf.mxu0  ;;  %12376 = vmatmul.msk.f32.gmra.mxu2 %vm336_vm1, %v16533_v35  ;;  %v16541_v0 = vadd.f32 %v7780_v34, %v7547_v58  ;;  %v18744_v58 = vld [vmem:[#allocation68_spill] sm:$0xff] }
 0x7b3   : > { %v16568_v34 = vld [vmem:[#allocation4 + $0xda] sm:$0xff] }
 0x7b4   : > { %v7509_v31 = vpop.f32.mrf.mxu3  ;;  %18745 = vst [vmem:[#allocation64_spill] sm:$0xff] %v16568_v34 }
 0x7b5   : > { %12442 = vmatmul.msk.f32.gmra.mxu0 %vm336_vm1, %v16547_v52  ;;  %v7229_v18 = vpop.f32.mrf.mxu2  ;;  %v16575_v52 = vld [vmem:[#allocation4 + $0xe0] sm:$0xff] }
 0x7b6   : > { %v7271_v43 = vadd.f32 %v7229_v18, %v16047_v13  ;;  %v16552_v32 = vpop.f32.mrf.mxu1  ;;  %v16566_v13 = vadd.f32 %v16388_v37, %v16398_v15 }
 0x7b8   : > { %v7548_v27 = vadd.f32 %v7506_v26, %v7271_v43 }
 0x7b9   : > { %12411 = vmatmul.msk.f32.gmra.mxu3 %vm336_vm1, %v15949_v12  ;;  %12475 = vmatmul.msk.f32.gmra.mxu1 %vm336_vm1, %v18744_v58 }
 0x7ba   : > { %v7786_v63 = vpop.f32.mrf.mxu0  ;;  %12377 = vmatmul.msk.f32.gmra.mxu2 %vm336_vm1, %v16554_v40  ;;  %v16562_v1 = vadd.f32 %v7783_v57, %v7548_v27  ;;  %v18746_v57 = vld [vmem:[#allocation65_spill] sm:$0xff] }
 0x7bb   : > { %v16589_v27 = vld [vmem:[#allocation4 + $0xe2] sm:$0xff] }
 0x7bc   : > { %v7512_v26 = vpop.f32.mrf.mxu3  ;;  %18747 = vst [vmem:[#allocation63_spill] sm:$0xff] %v16589_v27 }
 0x7bd   : > { %12443 = vmatmul.msk.f32.gmra.mxu0 %vm336_vm1, %v16568_v34  ;;  %v7232_v12 = vpop.f32.mrf.mxu2  ;;  %v16596_v34 = vld [vmem:[#allocation4 + $0xf0] sm:$0xff] }
 0x7be   : > { %v7272_v18 = vadd.f32 %v7232_v12, %v16068_v50  ;;  %v16573_v43 = vpop.f32.mrf.mxu1  ;;  %v16587_v50 = vadd.f32 %v16409_v33, %v16419_v48 }
 0x7c0   : > { %v7549_v58 = vadd.f32 %v7509_v31, %v7272_v18 }
 0x7c1   : > { %12412 = vmatmul.msk.f32.gmra.mxu3 %vm336_vm1, %v15970_v10  ;;  %12476 = vmatmul.msk.f32.gmra.mxu1 %vm336_vm1, %v18746_v57 }
 0x7c2   : > { %v7789_v37 = vpop.f32.mrf.mxu0  ;;  %12378 = vmatmul.msk.f32.gmra.mxu2 %vm336_vm1, %v16575_v52  ;;  %v16583_v15 = vadd.f32 %v7786_v63, %v7549_v58  ;;  %v18748_v63 = vld [vmem:[#allocation67_spill] sm:$0xff] }
 0x7c3   : > { %v16610_v58 = vld [vmem:[#allocation4 + $0xf2] sm:$0xff] }
 0x7c4   : > { %v7515_v31 = vpop.f32.mrf.mxu3  ;;  %18749 = vst [vmem:[#allocation61_spill] sm:$0xff] %v16610_v58 }
 0x7c5   : > { %12444 = vmatmul.msk.f32.gmra.mxu0 %vm336_vm1, %v16589_v27  ;;  %v7235_v10 = vpop.f32.mrf.mxu2  ;;  %v16617_v27 = vld [vmem:[#allocation4 + $0xf8] sm:$0xff] }
 0x7c6   : > { %v7273_v12 = vadd.f32 %v7235_v10, %v16089_v62  ;;  %v16594_v18 = vpop.f32.mrf.mxu1  ;;  %v16608_v62 = vadd.f32 %v16430_v14, %v16440_v53 }
 0x7c8   : > { %v7550_v57 = vadd.f32 %v7512_v26, %v7273_v12 }
 0x7c9   : > { %12413 = vmatmul.msk.f32.gmra.mxu3 %vm336_vm1, %v15991_v30  ;;  %12477 = vmatmul.msk.f32.gmra.mxu1 %vm336_vm1, %v18748_v63 }
 0x7ca   : > { %v7792_v33 = vpop.f32.mrf.mxu0  ;;  %12379 = vmatmul.msk.f32.gmra.mxu2 %vm336_vm1, %v16596_v34  ;;  %v16604_v48 = vadd.f32 %v7789_v37, %v7550_v57  ;;  %v18750_v37 = vld [vmem:[#allocation69_spill] sm:$0xff]  ;;  %v16631_v57 = vld [vmem:[#allocation4 + $0xfa] sm:$0xff] }
 0x7cb   : > { %18751 = vst [vmem:[#allocation66_spill] sm:$0xff] %v16631_v57 }
 0x7cc   : > { %v7518_v26 = vpop.f32.mrf.mxu3 }
 0x7cd   : > { %12445 = vmatmul.msk.f32.gmra.mxu0 %vm336_vm1, %v16610_v58  ;;  %v7238_v30 = vpop.f32.mrf.mxu2  ;;  %v16638_v58 = vld [vmem:[#allocation4 + $0x108] sm:$0xff] }
 0x7ce   : > { %v7274_v10 = vadd.f32 %v7238_v30, %v16110_v6  ;;  %v16615_v12 = vpop.f32.mrf.mxu1  ;;  %v16629_v6 = vadd.f32 %v16451_v9, %v16461_v49 }
 0x7d0   : > { %v7551_v63 = vadd.f32 %v7515_v31, %v7274_v10 }
 0x7d1   : > { %12414 = vmatmul.msk.f32.gmra.mxu3 %vm336_vm1, %v16012_v45  ;;  %12478 = vmatmul.msk.f32.gmra.mxu1 %vm336_vm1, %v18750_v37 }
 0x7d2   : > { %v7795_v14 = vpop.f32.mrf.mxu0  ;;  %12380 = vmatmul.msk.f32.gmra.mxu2 %vm336_vm1, %v16617_v27  ;;  %v16625_v53 = vadd.f32 %v7792_v33, %v7551_v63  ;;  %v18752_v33 = vld [vmem:[#allocation72_spill] sm:$0xff]  ;;  %v16652_v63 = vld [vmem:[#allocation4 + $0x10a] sm:$0xff] }
 0x7d3   : > { %18753 = vst [vmem:[#allocation68_spill] sm:$0xff] %v16652_v63 }
 0x7d4   : > { %v8534_v31 = vpop.f32.mrf.mxu3 }
 0x7d5   : > { %12446 = vmatmul.msk.f32.gmra.mxu0 %vm336_vm1, %v16631_v57  ;;  %v7241_v45 = vpop.f32.mrf.mxu2  ;;  %v16659_v57 = vld [vmem:[#allocation4 + $0x110] sm:$0xff] }
 0x7d6   : > { %v7275_v30 = vadd.f32 %v7241_v45, %v16131_v7  ;;  %v16636_v10 = vpop.f32.mrf.mxu1  ;;  %v16650_v7 = vadd.f32 %v16472_v56, %v16482_v41 }
 0x7d8   : > { %v7552_v37 = vadd.f32 %v7518_v26, %v7275_v30 }
 0x7d9   : > { %12415 = vmatmul.msk.f32.gmra.mxu3 %vm336_vm1, %v16033_v5  ;;  %12479 = vmatmul.msk.f32.gmra.mxu1 %vm336_vm1, %v18752_v33 }
 0x7da   : > { %v8811_v9 = vpop.f32.mrf.mxu0  ;;  %12381 = vmatmul.msk.f32.gmra.mxu2 %vm336_vm1, %v16638_v58  ;;  %v16646_v49 = vadd.f32 %v7795_v14, %v7552_v37  ;;  %v18754_v14 = vld [vmem:[#allocation70_spill] sm:$0xff] }
 0x7db   : > { %v16673_v37 = vld [vmem:[#allocation4 + $0x112] sm:$0xff] }
 0x7dc   : > { %v8537_v26 = vpop.f32.mrf.mxu3  ;;  %18755 = vst [vmem:[#allocation65_spill] sm:$0xff] %v16673_v37 }
 0x7dd   : > { %12447 = vmatmul.msk.f32.gmra.mxu0 %vm336_vm1, %v16652_v63  ;;  %v8257_v5 = vpop.f32.mrf.mxu2  ;;  %v16680_v63 = vld [vmem:[#allocation4 + $0x120] sm:$0xff] }
 0x7de   : > { %v8353_v45 = vadd.f32 %v8257_v5, %v16152_v2  ;;  %v16657_v30 = vpop.f32.mrf.mxu1  ;;  %v16671_v2 = vadd.f32 %v16493_v23, %v16503_v46 }
 0x7e0   : > { %v8630_v33 = vadd.f32 %v8534_v31, %v8353_v45 }
 0x7e1   : > { %12416 = vmatmul.msk.f32.gmra.mxu3 %vm336_vm1, %v16054_v36  ;;  %12480 = vmatmul.msk.f32.gmra.mxu1 %vm336_vm1, %v18754_v14 }
 0x7e2   : > { %v8814_v56 = vpop.f32.mrf.mxu0  ;;  %12382 = vmatmul.msk.f32.gmra.mxu2 %vm336_vm1, %v16659_v57  ;;  %v16667_v41 = vadd.f32 %v8811_v9, %v8630_v33  ;;  %v18756_v9 = vld [vmem:[#allocation71_spill] sm:$0xff]  ;;  %v16694_v33 = vld [vmem:[#allocation4 + $0x122] sm:$0xff] }
 0x7e3   : > { %18757 = vst [vmem:[#allocation67_spill] sm:$0xff] %v16694_v33 }
 0x7e4   : > { %v8540_v31 = vpop.f32.mrf.mxu3 }
 0x7e5   : > { %12448 = vmatmul.msk.f32.gmra.mxu0 %vm336_vm1, %v16673_v37  ;;  %v8260_v36 = vpop.f32.mrf.mxu2  ;;  %v16701_v37 = vld [vmem:[#allocation4 + $0x128] sm:$0xff] }
 0x7e6   : > { %v8354_v5 = vadd.f32 %v8260_v36, %v16173_v47  ;;  %v16678_v45 = vpop.f32.mrf.mxu1  ;;  %v16692_v47 = vadd.f32 %v16510_v22, %v16520_v17  ;;  %18758 = vst [vmem:[#allocation69_spill] sm:$0xff] %v16701_v37 }
 0x7e8   : > { %v8631_v14 = vadd.f32 %v8537_v26, %v8354_v5 }
 0x7e9   : > { %12417 = vmatmul.msk.f32.gmra.mxu3 %vm336_vm1, %v16075_v25  ;;  %12481 = vmatmul.msk.f32.gmra.mxu1 %vm336_vm1, %v18756_v9 }
 0x7ea   : > { %v8817_v23 = vpop.f32.mrf.mxu0  ;;  %12383 = vmatmul.msk.f32.gmra.mxu2 %vm336_vm1, %v16680_v63  ;;  %v16688_v46 = vadd.f32 %v8814_v56, %v8631_v14  ;;  %v18759_v56 = vld [vmem:[#allocation73_spill] sm:$0xff] }
 0x7eb   : > { %v16715_v14 = vld [vmem:[#allocation4 + $0x12a] sm:$0xff] }
 0x7ec   : > { %v8543_v26 = vpop.f32.mrf.mxu3  ;;  %18760 = vst [vmem:[#allocation72_spill] sm:$0xff] %v16715_v14 }
 0x7ed   : > { %12449 = vmatmul.msk.f32.gmra.mxu0 %vm336_vm1, %v16694_v33  ;;  %v8263_v25 = vpop.f32.mrf.mxu2  ;;  %v16722_v33 = vld [vmem:[#allocation4 + $0x138] sm:$0xff] }
 0x7ee   : > { %v8355_v36 = vadd.f32 %v8263_v25, %v16194_v39  ;;  %v16699_v5 = vpop.f32.mrf.mxu1  ;;  %v16713_v39 = vadd.f32 %v16531_v16, %v16541_v0  ;;  %18761 = vst [vmem:[#allocation70_spill] sm:$0xff] %v16722_v33 }
 0x7f0   : > { %v8632_v9 = vadd.f32 %v8540_v31, %v8355_v36 }
 0x7f1   : > { %12418 = vmatmul.msk.f32.gmra.mxu3 %vm336_vm1, %v16096_v42  ;;  %12482 = vmatmul.msk.f32.gmra.mxu1 %vm336_vm1, %v18759_v56 }
 0x7f2   : > { %v8820_v22 = vpop.f32.mrf.mxu0  ;;  %12384 = vmatmul.msk.f32.gmra.mxu2 %vm336_vm1, %v16701_v37  ;;  %v16709_v17 = vadd.f32 %v8817_v23, %v8632_v9  ;;  %v18762_v23 = vld [vmem:[#allocation74_spill] sm:$0xff]  ;;  %v16736_v9 = vld [vmem:[#allocation4 + $0x13a] sm:$0xff] }
 0x7f3   : > { %18763 = vst [vmem:[#allocation71_spill] sm:$0xff] %v16736_v9 }
 0x7f4   : > { %v8546_v31 = vpop.f32.mrf.mxu3 }
 0x7f5   : > { %12450 = vmatmul.msk.f32.gmra.mxu0 %vm336_vm1, %v16715_v14  ;;  %v8266_v42 = vpop.f32.mrf.mxu2  ;;  %v16743_v14 = vld [vmem:[#allocation4 + $0x140] sm:$0xff] }
 0x7f6   : > { %v8356_v25 = vadd.f32 %v8266_v42, %v16215_v8  ;;  %v16720_v36 = vpop.f32.mrf.mxu1  ;;  %v16734_v8 = vadd.f32 %v16552_v32, %v16562_v1  ;;  %18764 = vst [vmem:[#allocation73_spill] sm:$0xff] %v16743_v14 }
 0x7f8   : > { %v8633_v56 = vadd.f32 %v8543_v26, %v8356_v25 }
 0x7f9   : > { %12419 = vmatmul.msk.f32.gmra.mxu3 %vm336_vm1, %v16117_v4  ;;  %12483 = vmatmul.msk.f32.gmra.mxu1 %vm336_vm1, %v18762_v23 }
 0x7fa   : > { %v8823_v16 = vpop.f32.mrf.mxu0  ;;  %12385 = vmatmul.msk.f32.gmra.mxu2 %vm336_vm1, %v16722_v33  ;;  %v16730_v0 = vadd.f32 %v8820_v22, %v8633_v56  ;;  %v18765_v22 = vld [vmem:[#allocation77_spill] sm:$0xff]  ;;  %v18766_v56 = vld [vmem:[#allocation75_spill] sm:$0xff]  ;;  %v16764_v33 = vld [vmem:[#allocation4 + $0x150] sm:$0xff] }
 0x7fb   : > { %18768 = vst [vmem:[#allocation77_spill] sm:$0xff] %v16764_v33 }
 0x7fc   : > { %v8549_v26 = vpop.f32.mrf.mxu3 }
 0x7fd   : > { %12451 = vmatmul.msk.f32.gmra.mxu0 %vm336_vm1, %v16736_v9  ;;  %v8269_v4 = vpop.f32.mrf.mxu2 }
 0x7fe   : > { %v8357_v42 = vadd.f32 %v8269_v4, %v16247_v21  ;;  %v16741_v25 = vpop.f32.mrf.mxu1  ;;  %v16755_v21 = vadd.f32 %v16573_v43, %v16583_v15  ;;  %v16757_v4 = vld [vmem:[#allocation4 + $0x142] sm:$0xff] }
 0x7ff   : > { %18767 = vst [vmem:[#allocation74_spill] sm:$0xff] %v16757_v4 }
 0x800   : > { %v8634_v23 = vadd.f32 %v8546_v31, %v8357_v42 }
 0x801   : > { %12420 = vmatmul.msk.f32.gmra.mxu3 %vm336_vm1, %v18765_v22  ;;  %12484 = vmatmul.msk.f32.gmra.mxu1 %vm336_vm1, %v18766_v56 }
 0x802   : > { %v8826_v32 = vpop.f32.mrf.mxu0  ;;  %12386 = vmatmul.msk.f32.gmra.mxu2 %vm336_vm1, %v16743_v14  ;;  %v16751_v1 = vadd.f32 %v8823_v16, %v8634_v23  ;;  %v18769_v16 = vld [vmem:[#allocation79_spill] sm:$0xff]  ;;  %v18770_v23 = vld [vmem:[#allocation76_spill] sm:$0xff] }
 0x803   : > { %v16785_v14 = vld [vmem:[#allocation4 + $0x158] sm:$0xff] }
 0x804   : > { %v8552_v31 = vpop.f32.mrf.mxu3  ;;  %18772 = vst [vmem:[#allocation79_spill] sm:$0xff] %v16785_v14 }
 0x805   : > { %12452 = vmatmul.msk.f32.gmra.mxu0 %vm336_vm1, %v16757_v4  ;;  %v8272_v42 = vpop.f32.mrf.mxu2 }
 0x806   : > { %v8358_v22 = vadd.f32 %v8272_v42, %v16272_v60  ;;  %v16762_v56 = vpop.f32.mrf.mxu1  ;;  %v16776_v60 = vadd.f32 %v16594_v18, %v16604_v48  ;;  %v16778_v42 = vld [vmem:[#allocation4 + $0x152] sm:$0xff] }
 0x807   : > { %18771 = vst [vmem:[#allocation75_spill] sm:$0xff] %v16778_v42 }
 0x808   : > { %v8635_v9 = vadd.f32 %v8549_v26, %v8358_v22 }
 0x809   : > { %12421 = vmatmul.msk.f32.gmra.mxu3 %vm336_vm1, %v18769_v16  ;;  %12485 = vmatmul.msk.f32.gmra.mxu1 %vm336_vm1, %v18770_v23 }
 0x80a   : > { %v8829_v43 = vpop.f32.mrf.mxu0  ;;  %12387 = vmatmul.msk.f32.gmra.mxu2 %vm336_vm1, %v16764_v33  ;;  %v16772_v15 = vadd.f32 %v8826_v32, %v8635_v9  ;;  %v18773_v9 = vld [vmem:[#allocation81_spill] sm:$0xff]  ;;  %v18774_v32 = vld [vmem:[#allocation78_spill] sm:$0xff] }
 0x80b   : > { %v16804_v33 = vld [vmem:[#allocation4 + $0x168] sm:$0xff] }
 0x80c   : > { %v8555_v26 = vpop.f32.mrf.mxu3 }
 0x80d   : > { %12453 = vmatmul.msk.f32.gmra.mxu0 %vm336_vm1, %v16778_v42  ;;  %v8275_v22 = vpop.f32.mrf.mxu2 }
 0x80e   : > { %v8359_v16 = vadd.f32 %v8275_v22, %v16292_v29  ;;  %v16783_v23 = vpop.f32.mrf.mxu1  ;;  %v16797_v29 = vadd.f32 %v16615_v12, %v16625_v53  ;;  %v16799_v22 = vld [vmem:[#allocation4 + $0x15a] sm:$0xff] }
 0x80f   : > { %18775 = vst [vmem:[#allocation76_spill] sm:$0xff] %v16799_v22 }
 0x810   : > { %v8636_v4 = vadd.f32 %v8552_v31, %v8359_v16 }
 0x811   : > { %12422 = vmatmul.msk.f32.gmra.mxu3 %vm336_vm1, %v18773_v9  ;;  %12486 = vmatmul.msk.f32.gmra.mxu1 %vm336_vm1, %v18774_v32  ;;  %v18776_v9 = vld [vmem:[#allocation88_spill] sm:$0xff] }
 0x812   : > { %v8832_v18 = vpop.f32.mrf.mxu0  ;;  %12388 = vmatmul.msk.f32.gmra.mxu2 %vm336_vm1, %v16785_v14  ;;  %v16793_v48 = vadd.f32 %v8829_v43, %v8636_v4  ;;  %v18777_v4 = vld [vmem:[#allocation85_spill] sm:$0xff]  ;;  %v18778_v43 = vld [vmem:[#allocation80_spill] sm:$0xff] }
 0x813   : > { %v18781_v14 = vld [vmem:[#allocation41_spill] sm:$0xff] }
 0x814   : > { %v8558_v31 = vpop.f32.mrf.mxu3 }
 0x815   : > { %12454 = vmatmul.msk.f32.gmra.mxu0 %vm336_vm1, %v16799_v22  ;;  %v8278_v16 = vpop.f32.mrf.mxu2  ;;  %v16825_v22 = vld [vmem:[#allocation4 + $0x170] sm:$0xff] }
 0x816   : > { %v8360_v42 = vadd.f32 %v8278_v16, %v18776_v9  ;;  %v16806_v37 = vpop.f32.mrf.mxu1  ;;  %v16818_v16 = vadd.f32 %v16636_v10, %v16646_v49  ;;  %18780 = vst [vmem:[#allocation78_spill] sm:$0xff] %v16825_v22 }
 0x818   : > { %v8637_v32 = vadd.f32 %v8555_v26, %v8360_v42  ;;  %v16820_v42 = vld [vmem:[#allocation4 + $0x16a] sm:$0xff] }
 0x819   : > { %12423 = vmatmul.msk.f32.gmra.mxu3 %vm336_vm1, %v18777_v4  ;;  %12487 = vmatmul.msk.f32.gmra.mxu1 %vm336_vm1, %v18778_v43  ;;  %18779 = vst [vmem:[#allocation81_spill] sm:$0xff] %v16820_v42 }
 0x81a   : > { %v8835_v12 = vpop.f32.mrf.mxu0  ;;  %12389 = vmatmul.msk.f32.gmra.mxu2 %vm336_vm1, %v16804_v33  ;;  %v16814_v53 = vadd.f32 %v8832_v18, %v8637_v32  ;;  %v18782_v18 = vld [vmem:[#allocation82_spill] sm:$0xff]  ;;  %v16837_v32 = vadd.f32 %v16657_v30, %v16667_v41 }
 0x81c   : > { %v8561_v26 = vpop.f32.mrf.mxu3 }
 0x81d   : > { %12455 = vmatmul.msk.f32.gmra.mxu0 %vm336_vm1, %v16820_v42  ;;  %v8281_v9 = vpop.f32.mrf.mxu2  ;;  %v16846_v42 = vld [vmem:[#allocation4 + $0x180] sm:$0xff] }
 0x81e   : > { %v8361_v4 = vadd.f32 %v8281_v9, %v16327_v20  ;;  %v16839_v20 = vpop.f32.mrf.mxu1  ;;  %18784 = vst [vmem:[#allocation85_spill] sm:$0xff] %v16846_v42 }
 0x820   : > { %v8638_v43 = vadd.f32 %v8558_v31, %v8361_v4  ;;  %v16841_v31 = vld [vmem:[#allocation4 + $0x172] sm:$0xff] }
 0x821   : > { %12424 = vmatmul.msk.f32.gmra.mxu3 %vm336_vm1, %v18781_v14  ;;  %12488 = vmatmul.msk.f32.gmra.mxu1 %vm336_vm1, %v18782_v18  ;;  %18783 = vst [vmem:[#allocation88_spill] sm:$0xff] %v16841_v31 }
 0x822   : > { %v8838_v10 = vpop.f32.mrf.mxu0  ;;  %12390 = vmatmul.msk.f32.gmra.mxu2 %vm336_vm1, %v16825_v22  ;;  %v16833_v49 = vadd.f32 %v8835_v12, %v8638_v43  ;;  %v18785_v12 = vld [vmem:[#allocation42_spill] sm:$0xff]  ;;  %v18786_v43 = vld [vmem:[#allocation84_spill] sm:$0xff]  ;;  %v16867_v22 = vld [vmem:[#allocation4 + $0x188] sm:$0xff] }
 0x823   : > { %18788 = vst [vmem:[#allocation41_spill] sm:$0xff] %v16867_v22 }
 0x824   : > { %v8564_v9 = vpop.f32.mrf.mxu3 }
 0x825   : > { %12456 = vmatmul.msk.f32.gmra.mxu0 %vm336_vm1, %v16841_v31  ;;  %v8284_v14 = vpop.f32.mrf.mxu2  ;;  %v16858_v31 = vadd.f32 %v16678_v45, %v16688_v46 }
 0x826   : > { %v8362_v4 = vadd.f32 %v8284_v14, %v16342_v19  ;;  %v16860_v19 = vld [vmem:[#allocation4 + $0x182] sm:$0xff] }
 0x827   : > { %18787 = vst [vmem:[#allocation80_spill] sm:$0xff] %v16860_v19 }
 0x828   : > { %v8639_v18 = vadd.f32 %v8561_v26, %v8362_v4  ;;  %v16864_v4 = vpop.f32.mrf.mxu1 }
 0x829   : > { %12425 = vmatmul.msk.f32.gmra.mxu3 %vm336_vm1, %v18785_v12  ;;  %12489 = vmatmul.msk.f32.gmra.mxu1 %vm336_vm1, %v18786_v43 }
 0x82a   : > { %v8841_v30 = vpop.f32.mrf.mxu0  ;;  %12391 = vmatmul.msk.f32.gmra.mxu2 %vm336_vm1, %v16846_v42  ;;  %v16854_v41 = vadd.f32 %v8838_v10, %v8639_v18  ;;  %v18789_v10 = vld [vmem:[#allocation51_spill] sm:$0xff] }
 0x82b   : > { %v18790_v18 = vld [vmem:[#allocation83_spill] sm:$0xff] }
 0x82c   : > { %v8567_v26 = vpop.f32.mrf.mxu3  ;;  %v16888_v42 = vld [vmem:[#allocation4 + $0x198] sm:$0xff] }
 0x82d   : > { %12457 = vmatmul.msk.f32.gmra.mxu0 %vm336_vm1, %v16860_v19  ;;  %v8287_v14 = vpop.f32.mrf.mxu2  ;;  %v16879_v19 = vadd.f32 %v16699_v5, %v16709_v17  ;;  %18792 = vst [vmem:[#allocation42_spill] sm:$0xff] %v16888_v42 }
 0x82e   : > { %v8363_v12 = vadd.f32 %v8287_v14, %v16362_v3  ;;  %v16881_v3 = vld [vmem:[#allocation4 + $0x18a] sm:$0xff] }
 0x82f   : > { %18791 = vst [vmem:[#allocation82_spill] sm:$0xff] %v16881_v3 }
 0x830   : > { %v8640_v43 = vadd.f32 %v8564_v9, %v8363_v12 }
 0x831   : > { %12426 = vmatmul.msk.f32.gmra.mxu3 %vm336_vm1, %v18789_v10  ;;  %12490 = vmatmul.msk.f32.gmra.mxu1 %vm336_vm1, %v18790_v18  ;;  %v16886_v10 = vpop.f32.mrf.mxu1 }
 0x832   : > { %v8844_v45 = vpop.f32.mrf.mxu0  ;;  %12392 = vmatmul.msk.f32.gmra.mxu2 %vm336_vm1, %v16867_v22  ;;  %v16875_v46 = vadd.f32 %v8841_v30, %v8640_v43  ;;  %v18793_v30 = vld [vmem:[#allocation87_spill] sm:$0xff]  ;;  %v18794_v43 = vld [vmem:[#allocation86_spill] sm:$0xff] }
 0x833   : > { %v16943_v22 = vld [vmem:[#allocation4 + $0x1b0] sm:$0xff] }
 0x834   : > { %v8570_v9 = vpop.f32.mrf.mxu3  ;;  %18799 = vst [vmem:[#allocation87_spill] sm:$0xff] %v16943_v22 }
 0x835   : > { %12458 = vmatmul.msk.f32.gmra.mxu0 %vm336_vm1, %v16881_v3  ;;  %v8290_v14 = vpop.f32.mrf.mxu2  ;;  %v16924_v3 = vld [vmem:[#allocation4 + $0x1a0] sm:$0xff] }
 0x836   : > { %v8364_v12 = vadd.f32 %v8290_v14, %v16383_v38  ;;  %v10357_v38 = vld [vmem:[%s18224_s6 + $0x5c] sm:$0xf]  ;;  %v16906_v14 = vadd.f32 %v16720_v36, %v16730_v0  ;;  %v8415_v0 = vld [vmem:[#allocation4 + $0x1b1] sm:$0xff]  ;;  %18796 = vst [vmem:[#allocation51_spill] sm:$0xff] %v16924_v3 }
 0x837   : > { %12628 = vmatpush.msk.msra.mxu2 %vm757_vm0, %v10357_v38  ;;  %v10080_v38 = vld [vmem:[%s18224_s6 + $0x58] sm:$0xf] }
 0x838   : > { %v8641_v18 = vadd.f32 %v8567_v26, %v8364_v12  ;;  %v9803_v26 = vld [vmem:[%s18224_s6 + $0x54] sm:$0xf]  ;;  %v16908_v12 = vld [vmem:[#allocation4 + $0x19a] sm:$0xff]  ;;  %12595 = vmatpush.msk.msra.mxu1 %vm757_vm0, %v10080_v38 }
 0x839   : > { %12427 = vmatmul.msk.f32.gmra.mxu3 %vm336_vm1, %v18793_v30  ;;  %12491 = vmatmul.msk.f32.gmra.mxu1 %vm336_vm1, %v18794_v43  ;;  %18795 = vst [vmem:[#allocation84_spill] sm:$0xff] %v16908_v12 }
 0x83a   : > { %v8847_v5 = vpop.f32.mrf.mxu0  ;;  %12393 = vmatmul.msk.f32.gmra.mxu2 %vm336_vm1, %v16888_v42  ;;  %v16896_v17 = vadd.f32 %v8844_v45, %v8641_v18  ;;  %12562 = vmatpush.msk.msra.mxu0 %vm757_vm0, %v9803_v26  ;;  %v10634_v45 = vld [vmem:[%s18224_s6 + $0x60] sm:$0xf]  ;;  %v16922_v26 = vpop.f32.mrf.mxu1 }
 0x83b   : > { %12661 = vmatpush.msk.msra.mxu3 %vm757_vm0, %v10634_v45  ;;  %v18797_v42 = vld [vmem:[#allocation40_spill] sm:$0xff] }
 0x83c   : > { %v8573_v18 = vpop.f32.mrf.mxu3  ;;  %v16938_v45 = vld [vmem:[#allocation4 + $0x1a2] sm:$0xff] }
 0x83d   : > { %12459 = vmatmul.msk.f32.gmra.mxu0 %vm336_vm1, %v16908_v12  ;;  %v8293_v30 = vpop.f32.mrf.mxu2  ;;  %18798 = vst [vmem:[#allocation83_spill] sm:$0xff] %v16938_v45 }
 0x83e   : > { %v8365_v36 = vadd.f32 %v8293_v30, %v16404_v55 }
 0x840   : > { %v8642_v43 = vadd.f32 %v8570_v9, %v8365_v36  ;;  %v16936_v9 = vadd.f32 %v16741_v25, %v16751_v1  ;;  %v16948_v1 = vld [vmem:[#allocation4 + $0x1b2] sm:$0xff] }
 0x841   : > { %12428 = vmatmul.msk.f32.gmra.mxu3 %vm336_vm1, %v8415_v0  ;;  %12492 = vmatmul.msk.f32.gmra.mxu1 %vm336_vm1, %v18797_v42  ;;  %v8416_v0 = vld [vmem:[#allocation4 + $0x1b9] sm:$0xff]  ;;  %18801 = vst [vmem:[#allocation86_spill] sm:$0xff] %v16948_v1 }
 0x842   : > { %v8850_v12 = vpop.f32.mrf.mxu0  ;;  %12394 = vmatmul.msk.f32.gmra.mxu2 %vm336_vm1, %v16924_v3  ;;  %v16931_v55 = vadd.f32 %v8847_v5, %v8642_v43  ;;  %v18800_v43 = vld [vmem:[#allocation45_spill] sm:$0xff] }
 0x844   : > { %v8576_v30 = vpop.f32.mrf.mxu3 }
 0x845   : > { %12460 = vmatmul.msk.f32.gmra.mxu0 %vm336_vm1, %v16938_v45  ;;  %v8296_v36 = vpop.f32.mrf.mxu2  ;;  %v16963_v45 = vld [vmem:[#allocation4 + $0x1b8] sm:$0xff] }
 0x846   : > { %v8366_v42 = vadd.f32 %v8296_v36, %v16425_v24  ;;  %v16956_v24 = vadd.f32 %v16762_v56, %v16772_v15  ;;  %v16958_v36 = vpop.f32.mrf.mxu1  ;;  %18802 = vst [vmem:[#allocation40_spill] sm:$0xff] %v16963_v45  ;;  %v16968_v15 = vld [vmem:[#allocation4 + $0x1ba] sm:$0xff] }
 0x847   : > { %18804 = vst [vmem:[#allocation45_spill] sm:$0xff] %v16968_v15 }
 0x848   : > { %v8643_v5 = vadd.f32 %v8573_v18, %v8366_v42 }
 0x849   : > { %12429 = vmatmul.msk.f32.gmra.mxu3 %vm336_vm1, %v8416_v0  ;;  %12493 = vmatmul.msk.f32.gmra.mxu1 %vm336_vm1, %v18800_v43  ;;  %v8969_v43 = vld [vmem:[#allocation4 + $0x1b3] sm:$0xff] }
 0x84a   : > { %v8853_v25 = vpop.f32.mrf.mxu0  ;;  %12395 = vmatmul.msk.f32.gmra.mxu2 %vm336_vm1, %v16943_v22  ;;  %v16952_v38 = vadd.f32 %v8850_v12, %v8643_v5  ;;  %v18803_v12 = vld [vmem:[#allocation46_spill] sm:$0xff] }
 0x84b   : > { %v9216_v22 = vld [vmem:[#allocation4 + $0x4c] sm:$0xff] }
 0x84c   : > { %v8579_v18 = vpop.f32.mrf.mxu3 }
 0x84d   : > { %12461 = vmatmul.msk.f32.gmra.mxu0 %vm336_vm1, %v16948_v1  ;;  %v8299_v42 = vpop.f32.mrf.mxu2 }
 0x84e   : > { %v8367_v0 = vadd.f32 %v8299_v42, %v16446_v54  ;;  %v16976_v54 = vadd.f32 %v16783_v23, %v16793_v48  ;;  %v16991_v48 = vadd.f32 %v16806_v37, %v16814_v53  ;;  %v17006_v53 = vadd.f32 %v16839_v20, %v16833_v49 }
 0x850   : > { %v8644_v3 = vadd.f32 %v8576_v30, %v8367_v0  ;;  %v16980_v30 = vpop.f32.mrf.mxu1 }
 0x851   : > { %12494 = vmatmul.msk.f32.gmra.mxu1 %vm336_vm1, %v8969_v43  ;;  %12530 = vmatmul.msk.f32.vlgmr.msrb.gmra.mxu3 %vm336_vm1, %v18803_v12  ;;  %v8970_v12 = vld [vmem:[#allocation4 + $0x1bb] sm:$0xff] }
 0x852   : > { %v8856_v56 = vpop.f32.mrf.mxu0  ;;  %12396 = vmatmul.msk.f32.gmra.mxu2 %vm336_vm1, %v16963_v45  ;;  %v16972_v5 = vadd.f32 %v8853_v25, %v8644_v3  ;;  %v18805_v3 = vld [vmem:[#allocation43_spill] sm:$0xff] }
 0x854   : > { %v8582_v42 = vpop.f32.mrf.mxu3 }
 0x855   : > { %12462 = vmatmul.msk.f32.gmra.mxu0 %vm336_vm1, %v16968_v15  ;;  %v8302_v0 = vpop.f32.mrf.mxu2  ;;  %v9771_v15 = vld [vmem:[#allocation4 + $0x61] sm:$0xff] }
 0x856   : > { %v8368_v43 = vadd.f32 %v8302_v0, %v16467_v11 }
 0x858   : > { %v8645_v1 = vadd.f32 %v8579_v18, %v8368_v43  ;;  %v16995_v0 = vpop.f32.mrf.mxu1 }
 0x859   : > { %12495 = vmatmul.msk.f32.gmra.mxu1 %vm336_vm1, %v8970_v12  ;;  %12531 = vmatmul.msk.f32.gmra.mxu3 %vm336_vm1, %v18805_v3  ;;  %v9217_v12 = vld [vmem:[#allocation4 + $0x54] sm:$0xff]  ;;  %v18806_v3 = vld [vmem:[#allocation44_spill] sm:$0xff] }
 0x85a   : > { %v8859_v25 = vpop.f32.mrf.mxu0  ;;  %12497 = vmatmul.msk.f32.vlgmr.msrb.gmra.mxu2 %vm336_vm1, %v9216_v22  ;;  %v16987_v23 = vadd.f32 %v8856_v56, %v8645_v1  ;;  %v18807_v22 = vld [vmem:[#allocation49_spill] sm:$0xff] }
 0x85c   : > { %v8585_v45 = vpop.f32.mrf.mxu3 }
 0x85d   : > { %12563 = vmatmul.msk.f32.vlgmr.msra.gmra.mxu0 %vm336_vm1, %v9771_v15  ;;  %v8305_v11 = vpop.f32.mrf.mxu2 }
 0x85e   : > { %v8369_v18 = vadd.f32 %v8305_v11, %v16488_v61  ;;  %v9772_v61 = vld [vmem:[#allocation4 + $0x69] sm:$0xff] }
 0x860   : > { %v8646_v43 = vadd.f32 %v8582_v42, %v8369_v18  ;;  %v17010_v18 = vpop.f32.mrf.mxu1 }
 0x861   : > { %12532 = vmatmul.msk.f32.gmra.mxu3 %vm336_vm1, %v18806_v3  ;;  %12596 = vmatmul.msk.f32.vlgmr.msra.gmra.mxu1 %vm336_vm1, %v18807_v22  ;;  %v17012_v3 = vld [vmem:[#allocation4 + $0x64] sm:$0xff] }
 0x862   : > { %v8862_v1 = vpop.f32.mrf.mxu0  ;;  %12498 = vmatmul.msk.f32.gmra.mxu2 %vm336_vm1, %v9217_v12  ;;  %v17002_v37 = vadd.f32 %v8859_v25, %v8646_v43  ;;  %v18808_v22 = vld [vmem:[#allocation48_spill] sm:$0xff]  ;;  %v18809_v25 = vld [vmem:[#allocation54_spill] sm:$0xff] }
 0x864   : > { %v8588_v56 = vpop.f32.mrf.mxu3 }
 0x865   : > { %12564 = vmatmul.msk.f32.gmra.mxu0 %vm336_vm1, %v9772_v61  ;;  %v8308_v15 = vpop.f32.mrf.mxu2 }
 0x866   : > { %v8370_v42 = vadd.f32 %v8308_v15, %v16524_v28  ;;  %v17024_v28 = vadd.f32 %v16864_v4, %v16854_v41  ;;  %v17040_v4 = vadd.f32 %v16886_v10, %v16875_v46 }
 0x868   : > { %v8647_v11 = vadd.f32 %v8585_v45, %v8370_v42  ;;  %v9773_v45 = vld [vmem:[#allocation4 + $0x79] sm:$0xff]  ;;  %v17028_v42 = vld [vmem:[#allocation4 + $0x6c] sm:$0xff] }
 0x869   : > { %12533 = vmatmul.msk.f32.gmra.mxu3 %vm336_vm1, %v18808_v22  ;;  %12597 = vmatmul.msk.f32.gmra.mxu1 %vm336_vm1, %v18809_v25  ;;  %v18810_v22 = vld [vmem:[#allocation55_spill] sm:$0xff]  ;;  %v18811_v25 = vld [vmem:[#allocation62_spill] sm:$0xff] }
 0x86a   : > { %v8865_v49 = vpop.f32.mrf.mxu0  ;;  %12499 = vmatmul.msk.f32.gmra.mxu2 %vm336_vm1, %v17012_v3  ;;  %v17020_v20 = vadd.f32 %v8862_v1, %v8647_v11 }
 0x86c   : > { %v8591_v43 = vpop.f32.mrf.mxu3 }
 0x86d   : > { %12565 = vmatmul.msk.f32.gmra.mxu0 %vm336_vm1, %v9773_v45  ;;  %v8311_v12 = vpop.f32.mrf.mxu2 }
 0x86e   : > { %v8371_v61 = vadd.f32 %v8311_v12, %v16545_v51  ;;  %v17042_v51 = vpop.f32.mrf.mxu1 }
 0x870   : > { %v8648_v15 = vadd.f32 %v8588_v56, %v8371_v61  ;;  %v9774_v56 = vld [vmem:[#allocation4 + $0x81] sm:$0xff] }
 0x871   : > { %12534 = vmatmul.msk.f32.gmra.mxu3 %vm336_vm1, %v18810_v22  ;;  %12598 = vmatmul.msk.f32.gmra.mxu1 %vm336_vm1, %v18811_v25  ;;  %v17046_v22 = vld [vmem:[#allocation4 + $0x7c] sm:$0xff] }
 0x872   : > { %v8868_v1 = vpop.f32.mrf.mxu0  ;;  %12500 = vmatmul.msk.f32.gmra.mxu2 %vm336_vm1, %v17028_v42  ;;  %v17036_v41 = vadd.f32 %v8865_v49, %v8648_v15  ;;  %18812 = vst [vmem:[#allocation46_spill] sm:$0xff] %v17046_v22  ;;  %v18813_v49 = vld [vmem:[#allocation47_spill] sm:$0xff]  ;;  %v17058_v15 = vadd.f32 %v16922_v26, %v16896_v17 }
 0x874   : > { %v8594_v11 = vpop.f32.mrf.mxu3 }
 0x875   : > { %12566 = vmatmul.msk.f32.gmra.mxu0 %vm336_vm1, %v9774_v56  ;;  %v8314_v45 = vpop.f32.mrf.mxu2 }
 0x876   : > { %v8372_v12 = vadd.f32 %v8314_v45, %v16566_v13  ;;  %v9775_v13 = vld [vmem:[#allocation4 + $0x91] sm:$0xff]  ;;  %v17061_v25 = vpop.f32.mrf.mxu1 }
 0x878   : > { %v8649_v61 = vadd.f32 %v8591_v43, %v8372_v12  ;;  %v17064_v12 = vld [vmem:[#allocation4 + $0x84] sm:$0xff] }
 0x879   : > { %12535 = vmatmul.msk.f32.gmra.mxu3 %vm336_vm1, %v16453_v59  ;;  %12599 = vmatmul.msk.f32.gmra.mxu1 %vm336_vm1, %v18813_v49  ;;  %v18814_v49 = vld [vmem:[#allocation57_spill] sm:$0xff] }
 0x87a   : > { %v8871_v46 = vpop.f32.mrf.mxu0  ;;  %12501 = vmatmul.msk.f32.gmra.mxu2 %vm336_vm1, %v17046_v22  ;;  %v17054_v10 = vadd.f32 %v8868_v1, %v8649_v61  ;;  %v18815_v1 = vld [vmem:[#allocation52_spill] sm:$0xff]  ;;  %v17076_v61 = vadd.f32 %v16958_v36, %v16931_v55  ;;  %v18816_v22 = vld [vmem:[#allocation50_spill] sm:$0xff] }
 0x87c   : > { %v8597_v43 = vpop.f32.mrf.mxu3 }
 0x87d   : > { %12567 = vmatmul.msk.f32.gmra.mxu0 %vm336_vm1, %v9775_v13  ;;  %v8317_v59 = vpop.f32.mrf.mxu2 }
 0x87e   : > { %v8373_v56 = vadd.f32 %v8317_v59, %v16587_v50  ;;  %v9776_v50 = vld [vmem:[#allocation4 + $0x99] sm:$0xff] }
 0x880   : > { %v8650_v45 = vadd.f32 %v8594_v11, %v8373_v56  ;;  %v17080_v56 = vpop.f32.mrf.mxu1 }
 0x881   : > { %12536 = vmatmul.msk.f32.gmra.mxu3 %vm336_vm1, %v18814_v49  ;;  %12600 = vmatmul.msk.f32.gmra.mxu1 %vm336_vm1, %v18815_v1  ;;  %v17082_v1 = vld [vmem:[#allocation4 + $0x94] sm:$0xff] }
 0x882   : > { %v8874_v17 = vpop.f32.mrf.mxu0  ;;  %12502 = vmatmul.msk.f32.gmra.mxu2 %vm336_vm1, %v17064_v12  ;;  %v17072_v26 = vadd.f32 %v8871_v46, %v8650_v45  ;;  %v18817_v46 = vld [vmem:[#allocation58_spill] sm:$0xff] }
 0x883   : > { %v9777_v45 = vld [vmem:[#allocation4 + $0xa9] sm:$0xff] }
 0x884   : > { %v8600_v11 = vpop.f32.mrf.mxu3 }
 0x885   : > { %12568 = vmatmul.msk.f32.gmra.mxu0 %vm336_vm1, %v9776_v50  ;;  %v8320_v13 = vpop.f32.mrf.mxu2 }
 0x886   : > { %v8374_v59 = vadd.f32 %v8320_v13, %v16608_v62  ;;  %v17094_v62 = vadd.f32 %v16980_v30, %v16952_v38 }
 0x888   : > { %v8651_v49 = vadd.f32 %v8597_v43, %v8374_v59  ;;  %v17098_v59 = vpop.f32.mrf.mxu1 }
 0x889   : > { %12537 = vmatmul.msk.f32.gmra.mxu3 %vm336_vm1, %v18816_v22  ;;  %12601 = vmatmul.msk.f32.gmra.mxu1 %vm336_vm1, %v18817_v46  ;;  %v17100_v46 = vld [vmem:[#allocation4 + $0x9c] sm:$0xff] }
 0x88a   : > { %v8877_v55 = vpop.f32.mrf.mxu0  ;;  %12503 = vmatmul.msk.f32.gmra.mxu2 %vm336_vm1, %v17082_v1  ;;  %v17090_v36 = vadd.f32 %v8874_v17, %v8651_v49  ;;  %v18818_v17 = vld [vmem:[#allocation60_spill] sm:$0xff] }
 0x88c   : > { %v8603_v43 = vpop.f32.mrf.mxu3 }
 0x88d   : > { %12569 = vmatmul.msk.f32.gmra.mxu0 %vm336_vm1, %v9777_v45  ;;  %v8323_v50 = vpop.f32.mrf.mxu2 }
 0x88e   : > { %v8375_v22 = vadd.f32 %v8323_v50, %v16629_v6  ;;  %v17112_v6 = vadd.f32 %v16995_v0, %v16972_v5  ;;  %v17128_v0 = vadd.f32 %v17010_v18, %v16987_v23 }
 0x890   : > { %v8652_v13 = vadd.f32 %v8600_v11, %v8375_v22  ;;  %v9778_v11 = vld [vmem:[#allocation4 + $0xb1] sm:$0xff] }
 0x891   : > { %12538 = vmatmul.msk.f32.gmra.mxu3 %vm336_vm1, %v16512_v44  ;;  %12602 = vmatmul.msk.f32.gmra.mxu1 %vm336_vm1, %v18818_v17  ;;  %v17116_v22 = vld [vmem:[#allocation4 + $0xac] sm:$0xff]  ;;  %v18819_v17 = vld [vmem:[#allocation59_spill] sm:$0xff] }
 0x892   : > { %v8880_v38 = vpop.f32.mrf.mxu0  ;;  %12504 = vmatmul.msk.f32.gmra.mxu2 %vm336_vm1, %v17100_v46  ;;  %v17108_v30 = vadd.f32 %v8877_v55, %v8652_v13 }
 0x894   : > { %v8606_v49 = vpop.f32.mrf.mxu3 }
 0x895   : > { %12570 = vmatmul.msk.f32.gmra.mxu0 %vm336_vm1, %v9778_v11  ;;  %v8326_v45 = vpop.f32.mrf.mxu2 }
 0x896   : > { %v8376_v44 = vadd.f32 %v8326_v45, %v16650_v7  ;;  %v17130_v7 = vpop.f32.mrf.mxu1 }
 0x898   : > { %v8653_v50 = vadd.f32 %v8603_v43, %v8376_v44  ;;  %v9779_v43 = vld [vmem:[#allocation4 + $0xc1] sm:$0xff]  ;;  %v17134_v44 = vld [vmem:[#allocation4 + $0xb4] sm:$0xff] }
 0x899   : > { %12539 = vmatmul.msk.f32.gmra.mxu3 %vm336_vm1, %v16533_v35  ;;  %12603 = vmatmul.msk.f32.gmra.mxu1 %vm336_vm1, %v18819_v17 }
 0x89a   : > { %v8883_v55 = vpop.f32.mrf.mxu0  ;;  %12505 = vmatmul.msk.f32.gmra.mxu2 %vm336_vm1, %v17116_v22  ;;  %v17124_v5 = vadd.f32 %v8880_v38, %v8653_v50  ;;  %v18820_v38 = vld [vmem:[#allocation53_spill] sm:$0xff]  ;;  %v17146_v50 = vadd.f32 %v17042_v51, %v17002_v37 }
 0x89c   : > { %v8609_v13 = vpop.f32.mrf.mxu3 }
 0x89d   : > { %12571 = vmatmul.msk.f32.gmra.mxu0 %vm336_vm1, %v9779_v43  ;;  %v8329_v35 = vpop.f32.mrf.mxu2 }
 0x89e   : > { %v8377_v11 = vadd.f32 %v8329_v35, %v16671_v2  ;;  %v9780_v2 = vld [vmem:[#allocation4 + $0xc9] sm:$0xff]  ;;  %v17149_v17 = vpop.f32.mrf.mxu1 }
 0x8a0   : > { %v8654_v45 = vadd.f32 %v8606_v49, %v8377_v11  ;;  %v17152_v11 = vld [vmem:[#allocation4 + $0xc4] sm:$0xff] }
 0x8a1   : > { %12540 = vmatmul.msk.f32.gmra.mxu3 %vm336_vm1, %v16554_v40  ;;  %12604 = vmatmul.msk.f32.gmra.mxu1 %vm336_vm1, %v18820_v38 }
 0x8a2   : > { %v8886_v23 = vpop.f32.mrf.mxu0  ;;  %12506 = vmatmul.msk.f32.gmra.mxu2 %vm336_vm1, %v17134_v44  ;;  %v17142_v18 = vadd.f32 %v8883_v55, %v8654_v45  ;;  %v18821_v55 = vld [vmem:[#allocation56_spill] sm:$0xff]  ;;  %v17164_v45 = vadd.f32 %v17061_v25, %v17020_v20 }
 0x8a4   : > { %v8612_v49 = vpop.f32.mrf.mxu3 }
 0x8a5   : > { %12572 = vmatmul.msk.f32.gmra.mxu0 %vm336_vm1, %v9780_v2  ;;  %v8332_v40 = vpop.f32.mrf.mxu2 }
 0x8a6   : > { %v8378_v43 = vadd.f32 %v8332_v40, %v16692_v47  ;;  %v9781_v47 = vld [vmem:[#allocation4 + $0xd9] sm:$0xff]  ;;  %v17168_v2 = vpop.f32.mrf.mxu1 }
 0x8a8   : > { %v8655_v35 = vadd.f32 %v8609_v13, %v8378_v43  ;;  %v17170_v43 = vld [vmem:[#allocation4 + $0xcc] sm:$0xff] }
 0x8a9   : > { %12541 = vmatmul.msk.f32.gmra.mxu3 %vm336_vm1, %v16575_v52  ;;  %12605 = vmatmul.msk.f32.gmra.mxu1 %vm336_vm1, %v18821_v55 }
 0x8aa   : > { %v8889_v37 = vpop.f32.mrf.mxu0  ;;  %12507 = vmatmul.msk.f32.gmra.mxu2 %vm336_vm1, %v17152_v11  ;;  %v17160_v51 = vadd.f32 %v8886_v23, %v8655_v35  ;;  %v18822_v23 = vld [vmem:[#allocation64_spill] sm:$0xff] }
 0x8ab   : > { %v9782_v35 = vld [vmem:[#allocation4 + $0xe1] sm:$0xff] }
 0x8ac   : > { %v8615_v13 = vpop.f32.mrf.mxu3 }
 0x8ad   : > { %12573 = vmatmul.msk.f32.gmra.mxu0 %vm336_vm1, %v9781_v47  ;;  %v8335_v38 = vpop.f32.mrf.mxu2 }
 0x8ae   : > { %v8379_v52 = vadd.f32 %v8335_v38, %v16713_v39  ;;  %v17182_v39 = vadd.f32 %v17080_v56, %v17036_v41  ;;  %v9157_v38 = vpop.f32.mrf.mxu1  ;;  %v17198_v56 = vadd.f32 %v17098_v59, %v17054_v10  ;;  %v17214_v59 = vadd.f32 %v17130_v7, %v17072_v26 }
 0x8af   : > { %v17230_v7 = vadd.f32 %v17149_v17, %v17090_v36  ;;  %v17246_v17 = vadd.f32 %v17168_v2, %v17108_v30  ;;  %v17261_v2 = vadd.f32 %v9157_v38, %v17124_v5 }
 0x8b0   : > { %v8656_v40 = vadd.f32 %v8612_v49, %v8379_v52  ;;  %v17186_v52 = vld [vmem:[#allocation4 + $0xdc] sm:$0xff] }
 0x8b1   : > { %12542 = vmatmul.msk.f32.gmra.mxu3 %vm336_vm1, %v16596_v34  ;;  %12606 = vmatmul.msk.f32.gmra.mxu1 %vm336_vm1, %v18822_v23 }
 0x8b2   : > { %v8892_v20 = vpop.f32.mrf.mxu0  ;;  %12508 = vmatmul.msk.f32.gmra.mxu2 %vm336_vm1, %v17170_v43  ;;  %v17178_v25 = vadd.f32 %v8889_v37, %v8656_v40  ;;  %v18823_v37 = vld [vmem:[#allocation63_spill] sm:$0xff] }
 0x8b4   : > { %v8618_v49 = vpop.f32.mrf.mxu3 }
 0x8b5   : > { %12574 = vmatmul.msk.f32.gmra.mxu0 %vm336_vm1, %v9782_v35  ;;  %v8338_v55 = vpop.f32.mrf.mxu2 }
 0x8b6   : > { %v8380_v34 = vadd.f32 %v8338_v55, %v16734_v8  ;;  %v9783_v8 = vld [vmem:[#allocation4 + $0xf1] sm:$0xff]  ;;  %v17202_v55 = vld [vmem:[#allocation4 + $0xe4] sm:$0xff] }
 0x8b8   : > { %v8657_v47 = vadd.f32 %v8615_v13, %v8380_v34  ;;  %v18824_v34 = vld [vmem:[#allocation61_spill] sm:$0xff] }
 0x8b9   : > { %12543 = vmatmul.msk.f32.gmra.mxu3 %vm336_vm1, %v16617_v27  ;;  %12607 = vmatmul.msk.f32.gmra.mxu1 %vm336_vm1, %v18823_v37 }
 0x8ba   : > { %v8895_v40 = vpop.f32.mrf.mxu0  ;;  %12509 = vmatmul.msk.f32.gmra.mxu2 %vm336_vm1, %v17186_v52  ;;  %v17194_v41 = vadd.f32 %v8892_v20, %v8657_v47 }
 0x8bc   : > { %v8621_v13 = vpop.f32.mrf.mxu3 }
 0x8bd   : > { %12575 = vmatmul.msk.f32.gmra.mxu0 %vm336_vm1, %v9783_v8  ;;  %v8341_v23 = vpop.f32.mrf.mxu2 }
 0x8be   : > { %v8381_v27 = vadd.f32 %v8341_v23, %v16755_v21  ;;  %v9160_v21 = vpop.f32.mrf.mxu1  ;;  %v17218_v23 = vld [vmem:[#allocation4 + $0xf4] sm:$0xff] }
 0x8bf   : > { %v17276_v38 = vadd.f32 %v9160_v21, %v17142_v18 }
 0x8c0   : > { %v8658_v35 = vadd.f32 %v8618_v49, %v8381_v27  ;;  %v9784_v49 = vld [vmem:[#allocation4 + $0xf9] sm:$0xff] }
 0x8c1   : > { %12544 = vmatmul.msk.f32.gmra.mxu3 %vm336_vm1, %v16638_v58  ;;  %12608 = vmatmul.msk.f32.gmra.mxu1 %vm336_vm1, %v18824_v34 }
 0x8c2   : > { %v8898_v20 = vpop.f32.mrf.mxu0  ;;  %12510 = vmatmul.msk.f32.gmra.mxu2 %vm336_vm1, %v17202_v55  ;;  %v17210_v10 = vadd.f32 %v8895_v40, %v8658_v35  ;;  %v18825_v40 = vld [vmem:[#allocation66_spill] sm:$0xff] }
 0x8c4   : > { %v8624_v47 = vpop.f32.mrf.mxu3 }
 0x8c5   : > { %12576 = vmatmul.msk.f32.gmra.mxu0 %vm336_vm1, %v9784_v49  ;;  %v8344_v37 = vpop.f32.mrf.mxu2 }
 0x8c6   : > { %v8382_v58 = vadd.f32 %v8344_v37, %v16776_v60  ;;  %v9785_v60 = vld [vmem:[#allocation4 + $0x109] sm:$0xff]  ;;  %v9163_v35 = vpop.f32.mrf.mxu1  ;;  %v17234_v37 = vld [vmem:[#allocation4 + $0xfc] sm:$0xff] }
 0x8c7   : > { %v17291_v21 = vadd.f32 %v9163_v35, %v17160_v51 }
 0x8c8   : > { %v8659_v8 = vadd.f32 %v8621_v13, %v8382_v58 }
 0x8c9   : > { %12545 = vmatmul.msk.f32.gmra.mxu3 %vm336_vm1, %v16659_v57  ;;  %12609 = vmatmul.msk.f32.gmra.mxu1 %vm336_vm1, %v18825_v40 }
 0x8ca   : > { %v8901_v27 = vpop.f32.mrf.mxu0  ;;  %12511 = vmatmul.msk.f32.gmra.mxu2 %vm336_vm1, %v17218_v23  ;;  %v17226_v26 = vadd.f32 %v8898_v20, %v8659_v8  ;;  %v18826_v20 = vld [vmem:[#allocation68_spill] sm:$0xff] }
 0x8cc   : > { %v8627_v13 = vpop.f32.mrf.mxu3 }
 0x8cd   : > { %12577 = vmatmul.msk.f32.gmra.mxu0 %vm336_vm1, %v9785_v60  ;;  %v8347_v34 = vpop.f32.mrf.mxu2 }
 0x8ce   : > { %v8383_v57 = vadd.f32 %v8347_v34, %v16797_v29  ;;  %v9786_v29 = vld [vmem:[#allocation4 + $0x111] sm:$0xff]  ;;  %v9166_v40 = vpop.f32.mrf.mxu1 }
 0x8cf   : > { %v17250_v34 = vld [vmem:[#allocation4 + $0x10c] sm:$0xff]  ;;  %v17306_v35 = vadd.f32 %v9166_v40, %v17178_v25 }
 0x8d0   : > { %v8660_v49 = vadd.f32 %v8624_v47, %v8383_v57  ;;  %18827 = vst [vmem:[#allocation43_spill] sm:$0xff] %v17250_v34  ;;  %v18828_v57 = vld [vmem:[#allocation69_spill] sm:$0xff] }
 0x8d1   : > { %12546 = vmatmul.msk.f32.gmra.mxu3 %vm336_vm1, %v16680_v63  ;;  %12610 = vmatmul.msk.f32.gmra.mxu1 %vm336_vm1, %v18826_v20 }
 0x8d2   : > { %v8904_v58 = vpop.f32.mrf.mxu0  ;;  %12512 = vmatmul.msk.f32.gmra.mxu2 %vm336_vm1, %v17234_v37  ;;  %v17242_v36 = vadd.f32 %v8901_v27, %v8660_v49  ;;  %v18829_v27 = vld [vmem:[#allocation65_spill] sm:$0xff] }
 0x8d4   : > { %v9643_v47 = vpop.f32.mrf.mxu3 }
 0x8d5   : > { %12578 = vmatmul.msk.f32.gmra.mxu0 %vm336_vm1, %v9786_v29  ;;  %v8350_v8 = vpop.f32.mrf.mxu2 }
 0x8d6   : > { %v8384_v63 = vadd.f32 %v8350_v8, %v16818_v16  ;;  %v9787_v16 = vld [vmem:[#allocation4 + $0x121] sm:$0xff] }
 0x8d8   : > { %v8661_v60 = vadd.f32 %v8627_v13, %v8384_v63  ;;  %v9169_v63 = vpop.f32.mrf.mxu1 }
 0x8d9   : > { %12547 = vmatmul.msk.f32.gmra.mxu3 %vm336_vm1, %v18828_v57  ;;  %12611 = vmatmul.msk.f32.gmra.mxu1 %vm336_vm1, %v18829_v27  ;;  %v17265_v57 = vld [vmem:[#allocation4 + $0x114] sm:$0xff]  ;;  %v17321_v40 = vadd.f32 %v9169_v63, %v17194_v41 }
 0x8da   : > { %v9920_v49 = vpop.f32.mrf.mxu0  ;;  %12513 = vmatmul.msk.f32.gmra.mxu2 %vm336_vm1, %v17250_v34  ;;  %v17258_v30 = vadd.f32 %v8904_v58, %v8661_v60  ;;  %v18830_v27 = vld [vmem:[#allocation70_spill] sm:$0xff]  ;;  %v18831_v34 = vld [vmem:[#allocation67_spill] sm:$0xff] }
 0x8dc   : > { %v9646_v20 = vpop.f32.mrf.mxu3 }
 0x8dd   : > { %12579 = vmatmul.msk.f32.gmra.mxu0 %vm336_vm1, %v9787_v16  ;;  %v9365_v13 = vpop.f32.mrf.mxu2 }
 0x8de   : > { %v9461_v29 = vadd.f32 %v9365_v13, %v16837_v32  ;;  %v9788_v32 = vld [vmem:[#allocation4 + $0x129] sm:$0xff] }
 0x8e0   : > { %v9739_v8 = vadd.f32 %v9643_v47, %v9461_v29  ;;  %v17280_v29 = vld [vmem:[#allocation4 + $0x124] sm:$0xff] }
 0x8e1   : > { %12548 = vmatmul.msk.f32.gmra.mxu3 %vm336_vm1, %v18830_v27  ;;  %12612 = vmatmul.msk.f32.gmra.mxu1 %vm336_vm1, %v18831_v34  ;;  %18832 = vst [vmem:[#allocation44_spill] sm:$0xff] %v17280_v29  ;;  %v18833_v34 = vld [vmem:[#allocation73_spill] sm:$0xff]  ;;  %v18834_v27 = vld [vmem:[#allocation72_spill] sm:$0xff] }
 0x8e2   : > { %v9923_v58 = vpop.f32.mrf.mxu0  ;;  %12514 = vmatmul.msk.f32.gmra.mxu2 %vm336_vm1, %v17265_v57  ;;  %v17273_v5 = vadd.f32 %v9920_v49, %v9739_v8  ;;  %v9172_v8 = vpop.f32.mrf.mxu1 }
 0x8e3   : > { %v17336_v63 = vadd.f32 %v9172_v8, %v17210_v10 }
 0x8e4   : > { %v9649_v47 = vpop.f32.mrf.mxu3 }
 0x8e5   : > { %12580 = vmatmul.msk.f32.gmra.mxu0 %vm336_vm1, %v9788_v32  ;;  %v9368_v60 = vpop.f32.mrf.mxu2 }
 0x8e6   : > { %v9462_v16 = vadd.f32 %v9368_v60, %v16858_v31  ;;  %v9789_v31 = vld [vmem:[#allocation4 + $0x139] sm:$0xff] }
 0x8e8   : > { %v9740_v13 = vadd.f32 %v9646_v20, %v9462_v16 }
 0x8e9   : > { %12549 = vmatmul.msk.f32.gmra.mxu3 %vm336_vm1, %v18833_v34  ;;  %12613 = vmatmul.msk.f32.gmra.mxu1 %vm336_vm1, %v18834_v27  ;;  %v17295_v34 = vld [vmem:[#allocation4 + $0x12c] sm:$0xff] }
 0x8ea   : > { %v9926_v49 = vpop.f32.mrf.mxu0  ;;  %12515 = vmatmul.msk.f32.gmra.mxu2 %vm336_vm1, %v17280_v29  ;;  %v17288_v18 = vadd.f32 %v9923_v58, %v9740_v13  ;;  %18835 = vst [vmem:[#allocation49_spill] sm:$0xff] %v17295_v34  ;;  %v18836_v27 = vld [vmem:[#allocation77_spill] sm:$0xff]  ;;  %v18837_v29 = vld [vmem:[#allocation71_spill] sm:$0xff] }
 0x8eb   : > { %v9790_v13 = vld [vmem:[#allocation4 + $0x141] sm:$0xff] }
 0x8ec   : > { %v9652_v20 = vpop.f32.mrf.mxu3 }
 0x8ed   : > { %12581 = vmatmul.msk.f32.gmra.mxu0 %vm336_vm1, %v9789_v31  ;;  %v9371_v32 = vpop.f32.mrf.mxu2 }
 0x8ee   : > { %v9463_v60 = vadd.f32 %v9371_v32, %v16879_v19 }
 0x8f0   : > { %v9741_v16 = vadd.f32 %v9649_v47, %v9463_v60  ;;  %v9175_v47 = vpop.f32.mrf.mxu1 }
 0x8f1   : > { %12550 = vmatmul.msk.f32.gmra.mxu3 %vm336_vm1, %v18836_v27  ;;  %12614 = vmatmul.msk.f32.gmra.mxu1 %vm336_vm1, %v18837_v29  ;;  %v17310_v27 = vld [vmem:[#allocation4 + $0x13c] sm:$0xff]  ;;  %v17351_v8 = vadd.f32 %v9175_v47, %v17226_v26 }
 0x8f2   : > { %v9929_v58 = vpop.f32.mrf.mxu0  ;;  %12516 = vmatmul.msk.f32.gmra.mxu2 %vm336_vm1, %v17295_v34  ;;  %v17303_v51 = vadd.f32 %v9926_v49, %v9741_v16  ;;  %v18838_v29 = vld [vmem:[#allocation79_spill] sm:$0xff]  ;;  %v18839_v34 = vld [vmem:[#allocation74_spill] sm:$0xff] }
 0x8f3   : > { %v9791_v16 = vld [vmem:[#allocation4 + $0x151] sm:$0xff] }
 0x8f4   : > { %v9655_v19 = vpop.f32.mrf.mxu3 }
 0x8f5   : > { %12582 = vmatmul.msk.f32.gmra.mxu0 %vm336_vm1, %v9790_v13  ;;  %v9374_v31 = vpop.f32.mrf.mxu2 }
 0x8f6   : > { %v9464_v32 = vadd.f32 %v9374_v31, %v16906_v14 }
 0x8f8   : > { %v9742_v60 = vadd.f32 %v9652_v20, %v9464_v32  ;;  %v9178_v31 = vpop.f32.mrf.mxu1 }
 0x8f9   : > { %12551 = vmatmul.msk.f32.gmra.mxu3 %vm336_vm1, %v18838_v29  ;;  %12615 = vmatmul.msk.f32.gmra.mxu1 %vm336_vm1, %v18839_v34  ;;  %v17325_v29 = vld [vmem:[#allocation4 + $0x144] sm:$0xff]  ;;  %v18840_v34 = vld [vmem:[#allocation75_spill] sm:$0xff]  ;;  %v17366_v47 = vadd.f32 %v9178_v31, %v17242_v36 }
 0x8fa   : > { %v9932_v49 = vpop.f32.mrf.mxu0  ;;  %12517 = vmatmul.msk.f32.gmra.mxu2 %vm336_vm1, %v17310_v27  ;;  %v17318_v25 = vadd.f32 %v9929_v58, %v9742_v60 }
 0x8fc   : > { %v9658_v14 = vpop.f32.mrf.mxu3 }
 0x8fd   : > { %12583 = vmatmul.msk.f32.gmra.mxu0 %vm336_vm1, %v9791_v16  ;;  %v9377_v20 = vpop.f32.mrf.mxu2 }
 0x8fe   : > { %v9465_v13 = vadd.f32 %v9377_v20, %v16936_v9  ;;  %v9792_v9 = vld [vmem:[#allocation4 + $0x159] sm:$0xff] }
 0x900   : > { %v9743_v32 = vadd.f32 %v9655_v19, %v9465_v13  ;;  %v9181_v20 = vpop.f32.mrf.mxu1  ;;  %v17340_v13 = vld [vmem:[#allocation4 + $0x154] sm:$0xff] }
 0x901   : > { %12552 = vmatmul.msk.f32.gmra.mxu3 %vm336_vm1, %v16804_v33  ;;  %12616 = vmatmul.msk.f32.gmra.mxu1 %vm336_vm1, %v18840_v34  ;;  %18841 = vst [vmem:[#allocation48_spill] sm:$0xff] %v17340_v13  ;;  %v18842_v34 = vld [vmem:[#allocation78_spill] sm:$0xff]  ;;  %v17381_v31 = vadd.f32 %v9181_v20, %v17258_v30 }
 0x902   : > { %12518 = vmatmul.msk.f32.gmra.mxu2 %vm336_vm1, %v17325_v29  ;;  %v17333_v41 = vadd.f32 %v9932_v49, %v9743_v32  ;;  %v9935_v58 = vpop.f32.mrf.mxu0  ;;  %v18843_v49 = vld [vmem:[#allocation76_spill] sm:$0xff]  ;;  %v9793_v32 = vld [vmem:[#allocation4 + $0x169] sm:$0xff] }
 0x903   : > { %v9796_v20 = vld [vmem:[#allocation4 + $0x189] sm:$0xff] }
 0x904   : > { %v9661_v60 = vpop.f32.mrf.mxu3 }
 0x905   : > { %12584 = vmatmul.msk.f32.gmra.mxu0 %vm336_vm1, %v9792_v9  ;;  %v9380_v19 = vpop.f32.mrf.mxu2 }
 0x906   : > { %v9466_v16 = vadd.f32 %v9380_v19, %v16956_v24 }
 0x908   : > { %v9744_v33 = vadd.f32 %v9658_v14, %v9466_v16 }
 0x909   : > { %12553 = vmatmul.msk.f32.gmra.mxu3 %vm336_vm1, %v18842_v34  ;;  %12617 = vmatmul.msk.f32.gmra.mxu1 %vm336_vm1, %v18843_v49  ;;  %v17355_v34 = vld [vmem:[#allocation4 + $0x15c] sm:$0xff]  ;;  %v18844_v49 = vld [vmem:[#allocation85_spill] sm:$0xff] }
 0x90a   : > { %12519 = vmatmul.msk.f32.gmra.mxu2 %vm336_vm1, %v17340_v13  ;;  %v17348_v10 = vadd.f32 %v9935_v58, %v9744_v33  ;;  %v9938_v9 = vpop.f32.mrf.mxu0  ;;  %v18845_v13 = vld [vmem:[#allocation81_spill] sm:$0xff]  ;;  %v10197_v58 = vpop.f32.mrf.mxu1  ;;  %v9794_v33 = vld [vmem:[#allocation4 + $0x171] sm:$0xff] }
 0x90b   : > { %v17396_v30 = vadd.f32 %v10197_v58, %v17273_v5  ;;  %v9797_v58 = vld [vmem:[#allocation4 + $0x199] sm:$0xff] }
 0x90c   : > { %v9664_v24 = vpop.f32.mrf.mxu3 }
 0x90d   : > { %12585 = vmatmul.msk.f32.gmra.mxu0 %vm336_vm1, %v9793_v32  ;;  %v9383_v14 = vpop.f32.mrf.mxu2 }
 0x90e   : > { %v9467_v19 = vadd.f32 %v9383_v14, %v16976_v54 }
 0x910   : > { %v9745_v16 = vadd.f32 %v9661_v60, %v9467_v19 }
 0x911   : > { %12554 = vmatmul.msk.f32.gmra.mxu3 %vm336_vm1, %v18844_v49  ;;  %12618 = vmatmul.msk.f32.gmra.mxu1 %vm336_vm1, %v18845_v13  ;;  %v17370_v49 = vld [vmem:[#allocation4 + $0x16c] sm:$0xff] }
 0x912   : > { %12520 = vmatmul.msk.f32.gmra.mxu2 %vm336_vm1, %v17355_v34  ;;  %v17363_v26 = vadd.f32 %v9938_v9, %v9745_v16  ;;  %v9941_v14 = vpop.f32.mrf.mxu0  ;;  %v18846_v13 = vld [vmem:[#allocation41_spill] sm:$0xff]  ;;  %v18847_v9 = vld [vmem:[#allocation88_spill] sm:$0xff] }
 0x913   : > { %v9795_v16 = vld [vmem:[#allocation4 + $0x181] sm:$0xff] }
 0x914   : > { %v9667_v54 = vpop.f32.mrf.mxu3 }
 0x915   : > { %12586 = vmatmul.msk.f32.gmra.mxu0 %vm336_vm1, %v9794_v33  ;;  %v9386_v60 = vpop.f32.mrf.mxu2 }
 0x916   : > { %v9468_v32 = vadd.f32 %v9386_v60, %v16991_v48 }
 0x918   : > { %v9746_v19 = vadd.f32 %v9664_v24, %v9468_v32  ;;  %v10200_v24 = vpop.f32.mrf.mxu1 }
 0x919   : > { %12555 = vmatmul.msk.f32.gmra.mxu3 %vm336_vm1, %v18846_v13  ;;  %12619 = vmatmul.msk.f32.gmra.mxu1 %vm336_vm1, %v18847_v9  ;;  %v17387_v13 = vld [vmem:[#allocation4 + $0x174] sm:$0xff]  ;;  %v17411_v5 = vadd.f32 %v10200_v24, %v17288_v18  ;;  %v9798_v24 = vld [vmem:[#allocation4 + $0x1a1] sm:$0xff] }
 0x91a   : > { %12521 = vmatmul.msk.f32.gmra.mxu2 %vm336_vm1, %v17370_v49  ;;  %v17378_v36 = vadd.f32 %v9941_v14, %v9746_v19  ;;  %v18848_v9 = vld [vmem:[#allocation42_spill] sm:$0xff]  ;;  %v18849_v14 = vld [vmem:[#allocation80_spill] sm:$0xff] }
 0x91c   : > { %v9670_v48 = vpop.f32.mrf.mxu3 }
 0x91d   : > { %12587 = vmatmul.msk.f32.gmra.mxu0 %vm336_vm1, %v9795_v16  ;;  %v9389_v33 = vpop.f32.mrf.mxu2 }
 0x91e   : > { %v9469_v60 = vadd.f32 %v9389_v33, %v17006_v53 }
 0x920   : > { %v17385_v32 = vadd.f32 %v9667_v54, %v9469_v60  ;;  %v10203_v16 = vpop.f32.mrf.mxu1  ;;  %v17402_v60 = vld [vmem:[#allocation4 + $0x184] sm:$0xff] }
 0x921   : > { %12556 = vmatmul.msk.f32.gmra.mxu3 %vm336_vm1, %v18848_v9  ;;  %12620 = vmatmul.msk.f32.gmra.mxu1 %vm336_vm1, %v18849_v14  ;;  %v18851_v9 = vld [vmem:[#allocation51_spill] sm:$0xff]  ;;  %v18852_v14 = vld [vmem:[#allocation82_spill] sm:$0xff]  ;;  %v17426_v18 = vadd.f32 %v10203_v16, %v17303_v51 }
 0x922   : > { %12522 = vmatmul.msk.f32.gmra.mxu2 %vm336_vm1, %v17387_v13 }
 0x924   : > { %v9673_v19 = vpop.f32.mrf.mxu3 }
 0x925   : > { %12588 = vmatmul.msk.f32.gmra.mxu0 %vm336_vm1, %v9796_v20  ;;  %v9392_v53 = vpop.f32.mrf.mxu2 }
 0x926   : > { %v9470_v54 = vadd.f32 %v9392_v53, %v17024_v28 }
 0x928   : > { %v17400_v33 = vadd.f32 %v9670_v48, %v9470_v54  ;;  %v10206_v54 = vpop.f32.mrf.mxu1 }
 0x929   : > { %12557 = vmatmul.msk.f32.gmra.mxu3 %vm336_vm1, %v18851_v9  ;;  %12621 = vmatmul.msk.f32.gmra.mxu1 %vm336_vm1, %v18852_v14  ;;  %v17417_v9 = vld [vmem:[#allocation4 + $0x18c] sm:$0xff]  ;;  %v18855_v14 = vld [vmem:[#allocation84_spill] sm:$0xff]  ;;  %v17441_v51 = vadd.f32 %v10206_v54, %v17318_v25 }
 0x92a   : > { %18850 = vst [vmem:[#allocation54_spill] sm:$0xff] %v17400_v33  ;;  %12523 = vmatmul.msk.f32.gmra.mxu2 %vm336_vm1, %v17402_v60  ;;  %v18854_v33 = vld [vmem:[#allocation87_spill] sm:$0xff] }
 0x92c   : > { %v9676_v20 = vpop.f32.mrf.mxu3 }
 0x92d   : > { %12589 = vmatmul.msk.f32.gmra.mxu0 %vm336_vm1, %v9797_v58  ;;  %v9395_v28 = vpop.f32.mrf.mxu2 }
 0x92e   : > { %v9471_v48 = vadd.f32 %v9395_v28, %v17040_v4 }
 0x930   : > { %v17415_v53 = vadd.f32 %v9673_v19, %v9471_v48  ;;  %v17432_v48 = vld [vmem:[#allocation4 + $0x19c] sm:$0xff]  ;;  %v10209_v16 = vpop.f32.mrf.mxu1 }
 0x931   : > { %12558 = vmatmul.msk.f32.gmra.mxu3 %vm336_vm1, %v18854_v33  ;;  %12622 = vmatmul.msk.f32.gmra.mxu1 %vm336_vm1, %v18855_v14  ;;  %v18857_v33 = vld [vmem:[#allocation40_spill] sm:$0xff]  ;;  %v18858_v14 = vld [vmem:[#allocation83_spill] sm:$0xff]  ;;  %v17455_v25 = vadd.f32 %v10209_v16, %v17333_v41 }
 0x932   : > { %18853 = vst [vmem:[#allocation55_spill] sm:$0xff] %v17415_v53  ;;  %12524 = vmatmul.msk.f32.gmra.mxu2 %vm336_vm1, %v17417_v9  ;;  %v9799_v53 = vld [vmem:[#allocation4 + $0x1b1] sm:$0xff] }
 0x934   : > { %v9679_v58 = vpop.f32.mrf.mxu3 }
 0x935   : > { %12590 = vmatmul.msk.f32.gmra.mxu0 %vm336_vm1, %v9798_v24  ;;  %v9398_v4 = vpop.f32.mrf.mxu2 }
 0x936   : > { %v9472_v19 = vadd.f32 %v9398_v4, %v17058_v15  ;;  %v9524_v4 = vld [vmem:[#allocation4 + $0x1c8] sm:$0xff] }
 0x938   : > { %v17430_v28 = vadd.f32 %v9676_v20, %v9472_v19 }
 0x939   : > { %12559 = vmatmul.msk.f32.gmra.mxu3 %vm336_vm1, %v18857_v33  ;;  %12623 = vmatmul.msk.f32.gmra.mxu1 %vm336_vm1, %v18858_v14  ;;  %v17447_v33 = vld [vmem:[#allocation4 + $0x1a4] sm:$0xff]  ;;  %v18860_v14 = vld [vmem:[#allocation86_spill] sm:$0xff] }
 0x93a   : > { %18856 = vst [vmem:[#allocation62_spill] sm:$0xff] %v17430_v28  ;;  %12525 = vmatmul.msk.f32.gmra.mxu2 %vm336_vm1, %v17432_v48  ;;  %v9800_v28 = vld [vmem:[#allocation4 + $0x1b9] sm:$0xff] }
 0x93c   : > { %v9682_v24 = vpop.f32.mrf.mxu3 }
 0x93d   : > { %12591 = vmatmul.msk.f32.gmra.mxu0 %vm336_vm1, %v9799_v53  ;;  %v9401_v15 = vpop.f32.mrf.mxu2 }
 0x93e   : > { %v9473_v20 = vadd.f32 %v9401_v15, %v17076_v61  ;;  %v10212_v61 = vpop.f32.mrf.mxu1  ;;  %v9525_v15 = vld [vmem:[#allocation4 + $0x1d0] sm:$0xff] }
 0x93f   : > { %v17469_v41 = vadd.f32 %v10212_v61, %v17348_v10 }
 0x940   : > { %v17445_v19 = vadd.f32 %v9679_v58, %v9473_v20  ;;  %v17459_v20 = vld [vmem:[#allocation4 + $0x1b4] sm:$0xff] }
 0x941   : > { %12560 = vmatmul.msk.f32.gmra.mxu3 %vm336_vm1, %v9524_v4  ;;  %12624 = vmatmul.msk.f32.gmra.mxu1 %vm336_vm1, %v18860_v14  ;;  %v18861_v14 = vld [vmem:[#allocation45_spill] sm:$0xff] }
 0x942   : > { %18859 = vst [vmem:[#allocation47_spill] sm:$0xff] %v17445_v19  ;;  %12526 = vmatmul.msk.f32.gmra.mxu2 %vm336_vm1, %v17447_v33  ;;  %v9801_v19 = vld [vmem:[#allocation4 + $0x1c9] sm:$0xff] }
 0x944   : > { %v9685_v53 = vpop.f32.mrf.mxu3 }
 0x945   : > { %12592 = vmatmul.msk.f32.gmra.mxu0 %vm336_vm1, %v9800_v28  ;;  %v9404_v54 = vpop.f32.mrf.mxu2 }
 0x946   : > { %v9474_v58 = vadd.f32 %v9404_v54, %v17094_v62  ;;  %v10215_v54 = vpop.f32.mrf.mxu1 }
 0x947   : > { %v17483_v10 = vadd.f32 %v10215_v54, %v17363_v26 }
 0x948   : > { %v17461_v4 = vadd.f32 %v9682_v24, %v9474_v58  ;;  %v10078_v24 = vld [vmem:[#allocation4 + $0x1ca] sm:$0xff]  ;;  %v17473_v58 = vld [vmem:[#allocation4 + $0x1bc] sm:$0xff] }
 0x949   : > { %12561 = vmatmul.msk.f32.gmra.mxu3 %vm336_vm1, %v9525_v15  ;;  %12625 = vmatmul.msk.f32.gmra.mxu1 %vm336_vm1, %v18861_v14  ;;  %v9802_v14 = vld [vmem:[#allocation4 + $0x1d1] sm:$0xff] }
 0x94a   : > { %12527 = vmatmul.msk.f32.gmra.mxu2 %vm336_vm1, %v17459_v20 }
 0x94c   : > { %v9688_v28 = vpop.f32.mrf.mxu3 }
 0x94d   : > { %12593 = vmatmul.msk.f32.gmra.mxu0 %vm336_vm1, %v9801_v19  ;;  %v9407_v62 = vpop.f32.mrf.mxu2 }
 0x94e   : > { %v9475_v16 = vadd.f32 %v9407_v62, %v17112_v6 }
 0x950   : > { %v17475_v15 = vadd.f32 %v9685_v53, %v9475_v16  ;;  %v10079_v53 = vld [vmem:[#allocation4 + $0x1d2] sm:$0xff]  ;;  %v10218_v16 = vpop.f32.mrf.mxu1 }
 0x951   : > { %12662 = vmatmul.msk.f32.vlgmr.msra.gmra.mxu3 %vm336_vm1, %v17012_v3  ;;  %12626 = vmatmul.msk.f32.gmra.mxu1 %vm336_vm1, %v10078_v24  ;;  %v10325_v3 = vld [vmem:[#allocation4 + $0x63] sm:$0xff]  ;;  %v17494_v26 = vadd.f32 %v10218_v16, %v17378_v36  ;;  %v10327_v36 = vld [vmem:[#allocation4 + $0x7b] sm:$0xff] }
 0x952   : > { %12528 = vmatmul.msk.f32.gmra.mxu2 %vm336_vm1, %v17473_v58 }
 0x954   : > { %v9691_v19 = vpop.f32.mrf.mxu3 }
 0x955   : > { %12594 = vmatmul.msk.f32.gmra.mxu0 %vm336_vm1, %v9802_v14  ;;  %v9410_v6 = vpop.f32.mrf.mxu2 }
 0x956   : > { %v9476_v61 = vadd.f32 %v9410_v6, %v17128_v0  ;;  %v18862_v6 = vld [vmem:[#allocation46_spill] sm:$0xff] }
 0x958   : > { %v17487_v62 = vadd.f32 %v9688_v28, %v9476_v61  ;;  %v10326_v28 = vld [vmem:[#allocation4 + $0x6b] sm:$0xff] }
 0x959   : > { %12663 = vmatmul.msk.f32.gmra.mxu3 %vm336_vm1, %v17028_v42  ;;  %12627 = vmatmul.msk.f32.gmra.mxu1 %vm336_vm1, %v10079_v53 }
 0x95a   : > { %12629 = vmatmul.msk.f32.vlgmr.msra.gmra.mxu2 %vm336_vm1, %v10325_v3 }
 0x95c   : > { %v9694_v24 = vpop.f32.mrf.mxu3 }
 0x95d   : > { %v9413_v54 = vpop.f32.mrf.mxu2 }
 0x95e   : > { %v9477_v14 = vadd.f32 %v9413_v54, %v17146_v50 }
 0x960   : > { %v17497_v0 = vadd.f32 %v9691_v19, %v9477_v14  ;;  %v10328_v14 = vld [vmem:[#allocation4 + $0x83] sm:$0xff] }
 0x961   : > { %12664 = vmatmul.msk.f32.gmra.mxu3 %vm336_vm1, %v18862_v6 }
 0x962   : > { %12630 = vmatmul.msk.f32.gmra.mxu2 %vm336_vm1, %v10326_v28 }
 0x964   : > { %v9697_v42 = vpop.f32.mrf.mxu3 }
 0x965   : > { %v9416_v61 = vpop.f32.mrf.mxu2 }
 0x966   : > { %v9478_v53 = vadd.f32 %v9416_v61, %v17164_v45 }
 0x968   : > { %v17503_v3 = vadd.f32 %v9694_v24, %v9478_v53 }
 0x969   : > { %12665 = vmatmul.msk.f32.gmra.mxu3 %vm336_vm1, %v17064_v12  ;;  %v10329_v12 = vld [vmem:[#allocation4 + $0x93] sm:$0xff] }
 0x96a   : > { %12631 = vmatmul.msk.f32.gmra.mxu2 %vm336_vm1, %v10327_v36 }
 0x96c   : > { %v9700_v50 = vpop.f32.mrf.mxu3 }
 0x96d   : > { %v9419_v19 = vpop.f32.mrf.mxu2 }
 0x96e   : > { %v9479_v16 = vadd.f32 %v9419_v19, %v17182_v39 }
 0x970   : > { %v17509_v54 = vadd.f32 %v9697_v42, %v9479_v16 }
 0x971   : > { %12666 = vmatmul.msk.f32.gmra.mxu3 %vm336_vm1, %v17082_v1  ;;  %v10330_v1 = vld [vmem:[#allocation4 + $0x9b] sm:$0xff] }
 0x972   : > { %12632 = vmatmul.msk.f32.gmra.mxu2 %vm336_vm1, %v10328_v14 }
 0x974   : > { %v9703_v45 = vpop.f32.mrf.mxu3 }
 0x975   : > { %v9422_v24 = vpop.f32.mrf.mxu2 }
 0x976   : > { %v9480_v28 = vadd.f32 %v9422_v24, %v17198_v56 }
 0x978   : > { %v17515_v6 = vadd.f32 %v9700_v50, %v9480_v28  ;;  %v17538_v28 = vpop.permute.xlu2 %11203 }
 0x979   : > { %12667 = vmatmul.msk.f32.gmra.mxu3 %vm336_vm1, %v17100_v46  ;;  %v10331_v46 = vld [vmem:[#allocation4 + $0xab] sm:$0xff] }
 0x97a   : > { %12633 = vmatmul.msk.f32.gmra.mxu2 %vm336_vm1, %v10329_v12 }
 0x97c   : > { %v9706_v39 = vpop.f32.mrf.mxu3 }
 0x97d   : > { %v9425_v42 = vpop.f32.mrf.mxu2 }
 0x97e   : > { %v9481_v61 = vadd.f32 %v9425_v42, %v17214_v59 }
 0x980   : > { %v17521_v53 = vadd.f32 %v9703_v45, %v9481_v61  ;;  %v17547_v61 = vpop.permute.xlu2 %11209 }
 0x981   : > { %12668 = vmatmul.msk.f32.gmra.mxu3 %vm336_vm1, %v17116_v22  ;;  %v10332_v22 = vld [vmem:[#allocation4 + $0xb3] sm:$0xff] }
 0x982   : > { %12634 = vmatmul.msk.f32.gmra.mxu2 %vm336_vm1, %v10330_v1 }
 0x984   : > { %v9709_v56 = vpop.f32.mrf.mxu3 }
 0x985   : > { %v9428_v36 = vpop.f32.mrf.mxu2 }
 0x986   : > { %v9482_v50 = vadd.f32 %v9428_v36, %v17230_v7  ;;  %v17554_v36 = vpop.permute.xlu0 %11205 }
 0x988   : > { %v17527_v19 = vadd.f32 %v9706_v39, %v9482_v50  ;;  %v10333_v39 = vld [vmem:[#allocation4 + $0xc3] sm:$0xff] }
 0x989   : > { %12669 = vmatmul.msk.f32.gmra.mxu3 %vm336_vm1, %v17134_v44 }
 0x98a   : > { %12635 = vmatmul.msk.f32.gmra.mxu2 %vm336_vm1, %v10331_v46 }
 0x98c   : > { %v9712_v59 = vpop.f32.mrf.mxu3 }
 0x98d   : > { %v9431_v16 = vpop.f32.mrf.mxu2 }
 0x98e   : > { %v9483_v14 = vadd.f32 %v9431_v16, %v17246_v17 }
 0x990   : > { %v17533_v45 = vadd.f32 %v9709_v56, %v9483_v14  ;;  %v10334_v56 = vld [vmem:[#allocation4 + $0xcb] sm:$0xff]  ;;  %v17564_v14 = vpop.permute.xlu1 %11207 }
 0x991   : > { %12670 = vmatmul.msk.f32.gmra.mxu3 %vm336_vm1, %v17152_v11 }
 0x992   : > { %12636 = vmatmul.msk.f32.gmra.mxu2 %vm336_vm1, %v10332_v22 }
 0x994   : > { %v9715_v7 = vpop.f32.mrf.mxu3 }
 0x995   : > { %v9434_v24 = vpop.f32.mrf.mxu2 }
 0x996   : > { %v9484_v44 = vadd.f32 %v9434_v24, %v17261_v2 }
 0x998   : > { %v17541_v12 = vadd.f32 %v9712_v59, %v9484_v44  ;;  %v10335_v59 = vld [vmem:[#allocation4 + $0xdb] sm:$0xff] }
 0x999   : > { %12671 = vmatmul.msk.f32.gmra.mxu3 %vm336_vm1, %v17170_v43 }
 0x99a   : > { %12637 = vmatmul.msk.f32.gmra.mxu2 %vm336_vm1, %v10333_v39 }
 0x99c   : > { %v9718_v17 = vpop.f32.mrf.mxu3 }
 0x99d   : > { %v9437_v42 = vpop.f32.mrf.mxu2 }
 0x99e   : > { %v9485_v11 = vadd.f32 %v9437_v42, %v17276_v38  ;;  %v17561_v38 = vpop.permute.xlu2 %11215  ;;  %v17577_v42 = vpop.permute.xlu1 %11213 }
 0x9a0   : > { %v17549_v1 = vadd.f32 %v9715_v7, %v9485_v11  ;;  %v17567_v7 = vpop.permute.xlu0 %11211 }
 0x9a1   : > { %12672 = vmatmul.msk.f32.gmra.mxu3 %vm336_vm1, %v17186_v52 }
 0x9a2   : > { %12638 = vmatmul.msk.f32.gmra.mxu2 %vm336_vm1, %v10334_v56  ;;  %v10337_v56 = vld [vmem:[#allocation4 + $0xf3] sm:$0xff] }
 0x9a4   : > { %v9721_v2 = vpop.f32.mrf.mxu3 }
 0x9a5   : > { %v9440_v43 = vpop.f32.mrf.mxu2 }
 0x9a6   : > { %v9486_v50 = vadd.f32 %v9440_v43, %v17291_v21  ;;  %v10336_v21 = vld [vmem:[#allocation4 + $0xe3] sm:$0xff] }
 0x9a8   : > { %v17557_v46 = vadd.f32 %v9718_v17, %v9486_v50 }
 0x9a9   : > { %12673 = vmatmul.msk.f32.gmra.mxu3 %vm336_vm1, %v17202_v55  ;;  %v17574_v55 = vpop.permute.xlu2 %11221 }
 0x9aa   : > { %12639 = vmatmul.msk.f32.gmra.mxu2 %vm336_vm1, %v10335_v59  ;;  %18864 = vst [vmem:[#allocation52_spill] sm:$0xff] %v17574_v55 }
 0x9ac   : > { %v9724_v16 = vpop.f32.mrf.mxu3 }
 0x9ad   : > { %v9443_v52 = vpop.f32.mrf.mxu2 }
 0x9ae   : > { %v9487_v22 = vadd.f32 %v9443_v52, %v17306_v35  ;;  %v17581_v35 = vpop.permute.xlu0 %11217  ;;  %v18868_v52 = vld [vmem:[#allocation43_spill] sm:$0xff] }
 0x9b0   : > { %v17569_v24 = vadd.f32 %v9721_v2, %v9487_v22 }
 0x9b1   : > { %12674 = vmatmul.msk.f32.gmra.mxu3 %vm336_vm1, %v17218_v23  ;;  %v17586_v43 = vpop.permute.xlu2 %11227 }
 0x9b2   : > { %18863 = vst [vmem:[#allocation57_spill] sm:$0xff] %v17569_v24  ;;  %12640 = vmatmul.msk.f32.gmra.mxu2 %vm336_vm1, %v10336_v21 }
 0x9b3   : > { %18866 = vst [vmem:[#allocation58_spill] sm:$0xff] %v17586_v43 }
 0x9b4   : > { %v9727_v44 = vpop.f32.mrf.mxu3 }
 0x9b5   : > { %v9446_v39 = vpop.f32.mrf.mxu2 }
 0x9b6   : > { %v9488_v17 = vadd.f32 %v9446_v39, %v17321_v40  ;;  %v10338_v40 = vld [vmem:[#allocation4 + $0xfb] sm:$0xff]  ;;  %v17596_v22 = vpop.permute.xlu0 %11223 }
 0x9b7   : > { %18869 = vst [vmem:[#allocation59_spill] sm:$0xff] %v17596_v22 }
 0x9b8   : > { %v17579_v11 = vadd.f32 %v9724_v16, %v9488_v17  ;;  %v17593_v16 = vpop.permute.xlu1 %11219 }
 0x9b9   : > { %12675 = vmatmul.msk.f32.gmra.mxu3 %vm336_vm1, %v17234_v37  ;;  %v17599_v17 = vpop.permute.xlu2 %11233 }
 0x9ba   : > { %18865 = vst [vmem:[#allocation50_spill] sm:$0xff] %v17579_v11  ;;  %12641 = vmatmul.msk.f32.gmra.mxu2 %vm336_vm1, %v10337_v56 }
 0x9bb   : > { %18870 = vst [vmem:[#allocation53_spill] sm:$0xff] %v17599_v17 }
 0x9bc   : > { %v9730_v23 = vpop.f32.mrf.mxu3 }
 0x9bd   : > { %v9449_v2 = vpop.f32.mrf.mxu2 }
 0x9be   : > { %v9489_v50 = vadd.f32 %v9449_v2, %v17336_v63  ;;  %v10339_v63 = vld [vmem:[#allocation4 + $0x10b] sm:$0xff] }
 0x9c0   : > { %v17589_v59 = vadd.f32 %v9727_v44, %v9489_v50  ;;  %v17606_v44 = vpop.permute.xlu1 %11225  ;;  %v17608_v50 = vpop.permute.xlu0 %11229 }
 0x9c1   : > { %12676 = vmatmul.msk.f32.gmra.mxu3 %vm336_vm1, %v18868_v52  ;;  %18872 = vst [vmem:[#allocation64_spill] sm:$0xff] %v17608_v50 }
 0x9c2   : > { %18867 = vst [vmem:[#allocation60_spill] sm:$0xff] %v17589_v59  ;;  %12642 = vmatmul.msk.f32.gmra.mxu2 %vm336_vm1, %v10338_v40 }
 0x9c4   : > { %v9733_v37 = vpop.f32.mrf.mxu3 }
 0x9c5   : > { %v9452_v21 = vpop.f32.mrf.mxu2 }
 0x9c6   : > { %v9490_v39 = vadd.f32 %v9452_v21, %v17351_v8  ;;  %v10340_v8 = vld [vmem:[#allocation4 + $0x113] sm:$0xff]  ;;  %v18874_v21 = vld [vmem:[#allocation44_spill] sm:$0xff] }
 0x9c8   : > { %v17601_v56 = vadd.f32 %v9730_v23, %v9490_v39  ;;  %v17615_v23 = vpop.permute.xlu2 %11239  ;;  %v17621_v50 = vpop.permute.xlu0 %11235 }
 0x9c9   : > { %12677 = vmatmul.msk.f32.gmra.mxu3 %vm336_vm1, %v17265_v57  ;;  %18875 = vst [vmem:[#allocation61_spill] sm:$0xff] %v17615_v23  ;;  %v10342_v23 = vld [vmem:[#allocation4 + $0x12b] sm:$0xff] }
 0x9ca   : > { %18871 = vst [vmem:[#allocation56_spill] sm:$0xff] %v17601_v56  ;;  %12643 = vmatmul.msk.f32.gmra.mxu2 %vm336_vm1, %v10339_v63  ;;  %v17618_v63 = vpop.permute.xlu1 %11231 }
 0x9cb   : > { %18876 = vst [vmem:[#allocation66_spill] sm:$0xff] %v17618_v63 }
 0x9cc   : > { %v9736_v2 = vpop.f32.mrf.mxu3  ;;  %18877 = vst [vmem:[#allocation68_spill] sm:$0xff] %v17621_v50  ;;  %v17646_v50 = vpop.f32.mrf.mxu0 }
 0x9cd   : > { %v9455_v40 = vpop.f32.mrf.mxu2 }
 0x9ce   : > { %v9491_v52 = vadd.f32 %v9455_v40, %v17366_v47  ;;  %v10341_v47 = vld [vmem:[#allocation4 + $0x123] sm:$0xff] }
 0x9d0   : > { %v17611_v43 = vadd.f32 %v9733_v37, %v9491_v52  ;;  %v18879_v37 = vld [vmem:[#allocation49_spill] sm:$0xff]  ;;  %v17628_v40 = vpop.permute.xlu2 %11245 }
 0x9d1   : > { %12678 = vmatmul.msk.f32.gmra.mxu3 %vm336_vm1, %v18874_v21  ;;  %18880 = vst [vmem:[#allocation65_spill] sm:$0xff] %v17628_v40 }
 0x9d2   : > { %18873 = vst [vmem:[#allocation63_spill] sm:$0xff] %v17611_v43  ;;  %12644 = vmatmul.msk.f32.gmra.mxu2 %vm336_vm1, %v10340_v8 }
 0x9d4   : > { %v10751_v57 = vpop.f32.mrf.mxu3 }
 0x9d5   : > { %v9458_v39 = vpop.f32.mrf.mxu2 }
 0x9d6   : > { %v9492_v17 = vadd.f32 %v9458_v39, %v17381_v31  ;;  %v17634_v31 = vld [vmem:[%s18225_s7] ss:$0 sm:$0xff]  ;;  %v17636_v39 = vpop.permute.xlu1 %11237 }
 0x9d7   : > { %18881 = vst [vmem:[#allocation70_spill] sm:$0xff] %v17636_v39  ;;  %v10346_v39 = vld [vmem:[#allocation4 + $0x15b] sm:$0xff] }
 0x9d8   : > { %v17623_v56 = vadd.f32 %v9736_v2, %v9492_v17  ;;  %v17638_v2 = vpop.permute.xlu0 %11241  ;;  %v17644_v40 = vpop.permute.xlu2 %11251 }
 0x9d9   : > { %12679 = vmatmul.msk.f32.gmra.mxu3 %vm336_vm1, %v18879_v37  ;;  %18882 = vst [vmem:[#allocation67_spill] sm:$0xff] %v17638_v2  ;;  %v17658_v2 = vpop.f32.mrf.mxu1 }
 0x9da   : > { %18878 = vst [vmem:[#allocation69_spill] sm:$0xff] %v17623_v56  ;;  %12645 = vmatmul.msk.f32.gmra.mxu2 %vm336_vm1, %v10341_v47 }
 0x9db   : > { %18883 = vst [vmem:[#allocation73_spill] sm:$0xff] %v17644_v40 }
 0x9dc   : > { %v10754_v52 = vpop.f32.mrf.mxu3 }
 0x9dd   : > { %v10474_v8 = vpop.f32.mrf.mxu2 }
 0x9de   : > { %v10570_v21 = vadd.f32 %v10474_v8, %v17396_v30 }
 0x9e0   : > { %v10847_v17 = vadd.f32 %v10751_v57, %v10570_v21  ;;  %v10343_v21 = vld [vmem:[#allocation4 + $0x13b] sm:$0xff] }
 0x9e1   : > { %12680 = vmatmul.msk.f32.gmra.mxu3 %vm336_vm1, %v17310_v27  ;;  %v17652_v27 = vpop.permute.xlu1 %11243 }
 0x9e2   : > { %v10883_v47 = vadd.f32 %v17634_v31, %v10847_v17  ;;  %12646 = vmatmul.msk.f32.gmra.mxu2 %vm336_vm1, %v10342_v23  ;;  %18884 = vst [vmem:[#allocation72_spill] sm:$0xff] %v17652_v27  ;;  %v17656_v17 = vpop.permute.xlu0 %11247 }
 0x9e3   : > { %18885 = vst [vmem:[#allocation77_spill] sm:$0xff] %v17656_v17 }
 0x9e4   : > { %v10915_v37 = vmax.f32 %v10883_v47, 0.0  ;;  %v10757_v30 = vpop.f32.mrf.mxu3 }
 0x9e5   : > { %v10477_v8 = vpop.f32.mrf.mxu2 }
 0x9e6   : > { %v10571_v56 = vadd.f32 %v10477_v8, %v17411_v5  ;;  %11107 = vrot.lane.b32.xlu0 %v10915_v37, %s12838_s23  ;;  %v10344_v8 = vld [vmem:[#allocation4 + $0x143] sm:$0xff] }
 0x9e8   : > { %v10848_v57 = vadd.f32 %v10754_v52, %v10571_v56  ;;  %v17662_v56 = vpop.permute.xlu2 %11257 }
 0x9e9   : > { %12681 = vmatmul.msk.f32.gmra.mxu3 %vm336_vm1, %v17325_v29  ;;  %18886 = vst [vmem:[#allocation71_spill] sm:$0xff] %v17662_v56  ;;  %v17664_v29 = vpop.f32.mrf.mxu0  ;;  %v10345_v56 = vld [vmem:[#allocation4 + $0x153] sm:$0xff] }
 0x9ea   : > { %v10884_v23 = vadd.f32 %v17634_v31, %v10848_v57  ;;  %12647 = vmatmul.msk.f32.gmra.mxu2 %vm336_vm1, %v10343_v21  ;;  %v18887_v57 = vld [vmem:[#allocation48_spill] sm:$0xff] }
 0x9ec   : > { %v10916_v47 = vmax.f32 %v10884_v23, 0.0  ;;  %v10760_v40 = vpop.f32.mrf.mxu3  ;;  %v17670_v23 = vpop.permute.xlu1 %11249 }
 0x9ed   : > { %v10480_v5 = vpop.f32.mrf.mxu2  ;;  %18888 = vst [vmem:[#allocation79_spill] sm:$0xff] %v17670_v23 }
 0x9ee   : > { %v10572_v37 = vadd.f32 %v10480_v5, %v17426_v18  ;;  %11109 = vrot.lane.b32.xlu1 %v10916_v47, %s12838_s23  ;;  %v17672_v18 = vpop.permute.xlu0 %11253 }
 0x9ef   : > { %18889 = vst [vmem:[#allocation74_spill] sm:$0xff] %v17672_v18 }
 0x9f0   : > { %v10849_v52 = vadd.f32 %v10757_v30, %v10572_v37  ;;  %v17676_v30 = vpop.f32.mrf.mxu1  ;;  %v17678_v37 = vpop.permute.xlu2 %10981 }
 0x9f1   : > { %12682 = vmatmul.msk.f32.gmra.mxu3 %vm336_vm1, %v18887_v57 }
 0x9f2   : > { %v10885_v21 = vadd.f32 %v17634_v31, %v10849_v52  ;;  %12648 = vmatmul.msk.f32.gmra.mxu2 %vm336_vm1, %v10344_v8  ;;  %v17682_v52 = vpop.f32.mrf.mxu0 }
 0x9f4   : > { %v10917_v17 = vmax.f32 %v10885_v21, 0.0  ;;  %v10763_v27 = vpop.f32.mrf.mxu3 }
 0x9f5   : > { %v10483_v47 = vpop.f32.mrf.mxu2 }
 0x9f6   : > { %v10573_v5 = vadd.f32 %v10483_v47, %v17441_v51  ;;  %11111 = vrot.lane.b32.xlu2 %v10917_v17, %s12838_s23  ;;  %v17686_v47 = vpop.permute.xlu1 %11255 }
 0x9f7   : > { %18890 = vst [vmem:[#allocation75_spill] sm:$0xff] %v17686_v47  ;;  %v10347_v47 = vld [vmem:[#allocation4 + $0x16b] sm:$0xff] }
 0x9f8   : > { %v10850_v57 = vadd.f32 %v10760_v40, %v10573_v5  ;;  %v17690_v40 = vpop.permute.xlu0 %11259  ;;  %v17692_v5 = vpop.permute.xlu2 %10987 }
 0x9f9   : > { %12683 = vmatmul.msk.f32.gmra.mxu3 %vm336_vm1, %v17355_v34  ;;  %18891 = vst [vmem:[#allocation78_spill] sm:$0xff] %v17690_v40  ;;  %v17694_v23 = vpop.f32.mrf.mxu1 }
 0x9fa   : > { %v10886_v8 = vadd.f32 %v17634_v31, %v10850_v57  ;;  %12649 = vmatmul.msk.f32.gmra.mxu2 %vm336_vm1, %v10345_v56  ;;  %v17700_v57 = vpop.f32.mrf.mxu0 }
 0x9fc   : > { %v10918_v21 = vmax.f32 %v10886_v8, 0.0  ;;  %v10766_v18 = vpop.f32.mrf.mxu3 }
 0x9fd   : > { %v10486_v51 = vpop.f32.mrf.mxu2 }
 0x9fe   : > { %v10574_v17 = vadd.f32 %v10486_v51, %v17455_v25  ;;  %11113 = vrot.lane.b32.xlu0 %v10918_v21, %s12838_s23  ;;  %v17702_v51 = vpop.permute.xlu1 %10979 }
 0xa00   : > { %v10851_v34 = vadd.f32 %v10763_v27, %v10574_v17  ;;  %v17706_v27 = vpop.permute.xlu0 %10983  ;;  %v17708_v17 = vpop.permute.xlu2 %10993 }
 0xa01   : > { %12684 = vmatmul.msk.f32.gmra.mxu3 %vm336_vm1, %v17370_v49 }
 0xa02   : > { %v10887_v56 = vadd.f32 %v17634_v31, %v10851_v34  ;;  %12650 = vmatmul.msk.f32.gmra.mxu2 %vm336_vm1, %v10346_v39  ;;  %v17714_v34 = vpop.f32.mrf.mxu1 }
 0xa04   : > { %v10919_v25 = vmax.f32 %v10887_v56, 0.0  ;;  %v10769_v8 = vpop.f32.mrf.mxu3 }
 0xa05   : > { %v10489_v21 = vpop.f32.mrf.mxu2 }
 0xa06   : > { %v10575_v40 = vadd.f32 %v10489_v21, %v17469_v41  ;;  %11115 = vrot.lane.b32.xlu1 %v10919_v25, %s12838_s23  ;;  %v17716_v21 = vpop.permute.xlu1 %10985  ;;  %v17718_v25 = vpop.f32.mrf.mxu0 }
 0xa08   : > { %v10852_v49 = vadd.f32 %v10766_v18, %v10575_v40  ;;  %v17722_v18 = vpop.permute.xlu0 %10989 }
 0xa09   : > { %12685 = vmatmul.msk.f32.gmra.mxu3 %vm336_vm1, %v17387_v13  ;;  %v17724_v13 = vpop.permute.xlu2 %10999 }
 0xa0a   : > { %v10888_v39 = vadd.f32 %v17634_v31, %v10852_v49  ;;  %12651 = vmatmul.msk.f32.gmra.mxu2 %vm336_vm1, %v10347_v47  ;;  %18892 = vst [vmem:[#allocation76_spill] sm:$0xff] %v17724_v13  ;;  %v10348_v49 = vld [vmem:[#allocation4 + $0x173] sm:$0xff]  ;;  %v17730_v11 = vpop.f32.mrf.mxu1 }
 0xa0c   : > { %v10920_v56 = vmax.f32 %v10888_v39, 0.0  ;;  %v10772_v43 = vpop.f32.mrf.mxu3 }
 0xa0d   : > { %v10492_v41 = vpop.f32.mrf.mxu2 }
 0xa0e   : > { %v10576_v59 = vadd.f32 %v10492_v41, %v17483_v10  ;;  %11117 = vrot.lane.b32.xlu2 %v10920_v56, %s12838_s23  ;;  %v17732_v41 = vpop.permute.xlu1 %10991 }
 0xa10   : > { %v10853_v40 = vadd.f32 %v10769_v8, %v10576_v59  ;;  %v17736_v59 = vpop.permute.xlu0 %10995 }
 0xa11   : > { %12686 = vmatmul.msk.f32.gmra.mxu3 %vm336_vm1, %v17402_v60  ;;  %v17738_v8 = vpop.permute.xlu2 %11005  ;;  %v10024_v60 = vadd.f32 %v17646_v50, %v17385_v32 }
 0xa12   : > { %v10889_v47 = vadd.f32 %v17634_v31, %v10853_v40  ;;  %12652 = vmatmul.msk.f32.gmra.mxu2 %vm336_vm1, %v10348_v49  ;;  %18893 = vst [vmem:[#allocation85_spill] sm:$0xff] %v17738_v8  ;;  %v17742_v40 = vpop.f32.mrf.mxu0 }
 0xa14   : > { %v10921_v39 = vmax.f32 %v10889_v47, 0.0  ;;  %v10775_v63 = vpop.f32.mrf.mxu3  ;;  %v10349_v47 = vld [vmem:[#allocation4 + $0x183] sm:$0xff] }
 0xa15   : > { %v10495_v10 = vpop.f32.mrf.mxu2 }
 0xa16   : > { %v10577_v56 = vadd.f32 %v10495_v10, %v17494_v26  ;;  %11119 = vrot.lane.b32.xlu0 %v10921_v39, %s12838_s23  ;;  %v10301_v26 = vadd.f32 %v17658_v2, %v10024_v60  ;;  %v17749_v8 = vpop.permute.xlu1 %10997 }
 0xa18   : > { %v10854_v49 = vadd.f32 %v10772_v43, %v10577_v56  ;;  %v17752_v32 = vpop.permute.xlu0 %11001  ;;  %v17754_v43 = vpop.f32.mrf.mxu1 }
 0xa19   : > { %12687 = vmatmul.msk.f32.gmra.mxu3 %vm336_vm1, %v17417_v9  ;;  %v17756_v50 = vpop.permute.xlu2 %11011  ;;  %v18895_v9 = vld [vmem:[#allocation54_spill] sm:$0xff] }
 0xa1a   : > { %v10890_v22 = vadd.f32 %v17634_v31, %v10854_v49  ;;  %12653 = vmatmul.msk.f32.gmra.mxu2 %vm336_vm1, %v10349_v47  ;;  %18894 = vst [vmem:[#allocation81_spill] sm:$0xff] %v17756_v50  ;;  %v10025_v56 = vadd.f32 %v17664_v29, %v18895_v9  ;;  %v10350_v47 = vld [vmem:[#allocation4 + $0x18b] sm:$0xff] }
 0xa1c   : > { %v10922_v39 = vmax.f32 %v10890_v22, 0.0  ;;  %v10778_v10 = vpop.f32.mrf.mxu3  ;;  %v17762_v22 = vpop.f32.mrf.mxu0  ;;  %v10302_v60 = vadd.f32 %v17676_v30, %v10025_v56 }
 0xa1d   : > { %v10498_v24 = vpop.f32.mrf.mxu2 }
 0xa1e   : > { %v10578_v13 = vadd.f32 %v10498_v24, %v10301_v26  ;;  %11121 = vrot.lane.b32.xlu1 %v10922_v39, %s12838_s23  ;;  %v17768_v29 = vpop.permute.xlu1 %11003 }
 0xa20   : > { %v10855_v49 = vadd.f32 %v10775_v63, %v10578_v13  ;;  %v17770_v63 = vpop.permute.xlu0 %11007  ;;  %v17776_v55 = vpop.f32.mrf.mxu1 }
 0xa21   : > { %12688 = vmatmul.msk.f32.gmra.mxu3 %vm336_vm1, %v17432_v48  ;;  %v17772_v13 = vpop.permute.xlu2 %11017  ;;  %v18897_v48 = vld [vmem:[#allocation55_spill] sm:$0xff] }
 0xa22   : > { %v10891_v24 = vadd.f32 %v17634_v31, %v10855_v49  ;;  %12654 = vmatmul.msk.f32.gmra.mxu2 %vm336_vm1, %v10350_v47  ;;  %18896 = vst [vmem:[#allocation41_spill] sm:$0xff] %v17772_v13  ;;  %v10026_v9 = vadd.f32 %v17682_v52, %v18897_v48  ;;  %v10351_v47 = vld [vmem:[#allocation4 + $0x19b] sm:$0xff] }
 0xa24   : > { %v10923_v2 = vmax.f32 %v10891_v24, 0.0  ;;  %v10781_v26 = vpop.f32.mrf.mxu3  ;;  %v17782_v56 = vpop.f32.mrf.mxu0 }
 0xa25   : > { %v10501_v39 = vpop.f32.mrf.mxu2 }
 0xa26   : > { %v10579_v50 = vadd.f32 %v10501_v39, %v10302_v60  ;;  %11123 = vrot.lane.b32.xlu2 %v10923_v2, %s12838_s23  ;;  %v10303_v2 = vadd.f32 %v17694_v23, %v10026_v9  ;;  %v17786_v52 = vpop.permute.xlu1 %11009 }
 0xa27   : > { %18898 = vst [vmem:[#allocation88_spill] sm:$0xff] %v17786_v52 }
 0xa28   : > { %v10856_v49 = vadd.f32 %v10778_v10, %v10579_v50  ;;  %v17788_v10 = vpop.permute.xlu0 %11013  ;;  %v17798_v9 = vpop.f32.mrf.mxu1 }
 0xa29   : > { %12689 = vmatmul.msk.f32.gmra.mxu3 %vm336_vm1, %v17447_v33  ;;  %v17790_v50 = vpop.permute.xlu2 %11023  ;;  %v18900_v33 = vld [vmem:[#allocation62_spill] sm:$0xff] }
 0xa2a   : > { %v10892_v30 = vadd.f32 %v17634_v31, %v10856_v49  ;;  %12655 = vmatmul.msk.f32.gmra.mxu2 %vm336_vm1, %v10351_v47  ;;  %18899 = vst [vmem:[#allocation42_spill] sm:$0xff] %v17790_v50  ;;  %v10027_v48 = vadd.f32 %v17700_v57, %v18900_v33  ;;  %v10352_v47 = vld [vmem:[#allocation4 + $0x1a3] sm:$0xff]  ;;  %v18903_v33 = vld [vmem:[#allocation47_spill] sm:$0xff] }
 0xa2c   : > { %v10924_v24 = vmax.f32 %v10892_v30, 0.0  ;;  %v10784_v60 = vpop.f32.mrf.mxu3  ;;  %v17801_v50 = vpop.f32.mrf.mxu0 }
 0xa2d   : > { %v10504_v39 = vpop.f32.mrf.mxu2 }
 0xa2e   : > { %v10580_v13 = vadd.f32 %v10504_v39, %v10303_v2  ;;  %11125 = vrot.lane.b32.xlu0 %v10924_v24, %s12838_s23  ;;  %v10304_v24 = vadd.f32 %v17714_v34, %v10027_v48  ;;  %v17804_v57 = vpop.permute.xlu1 %11015 }
 0xa2f   : > { %18901 = vst [vmem:[#allocation80_spill] sm:$0xff] %v17804_v57 }
 0xa30   : > { %v10857_v49 = vadd.f32 %v10781_v26, %v10580_v13  ;;  %v17806_v26 = vpop.permute.xlu0 %11019 }
 0xa31   : > { %12690 = vmatmul.msk.f32.gmra.mxu3 %vm336_vm1, %v17459_v20  ;;  %v10353_v20 = vld [vmem:[#allocation4 + $0x1b3] sm:$0xff]  ;;  %v17808_v13 = vpop.permute.xlu2 %11029 }
 0xa32   : > { %v10893_v23 = vadd.f32 %v17634_v31, %v10857_v49  ;;  %12656 = vmatmul.msk.f32.gmra.mxu2 %vm336_vm1, %v10352_v47  ;;  %18902 = vst [vmem:[#allocation51_spill] sm:$0xff] %v17808_v13  ;;  %v10028_v49 = vadd.f32 %v17718_v25, %v18903_v33  ;;  %v10632_v13 = vld [vmem:[#allocation4 + $0x1cc] sm:$0xff] }
 0xa34   : > { %v10925_v30 = vmax.f32 %v10893_v23, 0.0  ;;  %v10787_v2 = vpop.f32.mrf.mxu3  ;;  %v10305_v23 = vadd.f32 %v17730_v11, %v10028_v49  ;;  %v17828_v33 = vpop.f32.mrf.mxu0 }
 0xa35   : > { %v10507_v39 = vpop.f32.mrf.mxu2 }
 0xa36   : > { %v10581_v52 = vadd.f32 %v10507_v39, %v10304_v24  ;;  %11127 = vrot.lane.b32.xlu1 %v10925_v30, %s12838_s23  ;;  %v17817_v24 = vpop.f32.mrf.mxu1  ;;  %v17820_v25 = vpop.permute.xlu1 %11021 }
 0xa38   : > { %v10858_v47 = vadd.f32 %v10784_v60, %v10581_v52  ;;  %v17822_v60 = vpop.permute.xlu0 %11025 }
 0xa39   : > { %12691 = vmatmul.msk.f32.gmra.mxu3 %vm336_vm1, %v17473_v58  ;;  %v10354_v58 = vld [vmem:[#allocation4 + $0x1bb] sm:$0xff]  ;;  %v17824_v52 = vpop.permute.xlu2 %11035 }
 0xa3a   : > { %v10894_v34 = vadd.f32 %v17634_v31, %v10858_v47  ;;  %12657 = vmatmul.msk.f32.gmra.mxu2 %vm336_vm1, %v10353_v20  ;;  %18904 = vst [vmem:[#allocation82_spill] sm:$0xff] %v17824_v52  ;;  %v10029_v20 = vadd.f32 %v17742_v40, %v17461_v4  ;;  %v10633_v52 = vld [vmem:[#allocation4 + $0x1d4] sm:$0xff] }
 0xa3c   : > { %v10926_v48 = vmax.f32 %v10894_v34, 0.0  ;;  %v10790_v30 = vpop.f32.mrf.mxu3  ;;  %v10306_v34 = vadd.f32 %v17754_v43, %v10029_v20  ;;  %v10030_v43 = vadd.f32 %v17762_v22, %v17475_v15  ;;  %v17846_v20 = vpop.f32.mrf.mxu0  ;;  %v10356_v22 = vld [vmem:[#allocation4 + $0x1d3] sm:$0xff] }
 0xa3d   : > { %v10510_v39 = vpop.f32.mrf.mxu2 }
 0xa3e   : > { %v10582_v57 = vadd.f32 %v10510_v39, %v10305_v23  ;;  %11129 = vrot.lane.b32.xlu2 %v10926_v48, %s12838_s23  ;;  %v17835_v4 = vpop.permute.xlu1 %11027  ;;  %v17837_v40 = vpop.f32.mrf.mxu1 }
 0xa40   : > { %v10859_v11 = vadd.f32 %v10787_v2, %v10582_v57  ;;  %v10355_v2 = vld [vmem:[#allocation4 + $0x1cb] sm:$0xff]  ;;  %v17839_v57 = vpop.permute.xlu0 %11031 }
 0xa41   : > { %12692 = vmatmul.msk.f32.gmra.mxu3 %vm336_vm1, %v10632_v13  ;;  %v17841_v13 = vpop.permute.xlu2 %11041 }
 0xa42   : > { %v10895_v49 = vadd.f32 %v17634_v31, %v10859_v11  ;;  %12658 = vmatmul.msk.f32.gmra.mxu2 %vm336_vm1, %v10354_v58  ;;  %18905 = vst [vmem:[#allocation87_spill] sm:$0xff] %v17841_v13 }
 0xa44   : > { %v10927_v47 = vmax.f32 %v10895_v49, 0.0  ;;  %v10793_v48 = vpop.f32.mrf.mxu3 }
 0xa45   : > { %v10513_v23 = vpop.f32.mrf.mxu2 }
 0xa46   : > { %v10583_v39 = vadd.f32 %v10513_v23, %v10306_v34  ;;  %11131 = vrot.lane.b32.xlu0 %v10927_v47, %s12838_s23  ;;  %v10307_v47 = vadd.f32 %v17776_v55, %v10030_v43  ;;  %v17855_v15 = vpop.permute.xlu1 %11033  ;;  %v10031_v55 = vadd.f32 %v17782_v56, %v17487_v62 }
 0xa48   : > { %v10860_v58 = vadd.f32 %v10790_v30, %v10583_v39  ;;  %v18906_v30 = vld [vmem:[#allocation10_spill] sm:$0xff]  ;;  %v17860_v39 = vpop.permute.xlu0 %11037  ;;  %v10308_v56 = vadd.f32 %v17798_v9, %v10031_v55 }
 0xa49   : > { %12693 = vmatmul.msk.f32.gmra.mxu3 %vm336_vm1, %v10633_v52  ;;  %v11301_v52 = vsel %vm1154_vm4, %v18906_v30, %v17706_v27  ;;  %v9977_v27 = vpop.f32.mrf.mxu0  ;;  %v18907_v30 = vld [vmem:[#allocation8_spill] sm:$0xff] }
 0xa4a   : > { %v10896_v11 = vadd.f32 %v17634_v31, %v10860_v58  ;;  %12659 = vmatmul.msk.f32.gmra.mxu2 %vm336_vm1, %v10355_v2  ;;  %v10251_v58 = vpop.f32.mrf.mxu1 }
 0xa4c   : > { %v10928_v49 = vmax.f32 %v10896_v11, 0.0  ;;  %v10796_v34 = vpop.f32.mrf.mxu3 }
 0xa4d   : > { %v10516_v23 = vpop.f32.mrf.mxu2 }
 0xa4e   : > { %v10584_v13 = vadd.f32 %v10516_v23, %v10307_v47  ;;  %11133 = vrot.lane.b32.xlu1 %v10928_v49, %s12838_s23 }
 0xa50   : > { %v10861_v2 = vadd.f32 %v10793_v48, %v10584_v13  ;;  %v11112_v43 = vpop.permute.xlu2 %11111 }
 0xa51   : > { %v11334_v11 = vsel %vm11331_vm8, %v11301_v52, %v11112_v43  ;;  %v10032_v52 = vadd.f32 %v17801_v50, %v17497_v0  ;;  %v18908_v50 = vld [vmem:[#allocation9_spill] sm:$0xff] }
 0xa52   : > { %v10897_v49 = vadd.f32 %v17634_v31, %v10861_v2  ;;  %v11367_v47 = vsel %vm11364_vm9, %v11334_v11, %v17564_v14  ;;  %12660 = vmatmul.msk.f32.gmra.mxu2 %vm336_vm1, %v10356_v22  ;;  %v11299_v14 = vsel %vm1154_vm4, %v18907_v30, %v17702_v51  ;;  %v17878_v22 = vpop.permute.xlu1 %11039 }
 0xa53   : > { %11400 = vst.msk [vmem:[%s17869_s10 + $0x10] sm:$0xff] %vm11397_vm10, %v11367_v47  ;;  %v10309_v51 = vadd.f32 %v17817_v24, %v10032_v52 }
 0xa54   : > { %v10929_v62 = vmax.f32 %v10897_v49, 0.0  ;;  %v10799_v48 = vpop.f32.mrf.mxu3  ;;  %v10254_v49 = vpop.f32.mrf.mxu1 }
 0xa55   : > { %v10519_v13 = vpop.f32.mrf.mxu2 }
 0xa56   : > { %v10585_v23 = vadd.f32 %v10519_v13, %v10308_v56  ;;  %11135 = vrot.lane.b32.xlu2 %v10929_v62, %s12838_s23  ;;  %v9980_v13 = vpop.f32.mrf.mxu0 }
 0xa58   : > { %v10862_v2 = vadd.f32 %v10796_v34, %v10585_v23  ;;  %v11108_v43 = vpop.permute.xlu0 %11107  ;;  %v11300_v34 = vsel %vm1154_vm4, %v18908_v50, %v17678_v37 }
 0xa59   : > { %v11332_v11 = vsel %vm11331_vm8, %v11299_v14, %v11108_v43 }
 0xa5a   : > { %v10898_v9 = vadd.f32 %v17634_v31, %v10862_v2  ;;  %v11365_v55 = vsel %vm11364_vm9, %v11332_v11, %v17538_v28  ;;  %v10033_v28 = vadd.f32 %v17828_v33, %v17503_v3  ;;  %v18909_v3 = vld [vmem:[#allocation13_spill] sm:$0xff] }
 0xa5b   : > { %11398 = vst.msk [vmem:[%s17869_s10] sm:$0xff] %vm11397_vm10, %v11365_v55  ;;  %v11304_v33 = vsel %vm1154_vm4, %v18909_v3, %v17722_v18 }
 0xa5c   : > { %v10930_v47 = vmax.f32 %v10898_v9, 0.0  ;;  %v10802_v62 = vpop.f32.mrf.mxu3  ;;  %v10310_v43 = vadd.f32 %v17837_v40, %v10033_v28  ;;  %v10257_v37 = vpop.f32.mrf.mxu1 }
 0xa5d   : > { %v10522_v56 = vpop.f32.mrf.mxu2 }
 0xa5e   : > { %v10586_v0 = vadd.f32 %v10522_v56, %v10309_v51  ;;  %11137 = vrot.lane.b32.xlu0 %v10930_v47, %s12838_s23 }
 0xa60   : > { %v10863_v23 = vadd.f32 %v10799_v48, %v10586_v0  ;;  %v11110_v30 = vpop.permute.xlu1 %11109  ;;  %v10034_v48 = vadd.f32 %v17846_v20, %v17509_v54  ;;  %v18910_v20 = vld [vmem:[#allocation11_spill] sm:$0xff] }
 0xa61   : > { %v11333_v14 = vsel %vm11331_vm8, %v11300_v34, %v11110_v30  ;;  %v10035_v30 = vadd.f32 %v9977_v27, %v17515_v6  ;;  %v18911_v6 = vld [vmem:[#allocation12_spill] sm:$0xff] }
 0xa62   : > { %v10899_v2 = vadd.f32 %v17634_v31, %v10863_v23  ;;  %v11366_v24 = vsel %vm11364_vm9, %v11333_v14, %v17554_v36  ;;  %v9983_v36 = vpop.f32.mrf.mxu0  ;;  %v10311_v34 = vadd.f32 %v10251_v58, %v10034_v48  ;;  %v11303_v27 = vsel %vm1154_vm4, %v18911_v6, %v17692_v5 }
 0xa63   : > { %11399 = vst.msk [vmem:[%s17869_s10 + $0x8] sm:$0xff] %vm11397_vm10, %v11366_v24 }
 0xa64   : > { %v10931_v52 = vmax.f32 %v10899_v2, 0.0  ;;  %v10805_v11 = vpop.f32.mrf.mxu3  ;;  %v10260_v54 = vpop.f32.mrf.mxu1 }
 0xa65   : > { %v10525_v9 = vpop.f32.mrf.mxu2 }
 0xa66   : > { %v10587_v55 = vadd.f32 %v10525_v9, %v10310_v43  ;;  %11139 = vrot.lane.b32.xlu1 %v10931_v52, %s12838_s23  ;;  %v10312_v9 = vadd.f32 %v10254_v49, %v10035_v30 }
 0xa68   : > { %v10864_v47 = vadd.f32 %v10802_v62, %v10587_v55  ;;  %v11118_v51 = vpop.permute.xlu2 %11117  ;;  %v11302_v62 = vsel %vm1154_vm4, %v18910_v20, %v17716_v21 }
 0xa69   : > { %v11337_v56 = vsel %vm11331_vm8, %v11304_v33, %v11118_v51 }
 0xa6a   : > { %v10900_v40 = vadd.f32 %v17634_v31, %v10864_v47  ;;  %v11370_v0 = vsel %vm11364_vm9, %v11337_v56, %v17577_v42  ;;  %v9986_v24 = vpop.f32.mrf.mxu0 }
 0xa6b   : > { %11403 = vst.msk [vmem:[%s17869_s10 + $0x28] sm:$0xff] %vm11397_vm10, %v11370_v0 }
 0xa6c   : > { %v10932_v50 = vmax.f32 %v10900_v40, 0.0  ;;  %v10808_v28 = vpop.f32.mrf.mxu3  ;;  %v10263_v47 = vpop.f32.mrf.mxu1 }
 0xa6d   : > { %v10528_v18 = vpop.f32.mrf.mxu2 }
 0xa6e   : > { %v10588_v23 = vadd.f32 %v10528_v18, %v10311_v34  ;;  %11141 = vrot.lane.b32.xlu2 %v10932_v50, %s12838_s23 }
 0xa70   : > { %v10865_v14 = vadd.f32 %v10805_v11, %v10588_v23  ;;  %v11114_v2 = vpop.permute.xlu0 %11113  ;;  %v10036_v11 = vadd.f32 %v9980_v13, %v17521_v53  ;;  %v18912_v53 = vld [vmem:[#allocation16_spill] sm:$0xff] }
 0xa71   : > { %v11335_v42 = vsel %vm11331_vm8, %v11302_v62, %v11114_v2  ;;  %v11307_v13 = vsel %vm1154_vm4, %v18912_v53, %v17736_v59 }
 0xa72   : > { %v10901_v52 = vadd.f32 %v17634_v31, %v10865_v14  ;;  %v11368_v58 = vsel %vm11364_vm9, %v11335_v42, %v17547_v61  ;;  %v9989_v56 = vpop.f32.mrf.mxu0  ;;  %v10313_v0 = vadd.f32 %v10257_v37, %v10036_v11 }
 0xa73   : > { %11401 = vst.msk [vmem:[%s17869_s10 + $0x18] sm:$0xff] %vm11397_vm10, %v11368_v58  ;;  %v10038_v58 = vadd.f32 %v9986_v24, %v17533_v45  ;;  %v18914_v45 = vld [vmem:[#allocation15_spill] sm:$0xff] }
 0xa74   : > { %v10933_v43 = vmax.f32 %v10901_v52, 0.0  ;;  %v10811_v55 = vpop.f32.mrf.mxu3  ;;  %v10266_v62 = vpop.f32.mrf.mxu1  ;;  %v11306_v24 = vsel %vm1154_vm4, %v18914_v45, %v17708_v17 }
 0xa75   : > { %v10531_v3 = vpop.f32.mrf.mxu2 }
 0xa76   : > { %v10589_v21 = vadd.f32 %v10531_v3, %v10312_v9  ;;  %11143 = vrot.lane.b32.xlu0 %v10933_v43, %s12838_s23 }
 0xa78   : > { %v10866_v33 = vadd.f32 %v10808_v28, %v10589_v21  ;;  %v11116_v48 = vpop.permute.xlu1 %11115  ;;  %v10037_v28 = vadd.f32 %v9983_v36, %v17527_v19  ;;  %v18913_v19 = vld [vmem:[#allocation14_spill] sm:$0xff]  ;;  %v10315_v21 = vadd.f32 %v10263_v47, %v10038_v58 }
 0xa79   : > { %v11336_v61 = vsel %vm11331_vm8, %v11303_v27, %v11116_v48  ;;  %v11305_v36 = vsel %vm1154_vm4, %v18913_v19, %v17732_v41 }
 0xa7a   : > { %v10902_v51 = vadd.f32 %v17634_v31, %v10866_v33  ;;  %v11369_v49 = vsel %vm11364_vm9, %v11336_v61, %v17567_v7  ;;  %v10314_v14 = vadd.f32 %v10260_v54, %v10037_v28  ;;  %v9992_v59 = vpop.f32.mrf.mxu0  ;;  %v10039_v33 = vadd.f32 %v9989_v56, %v17541_v12  ;;  %v18915_v56 = vld [vmem:[#allocation19_spill] sm:$0xff] }
 0xa7b   : > { %11402 = vst.msk [vmem:[%s17869_s10 + $0x20] sm:$0xff] %vm11397_vm10, %v11369_v49  ;;  %v10040_v53 = vadd.f32 %v9992_v59, %v17549_v1  ;;  %v18916_v1 = vld [vmem:[#allocation17_spill] sm:$0xff] }
 0xa7c   : > { %v10934_v40 = vmax.f32 %v10902_v51, 0.0  ;;  %v10814_v50 = vpop.f32.mrf.mxu3  ;;  %v10269_v27 = vpop.f32.mrf.mxu1 }
 0xa7d   : > { %v10534_v5 = vpop.f32.mrf.mxu2 }
 0xa7e   : > { %v10590_v34 = vadd.f32 %v10534_v5, %v10313_v0  ;;  %11145 = vrot.lane.b32.xlu1 %v10934_v40, %s12838_s23  ;;  %v10316_v0 = vadd.f32 %v10266_v62, %v10039_v33  ;;  %v18921_v33 = vld [vmem:[#allocation59_spill] sm:$0xff] }
 0xa80   : > { %v10867_v18 = vadd.f32 %v10811_v55, %v10590_v34  ;;  %v11124_v23 = vpop.permute.xlu2 %11123  ;;  %v11310_v34 = vsel %vm1154_vm4, %v18915_v56, %v17752_v32 }
 0xa81   : > { %v11340_v7 = vsel %vm11331_vm8, %v11307_v13, %v11124_v23 }
 0xa82   : > { %v10903_v20 = vadd.f32 %v17634_v31, %v10867_v18  ;;  %v11373_v37 = vsel %vm11364_vm9, %v11340_v7, %v17593_v16  ;;  %v9995_v48 = vpop.f32.mrf.mxu0 }
 0xa83   : > { %11406 = vst.msk [vmem:[%s17869_s10 + $0x40] sm:$0xff] %vm11397_vm10, %v11373_v37  ;;  %v10317_v37 = vadd.f32 %v10269_v27, %v10040_v53 }
 0xa84   : > { %v10935_v30 = vmax.f32 %v10903_v20, 0.0  ;;  %v10817_v2 = vpop.f32.mrf.mxu3  ;;  %v10272_v12 = vpop.f32.mrf.mxu1 }
 0xa85   : > { %v10537_v42 = vpop.f32.mrf.mxu2 }
 0xa86   : > { %v10591_v52 = vadd.f32 %v10537_v42, %v10314_v14  ;;  %11147 = vrot.lane.b32.xlu2 %v10935_v30, %s12838_s23  ;;  %v11308_v14 = vsel %vm1154_vm4, %v18916_v1, %v17749_v8 }
 0xa88   : > { %v10868_v43 = vadd.f32 %v10814_v50, %v10591_v52  ;;  %v11120_v16 = vpop.permute.xlu0 %11119 }
 0xa89   : > { %v11338_v9 = vsel %vm11331_vm8, %v11305_v36, %v11120_v16  ;;  %v18917_v36 = vld [vmem:[#allocation52_spill] sm:$0xff] }
 0xa8a   : > { %v10904_v55 = vadd.f32 %v17634_v31, %v10868_v43  ;;  %v11371_v54 = vsel %vm11364_vm9, %v11338_v9, %v17561_v38  ;;  %v9998_v18 = vpop.f32.mrf.mxu0 }
 0xa8b   : > { %11404 = vst.msk [vmem:[%s17869_s10 + $0x30] sm:$0xff] %vm11397_vm10, %v11371_v54 }
 0xa8c   : > { %v10936_v3 = vmax.f32 %v10904_v55, 0.0  ;;  %v10820_v6 = vpop.f32.mrf.mxu3  ;;  %v10275_v52 = vpop.f32.mrf.mxu1 }
 0xa8d   : > { %v10540_v11 = vpop.f32.mrf.mxu2 }
 0xa8e   : > { %v10592_v41 = vadd.f32 %v10540_v11, %v10315_v21  ;;  %11149 = vrot.lane.b32.xlu0 %v10936_v3, %s12838_s23  ;;  %v18919_v3 = vld [vmem:[#allocation18_spill] sm:$0xff] }
 0xa90   : > { %v10869_v61 = vadd.f32 %v10817_v2, %v10592_v41  ;;  %v11122_v38 = vpop.permute.xlu1 %11121  ;;  %v10041_v2 = vadd.f32 %v9995_v48, %v17557_v46  ;;  %v18918_v46 = vld [vmem:[#allocation76_spill] sm:$0xff] }
 0xa91   : > { %v11339_v51 = vsel %vm11331_vm8, %v11306_v24, %v11122_v38  ;;  %v11309_v21 = vsel %vm1154_vm4, %v18919_v3, %v18918_v46 }
 0xa92   : > { %v10905_v49 = vadd.f32 %v17634_v31, %v10869_v61  ;;  %v11372_v47 = vsel %vm11364_vm9, %v11339_v51, %v17581_v35  ;;  %v10001_v43 = vpop.f32.mrf.mxu0  ;;  %v10318_v9 = vadd.f32 %v10272_v12, %v10041_v2 }
 0xa93   : > { %11405 = vst.msk [vmem:[%s17869_s10 + $0x38] sm:$0xff] %vm11397_vm10, %v11372_v47 }
 0xa94   : > { %v10937_v40 = vmax.f32 %v10905_v49, 0.0  ;;  %v10823_v50 = vpop.f32.mrf.mxu3  ;;  %v10278_v61 = vpop.f32.mrf.mxu1 }
 0xa95   : > { %v10543_v5 = vpop.f32.mrf.mxu2 }
 0xa96   : > { %v10593_v17 = vadd.f32 %v10543_v5, %v10316_v0  ;;  %11151 = vrot.lane.b32.xlu1 %v10937_v40, %s12838_s23 }
 0xa98   : > { %v10870_v13 = vadd.f32 %v10820_v6, %v10593_v17  ;;  %v11130_v28 = vpop.permute.xlu2 %11129  ;;  %v18920_v6 = vld [vmem:[#allocation57_spill] sm:$0xff]  ;;  %v18923_v17 = vld [vmem:[#allocation50_spill] sm:$0xff] }
 0xa99   : > { %v11343_v35 = vsel %vm11331_vm8, %v11310_v34, %v11130_v28  ;;  %v10042_v27 = vadd.f32 %v9998_v18, %v18920_v6  ;;  %v10043_v12 = vadd.f32 %v10001_v43, %v18923_v17  ;;  %v18924_v28 = vld [vmem:[#allocation66_spill] sm:$0xff] }
 0xa9a   : > { %v10906_v23 = vadd.f32 %v17634_v31, %v10870_v13  ;;  %v11376_v7 = vsel %vm11364_vm9, %v11343_v35, %v17606_v44  ;;  %v10004_v40 = vpop.f32.mrf.mxu0 }
 0xa9b   : > { %11409 = vst.msk [vmem:[%s17869_s10 + $0x58] sm:$0xff] %vm11397_vm10, %v11376_v7  ;;  %v10319_v51 = vadd.f32 %v10275_v52, %v10042_v27  ;;  %v10320_v7 = vadd.f32 %v10278_v61, %v10043_v12 }
 0xa9c   : > { %v10938_v20 = vmax.f32 %v10906_v23, 0.0  ;;  %v10826_v62 = vpop.f32.mrf.mxu3  ;;  %v10281_v18 = vpop.f32.mrf.mxu1 }
 0xa9d   : > { %v10546_v30 = vpop.f32.mrf.mxu2 }
 0xa9e   : > { %v10594_v32 = vadd.f32 %v10546_v30, %v10317_v37  ;;  %11153 = vrot.lane.b32.xlu2 %v10938_v20, %s12838_s23 }
 0xaa0   : > { %v10871_v42 = vadd.f32 %v10823_v50, %v10594_v32  ;;  %v11126_v59 = vpop.permute.xlu0 %11125  ;;  %v18922_v50 = vld [vmem:[#allocation22_spill] sm:$0xff]  ;;  %v18926_v32 = vld [vmem:[#allocation60_spill] sm:$0xff] }
 0xaa1   : > { %v11341_v44 = vsel %vm11331_vm8, %v11308_v14, %v11126_v59  ;;  %v11313_v5 = vsel %vm1154_vm4, %v18922_v50, %v17770_v63  ;;  %v10044_v1 = vadd.f32 %v10004_v40, %v18926_v32  ;;  %v18933_v40 = vld [vmem:[#allocation63_spill] sm:$0xff] }
 0xaa2   : > { %v10907_v19 = vadd.f32 %v17634_v31, %v10871_v42  ;;  %v11374_v58 = vsel %vm11364_vm9, %v11341_v44, %v18917_v36  ;;  %v10007_v42 = vpop.f32.mrf.mxu0  ;;  %v18927_v44 = vld [vmem:[#allocation58_spill] sm:$0xff] }
 0xaa3   : > { %11407 = vst.msk [vmem:[%s17869_s10 + $0x48] sm:$0xff] %vm11397_vm10, %v11374_v58  ;;  %v10321_v36 = vadd.f32 %v10281_v18, %v10044_v1 }
 0xaa4   : > { %v10939_v16 = vmax.f32 %v10907_v19, 0.0  ;;  %v10829_v8 = vpop.f32.mrf.mxu3  ;;  %v10284_v43 = vpop.f32.mrf.mxu1 }
 0xaa5   : > { %v10549_v55 = vpop.f32.mrf.mxu2 }
 0xaa6   : > { %v10595_v54 = vadd.f32 %v10549_v55, %v10318_v9  ;;  %11155 = vrot.lane.b32.xlu0 %v10939_v16, %s12838_s23  ;;  %v18928_v9 = vld [vmem:[#allocation85_spill] sm:$0xff] }
 0xaa7   : > { %v18929_v55 = vld [vmem:[#allocation21_spill] sm:$0xff] }
 0xaa8   : > { %v10872_v11 = vadd.f32 %v10826_v62, %v10595_v54  ;;  %v11128_v41 = vpop.permute.xlu1 %11127  ;;  %v18925_v62 = vld [vmem:[#allocation20_spill] sm:$0xff] }
 0xaa9   : > { %v11342_v45 = vsel %vm11331_vm8, %v11309_v21, %v11128_v41  ;;  %v11311_v30 = vsel %vm1154_vm4, %v18925_v62, %v17768_v29  ;;  %v18930_v54 = vld [vmem:[#allocation56_spill] sm:$0xff] }
 0xaaa   : > { %v10908_v24 = vadd.f32 %v17634_v31, %v10872_v11  ;;  %v11375_v48 = vsel %vm11364_vm9, %v11342_v45, %v18921_v33  ;;  %v10045_v46 = vadd.f32 %v10007_v42, %v18930_v54  ;;  %v18931_v41 = vld [vmem:[#allocation64_spill] sm:$0xff] }
 0xaab   : > { %11408 = vst.msk [vmem:[%s17869_s10 + $0x50] sm:$0xff] %vm11397_vm10, %v11375_v48 }
 0xaac   : > { %v10940_v38 = vmax.f32 %v10908_v24, 0.0  ;;  %v10832_v0 = vpop.f32.mrf.mxu3  ;;  %v10010_v24 = vpop.f32.mrf.mxu0  ;;  %v10322_v33 = vadd.f32 %v10284_v43, %v10045_v46  ;;  %v18940_v43 = vld [vmem:[#allocation81_spill] sm:$0xff]  ;;  %v18942_v46 = vld [vmem:[#allocation68_spill] sm:$0xff] }
 0xaad   : > { %v10552_v49 = vpop.f32.mrf.mxu2 }
 0xaae   : > { %v10596_v47 = vadd.f32 %v10552_v49, %v10319_v51  ;;  %11157 = vrot.lane.b32.xlu1 %v10940_v38, %s12838_s23  ;;  %v10287_v51 = vpop.f32.mrf.mxu1  ;;  %v18932_v49 = vld [vmem:[#allocation25_spill] sm:$0xff] }
 0xab0   : > { %v10873_v56 = vadd.f32 %v10829_v8, %v10596_v47  ;;  %v11136_v34 = vpop.permute.xlu2 %11135  ;;  %v11312_v8 = vsel %vm1154_vm4, %v18929_v55, %v18928_v9  ;;  %v11316_v47 = vsel %vm1154_vm4, %v18932_v49, %v17788_v10 }
 0xab1   : > { %v11346_v53 = vsel %vm11331_vm8, %v11313_v5, %v11136_v34 }
 0xab2   : > { %v10909_v13 = vadd.f32 %v17634_v31, %v10873_v56  ;;  %v11379_v35 = vsel %vm11364_vm9, %v11346_v53, %v18924_v28  ;;  %v18934_v56 = vld [vmem:[#allocation70_spill] sm:$0xff] }
 0xab3   : > { %11412 = vst.msk [vmem:[%s17869_s10 + $0x70] sm:$0xff] %vm11397_vm10, %v11379_v35 }
 0xab4   : > { %v10941_v23 = vmax.f32 %v10909_v13, 0.0  ;;  %v10835_v63 = vpop.f32.mrf.mxu3  ;;  %v10013_v35 = vpop.f32.mrf.mxu0 }
 0xab5   : > { %v10555_v20 = vpop.f32.mrf.mxu2 }
 0xab6   : > { %v10597_v37 = vadd.f32 %v10555_v20, %v10320_v7  ;;  %11159 = vrot.lane.b32.xlu2 %v10941_v23, %s12838_s23  ;;  %v18935_v23 = vld [vmem:[#allocation88_spill] sm:$0xff]  ;;  %v18936_v7 = vld [vmem:[#allocation23_spill] sm:$0xff]  ;;  %v10290_v32 = vpop.f32.mrf.mxu1 }
 0xab7   : > { %v11314_v20 = vsel %vm1154_vm4, %v18936_v7, %v18935_v23 }
 0xab8   : > { %v10874_v14 = vadd.f32 %v10832_v0, %v10597_v37  ;;  %v11132_v2 = vpop.permute.xlu0 %11131  ;;  %v10046_v0 = vadd.f32 %v10010_v24, %v18933_v40  ;;  %v18937_v37 = vld [vmem:[#allocation69_spill] sm:$0xff] }
 0xab9   : > { %v11344_v59 = vsel %vm11331_vm8, %v11311_v30, %v11132_v2  ;;  %v18938_v2 = vld [vmem:[#allocation53_spill] sm:$0xff] }
 0xaba   : > { %v10910_v52 = vadd.f32 %v17634_v31, %v10874_v14  ;;  %v11377_v19 = vsel %vm11364_vm9, %v11344_v59, %v18927_v44  ;;  %v10323_v13 = vadd.f32 %v10287_v51, %v10046_v0  ;;  %v18950_v40 = vld [vmem:[#allocation41_spill] sm:$0xff]  ;;  %v18951_v0 = vld [vmem:[#allocation27_spill] sm:$0xff] }
 0xabb   : > { %11410 = vst.msk [vmem:[%s17869_s10 + $0x60] sm:$0xff] %vm11397_vm10, %v11377_v19 }
 0xabc   : > { %v10942_v58 = vmax.f32 %v10910_v52, 0.0  ;;  %v10838_v27 = vpop.f32.mrf.mxu3 }
 0xabd   : > { %v10558_v16 = vpop.f32.mrf.mxu2 }
 0xabe   : > { %v10598_v29 = vadd.f32 %v10558_v16, %v10321_v36  ;;  %11161 = vrot.lane.b32.xlu0 %v10942_v58, %s12838_s23  ;;  %v18939_v58 = vld [vmem:[#allocation38_spill] sm:$0xff]  ;;  %v18941_v16 = vld [vmem:[#allocation24_spill] sm:$0xff] }
 0xac0   : > { %v10875_v3 = vadd.f32 %v10835_v63, %v10598_v29  ;;  %v11134_v21 = vpop.permute.xlu1 %11133  ;;  %v10047_v63 = vadd.f32 %v10013_v35, %v18937_v37  ;;  %v11315_v29 = vsel %vm1154_vm4, %v18941_v16, %v18940_v43  ;;  %v18954_v35 = vld [vmem:[#allocation79_spill] sm:$0xff]  ;;  %v18956_v37 = vld [vmem:[#allocation65_spill] sm:$0xff] }
 0xac1   : > { %v11345_v6 = vsel %vm11331_vm8, %v11312_v8, %v11134_v21 }
 0xac2   : > { %v10911_v11 = vadd.f32 %v17634_v31, %v10875_v3  ;;  %v11378_v45 = vsel %vm11364_vm9, %v11345_v6, %v18931_v41  ;;  %v10324_v59 = vadd.f32 %v10290_v32, %v10047_v63  ;;  %v18943_v6 = vld [vmem:[#allocation39_spill] sm:$0xff] }
 0xac3   : > { %11411 = vst.msk [vmem:[%s17869_s10 + $0x68] sm:$0xff] %vm11397_vm10, %v11378_v45  ;;  %v18945_v45 = vld [vmem:[#allocation72_spill] sm:$0xff] }
 0xac4   : > { %v10943_v48 = vmax.f32 %v10911_v11, 0.0  ;;  %v10841_v53 = vpop.f32.mrf.mxu3 }
 0xac5   : > { %v10561_v61 = vpop.f32.mrf.mxu2 }
 0xac6   : > { %v10599_v38 = vadd.f32 %v10561_v61, %v10322_v33  ;;  %11163 = vrot.lane.b32.xlu1 %v10943_v48, %s12838_s23  ;;  %v18946_v33 = vld [vmem:[#allocation37_spill] sm:$0xff]  ;;  %v18947_v48 = vld [vmem:[#allocation80_spill] sm:$0xff]  ;;  %v18948_v61 = vld [vmem:[#allocation26_spill] sm:$0xff] }
 0xac8   : > { %v10876_v50 = vadd.f32 %v10838_v27, %v10599_v38  ;;  %v11142_v5 = vpop.permute.xlu2 %11141  ;;  %v18944_v27 = vld [vmem:[#allocation28_spill] sm:$0xff]  ;;  %v11317_v38 = vsel %vm1154_vm4, %v18948_v61, %v18947_v48  ;;  %v18969_v48 = vld [vmem:[#allocation82_spill] sm:$0xff] }
 0xac9   : > { %v11349_v17 = vsel %vm11331_vm8, %v11316_v47, %v11142_v5  ;;  %v11319_v11 = vsel %vm1154_vm4, %v18944_v27, %v17806_v26  ;;  %v18949_v26 = vld [vmem:[#allocation61_spill] sm:$0xff]  ;;  %v18970_v61 = vld [vmem:[#allocation36_spill] sm:$0xff] }
 0xaca   : > { %v10912_v12 = vadd.f32 %v17634_v31, %v10876_v50  ;;  %v11382_v34 = vsel %vm11364_vm9, %v11349_v17, %v18934_v56  ;;  %v11318_v50 = vsel %vm1154_vm4, %v18951_v0, %v18950_v40  ;;  %v11329_v40 = vsel %vm1154_vm4, %v18939_v58, %v17878_v22 }
 0xacb   : > { %11415 = vst.msk [vmem:[%s17869_s10 + $0x88] sm:$0xff] %vm11397_vm10, %v11382_v34  ;;  %v18953_v34 = vld [vmem:[#allocation31_spill] sm:$0xff] }
 0xacc   : > { %v10944_v28 = vmax.f32 %v10912_v12, 0.0  ;;  %v10844_v19 = vpop.f32.mrf.mxu3  ;;  %v18952_v12 = vld [vmem:[#allocation67_spill] sm:$0xff] }
 0xacd   : > { %v10564_v18 = vpop.f32.mrf.mxu2 }
 0xace   : > { %v10600_v10 = vadd.f32 %v10564_v18, %v10323_v13  ;;  %11165 = vrot.lane.b32.xlu2 %v10944_v28, %s12838_s23 }
 0xad0   : > { %v10877_v62 = vadd.f32 %v10841_v53, %v10600_v10  ;;  %v11138_v30 = vpop.permute.xlu0 %11137  ;;  %v11322_v53 = vsel %vm1154_vm4, %v18953_v34, %v17822_v60  ;;  %v18955_v10 = vld [vmem:[#allocation29_spill] sm:$0xff]  ;;  %v18957_v60 = vld [vmem:[#allocation42_spill] sm:$0xff] }
 0xad1   : > { %v11347_v1 = vsel %vm11331_vm8, %v11314_v20, %v11138_v30  ;;  %v11320_v23 = vsel %vm1154_vm4, %v18955_v10, %v17820_v25  ;;  %v18960_v25 = vld [vmem:[#allocation34_spill] sm:$0xff] }
 0xad2   : > { %v10913_v14 = vadd.f32 %v17634_v31, %v10877_v62  ;;  %v11380_v42 = vsel %vm11364_vm9, %v11347_v1, %v18938_v2  ;;  %v18958_v62 = vld [vmem:[#allocation30_spill] sm:$0xff] }
 0xad3   : > { %11413 = vst.msk [vmem:[%s17869_s10 + $0x78] sm:$0xff] %vm11397_vm10, %v11380_v42  ;;  %v11321_v30 = vsel %vm1154_vm4, %v18958_v62, %v18957_v60  ;;  %v11325_v42 = vsel %vm1154_vm4, %v18960_v25, %v17839_v57  ;;  %v18964_v57 = vld [vmem:[#allocation51_spill] sm:$0xff] }
 0xad4   : > { %v10945_v52 = vmax.f32 %v10913_v14, 0.0  ;;  %v18959_v14 = vld [vmem:[#allocation77_spill] sm:$0xff] }
 0xad5   : > { %v10567_v44 = vpop.f32.mrf.mxu2 }
 0xad6   : > { %v10601_v36 = vadd.f32 %v10567_v44, %v10324_v59  ;;  %11263 = vrot.lane.b32.xlu2 %v18939_v58, %s12836_s12  ;;  %11167 = vrot.lane.b32.xlu0 %v10945_v52, %s12838_s23  ;;  %v18961_v44 = vld [vmem:[#allocation75_spill] sm:$0xff]  ;;  %v11328_v58 = vsel %vm1154_vm4, %v18946_v33, %v17860_v39 }
 0xad8   : > { %v10878_v9 = vadd.f32 %v10844_v19, %v10601_v36  ;;  %v11140_v55 = vpop.permute.xlu1 %11139  ;;  %v18962_v36 = vld [vmem:[#allocation32_spill] sm:$0xff] }
 0xad9   : > { %v11348_v8 = vsel %vm11331_vm8, %v11315_v29, %v11140_v55  ;;  %v11323_v43 = vsel %vm1154_vm4, %v18962_v36, %v17835_v4  ;;  %v18967_v4 = vld [vmem:[#allocation35_spill] sm:$0xff] }
 0xada   : > { %v10914_v54 = vadd.f32 %v17634_v31, %v10878_v9  ;;  %v11381_v3 = vsel %vm11364_vm9, %v11348_v8, %v18942_v46  ;;  %v18963_v9 = vld [vmem:[#allocation73_spill] sm:$0xff] }
 0xadb   : > { %11414 = vst.msk [vmem:[%s17869_s10 + $0x80] sm:$0xff] %vm11397_vm10, %v11381_v3  ;;  %v18965_v8 = vld [vmem:[#allocation33_spill] sm:$0xff] }
 0xadc   : > { %v10946_v21 = vmax.f32 %v10914_v54, 0.0  ;;  %v11324_v54 = vsel %vm1154_vm4, %v18965_v8, %v18964_v57 }
 0xade   : > { %11265 = vrot.lane.b32.xlu0 %v18943_v6, %s12836_s12  ;;  %11169 = vrot.lane.b32.xlu1 %v10946_v21, %s12838_s23  ;;  %v18966_v21 = vld [vmem:[#allocation74_spill] sm:$0xff] }
 0xae0   : > { %v11148_v41 = vpop.permute.xlu2 %11147 }
 0xae1   : > { %v11352_v31 = vsel %vm11331_vm8, %v11319_v11, %v11148_v41  ;;  %v11326_v11 = vsel %vm1154_vm4, %v18967_v4, %v17855_v15 }
 0xae2   : > { %v11385_v24 = vsel %vm11364_vm9, %v11352_v31, %v18945_v45  ;;  %v18968_v45 = vld [vmem:[#allocation71_spill] sm:$0xff] }
 0xae3   : > { %11418 = vst.msk [vmem:[%s17869_s10 + $0xa0] sm:$0xff] %vm11397_vm10, %v11385_v24 }
 0xae6   : > { %11261 = vrot.lane.b32.xlu1 %v18946_v33, %s12836_s12  ;;  %s12700_s12 = sshll.u32 %s12906_s9, 8  ;;  %s11443_s9 = sshll.u32 %s17869_s10, 4  ;;  %s11444_s9 = int_to_ptr.vmem [resolvable:$true] %s11443_s9 }
 0xae7   : > { %s11442_s18 = scalar_lea.hbm %s18226_s8, %s12700_s12  ;;  %s12788_s12 = scalar_lea.hbm %s18226_s8, 512 }
 0xae8   : > { %v11144_v51 = vpop.permute.xlu0 %11143  ;;  %s11445_s19 = sshll.u32 %s11442_s18, 4  ;;  %s11446_s19 = int_to_ptr.hbm [resolvable:$true] %s11445_s19 }
 0xae9   : > { %v11350_v49 = vsel %vm11331_vm8, %v11317_v38, %v11144_v51  ;;  %v11327_v38 = vsel %vm1154_vm4, %v18970_v61, %v18969_v48  ;;  %s12782_s21 = sshra.s32 %s11446_s19, 4  ;;  %s12783_s21 = int_to_ptr.hbm [resolvable:$true] %s12782_s21 }
 0xaea   : > { %v11383_v47 = vsel %vm11364_vm9, %v11350_v49, %v18949_v26  ;;  %v18971_v26 = vld [vmem:[#allocation78_spill] sm:$0xff]  ;;  %s12784_s22 = scalar_lea.hbm %s12783_s21, 256  ;;  %p12789_p0 = scmp.lt.s32.totalorder %s12783_s21, %s18226_s8 }
 0xaeb   : > { %11416 = vst.msk [vmem:[%s17869_s10 + $0x90] sm:$0xff] %vm11397_vm10, %v11383_v47  ;;  %p12785_p11 = scmp.ne.s32.totalorder %s12783_s21, %s12784_s22  ;;  %p12790_p1 = scmp.lt.s32.totalorder %s12788_s12, %s12784_s22 }
 0xaed   : > { %p12786_p12 = pnand %p12785_p11, %p12923_p5  ;;  %p12791_p2 = por %p12790_p1, %p12789_p0 }
 0xaef   : > { %p12787_p13 = pneg %p12786_p12 }
 0xaf0   : > { %v11146_v5 = vpop.permute.xlu1 %11145 }
 0xaf1   : > { %v11351_v17 = vsel %vm11331_vm8, %v11318_v50, %v11146_v5  ;;  %p12792_p3 = pnand %p12791_p2, %p12787_p13 }
 0xaf2   : > { %v11384_v56 = vsel %vm11364_vm9, %v11351_v17, %v18952_v12  ;;  %v18972_v12 = vld [vmem:[#allocation87_spill] sm:$0xff] }
 0xaf3   : > { %11417 = vst.msk [vmem:[%s17869_s10 + $0x98] sm:$0xff] %vm11397_vm10, %v11384_v56  ;;  %v11330_v56 = vsel %vm1154_vm4, %v18943_v6, %v18972_v12 }
 0xaf8   : > { %v11154_v13 = vpop.permute.xlu2 %11153 }
 0xaf9   : > { %v11355_v28 = vsel %vm11331_vm8, %v11322_v53, %v11154_v13 }
 0xafa   : > { %v11388_v18 = vsel %vm11364_vm9, %v11355_v28, %v18954_v35 }
 0xafb   : > { %11421 = vst.msk [vmem:[%s17869_s10 + $0xb8] sm:$0xff] %vm11397_vm10, %v11388_v18 }
 0xb00   : > { %v11150_v7 = vpop.permute.xlu0 %11149 }
 0xb01   : > { %v11353_v20 = vsel %vm11331_vm8, %v11320_v23, %v11150_v7 }
 0xb02   : > { %v11386_v63 = vsel %vm11364_vm9, %v11353_v20, %v18956_v37 }
 0xb03   : > { %11419 = vst.msk [vmem:[%s17869_s10 + $0xa8] sm:$0xff] %vm11397_vm10, %v11386_v63 }
 0xb08   : > { %v11152_v32 = vpop.permute.xlu1 %11151 }
 0xb09   : > { %v11354_v1 = vsel %vm11331_vm8, %v11321_v30, %v11152_v32 }
 0xb0a   : > { %v11387_v2 = vsel %vm11364_vm9, %v11354_v1, %v18959_v14 }
 0xb0b   : > { %11420 = vst.msk [vmem:[%s17869_s10 + $0xb0] sm:$0xff] %vm11397_vm10, %v11387_v2 }
 0xb10   : > { %v11160_v59 = vpop.permute.xlu2 %11159 }
 0xb11   : > { %v11358_v52 = vsel %vm11331_vm8, %v11325_v42, %v11160_v59 }
 0xb12   : > { %v11391_v19 = vsel %vm11364_vm9, %v11358_v52, %v18961_v44 }
 0xb13   : > { %11424 = vst.msk [vmem:[%s17869_s10 + $0xd0] sm:$0xff] %vm11397_vm10, %v11391_v19 }
 0xb18   : > { %v11156_v16 = vpop.permute.xlu0 %11155 }
 0xb19   : > { %v11356_v29 = vsel %vm11331_vm8, %v11323_v43, %v11156_v16 }
 0xb1a   : > { %v11389_v55 = vsel %vm11364_vm9, %v11356_v29, %v18963_v9 }
 0xb1b   : > { %11422 = vst.msk [vmem:[%s17869_s10 + $0xc0] sm:$0xff] %vm11397_vm10, %v11389_v55 }
 0xb20   : > { %v11158_v46 = vpop.permute.xlu1 %11157 }
 0xb21   : > { %v11357_v3 = vsel %vm11331_vm8, %v11324_v54, %v11158_v46 }
 0xb22   : > { %v11390_v27 = vsel %vm11364_vm9, %v11357_v3, %v18966_v21 }
 0xb23   : > { %11423 = vst.msk [vmem:[%s17869_s10 + $0xc8] sm:$0xff] %vm11397_vm10, %v11390_v27 }
 0xb28   : > { %v11166_v47 = vpop.permute.xlu2 %11165 }
 0xb29   : > { %v11361_v6 = vsel %vm11331_vm8, %v11328_v58, %v11166_v47 }
 0xb30   : > { %v11162_v41 = vpop.permute.xlu0 %11161  ;;  %v11264_v50 = vpop.permute.xlu2 %11263 }
 0xb31   : > { %v11359_v31 = vsel %vm11331_vm8, %v11326_v11, %v11162_v41 }
 0xb32   : > { %v11392_v24 = vsel %vm11364_vm9, %v11359_v31, %v18968_v45 }
 0xb33   : > { %11425 = vst.msk [vmem:[%s17869_s10 + $0xd8] sm:$0xff] %vm11397_vm10, %v11392_v24 }
 0xb38   : > { %v11164_v51 = vpop.permute.xlu1 %11163 }
 0xb39   : > { %v11360_v49 = vsel %vm11331_vm8, %v11327_v38, %v11164_v51 }
 0xb3a   : > { %v11393_v15 = vsel %vm11364_vm9, %v11360_v49, %v18971_v26 }
 0xb3b   : > { %11426 = vst.msk [vmem:[%s17869_s10 + $0xe0] sm:$0xff] %vm11397_vm10, %v11393_v15 }
 0xb48   : > { %v11168_v0 = vpop.permute.xlu0 %11167 }
 0xb49   : > { %v11362_v5 = vsel %vm11331_vm8, %v11329_v40, %v11168_v0 }
 0xb4a   : > { %v11395_v17 = vsel %vm11364_vm9, %v11362_v5, %v11264_v50 }
 0xb4b   : > { %11428 = vst.msk [vmem:[%s17869_s10 + $0xf0] sm:$0xff] %vm11397_vm10, %v11395_v17 }
 0xb50   : > { %v11266_v34 = vpop.permute.xlu0 %11265  ;;  %v11170_v53 = vpop.permute.xlu1 %11169 }
 0xb51   : > { %v11363_v13 = vsel %vm11331_vm8, %v11330_v56, %v11170_v53 }
 0xb52   : > { %v11396_v22 = vsel %vm11364_vm9, %v11363_v13, %v11266_v34 }
 0xb53   : > { %11429 = vst.msk [vmem:[%s17869_s10 + $0xf8] sm:$0xff] %vm11397_vm10, %v11396_v22 }
 0xb58   : > { %v11262_v28 = vpop.permute.xlu1 %11261 }
 0xb59   : > { %v11394_v35 = vsel %vm11364_vm9, %v11361_v6, %v11262_v28 }
 0xb5a   : > { %11427 = vst.msk [vmem:[%s17869_s10 + $0xe8] sm:$0xff] %vm11397_vm10, %v11394_v35 }
 0xb5b   : > { %12795 = shalt.err (!%p12792_p3)
}
 0xb5c   : > { %s12839_s24 = smov 128  }
 0xb5d   : > { %12701 = dma.vmem_to_hbm [thread:$0]  (%p12923_p5), %s11444_s9, 4096, %s11446_s19, %s11431_s20, %s12839_s24, %s12839_s24, %s12837_s25  }
 0xb5e PF: > { %p12707_p4 = scmp.ge.s32.totalorder %s12830_s30, 2  ;;  %s11460_s10 = sand.u32 1, %s12818_s27  }
 0xb5f   : > { %s11461_s18 = scalar_lea.sflag [#allocation6], %s11460_s10 }
 0xb60   : > { %p12704_p7 = pnand %p12707_p4, %p12927_p6 }
 0xb62   : > { %p12705_p8 = pneg %p12704_p7 }
 0xb64   : > { %12813 = dma.done.wait (%p12705_p8), %s11461_s18, 4096  }
 0xb65   : > { %12815 = vsyncadd (%p12705_p8), %s11461_s18, 4294963200  ;;  %p18_p9 = scmp.ge.s32.totalorder %s12910_s11, 4   ;;  %s18973_s27 = smov %s12822_s28 }
 0xb66   : > { %s18974_s28 = smov %s12826_s29  ;;  %s18975_s29 = smov %s12921_s14 }
 0xb67   : > { %s18976_s30 = smov %s12910_s11  ;;  %20 = sbr.rel (!%p18_p9) target bundleno = 3 (0x3), region = 97 }
 0xb6c   :  { %11467 = vsyncpa [#allocation6], 1 }
 0xb6d   :  { %11469 = vsyncpa [#allocation6 + $0x1], 1 }

</bundles_post_ra>
